<compile_context>
chip_gen: v7x
topology: tpu7x:2x2x1
jax: 0.10.0
libtpu: 0.0.40
codegen_flags: <defaults>
</compile_context>

<pallas_src>
import functools

import jax
import jax.numpy as jnp
from jax.experimental import pallas as pl
from jax.experimental.pallas import tpu as pltpu


def _round_up(x, m):
    return ((x + m - 1) // m) * m


def _vmem_limit_bytes(footprint):
    # Guard the single-block (gridless) layers against batch scaling.
    assert footprint <= 28 * 1024 * 1024, (
        f"single-block layer VMEM footprint too large ({footprint / 2**20:.1f} "
        "MiB); add an M-grid before scaling the batch")
    return int(min(max(2 * footprint, 16 << 20) + (2 << 20), 64 << 20))


# ----------------------------------------------------------------------------
# Kernels
# ----------------------------------------------------------------------------

def _matmul_bn_relu_kernel(a_ref, b_ref, gamma_ref, beta_ref, o_ref, acc_ref,
                           *, m_true, ch_w, row_tile):
    """C = A @ B (bf16 MXU, f32 accumulate into VMEM scratch) with training-mode
    BatchNorm + ReLU fused while the whole layer output is VMEM-resident.

    Column layout of B / C: `c // ch_w` replicas (spatial position or convT
    output phase) of a `ch_w`-wide channel block.  gamma/beta arrive at width
    sw = max(ch_w, 128) (pre-tiled by the wrapper when ch_w < 128), so every
    in-kernel slice / concat is 128-lane aligned; sub-group replicas are folded
    with a lane roll.  Statistics are f32 (v5e-safe: only MXU operands bf16).
    """
    mp, c = acc_ref.shape
    sw = gamma_ref.shape[1]            # = max(ch_w, 128)
    n_fold = c // sw                   # 128-aligned lane-group replicas
    n_rep = c // ch_w                  # total replicas of each channel
    n_tiles = mp // row_tile

    # 1) MXU matmul, staged to an explicit f32 VMEM scratch (bounds vreg
    #    pressure for the multi-pass BN epilogue).
    acc_ref[...] = jnp.dot(a_ref[...], b_ref[...],
                           preferred_element_type=jnp.float32)

    def _fold(v):                      # (1, c) -> per-channel value, width sw
        f = v[:, :sw]
        for g in range(1, n_fold):     # 128-aligned group slices
            f = f + v[:, g * sw:(g + 1) * sw]
        w = ch_w
        while w < sw:                  # intra-group fold (ch_w < 128): lane roll
            f = f + pltpu.roll(f, shift=w, axis=1)
            w *= 2
        return f                       # replicated per-channel across sw lanes

    def _tile(v):                      # (1, sw) -> (1, c), 128-aligned concat
        return jnp.concatenate([v] * n_fold, axis=1) if n_fold > 1 else v

    # 2) Per-column sums, row-tiled (padded rows of A are zero -> contribute 0).
    def _sum_body(t, s):
        r = pl.multiple_of(t * row_tile, row_tile)
        return s + jnp.sum(acc_ref[pl.ds(r, row_tile), :], axis=0, keepdims=True)
    col_sum = jax.lax.fori_loop(0, n_tiles, _sum_body,
                                jnp.zeros((1, c), jnp.float32))
    cnt = float(m_true * n_rep)
    mean = _fold(col_sum) / cnt                      # (1, sw)
    mean_full = _tile(mean)                          # (1, c)

    # 3) Centered sum of squares (numerically safer than E[x^2] - mean^2).
    #    Padded rows hold 0, not the mean, so mask them out (layer 1 only).
    def _sq_body(t, sq):
        r = pl.multiple_of(t * row_tile, row_tile)
        d = acc_ref[pl.ds(r, row_tile), :] - mean_full
        if m_true < mp:
            row = r + jax.lax.broadcasted_iota(jnp.int32, (row_tile, 1), 0)
            d = jnp.where(row < m_true, d, 0.0)
        return sq + jnp.sum(d * d, axis=0, keepdims=True)
    col_sq = jax.lax.fori_loop(0, n_tiles, _sq_body,
                               jnp.zeros((1, c), jnp.float32))
    var = _fold(col_sq) / cnt                        # biased (training-mode BN)
    inv = jax.lax.rsqrt(var + 1e-5)
    scale = inv * gamma_ref[...]
    shift = beta_ref[...] - mean * scale
    scale_full = _tile(scale)
    shift_full = _tile(shift)

    # 4) Normalize + ReLU, lane-dense row-tiled stores from scratch.
    def _out_body(t, carry):
        r = pl.multiple_of(t * row_tile, row_tile)
        y = acc_ref[pl.ds(r, row_tile), :] * scale_full + shift_full
        o_ref[pl.ds(r, row_tile), :] = jnp.maximum(y, 0.0).astype(o_ref.dtype)
        return carry
    jax.lax.fori_loop(0, n_tiles, _out_body, 0)


def _matmul_sigmoid_kernel(a_ref, b_ref, o_ref):
    acc = jnp.dot(a_ref[...], b_ref[...], preferred_element_type=jnp.float32)
    o_ref[...] = jax.nn.sigmoid(acc).astype(o_ref.dtype)


# ----------------------------------------------------------------------------
# pallas_call wrappers
# ----------------------------------------------------------------------------

def _fused_matmul_bn_relu(a, b, gamma, beta, *, ch_w, out_dtype=jnp.bfloat16):
    """Single-launch fused (matmul + BN + ReLU) layer; whole-array in VMEM."""
    m, k = a.shape
    kp, c = b.shape
    assert c % 128 == 0 and c % ch_w == 0
    assert gamma.shape == (1, max(ch_w, 128)) and beta.shape == gamma.shape
    mp = _round_up(m, 16)
    a = jnp.pad(a.astype(jnp.bfloat16), ((0, mp - m), (0, kp - k)))

    kernel = functools.partial(_matmul_bn_relu_kernel, m_true=m, ch_w=ch_w,
                               row_tile=8)
    vmem = pl.BlockSpec(memory_space=pltpu.MemorySpace.VMEM)
    footprint = (mp * kp * 2 + kp * c * 2           # A, B (bf16)
                 + mp * c * (2 + 4)                 # out (bf16) + acc scratch (f32)
                 + 2 * 4 * gamma.shape[1])          # gamma, beta
    out = pl.pallas_call(
        kernel,
        out_shape=jax.ShapeDtypeStruct((mp, c), out_dtype),
        in_specs=[vmem, vmem, vmem, vmem],
        out_specs=vmem,
        scratch_shapes=[pltpu.VMEM((mp, c), jnp.float32)],
        compiler_params=pltpu.CompilerParams(
            vmem_limit_bytes=_vmem_limit_bytes(footprint)),
    )(a, b, gamma, beta)
    return out[:m] if mp != m else out


def _matmul_sigmoid(a, b):
    """Final layer: bf16 matmul + fused sigmoid, M-gridded (parallel) so it is
    pipelined, VMEM-bounded, and uses both TensorCores on v7x."""
    m, k = a.shape
    kp, c = b.shape
    mp = _round_up(m, 16)
    a = jnp.pad(a.astype(jnp.bfloat16), ((0, mp - m), (0, kp - k)))
    bm = 128 if mp % 128 == 0 else mp
    footprint = 2 * (bm * kp * 2 + bm * c * 4 + kp * c * 2)   # double-buffered
    out = pl.pallas_call(
        _matmul_sigmoid_kernel,
        grid=(mp // bm,),
        in_specs=[pl.BlockSpec((bm, kp), lambda i: (i, 0)),
                  pl.BlockSpec((kp, c), lambda i: (0, 0))],
        out_specs=pl.BlockSpec((bm, c), lambda i: (i, 0)),
        out_shape=jax.ShapeDtypeStruct((mp, c), jnp.float32),
        compiler_params=pltpu.CompilerParams(
            dimension_semantics=("parallel",),
            vmem_limit_bytes=_vmem_limit_bytes(footprint)),
    )(a, b)
    return out[:m] if mp != m else out


# ----------------------------------------------------------------------------
# Plain-JAX glue: im2col / phase interleave (index plumbing only, bf16)
# ----------------------------------------------------------------------------
# TODO(synk): fold the interleave + im2col of consecutive layers into one
# gather (or into the kernel) to remove the extra HBM passes at layer edges.

def _im2col_3x3(x):
    """x: (N, H, W, C) -> (N*H*W, 9*C) patches of a 3x3/stride-1/pad-1 window,
    tap-major / channel-minor columns."""
    n, h, w, c = x.shape
    xp = jnp.pad(x, ((0, 0), (1, 1), (1, 1), (0, 0)))
    cols = [xp[:, i:i + h, j:j + w, :] for i in range(3) for j in range(3)]
    patches = jnp.stack(cols, axis=3)                          # (N, H, W, 9, C)
    return patches.reshape(n * h * w, 9 * c)


def _interleave_phases(out, n, h, w, cout):
    """(N*H*W, 4*cout) phase-major columns -> (N, 2H, 2W, Cout)."""
    out = out.reshape(n, h, w, 2, 2, cout)
    return out.transpose(0, 1, 3, 2, 4, 5).reshape(n, 2 * h, 2 * w, cout)


# ----------------------------------------------------------------------------
# Weight re-layout (done ONCE, outside the jitted forward)
# ----------------------------------------------------------------------------

def _conv3x3_weight(w):
    """Conv2d weight (Cout, Cin, 3, 3) -> (9*Cin, Cout), im2col tap order."""
    cout, cin = w.shape[:2]
    return w.transpose(2, 3, 1, 0).reshape(9 * cin, cout)


def _convT_phase_blocks(w_t):
    """ConvTranspose2d(k=4, s=2, p=1) weight (Cin, Cout, 4, 4) -> 4 blocks of
    shape (9*Cin, Cout), one per output phase (r, c): each phase only needs the
    3x3 input taps around its output pixel (no zero-insertion upsampling)."""
    cin, cout = w_t.shape[:2]
    blocks = []
    for r in (0, 1):
        for c in (0, 1):
            taps = []
            for th in range(3):
                for tw in range(3):
                    kh, kw = 3 + r - 2 * th, 3 + c - 2 * tw
                    if 0 <= kh < 4 and 0 <= kw < 4:
                        taps.append(w_t[:, :, kh, kw])
                    else:
                        taps.append(jnp.zeros((cin, cout), w_t.dtype))
            blocks.append(jnp.concatenate(taps, axis=0))        # (9*Cin, Cout)
    return blocks


def init_params(key):
    ks = jax.random.split(key, 5)
    std = 0.02  # DCGAN-style init
    p = {
        "w1": jax.random.normal(ks[0], (100, 256, 4, 4), jnp.float32) * std,
        "w2": jax.random.normal(ks[1], (256, 256, 3, 3), jnp.float32) * std,
        "w3": jax.random.normal(ks[2], (256, 128, 4, 4), jnp.float32) * std,
        "w4": jax.random.normal(ks[3], (128, 64, 4, 4), jnp.float32) * std,
        "w5": jax.random.normal(ks[4], (64, 3, 4, 4), jnp.float32) * std,
    }
    for name, c in (("bn1", 256), ("bn2", 256), ("bn3", 128), ("bn4", 64)):
        p[name + "_g"] = jnp.ones((1, c), jnp.float32)
        p[name + "_b"] = jnp.zeros((1, c), jnp.float32)
    return p


def prepare_params(p):
    """One-time re-layout into MXU-ready bf16 B matrices and lane-aligned BN
    vectors, so the jitted forward does no per-call weight plumbing."""
    bf = jnp.bfloat16
    prep = {}
    # 1) ConvTranspose2d(100,256,4,1,0) on a 1x1 map: columns = (position, ch).
    b1 = p["w1"].transpose(0, 2, 3, 1).reshape(100, 16 * 256)
    prep["b1"] = jnp.pad(b1, ((0, 28), (0, 0))).astype(bf)          # (128, 4096)
    prep["g1"], prep["bt1"] = p["bn1_g"], p["bn1_b"]                # (1, 256)
    # 2) Conv2d(256,256,3,1,1)
    prep["b2"] = _conv3x3_weight(p["w2"]).astype(bf)                # (2304, 256)
    prep["g2"], prep["bt2"] = p["bn2_g"], p["bn2_b"]
    # 3) ConvTranspose2d(256,128,4,2,1): 4 phases x 128 ch -> 4 lane groups.
    prep["b3"] = jnp.concatenate(_convT_phase_blocks(p["w3"]), axis=1).astype(bf)
    prep["g3"], prep["bt3"] = p["bn3_g"], p["bn3_b"]                # (1, 128)
    # 4) ConvTranspose2d(128,64,4,2,1): phases packed channel-tight, 2 per
    #    128-lane group; gamma/beta pre-tiled to lane-group width.
    prep["b4"] = jnp.concatenate(_convT_phase_blocks(p["w4"]), axis=1).astype(bf)
    prep["g4"] = jnp.tile(p["bn4_g"], (1, 2))                       # (1, 128)
    prep["bt4"] = jnp.tile(p["bn4_b"], (1, 2))
    # 5) ConvTranspose2d(64,3,4,2,1): all 4 phases x 3 ch in ONE 128-lane group.
    b5 = jnp.concatenate(_convT_phase_blocks(p["w5"]), axis=1)      # (576, 12)
    prep["b5"] = jnp.pad(b5, ((0, 64), (0, 116))).astype(bf)        # (640, 128)
    return prep


# ----------------------------------------------------------------------------
# Generator forward
# ----------------------------------------------------------------------------

@jax.jit
def generator_forward(prep, z_nchw):
    """z: (N, 100, 1, 1) -> image (N, 3, 32, 32); matches the PyTorch Generator
    run in train() mode (batch-statistics BatchNorm), up to bf16 MXU rounding."""
    n = z_nchw.shape[0]
    z = z_nchw.reshape(n, 100)

    # ConvTranspose2d(100,256,4,1,0) + BN + ReLU  -> (N, 4, 4, 256)
    x = _fused_matmul_bn_relu(z, prep["b1"], prep["g1"], prep["bt1"], ch_w=256)
    x = x.reshape(n, 4, 4, 256)
    # Conv2d(256,256,3,1,1) + BN + ReLU           -> (N, 4, 4, 256)
    x = _fused_matmul_bn_relu(_im2col_3x3(x), prep["b2"], prep["g2"],
                              prep["bt2"], ch_w=256).reshape(n, 4, 4, 256)
    # ConvTranspose2d(256,128,4,2,1) + BN + ReLU  -> (N, 8, 8, 128)
    x = _fused_matmul_bn_relu(_im2col_3x3(x), prep["b3"], prep["g3"],
                              prep["bt3"], ch_w=128)
    x = _interleave_phases(x, n, 4, 4, 128)
    # ConvTranspose2d(128,64,4,2,1) + BN + ReLU   -> (N, 16, 16, 64)
    x = _fused_matmul_bn_relu(_im2col_3x3(x), prep["b4"], prep["g4"],
                              prep["bt4"], ch_w=64)
    x = _interleave_phases(x, n, 8, 8, 64)
    # ConvTranspose2d(64,3,4,2,1) + Sigmoid       -> (N, 32, 32, 3)
    y = _matmul_sigmoid(_im2col_3x3(x), prep["b5"])     # (N*256, 128) f32
    img = _interleave_phases(y[:, :12], n, 16, 16, 3)
    return img.transpose(0, 3, 1, 2)                    # NCHW, float32


if __name__ == "__main__":
    key = jax.random.PRNGKey(0)
    pkey, zkey = jax.random.split(key)
    params = prepare_params(init_params(pkey))
    z = jax.random.normal(zkey, (2, 100, 1, 1), jnp.float32)

    out = jax.block_until_ready(generator_forward(params, z))

    assert out.shape == (2, 3, 32, 32), out.shape
    assert out.dtype == jnp.float32
    assert bool(jnp.all(jnp.isfinite(out)))
    assert bool(jnp.all((out >= 0.0) & (out <= 1.0)))   # sigmoid range
    print("KERNEL_OK")
</pallas_src>

<mosaic_0001>
module attributes {stable_mosaic.version = 11 : i64} {
  func.func @_matmul_bn_relu_kernel(%arg0: memref<16x128xbf16, #tpu.memory_space<vmem>>, %arg1: memref<128x4096xbf16, #tpu.memory_space<vmem>>, %arg2: memref<1x256xf32, #tpu.memory_space<vmem>>, %arg3: memref<1x256xf32, #tpu.memory_space<vmem>>, %arg4: memref<16x4096xbf16, #tpu.memory_space<vmem>>, %arg5: memref<16x4096xf32, #tpu.memory_space<vmem>>) attributes {dimension_semantics = [], scalar_prefetch = 0 : i64, scratch_operands = 1 : i64, tpu.core_type = #tpu.core_type<tc>} {
    %c0 = arith.constant 0 : index
    %c0_0 = arith.constant 0 : index
    %0 = vector.load %arg0[%c0, %c0_0] : memref<16x128xbf16, #tpu.memory_space<vmem>>, vector<16x128xbf16>
    %c0_1 = arith.constant 0 : index
    %c0_2 = arith.constant 0 : index
    %1 = vector.load %arg1[%c0_1, %c0_2] : memref<128x4096xbf16, #tpu.memory_space<vmem>>, vector<128x4096xbf16>
    %cst = arith.constant dense<0.000000e+00> : vector<16x4096xf32>
    %2 = tpu.matmul %0, %1, %cst {dimension_numbers = #tpu.dot_dimension_numbers<[1], [0], [0], [1], [0, 0, 1, 1], [], []>} : vector<16x128xbf16>, vector<128x4096xbf16>, vector<16x4096xf32> -> vector<16x4096xf32>
    %c0_3 = arith.constant 0 : index
    %c0_4 = arith.constant 0 : index
    %3 = vector.load %arg5[%c0_3, %c0_4] : memref<16x4096xf32, #tpu.memory_space<vmem>>, vector<16x4096xf32>
    tpu.vector_store %arg5[%c0_3, %c0_4], %2 {strides = array<i32>} : memref<16x4096xf32, #tpu.memory_space<vmem>>, vector<16x4096xf32>,
    %cst_5 = arith.constant 0.000000e+00 : f32
    %4 = vector.broadcast %cst_5 : f32 to vector<1x4096xf32>
    %c0_i32 = arith.constant 0 : i32
    %c2_i32 = arith.constant 2 : i32
    %5 = arith.addi %c0_i32, %c2_i32 : i32
    %c1_i32 = arith.constant 1 : i32
    %6 = scf.for %arg6 = %c0_i32 to %5 step %c1_i32 iter_args(%arg7 = %4) -> (vector<1x4096xf32>)  : i32 {
      %c8_i32 = arith.constant 8 : i32
      %88 = arith.muli %arg6, %c8_i32 : i32
      %89 = tpu.assume_multiple %88, 8 : i32
      %90 = arith.index_cast %89 : i32 to index
      %c0_23 = arith.constant 0 : index
      %91 = vector.load %arg5[%90, %c0_23] : memref<16x4096xf32, #tpu.memory_space<vmem>>, vector<8x4096xf32>
      %cst_24 = arith.constant dense<0.000000e+00> : vector<4096xf32>
      %92 = vector.multi_reduction <add>, %91, %cst_24 [0] : vector<8x4096xf32> to vector<4096xf32>
      %93 = vector.shape_cast %92 : vector<4096xf32> to vector<1x4096xf32>
      %94 = arith.addf %arg7, %93 : vector<1x4096xf32>
      scf.yield %94 : vector<1x4096xf32>
    }
    %c2_i32_6 = arith.constant 2 : i32
    %7 = vector.extract_strided_slice %6 {offsets = [0, 0], sizes = [1, 256], strides = [1, 1]} : vector<1x4096xf32> to vector<1x256xf32>
    %8 = vector.extract_strided_slice %6 {offsets = [0, 256], sizes = [1, 256], strides = [1, 1]} : vector<1x4096xf32> to vector<1x256xf32>
    %9 = arith.addf %7, %8 : vector<1x256xf32>
    %10 = vector.extract_strided_slice %6 {offsets = [0, 512], sizes = [1, 256], strides = [1, 1]} : vector<1x4096xf32> to vector<1x256xf32>
    %11 = arith.addf %9, %10 : vector<1x256xf32>
    %12 = vector.extract_strided_slice %6 {offsets = [0, 768], sizes = [1, 256], strides = [1, 1]} : vector<1x4096xf32> to vector<1x256xf32>
    %13 = arith.addf %11, %12 : vector<1x256xf32>
    %14 = vector.extract_strided_slice %6 {offsets = [0, 1024], sizes = [1, 256], strides = [1, 1]} : vector<1x4096xf32> to vector<1x256xf32>
    %15 = arith.addf %13, %14 : vector<1x256xf32>
    %16 = vector.extract_strided_slice %6 {offsets = [0, 1280], sizes = [1, 256], strides = [1, 1]} : vector<1x4096xf32> to vector<1x256xf32>
    %17 = arith.addf %15, %16 : vector<1x256xf32>
    %18 = vector.extract_strided_slice %6 {offsets = [0, 1536], sizes = [1, 256], strides = [1, 1]} : vector<1x4096xf32> to vector<1x256xf32>
    %19 = arith.addf %17, %18 : vector<1x256xf32>
    %20 = vector.extract_strided_slice %6 {offsets = [0, 1792], sizes = [1, 256], strides = [1, 1]} : vector<1x4096xf32> to vector<1x256xf32>
    %21 = arith.addf %19, %20 : vector<1x256xf32>
    %22 = vector.extract_strided_slice %6 {offsets = [0, 2048], sizes = [1, 256], strides = [1, 1]} : vector<1x4096xf32> to vector<1x256xf32>
    %23 = arith.addf %21, %22 : vector<1x256xf32>
    %24 = vector.extract_strided_slice %6 {offsets = [0, 2304], sizes = [1, 256], strides = [1, 1]} : vector<1x4096xf32> to vector<1x256xf32>
    %25 = arith.addf %23, %24 : vector<1x256xf32>
    %26 = vector.extract_strided_slice %6 {offsets = [0, 2560], sizes = [1, 256], strides = [1, 1]} : vector<1x4096xf32> to vector<1x256xf32>
    %27 = arith.addf %25, %26 : vector<1x256xf32>
    %28 = vector.extract_strided_slice %6 {offsets = [0, 2816], sizes = [1, 256], strides = [1, 1]} : vector<1x4096xf32> to vector<1x256xf32>
    %29 = arith.addf %27, %28 : vector<1x256xf32>
    %30 = vector.extract_strided_slice %6 {offsets = [0, 3072], sizes = [1, 256], strides = [1, 1]} : vector<1x4096xf32> to vector<1x256xf32>
    %31 = arith.addf %29, %30 : vector<1x256xf32>
    %32 = vector.extract_strided_slice %6 {offsets = [0, 3328], sizes = [1, 256], strides = [1, 1]} : vector<1x4096xf32> to vector<1x256xf32>
    %33 = arith.addf %31, %32 : vector<1x256xf32>
    %34 = vector.extract_strided_slice %6 {offsets = [0, 3584], sizes = [1, 256], strides = [1, 1]} : vector<1x4096xf32> to vector<1x256xf32>
    %35 = arith.addf %33, %34 : vector<1x256xf32>
    %36 = vector.extract_strided_slice %6 {offsets = [0, 3840], sizes = [1, 256], strides = [1, 1]} : vector<1x4096xf32> to vector<1x256xf32>
    %37 = arith.addf %35, %36 : vector<1x256xf32>
    %cst_7 = arith.constant 3.200000e+01 : f32
    %38 = vector.broadcast %cst_7 : f32 to vector<1x256xf32>
    %39 = arith.divf %37, %38 : vector<1x256xf32>
    %40 = tpu.concatenate %39, %39, %39, %39, %39, %39, %39, %39, %39, %39, %39, %39, %39, %39, %39, %39 in 1 : vector<1x256xf32>, vector<1x256xf32>, vector<1x256xf32>, vector<1x256xf32>, vector<1x256xf32>, vector<1x256xf32>, vector<1x256xf32>, vector<1x256xf32>, vector<1x256xf32>, vector<1x256xf32>, vector<1x256xf32>, vector<1x256xf32>, vector<1x256xf32>, vector<1x256xf32>, vector<1x256xf32>, vector<1x256xf32> -> vector<1x4096xf32>
    %cst_8 = arith.constant 0.000000e+00 : f32
    %41 = vector.broadcast %cst_8 : f32 to vector<1x4096xf32>
    %c0_i32_9 = arith.constant 0 : i32
    %c2_i32_10 = arith.constant 2 : i32
    %42 = arith.addi %c0_i32_9, %c2_i32_10 : i32
    %c1_i32_11 = arith.constant 1 : i32
    %43 = scf.for %arg6 = %c0_i32_9 to %42 step %c1_i32_11 iter_args(%arg7 = %41) -> (vector<1x4096xf32>)  : i32 {
      %c8_i32 = arith.constant 8 : i32
      %88 = arith.muli %arg6, %c8_i32 : i32
      %89 = tpu.assume_multiple %88, 8 : i32
      %90 = arith.index_cast %89 : i32 to index
      %c0_23 = arith.constant 0 : index
      %91 = vector.load %arg5[%90, %c0_23] : memref<16x4096xf32, #tpu.memory_space<vmem>>, vector<8x4096xf32>
      %92 = vector.broadcast %40 : vector<1x4096xf32> to vector<8x4096xf32>
      %93 = arith.subf %91, %92 : vector<8x4096xf32>
      %94 = tpu.iota {dimensions = array<i32: 0>} : vector<8x1xi32>
      %95 = vector.broadcast %89 : i32 to vector<8x1xi32>
      %96 = arith.addi %95, %94 : vector<8x1xi32>
      %c2_i32_24 = arith.constant 2 : i32
      %97 = vector.broadcast %c2_i32_24 : i32 to vector<8x1xi32>
      %98 = arith.cmpi slt, %96, %97 : vector<8x1xi32>
      %cst_25 = arith.constant 0.000000e+00 : f32
      %99 = vector.shape_cast %98 : vector<8x1xi1> to vector<8x1xi1>
      %100 = vector.broadcast %99 : vector<8x1xi1> to vector<8x4096xi1>
      %101 = vector.broadcast %cst_25 : f32 to vector<8x4096xf32>
      %102 = arith.select %100, %93, %101 : vector<8x4096xi1>, vector<8x4096xf32>
      %103 = arith.mulf %102, %102 : vector<8x4096xf32>
      %cst_26 = arith.constant dense<0.000000e+00> : vector<4096xf32>
      %104 = vector.multi_reduction <add>, %103, %cst_26 [0] : vector<8x4096xf32> to vector<4096xf32>
      %105 = vector.shape_cast %104 : vector<4096xf32> to vector<1x4096xf32>
      %106 = arith.addf %arg7, %105 : vector<1x4096xf32>
      scf.yield %106 : vector<1x4096xf32>
    }
    %c2_i32_12 = arith.constant 2 : i32
    %44 = vector.extract_strided_slice %43 {offsets = [0, 0], sizes = [1, 256], strides = [1, 1]} : vector<1x4096xf32> to vector<1x256xf32>
    %45 = vector.extract_strided_slice %43 {offsets = [0, 256], sizes = [1, 256], strides = [1, 1]} : vector<1x4096xf32> to vector<1x256xf32>
    %46 = arith.addf %44, %45 : vector<1x256xf32>
    %47 = vector.extract_strided_slice %43 {offsets = [0, 512], sizes = [1, 256], strides = [1, 1]} : vector<1x4096xf32> to vector<1x256xf32>
    %48 = arith.addf %46, %47 : vector<1x256xf32>
    %49 = vector.extract_strided_slice %43 {offsets = [0, 768], sizes = [1, 256], strides = [1, 1]} : vector<1x4096xf32> to vector<1x256xf32>
    %50 = arith.addf %48, %49 : vector<1x256xf32>
    %51 = vector.extract_strided_slice %43 {offsets = [0, 1024], sizes = [1, 256], strides = [1, 1]} : vector<1x4096xf32> to vector<1x256xf32>
    %52 = arith.addf %50, %51 : vector<1x256xf32>
    %53 = vector.extract_strided_slice %43 {offsets = [0, 1280], sizes = [1, 256], strides = [1, 1]} : vector<1x4096xf32> to vector<1x256xf32>
    %54 = arith.addf %52, %53 : vector<1x256xf32>
    %55 = vector.extract_strided_slice %43 {offsets = [0, 1536], sizes = [1, 256], strides = [1, 1]} : vector<1x4096xf32> to vector<1x256xf32>
    %56 = arith.addf %54, %55 : vector<1x256xf32>
    %57 = vector.extract_strided_slice %43 {offsets = [0, 1792], sizes = [1, 256], strides = [1, 1]} : vector<1x4096xf32> to vector<1x256xf32>
    %58 = arith.addf %56, %57 : vector<1x256xf32>
    %59 = vector.extract_strided_slice %43 {offsets = [0, 2048], sizes = [1, 256], strides = [1, 1]} : vector<1x4096xf32> to vector<1x256xf32>
    %60 = arith.addf %58, %59 : vector<1x256xf32>
    %61 = vector.extract_strided_slice %43 {offsets = [0, 2304], sizes = [1, 256], strides = [1, 1]} : vector<1x4096xf32> to vector<1x256xf32>
    %62 = arith.addf %60, %61 : vector<1x256xf32>
    %63 = vector.extract_strided_slice %43 {offsets = [0, 2560], sizes = [1, 256], strides = [1, 1]} : vector<1x4096xf32> to vector<1x256xf32>
    %64 = arith.addf %62, %63 : vector<1x256xf32>
    %65 = vector.extract_strided_slice %43 {offsets = [0, 2816], sizes = [1, 256], strides = [1, 1]} : vector<1x4096xf32> to vector<1x256xf32>
    %66 = arith.addf %64, %65 : vector<1x256xf32>
    %67 = vector.extract_strided_slice %43 {offsets = [0, 3072], sizes = [1, 256], strides = [1, 1]} : vector<1x4096xf32> to vector<1x256xf32>
    %68 = arith.addf %66, %67 : vector<1x256xf32>
    %69 = vector.extract_strided_slice %43 {offsets = [0, 3328], sizes = [1, 256], strides = [1, 1]} : vector<1x4096xf32> to vector<1x256xf32>
    %70 = arith.addf %68, %69 : vector<1x256xf32>
    %71 = vector.extract_strided_slice %43 {offsets = [0, 3584], sizes = [1, 256], strides = [1, 1]} : vector<1x4096xf32> to vector<1x256xf32>
    %72 = arith.addf %70, %71 : vector<1x256xf32>
    %73 = vector.extract_strided_slice %43 {offsets = [0, 3840], sizes = [1, 256], strides = [1, 1]} : vector<1x4096xf32> to vector<1x256xf32>
    %74 = arith.addf %72, %73 : vector<1x256xf32>
    %cst_13 = arith.constant 3.200000e+01 : f32
    %75 = vector.broadcast %cst_13 : f32 to vector<1x256xf32>
    %76 = arith.divf %74, %75 : vector<1x256xf32>
    %cst_14 = arith.constant 9.99999974E-6 : f32
    %77 = vector.broadcast %cst_14 : f32 to vector<1x256xf32>
    %78 = arith.addf %76, %77 : vector<1x256xf32>
    %79 = math.rsqrt %78 : vector<1x256xf32>
    %c0_15 = arith.constant 0 : index
    %c0_16 = arith.constant 0 : index
    %80 = vector.load %arg2[%c0_15, %c0_16] : memref<1x256xf32, #tpu.memory_space<vmem>>, vector<1x256xf32>
    %81 = arith.mulf %79, %80 : vector<1x256xf32>
    %c0_17 = arith.constant 0 : index
    %c0_18 = arith.constant 0 : index
    %82 = vector.load %arg3[%c0_17, %c0_18] : memref<1x256xf32, #tpu.memory_space<vmem>>, vector<1x256xf32>
    %83 = arith.mulf %39, %81 : vector<1x256xf32>
    %84 = arith.subf %82, %83 : vector<1x256xf32>
    %85 = tpu.concatenate %81, %81, %81, %81, %81, %81, %81, %81, %81, %81, %81, %81, %81, %81, %81, %81 in 1 : vector<1x256xf32>, vector<1x256xf32>, vector<1x256xf32>, vector<1x256xf32>, vector<1x256xf32>, vector<1x256xf32>, vector<1x256xf32>, vector<1x256xf32>, vector<1x256xf32>, vector<1x256xf32>, vector<1x256xf32>, vector<1x256xf32>, vector<1x256xf32>, vector<1x256xf32>, vector<1x256xf32>, vector<1x256xf32> -> vector<1x4096xf32>
    %86 = tpu.concatenate %84, %84, %84, %84, %84, %84, %84, %84, %84, %84, %84, %84, %84, %84, %84, %84 in 1 : vector<1x256xf32>, vector<1x256xf32>, vector<1x256xf32>, vector<1x256xf32>, vector<1x256xf32>, vector<1x256xf32>, vector<1x256xf32>, vector<1x256xf32>, vector<1x256xf32>, vector<1x256xf32>, vector<1x256xf32>, vector<1x256xf32>, vector<1x256xf32>, vector<1x256xf32>, vector<1x256xf32>, vector<1x256xf32> -> vector<1x4096xf32>
    %c0_i32_19 = arith.constant 0 : i32
    %c2_i32_20 = arith.constant 2 : i32
    %87 = arith.addi %c0_i32_19, %c2_i32_20 : i32
    %c1_i32_21 = arith.constant 1 : i32
    scf.for %arg6 = %c0_i32_19 to %87 step %c1_i32_21  : i32 {
      %c8_i32 = arith.constant 8 : i32
      %88 = arith.muli %arg6, %c8_i32 : i32
      %89 = tpu.assume_multiple %88, 8 : i32
      %90 = arith.index_cast %89 : i32 to index
      %c0_23 = arith.constant 0 : index
      %91 = vector.load %arg5[%90, %c0_23] : memref<16x4096xf32, #tpu.memory_space<vmem>>, vector<8x4096xf32>
      %92 = vector.broadcast %85 : vector<1x4096xf32> to vector<8x4096xf32>
      %93 = arith.mulf %91, %92 : vector<8x4096xf32>
      %94 = vector.broadcast %86 : vector<1x4096xf32> to vector<8x4096xf32>
      %95 = arith.addf %93, %94 : vector<8x4096xf32>
      %cst_24 = arith.constant 0.000000e+00 : f32
      %96 = vector.broadcast %cst_24 : f32 to vector<8x4096xf32>
      %97 = arith.maximumf %95, %96 : vector<8x4096xf32>
      %98 = arith.truncf %97 : vector<8x4096xf32> to vector<8x4096xbf16>
      %99 = arith.index_cast %89 : i32 to index
      %c0_25 = arith.constant 0 : index
      %100 = vector.load %arg4[%99, %c0_25] : memref<16x4096xbf16, #tpu.memory_space<vmem>>, vector<8x4096xbf16>
      tpu.vector_store %arg4[%99, %c0_25], %98 {strides = array<i32>} : memref<16x4096xbf16, #tpu.memory_space<vmem>>, vector<8x4096xbf16>,
    }
    %c2_i32_22 = arith.constant 2 : i32
    return
  }
}

module attributes {stable_mosaic.version = 11 : i64} {
  func.func @_matmul_bn_relu_kernel(%arg0: memref<32x2304xbf16, #tpu.memory_space<vmem>>, %arg1: memref<2304x256xbf16, #tpu.memory_space<vmem>>, %arg2: memref<1x256xf32, #tpu.memory_space<vmem>>, %arg3: memref<1x256xf32, #tpu.memory_space<vmem>>, %arg4: memref<32x256xbf16, #tpu.memory_space<vmem>>, %arg5: memref<32x256xf32, #tpu.memory_space<vmem>>) attributes {dimension_semantics = [], scalar_prefetch = 0 : i64, scratch_operands = 1 : i64, tpu.core_type = #tpu.core_type<tc>} {
    %c0 = arith.constant 0 : index
    %c0_0 = arith.constant 0 : index
    %0 = vector.load %arg0[%c0, %c0_0] : memref<32x2304xbf16, #tpu.memory_space<vmem>>, vector<32x2304xbf16>
    %c0_1 = arith.constant 0 : index
    %c0_2 = arith.constant 0 : index
    %1 = vector.load %arg1[%c0_1, %c0_2] : memref<2304x256xbf16, #tpu.memory_space<vmem>>, vector<2304x256xbf16>
    %cst = arith.constant dense<0.000000e+00> : vector<32x256xf32>
    %2 = tpu.matmul %0, %1, %cst {dimension_numbers = #tpu.dot_dimension_numbers<[1], [0], [0], [1], [0, 0, 1, 1], [], []>} : vector<32x2304xbf16>, vector<2304x256xbf16>, vector<32x256xf32> -> vector<32x256xf32>
    %c0_3 = arith.constant 0 : index
    %c0_4 = arith.constant 0 : index
    %3 = vector.load %arg5[%c0_3, %c0_4] : memref<32x256xf32, #tpu.memory_space<vmem>>, vector<32x256xf32>
    tpu.vector_store %arg5[%c0_3, %c0_4], %2 {strides = array<i32>} : memref<32x256xf32, #tpu.memory_space<vmem>>, vector<32x256xf32>,
    %cst_5 = arith.constant 0.000000e+00 : f32
    %4 = vector.broadcast %cst_5 : f32 to vector<1x256xf32>
    %c0_i32 = arith.constant 0 : i32
    %c4_i32 = arith.constant 4 : i32
    %5 = arith.addi %c0_i32, %c4_i32 : i32
    %c1_i32 = arith.constant 1 : i32
    %6 = scf.for %arg6 = %c0_i32 to %5 step %c1_i32 iter_args(%arg7 = %4) -> (vector<1x256xf32>)  : i32 {
      %c8_i32 = arith.constant 8 : i32
      %23 = arith.muli %arg6, %c8_i32 : i32
      %24 = tpu.assume_multiple %23, 8 : i32
      %25 = arith.index_cast %24 : i32 to index
      %c0_23 = arith.constant 0 : index
      %26 = vector.load %arg5[%25, %c0_23] : memref<32x256xf32, #tpu.memory_space<vmem>>, vector<8x256xf32>
      %cst_24 = arith.constant dense<0.000000e+00> : vector<256xf32>
      %27 = vector.multi_reduction <add>, %26, %cst_24 [0] : vector<8x256xf32> to vector<256xf32>
      %28 = vector.shape_cast %27 : vector<256xf32> to vector<1x256xf32>
      %29 = arith.addf %arg7, %28 : vector<1x256xf32>
      scf.yield %29 : vector<1x256xf32>
    }
    %c4_i32_6 = arith.constant 4 : i32
    %cst_7 = arith.constant 3.200000e+01 : f32
    %7 = vector.broadcast %cst_7 : f32 to vector<1x256xf32>
    %8 = arith.divf %6, %7 : vector<1x256xf32>
    %cst_8 = arith.constant 0.000000e+00 : f32
    %9 = vector.broadcast %cst_8 : f32 to vector<1x256xf32>
    %c0_i32_9 = arith.constant 0 : i32
    %c4_i32_10 = arith.constant 4 : i32
    %10 = arith.addi %c0_i32_9, %c4_i32_10 : i32
    %c1_i32_11 = arith.constant 1 : i32
    %11 = scf.for %arg6 = %c0_i32_9 to %10 step %c1_i32_11 iter_args(%arg7 = %9) -> (vector<1x256xf32>)  : i32 {
      %c8_i32 = arith.constant 8 : i32
      %23 = arith.muli %arg6, %c8_i32 : i32
      %24 = tpu.assume_multiple %23, 8 : i32
      %25 = arith.index_cast %24 : i32 to index
      %c0_23 = arith.constant 0 : index
      %26 = vector.load %arg5[%25, %c0_23] : memref<32x256xf32, #tpu.memory_space<vmem>>, vector<8x256xf32>
      %27 = vector.broadcast %8 : vector<1x256xf32> to vector<8x256xf32>
      %28 = arith.subf %26, %27 : vector<8x256xf32>
      %29 = arith.mulf %28, %28 : vector<8x256xf32>
      %cst_24 = arith.constant dense<0.000000e+00> : vector<256xf32>
      %30 = vector.multi_reduction <add>, %29, %cst_24 [0] : vector<8x256xf32> to vector<256xf32>
      %31 = vector.shape_cast %30 : vector<256xf32> to vector<1x256xf32>
      %32 = arith.addf %arg7, %31 : vector<1x256xf32>
      scf.yield %32 : vector<1x256xf32>
    }
    %c4_i32_12 = arith.constant 4 : i32
    %cst_13 = arith.constant 3.200000e+01 : f32
    %12 = vector.broadcast %cst_13 : f32 to vector<1x256xf32>
    %13 = arith.divf %11, %12 : vector<1x256xf32>
    %cst_14 = arith.constant 9.99999974E-6 : f32
    %14 = vector.broadcast %cst_14 : f32 to vector<1x256xf32>
    %15 = arith.addf %13, %14 : vector<1x256xf32>
    %16 = math.rsqrt %15 : vector<1x256xf32>
    %c0_15 = arith.constant 0 : index
    %c0_16 = arith.constant 0 : index
    %17 = vector.load %arg2[%c0_15, %c0_16] : memref<1x256xf32, #tpu.memory_space<vmem>>, vector<1x256xf32>
    %18 = arith.mulf %16, %17 : vector<1x256xf32>
    %c0_17 = arith.constant 0 : index
    %c0_18 = arith.constant 0 : index
    %19 = vector.load %arg3[%c0_17, %c0_18] : memref<1x256xf32, #tpu.memory_space<vmem>>, vector<1x256xf32>
    %20 = arith.mulf %8, %18 : vector<1x256xf32>
    %21 = arith.subf %19, %20 : vector<1x256xf32>
    %c0_i32_19 = arith.constant 0 : i32
    %c4_i32_20 = arith.constant 4 : i32
    %22 = arith.addi %c0_i32_19, %c4_i32_20 : i32
    %c1_i32_21 = arith.constant 1 : i32
    scf.for %arg6 = %c0_i32_19 to %22 step %c1_i32_21  : i32 {
      %c8_i32 = arith.constant 8 : i32
      %23 = arith.muli %arg6, %c8_i32 : i32
      %24 = tpu.assume_multiple %23, 8 : i32
      %25 = arith.index_cast %24 : i32 to index
      %c0_23 = arith.constant 0 : index
      %26 = vector.load %arg5[%25, %c0_23] : memref<32x256xf32, #tpu.memory_space<vmem>>, vector<8x256xf32>
      %27 = vector.broadcast %18 : vector<1x256xf32> to vector<8x256xf32>
      %28 = arith.mulf %26, %27 : vector<8x256xf32>
      %29 = vector.broadcast %21 : vector<1x256xf32> to vector<8x256xf32>
      %30 = arith.addf %28, %29 : vector<8x256xf32>
      %cst_24 = arith.constant 0.000000e+00 : f32
      %31 = vector.broadcast %cst_24 : f32 to vector<8x256xf32>
      %32 = arith.maximumf %30, %31 : vector<8x256xf32>
      %33 = arith.truncf %32 : vector<8x256xf32> to vector<8x256xbf16>
      %34 = arith.index_cast %24 : i32 to index
      %c0_25 = arith.constant 0 : index
      %35 = vector.load %arg4[%34, %c0_25] : memref<32x256xbf16, #tpu.memory_space<vmem>>, vector<8x256xbf16>
      tpu.vector_store %arg4[%34, %c0_25], %33 {strides = array<i32>} : memref<32x256xbf16, #tpu.memory_space<vmem>>, vector<8x256xbf16>,
    }
    %c4_i32_22 = arith.constant 4 : i32
    return
  }
}

module attributes {stable_mosaic.version = 11 : i64} {
  func.func @_matmul_bn_relu_kernel(%arg0: memref<32x2304xbf16, #tpu.memory_space<vmem>>, %arg1: memref<2304x512xbf16, #tpu.memory_space<vmem>>, %arg2: memref<1x128xf32, #tpu.memory_space<vmem>>, %arg3: memref<1x128xf32, #tpu.memory_space<vmem>>, %arg4: memref<32x512xbf16, #tpu.memory_space<vmem>>, %arg5: memref<32x512xf32, #tpu.memory_space<vmem>>) attributes {dimension_semantics = [], scalar_prefetch = 0 : i64, scratch_operands = 1 : i64, tpu.core_type = #tpu.core_type<tc>} {
    %c0 = arith.constant 0 : index
    %c0_0 = arith.constant 0 : index
    %0 = vector.load %arg0[%c0, %c0_0] : memref<32x2304xbf16, #tpu.memory_space<vmem>>, vector<32x2304xbf16>
    %c0_1 = arith.constant 0 : index
    %c0_2 = arith.constant 0 : index
    %1 = vector.load %arg1[%c0_1, %c0_2] : memref<2304x512xbf16, #tpu.memory_space<vmem>>, vector<2304x512xbf16>
    %cst = arith.constant dense<0.000000e+00> : vector<32x512xf32>
    %2 = tpu.matmul %0, %1, %cst {dimension_numbers = #tpu.dot_dimension_numbers<[1], [0], [0], [1], [0, 0, 1, 1], [], []>} : vector<32x2304xbf16>, vector<2304x512xbf16>, vector<32x512xf32> -> vector<32x512xf32>
    %c0_3 = arith.constant 0 : index
    %c0_4 = arith.constant 0 : index
    %3 = vector.load %arg5[%c0_3, %c0_4] : memref<32x512xf32, #tpu.memory_space<vmem>>, vector<32x512xf32>
    tpu.vector_store %arg5[%c0_3, %c0_4], %2 {strides = array<i32>} : memref<32x512xf32, #tpu.memory_space<vmem>>, vector<32x512xf32>,
    %cst_5 = arith.constant 0.000000e+00 : f32
    %4 = vector.broadcast %cst_5 : f32 to vector<1x512xf32>
    %c0_i32 = arith.constant 0 : i32
    %c4_i32 = arith.constant 4 : i32
    %5 = arith.addi %c0_i32, %c4_i32 : i32
    %c1_i32 = arith.constant 1 : i32
    %6 = scf.for %arg6 = %c0_i32 to %5 step %c1_i32 iter_args(%arg7 = %4) -> (vector<1x512xf32>)  : i32 {
      %c8_i32 = arith.constant 8 : i32
      %40 = arith.muli %arg6, %c8_i32 : i32
      %41 = tpu.assume_multiple %40, 8 : i32
      %42 = arith.index_cast %41 : i32 to index
      %c0_23 = arith.constant 0 : index
      %43 = vector.load %arg5[%42, %c0_23] : memref<32x512xf32, #tpu.memory_space<vmem>>, vector<8x512xf32>
      %cst_24 = arith.constant dense<0.000000e+00> : vector<512xf32>
      %44 = vector.multi_reduction <add>, %43, %cst_24 [0] : vector<8x512xf32> to vector<512xf32>
      %45 = vector.shape_cast %44 : vector<512xf32> to vector<1x512xf32>
      %46 = arith.addf %arg7, %45 : vector<1x512xf32>
      scf.yield %46 : vector<1x512xf32>
    }
    %c4_i32_6 = arith.constant 4 : i32
    %7 = vector.extract_strided_slice %6 {offsets = [0, 0], sizes = [1, 128], strides = [1, 1]} : vector<1x512xf32> to vector<1x128xf32>
    %8 = vector.extract_strided_slice %6 {offsets = [0, 128], sizes = [1, 128], strides = [1, 1]} : vector<1x512xf32> to vector<1x128xf32>
    %9 = arith.addf %7, %8 : vector<1x128xf32>
    %10 = vector.extract_strided_slice %6 {offsets = [0, 256], sizes = [1, 128], strides = [1, 1]} : vector<1x512xf32> to vector<1x128xf32>
    %11 = arith.addf %9, %10 : vector<1x128xf32>
    %12 = vector.extract_strided_slice %6 {offsets = [0, 384], sizes = [1, 128], strides = [1, 1]} : vector<1x512xf32> to vector<1x128xf32>
    %13 = arith.addf %11, %12 : vector<1x128xf32>
    %cst_7 = arith.constant 1.280000e+02 : f32
    %14 = vector.broadcast %cst_7 : f32 to vector<1x128xf32>
    %15 = arith.divf %13, %14 : vector<1x128xf32>
    %16 = tpu.concatenate %15, %15, %15, %15 in 1 : vector<1x128xf32>, vector<1x128xf32>, vector<1x128xf32>, vector<1x128xf32> -> vector<1x512xf32>
    %cst_8 = arith.constant 0.000000e+00 : f32
    %17 = vector.broadcast %cst_8 : f32 to vector<1x512xf32>
    %c0_i32_9 = arith.constant 0 : i32
    %c4_i32_10 = arith.constant 4 : i32
    %18 = arith.addi %c0_i32_9, %c4_i32_10 : i32
    %c1_i32_11 = arith.constant 1 : i32
    %19 = scf.for %arg6 = %c0_i32_9 to %18 step %c1_i32_11 iter_args(%arg7 = %17) -> (vector<1x512xf32>)  : i32 {
      %c8_i32 = arith.constant 8 : i32
      %40 = arith.muli %arg6, %c8_i32 : i32
      %41 = tpu.assume_multiple %40, 8 : i32
      %42 = arith.index_cast %41 : i32 to index
      %c0_23 = arith.constant 0 : index
      %43 = vector.load %arg5[%42, %c0_23] : memref<32x512xf32, #tpu.memory_space<vmem>>, vector<8x512xf32>
      %44 = vector.broadcast %16 : vector<1x512xf32> to vector<8x512xf32>
      %45 = arith.subf %43, %44 : vector<8x512xf32>
      %46 = arith.mulf %45, %45 : vector<8x512xf32>
      %cst_24 = arith.constant dense<0.000000e+00> : vector<512xf32>
      %47 = vector.multi_reduction <add>, %46, %cst_24 [0] : vector<8x512xf32> to vector<512xf32>
      %48 = vector.shape_cast %47 : vector<512xf32> to vector<1x512xf32>
      %49 = arith.addf %arg7, %48 : vector<1x512xf32>
      scf.yield %49 : vector<1x512xf32>
    }
    %c4_i32_12 = arith.constant 4 : i32
    %20 = vector.extract_strided_slice %19 {offsets = [0, 0], sizes = [1, 128], strides = [1, 1]} : vector<1x512xf32> to vector<1x128xf32>
    %21 = vector.extract_strided_slice %19 {offsets = [0, 128], sizes = [1, 128], strides = [1, 1]} : vector<1x512xf32> to vector<1x128xf32>
    %22 = arith.addf %20, %21 : vector<1x128xf32>
    %23 = vector.extract_strided_slice %19 {offsets = [0, 256], sizes = [1, 128], strides = [1, 1]} : vector<1x512xf32> to vector<1x128xf32>
    %24 = arith.addf %22, %23 : vector<1x128xf32>
    %25 = vector.extract_strided_slice %19 {offsets = [0, 384], sizes = [1, 128], strides = [1, 1]} : vector<1x512xf32> to vector<1x128xf32>
    %26 = arith.addf %24, %25 : vector<1x128xf32>
    %cst_13 = arith.constant 1.280000e+02 : f32
    %27 = vector.broadcast %cst_13 : f32 to vector<1x128xf32>
    %28 = arith.divf %26, %27 : vector<1x128xf32>
    %cst_14 = arith.constant 9.99999974E-6 : f32
    %29 = vector.broadcast %cst_14 : f32 to vector<1x128xf32>
    %30 = arith.addf %28, %29 : vector<1x128xf32>
    %31 = math.rsqrt %30 : vector<1x128xf32>
    %c0_15 = arith.constant 0 : index
    %c0_16 = arith.constant 0 : index
    %32 = vector.load %arg2[%c0_15, %c0_16] : memref<1x128xf32, #tpu.memory_space<vmem>>, vector<1x128xf32>
    %33 = arith.mulf %31, %32 : vector<1x128xf32>
    %c0_17 = arith.constant 0 : index
    %c0_18 = arith.constant 0 : index
    %34 = vector.load %arg3[%c0_17, %c0_18] : memref<1x128xf32, #tpu.memory_space<vmem>>, vector<1x128xf32>
    %35 = arith.mulf %15, %33 : vector<1x128xf32>
    %36 = arith.subf %34, %35 : vector<1x128xf32>
    %37 = tpu.concatenate %33, %33, %33, %33 in 1 : vector<1x128xf32>, vector<1x128xf32>, vector<1x128xf32>, vector<1x128xf32> -> vector<1x512xf32>
    %38 = tpu.concatenate %36, %36, %36, %36 in 1 : vector<1x128xf32>, vector<1x128xf32>, vector<1x128xf32>, vector<1x128xf32> -> vector<1x512xf32>
    %c0_i32_19 = arith.constant 0 : i32
    %c4_i32_20 = arith.constant 4 : i32
    %39 = arith.addi %c0_i32_19, %c4_i32_20 : i32
    %c1_i32_21 = arith.constant 1 : i32
    scf.for %arg6 = %c0_i32_19 to %39 step %c1_i32_21  : i32 {
      %c8_i32 = arith.constant 8 : i32
      %40 = arith.muli %arg6, %c8_i32 : i32
      %41 = tpu.assume_multiple %40, 8 : i32
      %42 = arith.index_cast %41 : i32 to index
      %c0_23 = arith.constant 0 : index
      %43 = vector.load %arg5[%42, %c0_23] : memref<32x512xf32, #tpu.memory_space<vmem>>, vector<8x512xf32>
      %44 = vector.broadcast %37 : vector<1x512xf32> to vector<8x512xf32>
      %45 = arith.mulf %43, %44 : vector<8x512xf32>
      %46 = vector.broadcast %38 : vector<1x512xf32> to vector<8x512xf32>
      %47 = arith.addf %45, %46 : vector<8x512xf32>
      %cst_24 = arith.constant 0.000000e+00 : f32
      %48 = vector.broadcast %cst_24 : f32 to vector<8x512xf32>
      %49 = arith.maximumf %47, %48 : vector<8x512xf32>
      %50 = arith.truncf %49 : vector<8x512xf32> to vector<8x512xbf16>
      %51 = arith.index_cast %41 : i32 to index
      %c0_25 = arith.constant 0 : index
      %52 = vector.load %arg4[%51, %c0_25] : memref<32x512xbf16, #tpu.memory_space<vmem>>, vector<8x512xbf16>
      tpu.vector_store %arg4[%51, %c0_25], %50 {strides = array<i32>} : memref<32x512xbf16, #tpu.memory_space<vmem>>, vector<8x512xbf16>,
    }
    %c4_i32_22 = arith.constant 4 : i32
    return
  }
}

module attributes {stable_mosaic.version = 11 : i64} {
  func.func @_matmul_bn_relu_kernel(%arg0: memref<128x1152xbf16, #tpu.memory_space<vmem>>, %arg1: memref<1152x256xbf16, #tpu.memory_space<vmem>>, %arg2: memref<1x128xf32, #tpu.memory_space<vmem>>, %arg3: memref<1x128xf32, #tpu.memory_space<vmem>>, %arg4: memref<128x256xbf16, #tpu.memory_space<vmem>>, %arg5: memref<128x256xf32, #tpu.memory_space<vmem>>) attributes {dimension_semantics = [], scalar_prefetch = 0 : i64, scratch_operands = 1 : i64, tpu.core_type = #tpu.core_type<tc>} {
    %c0 = arith.constant 0 : index
    %c0_0 = arith.constant 0 : index
    %0 = vector.load %arg0[%c0, %c0_0] : memref<128x1152xbf16, #tpu.memory_space<vmem>>, vector<128x1152xbf16>
    %c0_1 = arith.constant 0 : index
    %c0_2 = arith.constant 0 : index
    %1 = vector.load %arg1[%c0_1, %c0_2] : memref<1152x256xbf16, #tpu.memory_space<vmem>>, vector<1152x256xbf16>
    %cst = arith.constant dense<0.000000e+00> : vector<128x256xf32>
    %2 = tpu.matmul %0, %1, %cst {dimension_numbers = #tpu.dot_dimension_numbers<[1], [0], [0], [1], [0, 0, 1, 1], [], []>} : vector<128x1152xbf16>, vector<1152x256xbf16>, vector<128x256xf32> -> vector<128x256xf32>
    %c0_3 = arith.constant 0 : index
    %c0_4 = arith.constant 0 : index
    %3 = vector.load %arg5[%c0_3, %c0_4] : memref<128x256xf32, #tpu.memory_space<vmem>>, vector<128x256xf32>
    tpu.vector_store %arg5[%c0_3, %c0_4], %2 {strides = array<i32>} : memref<128x256xf32, #tpu.memory_space<vmem>>, vector<128x256xf32>,
    %cst_5 = arith.constant 0.000000e+00 : f32
    %4 = vector.broadcast %cst_5 : f32 to vector<1x256xf32>
    %c0_i32 = arith.constant 0 : i32
    %c16_i32 = arith.constant 16 : i32
    %5 = arith.addi %c0_i32, %c16_i32 : i32
    %c1_i32 = arith.constant 1 : i32
    %6 = scf.for %arg6 = %c0_i32 to %5 step %c1_i32 iter_args(%arg7 = %4) -> (vector<1x256xf32>)  : i32 {
      %c8_i32 = arith.constant 8 : i32
      %36 = arith.muli %arg6, %c8_i32 : i32
      %37 = tpu.assume_multiple %36, 8 : i32
      %38 = arith.index_cast %37 : i32 to index
      %c0_24 = arith.constant 0 : index
      %39 = vector.load %arg5[%38, %c0_24] : memref<128x256xf32, #tpu.memory_space<vmem>>, vector<8x256xf32>
      %cst_25 = arith.constant dense<0.000000e+00> : vector<256xf32>
      %40 = vector.multi_reduction <add>, %39, %cst_25 [0] : vector<8x256xf32> to vector<256xf32>
      %41 = vector.shape_cast %40 : vector<256xf32> to vector<1x256xf32>
      %42 = arith.addf %arg7, %41 : vector<1x256xf32>
      scf.yield %42 : vector<1x256xf32>
    }
    %c16_i32_6 = arith.constant 16 : i32
    %7 = vector.extract_strided_slice %6 {offsets = [0, 0], sizes = [1, 128], strides = [1, 1]} : vector<1x256xf32> to vector<1x128xf32>
    %8 = vector.extract_strided_slice %6 {offsets = [0, 128], sizes = [1, 128], strides = [1, 1]} : vector<1x256xf32> to vector<1x128xf32>
    %9 = arith.addf %7, %8 : vector<1x128xf32>
    %c64_i32 = arith.constant 64 : i32
    %10 = tpu.dynamic_rotate %9 by %c64_i32 dim 1 : vector<1x128xf32>, i32 -> vector<1x128xf32>
    %11 = arith.addf %9, %10 : vector<1x128xf32>
    %cst_7 = arith.constant 5.120000e+02 : f32
    %12 = vector.broadcast %cst_7 : f32 to vector<1x128xf32>
    %13 = arith.divf %11, %12 : vector<1x128xf32>
    %14 = tpu.concatenate %13, %13 in 1 : vector<1x128xf32>, vector<1x128xf32> -> vector<1x256xf32>
    %cst_8 = arith.constant 0.000000e+00 : f32
    %15 = vector.broadcast %cst_8 : f32 to vector<1x256xf32>
    %c0_i32_9 = arith.constant 0 : i32
    %c16_i32_10 = arith.constant 16 : i32
    %16 = arith.addi %c0_i32_9, %c16_i32_10 : i32
    %c1_i32_11 = arith.constant 1 : i32
    %17 = scf.for %arg6 = %c0_i32_9 to %16 step %c1_i32_11 iter_args(%arg7 = %15) -> (vector<1x256xf32>)  : i32 {
      %c8_i32 = arith.constant 8 : i32
      %36 = arith.muli %arg6, %c8_i32 : i32
      %37 = tpu.assume_multiple %36, 8 : i32
      %38 = arith.index_cast %37 : i32 to index
      %c0_24 = arith.constant 0 : index
      %39 = vector.load %arg5[%38, %c0_24] : memref<128x256xf32, #tpu.memory_space<vmem>>, vector<8x256xf32>
      %40 = vector.broadcast %14 : vector<1x256xf32> to vector<8x256xf32>
      %41 = arith.subf %39, %40 : vector<8x256xf32>
      %42 = arith.mulf %41, %41 : vector<8x256xf32>
      %cst_25 = arith.constant dense<0.000000e+00> : vector<256xf32>
      %43 = vector.multi_reduction <add>, %42, %cst_25 [0] : vector<8x256xf32> to vector<256xf32>
      %44 = vector.shape_cast %43 : vector<256xf32> to vector<1x256xf32>
      %45 = arith.addf %arg7, %44 : vector<1x256xf32>
      scf.yield %45 : vector<1x256xf32>
    }
    %c16_i32_12 = arith.constant 16 : i32
    %18 = vector.extract_strided_slice %17 {offsets = [0, 0], sizes = [1, 128], strides = [1, 1]} : vector<1x256xf32> to vector<1x128xf32>
    %19 = vector.extract_strided_slice %17 {offsets = [0, 128], sizes = [1, 128], strides = [1, 1]} : vector<1x256xf32> to vector<1x128xf32>
    %20 = arith.addf %18, %19 : vector<1x128xf32>
    %c64_i32_13 = arith.constant 64 : i32
    %21 = tpu.dynamic_rotate %20 by %c64_i32_13 dim 1 : vector<1x128xf32>, i32 -> vector<1x128xf32>
    %22 = arith.addf %20, %21 : vector<1x128xf32>
    %cst_14 = arith.constant 5.120000e+02 : f32
    %23 = vector.broadcast %cst_14 : f32 to vector<1x128xf32>
    %24 = arith.divf %22, %23 : vector<1x128xf32>
    %cst_15 = arith.constant 9.99999974E-6 : f32
    %25 = vector.broadcast %cst_15 : f32 to vector<1x128xf32>
    %26 = arith.addf %24, %25 : vector<1x128xf32>
    %27 = math.rsqrt %26 : vector<1x128xf32>
    %c0_16 = arith.constant 0 : index
    %c0_17 = arith.constant 0 : index
    %28 = vector.load %arg2[%c0_16, %c0_17] : memref<1x128xf32, #tpu.memory_space<vmem>>, vector<1x128xf32>
    %29 = arith.mulf %27, %28 : vector<1x128xf32>
    %c0_18 = arith.constant 0 : index
    %c0_19 = arith.constant 0 : index
    %30 = vector.load %arg3[%c0_18, %c0_19] : memref<1x128xf32, #tpu.memory_space<vmem>>, vector<1x128xf32>
    %31 = arith.mulf %13, %29 : vector<1x128xf32>
    %32 = arith.subf %30, %31 : vector<1x128xf32>
    %33 = tpu.concatenate %29, %29 in 1 : vector<1x128xf32>, vector<1x128xf32> -> vector<1x256xf32>
    %34 = tpu.concatenate %32, %32 in 1 : vector<1x128xf32>, vector<1x128xf32> -> vector<1x256xf32>
    %c0_i32_20 = arith.constant 0 : i32
    %c16_i32_21 = arith.constant 16 : i32
    %35 = arith.addi %c0_i32_20, %c16_i32_21 : i32
    %c1_i32_22 = arith.constant 1 : i32
    scf.for %arg6 = %c0_i32_20 to %35 step %c1_i32_22  : i32 {
      %c8_i32 = arith.constant 8 : i32
      %36 = arith.muli %arg6, %c8_i32 : i32
      %37 = tpu.assume_multiple %36, 8 : i32
      %38 = arith.index_cast %37 : i32 to index
      %c0_24 = arith.constant 0 : index
      %39 = vector.load %arg5[%38, %c0_24] : memref<128x256xf32, #tpu.memory_space<vmem>>, vector<8x256xf32>
      %40 = vector.broadcast %33 : vector<1x256xf32> to vector<8x256xf32>
      %41 = arith.mulf %39, %40 : vector<8x256xf32>
      %42 = vector.broadcast %34 : vector<1x256xf32> to vector<8x256xf32>
      %43 = arith.addf %41, %42 : vector<8x256xf32>
      %cst_25 = arith.constant 0.000000e+00 : f32
      %44 = vector.broadcast %cst_25 : f32 to vector<8x256xf32>
      %45 = arith.maximumf %43, %44 : vector<8x256xf32>
      %46 = arith.truncf %45 : vector<8x256xf32> to vector<8x256xbf16>
      %47 = arith.index_cast %37 : i32 to index
      %c0_26 = arith.constant 0 : index
      %48 = vector.load %arg4[%47, %c0_26] : memref<128x256xbf16, #tpu.memory_space<vmem>>, vector<8x256xbf16>
      tpu.vector_store %arg4[%47, %c0_26], %46 {strides = array<i32>} : memref<128x256xbf16, #tpu.memory_space<vmem>>, vector<8x256xbf16>,
    }
    %c16_i32_23 = arith.constant 16 : i32
    return
  }
}

module attributes {stable_mosaic.version = 11 : i64} {
  func.func @_matmul_sigmoid_kernel(%arg0: i32, %arg1: memref<128x640xbf16, #tpu.memory_space<vmem>>, %arg2: memref<640x128xbf16, #tpu.memory_space<vmem>>, %arg3: memref<128x128xf32, #tpu.memory_space<vmem>>) attributes {dimension_semantics = [#tpu.dimension_semantics<parallel>], iteration_bounds = array<i64: 4>, scalar_prefetch = 0 : i64, scratch_operands = 0 : i64, tpu.core_type = #tpu.core_type<tc>, window_params = [{transform_indices = @transform_0, window_bounds = array<i64: 128, 640>}, {pipeline_mode = #tpu.pipeline_mode<synchronous>, transform_indices = @transform_1, window_bounds = array<i64: 640, 128>}, {transform_indices = @transform_2, window_bounds = array<i64: 128, 128>}]} {
    %c0 = arith.constant 0 : index
    %c0_0 = arith.constant 0 : index
    %0 = vector.load %arg1[%c0, %c0_0] : memref<128x640xbf16, #tpu.memory_space<vmem>>, vector<128x640xbf16>
    %c0_1 = arith.constant 0 : index
    %c0_2 = arith.constant 0 : index
    %1 = vector.load %arg2[%c0_1, %c0_2] : memref<640x128xbf16, #tpu.memory_space<vmem>>, vector<640x128xbf16>
    %cst = arith.constant dense<0.000000e+00> : vector<128x128xf32>
    %2 = tpu.matmul %0, %1, %cst {dimension_numbers = #tpu.dot_dimension_numbers<[1], [0], [0], [1], [0, 0, 1, 1], [], []>} : vector<128x640xbf16>, vector<640x128xbf16>, vector<128x128xf32> -> vector<128x128xf32>
    %3 = arith.negf %2 : vector<128x128xf32>
    %4 = math.exp %3 : vector<128x128xf32>
    %cst_3 = arith.constant 1.000000e+00 : f32
    %5 = vector.broadcast %cst_3 : f32 to vector<128x128xf32>
    %6 = arith.addf %5, %4 : vector<128x128xf32>
    %7 = arith.divf %5, %6 : vector<128x128xf32>
    %c0_4 = arith.constant 0 : index
    %c0_5 = arith.constant 0 : index
    %8 = vector.load %arg3[%c0_4, %c0_5] : memref<128x128xf32, #tpu.memory_space<vmem>>, vector<128x128xf32>
    tpu.vector_store %arg3[%c0_4, %c0_5], %7 {strides = array<i32>} : memref<128x128xf32, #tpu.memory_space<vmem>>, vector<128x128xf32>,
    return
  }
  func.func @transform_0(%arg0: i32) -> (i32, i32) {
    %c0_i32 = arith.constant 0 : i32
    %c0_i32_0 = arith.constant 0 : i32
    return %arg0, %c0_i32 : i32, i32
  }
  func.func @transform_1(%arg0: i32) -> (i32, i32) {
    %c0_i32 = arith.constant 0 : i32
    %c0_i32_0 = arith.constant 0 : i32
    %c0_i32_1 = arith.constant 0 : i32
    return %c0_i32, %c0_i32_0 : i32, i32
  }
  func.func @transform_2(%arg0: i32) -> (i32, i32) {
    %c0_i32 = arith.constant 0 : i32
    %c0_i32_0 = arith.constant 0 : i32
    return %arg0, %c0_i32 : i32, i32
  }
}

</mosaic_0001>

<bundles_post_ra>
// kernel: generator_forward.5
= control target key start
LH: loop header
LB: loop body
LE: loop exit
PB: predicated region body
PF: predicated region fallthrough
CT: control target
= control target key end

     0   :  { %9 = vsyncpa [#allocation4], 0  ;;  %s6735_s0 = inlined_call_operand.vmem [shape: bf16[16,128], index: 0, kind: input, shape index: {}]   ;;  %s6736_s1 = inlined_call_operand.hbm [shape: bf16[128,4096], index: 1, kind: input, shape index: {}]   ;;  %s6737_s2 = inlined_call_operand.hbm [shape: f32[1,256], index: 2, kind: input, shape index: {}]   ;;  %s6738_s3 = inlined_call_operand.hbm [shape: f32[1,256], index: 3, kind: input, shape index: {}]   ;;  %s6739_s4 = inlined_call_operand.vmem [shape: bf16[16,4096], index: 4, kind: output, shape index: {}]  }
   0x1   :  { %10 = vsyncpa [#allocation6], 0  ;;  %s5159_s15 = smov [#allocation5]   ;;  %s5160_s17 = smov [#allocation3]  }
   0x2   :  { %s31_s16 = sshll.u32 %s5159_s15, 4  ;;  %s18_s18 = sshll.u32 %s5160_s17, 4  ;;  %s32_s16 = int_to_ptr.vmem [resolvable:$true] %s31_s16  ;;  %s5191_s18 = int_to_ptr.vmem [resolvable:$true] %s18_s18 }
   0x3   :  { %s4553_s21 = scalar_lea.hbm %s6737_s2, 32 }
   0x4   :  { %p4554_p0 = scmp.ne.s32.totalorder %s6737_s2, %s4553_s21  ;;  %p4557_p1 = scmp.lt.u32.totalorder %s4553_s21, %s6737_s2 }
   0x6   :  { %p4559_p2 = pnand %p4557_p1, %p4554_p0 }
   0x8   :  { %4562 = shalt.err (!%p4559_p2)
}
   0x9   :  { %s4563_s26 = scalar_lea.vmem %s32_s16, 32  ;;  %p4568_p4 = scmp.lt.s32.totalorder %s32_s16, %s32_s16 }
   0xa   :  { %p4564_p3 = scmp.ne.s32.totalorder %s32_s16, %s4563_s26  ;;  %p4569_p5 = scmp.lt.s32.totalorder %s4563_s26, %s4563_s26 }
   0xc   :  { %p4570_p6 = por %p4569_p5, %p4568_p4 }
   0xe   :  { %p4571_p7 = pnand %p4570_p6, %p4564_p3 }
  0x10   :  { %4574 = shalt.err (!%p4571_p7)
}
  0x11   :  { %34 = dma.hbm_to_vmem [thread:$0]  %s6737_s2, 32, %s32_s16, [#allocation6]  }
  0x12   :  { %s4575_s5 = scalar_lea.hbm %s6736_s1, 32768 }
  0x13   :  { %p4576_p8 = scmp.ne.s32.totalorder %s6736_s1, %s4575_s5  ;;  %p4579_p9 = scmp.lt.u32.totalorder %s4575_s5, %s6736_s1 }
  0x15   :  { %p4581_p10 = pnand %p4579_p9, %p4576_p8 }
  0x17   :  { %4584 = shalt.err (!%p4581_p10)
}
  0x18   :  { %s4585_s10 = scalar_lea.vmem %s5191_s18, 32768  ;;  %p4590_p12 = scmp.lt.s32.totalorder %s5191_s18, %s5191_s18 }
  0x19   :  { %p4586_p11 = scmp.ne.s32.totalorder %s5191_s18, %s4585_s10  ;;  %p4591_p13 = scmp.lt.s32.totalorder %s4585_s10, %s4585_s10 }
  0x1b   :  { %p4592_p0 = por %p4591_p13, %p4590_p12 }
  0x1d   :  { %p4593_p1 = pnand %p4592_p0, %p4586_p11 }
  0x1f   :  { %4596 = shalt.err (!%p4593_p1)
}
  0x20   :  { %s5161_s2 = smov 2048   ;;  %s5162_s11 = smov 128  }
  0x21   :  { %24 = dma.hbm_to_vmem [thread:$0]  %s6736_s1, 32768, %s5191_s18, [#allocation4], %s5161_s2, %s5161_s2, %s5162_s11  }
  0x22   :  { %s5163_s14 = smov [#allocation7]   ;;  %s4597_s19 = scalar_lea.hbm %s6738_s3, 32 }
  0x23   :  { %s41_s15 = sshll.u32 %s5163_s14, 4  ;;  %p4598_p2 = scmp.ne.s32.totalorder %s6738_s3, %s4597_s19  ;;  %s42_s15 = int_to_ptr.vmem [resolvable:$true] %s41_s15 }
  0x24   :  { %p4601_p3 = scmp.lt.u32.totalorder %s4597_s19, %s6738_s3 }
  0x26   :  { %p4603_p4 = pnand %p4601_p3, %p4598_p2 }
  0x28   :  { %4606 = shalt.err (!%p4603_p4)
}
  0x29   :  { %s4607_s24 = scalar_lea.vmem %s42_s15, 32  ;;  %p4612_p6 = scmp.lt.s32.totalorder %s42_s15, %s42_s15 }
  0x2a   :  { %p4608_p5 = scmp.ne.s32.totalorder %s42_s15, %s4607_s24  ;;  %p4613_p7 = scmp.lt.s32.totalorder %s4607_s24, %s4607_s24 }
  0x2c   :  { %p4614_p8 = por %p4613_p7, %p4612_p6 }
  0x2e   :  { %p4615_p9 = pnand %p4614_p8, %p4608_p5 }
  0x30   :  { %4618 = shalt.err (!%p4615_p9)
}
  0x31   :  { %44 = dma.hbm_to_vmem [thread:$0]  %s6738_s3, 32, %s42_s15, [#allocation6]  }
  0x32   :  { %4887 = dma.done.wait [#allocation4], 32768  }
  0x33   :  { %4888 = vsyncadd [#allocation4], 4294934528 }
  0x34   :  { %4889 = dma.done.wait [#allocation6], 64  }
  0x35   :  { %4890 = vsyncadd [#allocation6], 4294967232  ;;  %v5164_v0 = vmov 0   ;;  %v57_v1 = vld [vmem:[#allocation3] sm:$0xff]  ;;  %v58_v3 = vld [vmem:[#allocation3 + $0x8] sm:$0xff] }
  0x36   :  { %1631 = vmatprep.mubr.bf16.mxu0 %v5164_v0  ;;  %1674 = vmatprep.mubr.bf16.mxu1 %v5164_v0  ;;  %v73_v2 = vld [vmem:[#allocation3 + $0x80] sm:$0xff]  ;;  %v74_v5 = vld [vmem:[#allocation3 + $0x88] sm:$0xff]  ;;  %v59_v63 = vld [vmem:[#allocation3 + $0x10] sm:$0xff] }
  0x37   :  { %v3703_v4 = vcombine.high %v57_v1, %v73_v2  ;;  %v3702_v6 = vcombine.low %v57_v1, %v73_v2  ;;  %v89_v7 = vld [vmem:[#allocation3 + $0x100] sm:$0xff]  ;;  %v3705_v9 = vcombine.high %v58_v3, %v74_v5  ;;  %v3704_v10 = vcombine.low %v58_v3, %v74_v5  ;;  %v90_v12 = vld [vmem:[#allocation3 + $0x108] sm:$0xff]  ;;  %v75_v1 = vld [vmem:[#allocation3 + $0x90] sm:$0xff] }
  0x38   :  { %v105_v8 = vld [vmem:[#allocation3 + $0x180] sm:$0xff]  ;;  %v106_v13 = vld [vmem:[#allocation3 + $0x188] sm:$0xff]  ;;  %v60_v2 = vld [vmem:[#allocation3 + $0x18] sm:$0xff] }
  0x39   :  { %v3735_v11 = vcombine.high %v89_v7, %v105_v8  ;;  %v121_v14 = vld [vmem:[#allocation3 + $0x200] sm:$0xff]  ;;  %1599 = vmatprep.subr.bf16.mxu0 %v3703_v4  ;;  %v3737_v15 = vcombine.high %v90_v12, %v106_v13  ;;  %v122_v17 = vld [vmem:[#allocation3 + $0x208] sm:$0xff]  ;;  %1642 = vmatprep.subr.bf16.mxu1 %v3705_v9  ;;  %v3734_v19 = vcombine.low %v89_v7, %v105_v8  ;;  %v76_v3 = vld [vmem:[#allocation3 + $0x98] sm:$0xff] }
  0x3a   :  { %v137_v16 = vld [vmem:[#allocation3 + $0x280] sm:$0xff]  ;;  %v138_v18 = vld [vmem:[#allocation3 + $0x288] sm:$0xff]  ;;  %1600 = vmatpush1.bf16.msra.mxu0 %v3702_v6  ;;  %1643 = vmatpush1.bf16.msra.mxu1 %v3704_v10  ;;  %v3736_v20 = vcombine.low %v90_v12, %v106_v13  ;;  %v3707_v6 = vcombine.high %v59_v63, %v75_v1  ;;  %v3709_v7 = vcombine.high %v60_v2, %v76_v3  ;;  %v91_v8 = vld [vmem:[#allocation3 + $0x110] sm:$0xff] }
  0x3b   :  { %1601 = vmatprep.subr.bf16.mxu0 %v3735_v11  ;;  %v3767_v21 = vcombine.high %v121_v14, %v137_v16  ;;  %1644 = vmatprep.subr.bf16.mxu1 %v3737_v15  ;;  %v3769_v22 = vcombine.high %v122_v17, %v138_v18  ;;  %v153_v23 = vld [vmem:[#allocation3 + $0x300] sm:$0xff]  ;;  %v154_v25 = vld [vmem:[#allocation3 + $0x308] sm:$0xff]  ;;  %v3766_v27 = vcombine.low %v121_v14, %v137_v16  ;;  %v107_v9 = vld [vmem:[#allocation3 + $0x190] sm:$0xff] }
  0x3c   :  { %v169_v24 = vld [vmem:[#allocation3 + $0x380] sm:$0xff]  ;;  %v170_v26 = vld [vmem:[#allocation3 + $0x388] sm:$0xff]  ;;  %v3768_v28 = vcombine.low %v122_v17, %v138_v18  ;;  %v92_v11 = vld [vmem:[#allocation3 + $0x118] sm:$0xff]  ;;  %v3706_v13 = vcombine.low %v59_v63, %v75_v1  ;;  %v3708_v14 = vcombine.low %v60_v2, %v76_v3  ;;  %v3739_v15 = vcombine.high %v91_v8, %v107_v9 }
  0x3d   :  { %v3799_v29 = vcombine.high %v153_v23, %v169_v24  ;;  %v3801_v30 = vcombine.high %v154_v25, %v170_v26  ;;  %v185_v31 = vld [vmem:[#allocation3 + $0x400] sm:$0xff]  ;;  %v186_v33 = vld [vmem:[#allocation3 + $0x408] sm:$0xff]  ;;  %v3798_v35 = vcombine.low %v153_v23, %v169_v24  ;;  %v3800_v36 = vcombine.low %v154_v25, %v170_v26  ;;  %v108_v12 = vld [vmem:[#allocation3 + $0x198] sm:$0xff] }
  0x3e   :  { %1602 = vmatpush1.bf16.msra.mxu0 %v3734_v19  ;;  %1645 = vmatpush1.bf16.msra.mxu1 %v3736_v20  ;;  %v201_v32 = vld [vmem:[#allocation3 + $0x480] sm:$0xff]  ;;  %v202_v34 = vld [vmem:[#allocation3 + $0x488] sm:$0xff]  ;;  %v3741_v16 = vcombine.high %v92_v11, %v108_v12  ;;  %v123_v17 = vld [vmem:[#allocation3 + $0x210] sm:$0xff] }
  0x3f   :  { %1603 = vmatprep.subr.bf16.mxu0 %v3767_v21  ;;  %1646 = vmatprep.subr.bf16.mxu1 %v3769_v22  ;;  %v3831_v37 = vcombine.high %v185_v31, %v201_v32  ;;  %v3833_v38 = vcombine.high %v186_v33, %v202_v34  ;;  %v217_v39 = vld [vmem:[#allocation3 + $0x500] sm:$0xff]  ;;  %v218_v41 = vld [vmem:[#allocation3 + $0x508] sm:$0xff]  ;;  %v3830_v43 = vcombine.low %v185_v31, %v201_v32  ;;  %v139_v18 = vld [vmem:[#allocation3 + $0x290] sm:$0xff] }
  0x40   :  { %v233_v40 = vld [vmem:[#allocation3 + $0x580] sm:$0xff]  ;;  %v234_v42 = vld [vmem:[#allocation3 + $0x588] sm:$0xff]  ;;  %v3832_v44 = vcombine.low %v186_v33, %v202_v34  ;;  %v124_v19 = vld [vmem:[#allocation3 + $0x218] sm:$0xff]  ;;  %v3738_v21 = vcombine.low %v91_v8, %v107_v9  ;;  %v3740_v22 = vcombine.low %v92_v11, %v108_v12  ;;  %v3771_v23 = vcombine.high %v123_v17, %v139_v18 }
  0x41   :  { %v3863_v45 = vcombine.high %v217_v39, %v233_v40  ;;  %v3865_v46 = vcombine.high %v218_v41, %v234_v42  ;;  %v249_v47 = vld [vmem:[#allocation3 + $0x600] sm:$0xff]  ;;  %v250_v49 = vld [vmem:[#allocation3 + $0x608] sm:$0xff]  ;;  %v3862_v51 = vcombine.low %v217_v39, %v233_v40  ;;  %v3864_v52 = vcombine.low %v218_v41, %v234_v42  ;;  %v140_v20 = vld [vmem:[#allocation3 + $0x298] sm:$0xff] }
  0x42   :  { %1604 = vmatpush1.bf16.msra.mxu0 %v3766_v27  ;;  %1647 = vmatpush1.bf16.msra.mxu1 %v3768_v28  ;;  %v265_v48 = vld [vmem:[#allocation3 + $0x680] sm:$0xff]  ;;  %v266_v50 = vld [vmem:[#allocation3 + $0x688] sm:$0xff]  ;;  %v3773_v24 = vcombine.high %v124_v19, %v140_v20  ;;  %v155_v25 = vld [vmem:[#allocation3 + $0x310] sm:$0xff] }
  0x43   :  { %1605 = vmatprep.subr.bf16.mxu0 %v3799_v29  ;;  %1648 = vmatprep.subr.bf16.mxu1 %v3801_v30  ;;  %v3895_v53 = vcombine.high %v249_v47, %v265_v48  ;;  %v3897_v54 = vcombine.high %v250_v49, %v266_v50  ;;  %v281_v55 = vld [vmem:[#allocation3 + $0x700] sm:$0xff]  ;;  %v282_v57 = vld [vmem:[#allocation3 + $0x708] sm:$0xff]  ;;  %v3894_v59 = vcombine.low %v249_v47, %v265_v48  ;;  %v171_v26 = vld [vmem:[#allocation3 + $0x390] sm:$0xff] }
  0x44   :  { %v297_v56 = vld [vmem:[#allocation3 + $0x780] sm:$0xff]  ;;  %v298_v58 = vld [vmem:[#allocation3 + $0x788] sm:$0xff]  ;;  %v3896_v60 = vcombine.low %v250_v49, %v266_v50  ;;  %v156_v27 = vld [vmem:[#allocation3 + $0x318] sm:$0xff]  ;;  %v3770_v29 = vcombine.low %v123_v17, %v139_v18  ;;  %v3772_v30 = vcombine.low %v124_v19, %v140_v20  ;;  %v3803_v31 = vcombine.high %v155_v25, %v171_v26 }
  0x45   :  { %v3927_v61 = vcombine.high %v281_v55, %v297_v56  ;;  %v3929_v62 = vcombine.high %v282_v57, %v298_v58  ;;  %v3926_v4 = vcombine.low %v281_v55, %v297_v56  ;;  %v3928_v5 = vcombine.low %v282_v57, %v298_v58  ;;  %v5239_v10 = vld [vmem:[%s6735_s0] sm:$0xff]   ;;  %v172_v28 = vld [vmem:[#allocation3 + $0x398] sm:$0xff]  ;;  %v187_v33 = vld [vmem:[#allocation3 + $0x410] sm:$0xff] }
  0x46   :  { %1606 = vmatpush1.bf16.msra.mxu0 %v3798_v35  ;;  %1649 = vmatpush1.bf16.msra.mxu1 %v3800_v36  ;;  %v3805_v32 = vcombine.high %v156_v27, %v172_v28  ;;  %v203_v34 = vld [vmem:[#allocation3 + $0x490] sm:$0xff]  ;;  %v188_v35 = vld [vmem:[#allocation3 + $0x418] sm:$0xff]  ;;  %v61_v2 = vld [vmem:[#allocation3 + $0x20] sm:$0xff] }
  0x47   :  { %1607 = vmatprep.subr.bf16.mxu0 %v3831_v37  ;;  %1650 = vmatprep.subr.bf16.mxu1 %v3833_v38  ;;  %v204_v36 = vld [vmem:[#allocation3 + $0x498] sm:$0xff]  ;;  %v3802_v37 = vcombine.low %v155_v25, %v171_v26  ;;  %v3804_v38 = vcombine.low %v156_v27, %v172_v28  ;;  %v3835_v39 = vcombine.high %v187_v33, %v203_v34  ;;  %v219_v41 = vld [vmem:[#allocation3 + $0x510] sm:$0xff]  ;;  %v77_v3 = vld [vmem:[#allocation3 + $0xa0] sm:$0xff] }
  0x48   :  { %v3837_v40 = vcombine.high %v188_v35, %v204_v36  ;;  %v235_v42 = vld [vmem:[#allocation3 + $0x590] sm:$0xff]  ;;  %v3711_v8 = vcombine.high %v61_v2, %v77_v3  ;;  %v93_v11 = vld [vmem:[#allocation3 + $0x120] sm:$0xff] }
  0x49   :  { %v3867_v47 = vcombine.high %v219_v41, %v235_v42  ;;  %v251_v49 = vld [vmem:[#allocation3 + $0x610] sm:$0xff]  ;;  %v109_v12 = vld [vmem:[#allocation3 + $0x1a0] sm:$0xff] }
  0x4a   :  { %1608 = vmatpush1.bf16.msra.mxu0 %v3830_v43  ;;  %1651 = vmatpush1.bf16.msra.mxu1 %v3832_v44  ;;  %v220_v43 = vld [vmem:[#allocation3 + $0x518] sm:$0xff]  ;;  %v267_v50 = vld [vmem:[#allocation3 + $0x690] sm:$0xff]  ;;  %v3743_v17 = vcombine.high %v93_v11, %v109_v12  ;;  %v125_v19 = vld [vmem:[#allocation3 + $0x220] sm:$0xff] }
  0x4b   :  { %1609 = vmatprep.subr.bf16.mxu0 %v3863_v45  ;;  %1652 = vmatprep.subr.bf16.mxu1 %v3865_v46  ;;  %v236_v44 = vld [vmem:[#allocation3 + $0x598] sm:$0xff]  ;;  %v3834_v45 = vcombine.low %v187_v33, %v203_v34  ;;  %v3836_v46 = vcombine.low %v188_v35, %v204_v36  ;;  %v3899_v55 = vcombine.high %v251_v49, %v267_v50  ;;  %v283_v57 = vld [vmem:[#allocation3 + $0x710] sm:$0xff]  ;;  %v141_v20 = vld [vmem:[#allocation3 + $0x2a0] sm:$0xff] }
  0x4c   :  { %v3869_v48 = vcombine.high %v220_v43, %v236_v44  ;;  %v299_v58 = vld [vmem:[#allocation3 + $0x790] sm:$0xff]  ;;  %v3775_v25 = vcombine.high %v125_v19, %v141_v20  ;;  %v157_v27 = vld [vmem:[#allocation3 + $0x320] sm:$0xff] }
  0x4d   :  { %v3931_v63 = vcombine.high %v283_v57, %v299_v58  ;;  %v173_v28 = vld [vmem:[#allocation3 + $0x3a0] sm:$0xff] }
  0x4e   :  { %1610 = vmatpush1.bf16.msra.mxu0 %v3862_v51  ;;  %1653 = vmatpush1.bf16.msra.mxu1 %v3864_v52  ;;  %v252_v51 = vld [vmem:[#allocation3 + $0x618] sm:$0xff]  ;;  %v3807_v33 = vcombine.high %v157_v27, %v173_v28  ;;  %v189_v35 = vld [vmem:[#allocation3 + $0x420] sm:$0xff] }
  0x4f   :  { %1611 = vmatprep.subr.bf16.mxu0 %v3895_v53  ;;  %1654 = vmatprep.subr.bf16.mxu1 %v3897_v54  ;;  %v268_v52 = vld [vmem:[#allocation3 + $0x698] sm:$0xff]  ;;  %v3866_v53 = vcombine.low %v219_v41, %v235_v42  ;;  %v3868_v54 = vcombine.low %v220_v43, %v236_v44  ;;  %v205_v36 = vld [vmem:[#allocation3 + $0x4a0] sm:$0xff] }
  0x50   :  { %v3901_v56 = vcombine.high %v252_v51, %v268_v52  ;;  %v3839_v41 = vcombine.high %v189_v35, %v205_v36  ;;  %v221_v43 = vld [vmem:[#allocation3 + $0x520] sm:$0xff] }
  0x51   :  { %v237_v44 = vld [vmem:[#allocation3 + $0x5a0] sm:$0xff] }
  0x52   :  { %1612 = vmatpush1.bf16.msra.mxu0 %v3894_v59  ;;  %1655 = vmatpush1.bf16.msra.mxu1 %v3896_v60  ;;  %v284_v59 = vld [vmem:[#allocation3 + $0x718] sm:$0xff] }
  0x53   :  { %1613 = vmatprep.subr.bf16.mxu0 %v3927_v61  ;;  %1656 = vmatprep.subr.bf16.mxu1 %v3929_v62  ;;  %v300_v60 = vld [vmem:[#allocation3 + $0x798] sm:$0xff]  ;;  %v3898_v61 = vcombine.low %v251_v49, %v267_v50  ;;  %v3900_v62 = vcombine.low %v252_v51, %v268_v52  ;;  %v3871_v49 = vcombine.high %v221_v43, %v237_v44  ;;  %v253_v51 = vld [vmem:[#allocation3 + $0x620] sm:$0xff] }
  0x54   :  { %v3933_v1 = vcombine.high %v284_v59, %v300_v60  ;;  %v269_v52 = vld [vmem:[#allocation3 + $0x6a0] sm:$0xff] }
  0x56   :  { %1614 = vmatpush1.bf16.msra.mxu0 %v3926_v4  ;;  %1657 = vmatpush1.bf16.msra.mxu1 %v3928_v5  ;;  %v62_v4 = vld [vmem:[#allocation3 + $0x28] sm:$0xff] }
  0x57   :  { %1685 = vmatprep.subr.bf16.mxu0 %v3707_v6  ;;  %1728 = vmatprep.subr.bf16.mxu1 %v3709_v7  ;;  %v78_v5 = vld [vmem:[#allocation3 + $0xa8] sm:$0xff]  ;;  %v3930_v6 = vcombine.low %v283_v57, %v299_v58  ;;  %v3932_v7 = vcombine.low %v284_v59, %v300_v60  ;;  %v3903_v57 = vcombine.high %v253_v51, %v269_v52  ;;  %v285_v59 = vld [vmem:[#allocation3 + $0x720] sm:$0xff] }
  0x58   :  { %v3713_v9 = vcombine.high %v62_v4, %v78_v5  ;;  %v301_v60 = vld [vmem:[#allocation3 + $0x7a0] sm:$0xff] }
  0x59   :  { %1632 = vmatmul.mubr.bf16.vlgmr.msra.gmra.mrb[0].mxu0 %v5239_v10  ;;  %1675 = vmatmul.mubr.bf16.vlgmr.msra.gmra.mrb[0].mxu1 %v5239_v10 }
  0x5a   :  { %1686 = vmatpush1.bf16.msra.mxu0 %v3706_v13  ;;  %1729 = vmatpush1.bf16.msra.mxu1 %v3708_v14  ;;  %v94_v13 = vld [vmem:[#allocation3 + $0x128] sm:$0xff] }
  0x5b   :  { %1687 = vmatprep.subr.bf16.mxu0 %v3739_v15  ;;  %1730 = vmatprep.subr.bf16.mxu1 %v3741_v16  ;;  %v110_v14 = vld [vmem:[#allocation3 + $0x1a8] sm:$0xff]  ;;  %v3710_v15 = vcombine.low %v61_v2, %v77_v3  ;;  %v3712_v16 = vcombine.low %v62_v4, %v78_v5  ;;  %v3935_v2 = vcombine.high %v285_v59, %v301_v60  ;;  %v63_v4 = vld [vmem:[#allocation3 + $0x30] sm:$0xff] }
  0x5c   :  { %1717 = vmatprep.mubr.bf16.mxu0 %v5164_v0  ;;  %1760 = vmatprep.mubr.bf16.mxu1 %v5164_v0  ;;  %v3745_v18 = vcombine.high %v94_v13, %v110_v14  ;;  %v79_v5 = vld [vmem:[#allocation3 + $0xb0] sm:$0xff] }
  0x5e   :  { %1688 = vmatpush1.bf16.msra.mxu0 %v3738_v21  ;;  %1731 = vmatpush1.bf16.msra.mxu1 %v3740_v22  ;;  %v126_v21 = vld [vmem:[#allocation3 + $0x228] sm:$0xff] }
  0x5f   :  { %1689 = vmatprep.subr.bf16.mxu0 %v3771_v23  ;;  %1732 = vmatprep.subr.bf16.mxu1 %v3773_v24  ;;  %v142_v22 = vld [vmem:[#allocation3 + $0x2a8] sm:$0xff]  ;;  %v3742_v23 = vcombine.low %v93_v11, %v109_v12  ;;  %v3744_v24 = vcombine.low %v94_v13, %v110_v14  ;;  %v3715_v11 = vcombine.high %v63_v4, %v79_v5  ;;  %v95_v13 = vld [vmem:[#allocation3 + $0x130] sm:$0xff] }
  0x60   :  { %v3777_v26 = vcombine.high %v126_v21, %v142_v22  ;;  %v111_v14 = vld [vmem:[#allocation3 + $0x1b0] sm:$0xff] }
  0x62   :  { %1690 = vmatpush1.bf16.msra.mxu0 %v3770_v29  ;;  %1733 = vmatpush1.bf16.msra.mxu1 %v3772_v30  ;;  %v158_v29 = vld [vmem:[#allocation3 + $0x328] sm:$0xff] }
  0x63   :  { %1691 = vmatprep.subr.bf16.mxu0 %v3803_v31  ;;  %1734 = vmatprep.subr.bf16.mxu1 %v3805_v32  ;;  %v174_v30 = vld [vmem:[#allocation3 + $0x3a8] sm:$0xff]  ;;  %v3774_v31 = vcombine.low %v125_v19, %v141_v20  ;;  %v3776_v32 = vcombine.low %v126_v21, %v142_v22  ;;  %v3747_v19 = vcombine.high %v95_v13, %v111_v14  ;;  %v127_v21 = vld [vmem:[#allocation3 + $0x230] sm:$0xff] }
  0x64   :  { %v3809_v34 = vcombine.high %v158_v29, %v174_v30  ;;  %v143_v22 = vld [vmem:[#allocation3 + $0x2b0] sm:$0xff] }
  0x66   :  { %1692 = vmatpush1.bf16.msra.mxu0 %v3802_v37  ;;  %1735 = vmatpush1.bf16.msra.mxu1 %v3804_v38  ;;  %v190_v37 = vld [vmem:[#allocation3 + $0x428] sm:$0xff] }
  0x67   :  { %1693 = vmatprep.subr.bf16.mxu0 %v3835_v39  ;;  %1736 = vmatprep.subr.bf16.mxu1 %v3837_v40  ;;  %v206_v38 = vld [vmem:[#allocation3 + $0x4a8] sm:$0xff]  ;;  %v3806_v39 = vcombine.low %v157_v27, %v173_v28  ;;  %v3808_v40 = vcombine.low %v158_v29, %v174_v30  ;;  %v3779_v27 = vcombine.high %v127_v21, %v143_v22  ;;  %v159_v29 = vld [vmem:[#allocation3 + $0x330] sm:$0xff] }
  0x68   :  { %v3841_v42 = vcombine.high %v190_v37, %v206_v38  ;;  %v175_v30 = vld [vmem:[#allocation3 + $0x3b0] sm:$0xff] }
  0x6a   :  { %1694 = vmatpush1.bf16.msra.mxu0 %v3834_v45  ;;  %1737 = vmatpush1.bf16.msra.mxu1 %v3836_v46  ;;  %v222_v45 = vld [vmem:[#allocation3 + $0x528] sm:$0xff] }
  0x6b   :  { %1695 = vmatprep.subr.bf16.mxu0 %v3867_v47  ;;  %1738 = vmatprep.subr.bf16.mxu1 %v3869_v48  ;;  %v238_v46 = vld [vmem:[#allocation3 + $0x5a8] sm:$0xff]  ;;  %v3838_v47 = vcombine.low %v189_v35, %v205_v36  ;;  %v3840_v48 = vcombine.low %v190_v37, %v206_v38  ;;  %v3811_v35 = vcombine.high %v159_v29, %v175_v30  ;;  %v191_v37 = vld [vmem:[#allocation3 + $0x430] sm:$0xff] }
  0x6c   :  { %v3873_v50 = vcombine.high %v222_v45, %v238_v46  ;;  %v207_v38 = vld [vmem:[#allocation3 + $0x4b0] sm:$0xff] }
  0x6e   :  { %1696 = vmatpush1.bf16.msra.mxu0 %v3866_v53  ;;  %1739 = vmatpush1.bf16.msra.mxu1 %v3868_v54  ;;  %v254_v53 = vld [vmem:[#allocation3 + $0x628] sm:$0xff] }
  0x6f   :  { %1697 = vmatprep.subr.bf16.mxu0 %v3899_v55  ;;  %1740 = vmatprep.subr.bf16.mxu1 %v3901_v56  ;;  %v270_v54 = vld [vmem:[#allocation3 + $0x6a8] sm:$0xff]  ;;  %v3870_v55 = vcombine.low %v221_v43, %v237_v44  ;;  %v3872_v56 = vcombine.low %v222_v45, %v238_v46  ;;  %v3843_v43 = vcombine.high %v191_v37, %v207_v38  ;;  %v223_v45 = vld [vmem:[#allocation3 + $0x530] sm:$0xff] }
  0x70   :  { %v3905_v58 = vcombine.high %v254_v53, %v270_v54  ;;  %v239_v46 = vld [vmem:[#allocation3 + $0x5b0] sm:$0xff] }
  0x72   :  { %1698 = vmatpush1.bf16.msra.mxu0 %v3898_v61  ;;  %1741 = vmatpush1.bf16.msra.mxu1 %v3900_v62  ;;  %v286_v61 = vld [vmem:[#allocation3 + $0x728] sm:$0xff] }
  0x73   :  { %1699 = vmatprep.subr.bf16.mxu0 %v3931_v63  ;;  %1742 = vmatprep.subr.bf16.mxu1 %v3933_v1  ;;  %v302_v62 = vld [vmem:[#allocation3 + $0x7a8] sm:$0xff]  ;;  %v3902_v63 = vcombine.low %v253_v51, %v269_v52  ;;  %v3904_v1 = vcombine.low %v254_v53, %v270_v54  ;;  %v3875_v51 = vcombine.high %v223_v45, %v239_v46  ;;  %v255_v53 = vld [vmem:[#allocation3 + $0x630] sm:$0xff] }
  0x74   :  { %v3937_v3 = vcombine.high %v286_v61, %v302_v62  ;;  %v271_v54 = vld [vmem:[#allocation3 + $0x6b0] sm:$0xff] }
  0x76   :  { %1700 = vmatpush1.bf16.msra.mxu0 %v3930_v6  ;;  %1743 = vmatpush1.bf16.msra.mxu1 %v3932_v7  ;;  %v64_v6 = vld [vmem:[#allocation3 + $0x38] sm:$0xff] }
  0x77   :  { %1771 = vmatprep.subr.bf16.mxu0 %v3711_v8  ;;  %1814 = vmatprep.subr.bf16.mxu1 %v3713_v9  ;;  %v80_v7 = vld [vmem:[#allocation3 + $0xb8] sm:$0xff]  ;;  %v3934_v8 = vcombine.low %v285_v59, %v301_v60  ;;  %v3936_v9 = vcombine.low %v286_v61, %v302_v62  ;;  %v3907_v59 = vcombine.high %v255_v53, %v271_v54  ;;  %v287_v61 = vld [vmem:[#allocation3 + $0x730] sm:$0xff] }
  0x78   :  { %v3717_v12 = vcombine.high %v64_v6, %v80_v7  ;;  %v303_v62 = vld [vmem:[#allocation3 + $0x7b0] sm:$0xff] }
  0x79   :  { %1718 = vmatmul.mubr.bf16.vlgmr.msra.gmra.mrb[4].mxu0 %v5239_v10  ;;  %1761 = vmatmul.mubr.bf16.vlgmr.msra.gmra.mrb[4].mxu1 %v5239_v10 }
  0x7a   :  { %1772 = vmatpush1.bf16.msra.mxu0 %v3710_v15  ;;  %1815 = vmatpush1.bf16.msra.mxu1 %v3712_v16  ;;  %v96_v15 = vld [vmem:[#allocation3 + $0x138] sm:$0xff] }
  0x7b   :  { %1773 = vmatprep.subr.bf16.mxu0 %v3743_v17  ;;  %1816 = vmatprep.subr.bf16.mxu1 %v3745_v18  ;;  %v112_v16 = vld [vmem:[#allocation3 + $0x1b8] sm:$0xff]  ;;  %v3714_v17 = vcombine.low %v63_v4, %v79_v5  ;;  %v3716_v18 = vcombine.low %v64_v6, %v80_v7  ;;  %v3939_v4 = vcombine.high %v287_v61, %v303_v62  ;;  %v65_v6 = vld [vmem:[#allocation3 + $0x40] sm:$0xff] }
  0x7c   :  { %1803 = vmatprep.mubr.bf16.mxu0 %v5164_v0  ;;  %1846 = vmatprep.mubr.bf16.mxu1 %v5164_v0  ;;  %v3749_v20 = vcombine.high %v96_v15, %v112_v16  ;;  %v81_v7 = vld [vmem:[#allocation3 + $0xc0] sm:$0xff] }
  0x7e   :  { %1774 = vmatpush1.bf16.msra.mxu0 %v3742_v23  ;;  %1817 = vmatpush1.bf16.msra.mxu1 %v3744_v24  ;;  %v128_v23 = vld [vmem:[#allocation3 + $0x238] sm:$0xff] }
  0x7f   :  { %1775 = vmatprep.subr.bf16.mxu0 %v3775_v25  ;;  %1818 = vmatprep.subr.bf16.mxu1 %v3777_v26  ;;  %v144_v24 = vld [vmem:[#allocation3 + $0x2b8] sm:$0xff]  ;;  %v3746_v25 = vcombine.low %v95_v13, %v111_v14  ;;  %v3748_v26 = vcombine.low %v96_v15, %v112_v16  ;;  %v3719_v13 = vcombine.high %v65_v6, %v81_v7  ;;  %v97_v15 = vld [vmem:[#allocation3 + $0x140] sm:$0xff] }
  0x80   :  { %v3781_v28 = vcombine.high %v128_v23, %v144_v24  ;;  %v113_v16 = vld [vmem:[#allocation3 + $0x1c0] sm:$0xff] }
  0x82   :  { %1776 = vmatpush1.bf16.msra.mxu0 %v3774_v31  ;;  %1819 = vmatpush1.bf16.msra.mxu1 %v3776_v32  ;;  %v160_v31 = vld [vmem:[#allocation3 + $0x338] sm:$0xff] }
  0x83   :  { %1777 = vmatprep.subr.bf16.mxu0 %v3807_v33  ;;  %1820 = vmatprep.subr.bf16.mxu1 %v3809_v34  ;;  %v176_v32 = vld [vmem:[#allocation3 + $0x3b8] sm:$0xff]  ;;  %v3778_v33 = vcombine.low %v127_v21, %v143_v22  ;;  %v3780_v34 = vcombine.low %v128_v23, %v144_v24  ;;  %v3751_v21 = vcombine.high %v97_v15, %v113_v16  ;;  %v129_v23 = vld [vmem:[#allocation3 + $0x240] sm:$0xff] }
  0x84   :  { %v3813_v36 = vcombine.high %v160_v31, %v176_v32  ;;  %v145_v24 = vld [vmem:[#allocation3 + $0x2c0] sm:$0xff] }
  0x86   :  { %1778 = vmatpush1.bf16.msra.mxu0 %v3806_v39  ;;  %1821 = vmatpush1.bf16.msra.mxu1 %v3808_v40  ;;  %v192_v39 = vld [vmem:[#allocation3 + $0x438] sm:$0xff] }
  0x87   :  { %1779 = vmatprep.subr.bf16.mxu0 %v3839_v41  ;;  %1822 = vmatprep.subr.bf16.mxu1 %v3841_v42  ;;  %v208_v40 = vld [vmem:[#allocation3 + $0x4b8] sm:$0xff]  ;;  %v3810_v41 = vcombine.low %v159_v29, %v175_v30  ;;  %v3812_v42 = vcombine.low %v160_v31, %v176_v32  ;;  %v3783_v29 = vcombine.high %v129_v23, %v145_v24  ;;  %v161_v31 = vld [vmem:[#allocation3 + $0x340] sm:$0xff] }
  0x88   :  { %v3845_v44 = vcombine.high %v192_v39, %v208_v40  ;;  %v177_v32 = vld [vmem:[#allocation3 + $0x3c0] sm:$0xff] }
  0x8a   :  { %1780 = vmatpush1.bf16.msra.mxu0 %v3838_v47  ;;  %1823 = vmatpush1.bf16.msra.mxu1 %v3840_v48  ;;  %v224_v47 = vld [vmem:[#allocation3 + $0x538] sm:$0xff] }
  0x8b   :  { %1781 = vmatprep.subr.bf16.mxu0 %v3871_v49  ;;  %1824 = vmatprep.subr.bf16.mxu1 %v3873_v50  ;;  %v240_v48 = vld [vmem:[#allocation3 + $0x5b8] sm:$0xff]  ;;  %v3842_v49 = vcombine.low %v191_v37, %v207_v38  ;;  %v3844_v50 = vcombine.low %v192_v39, %v208_v40  ;;  %v3815_v37 = vcombine.high %v161_v31, %v177_v32  ;;  %v193_v39 = vld [vmem:[#allocation3 + $0x440] sm:$0xff] }
  0x8c   :  { %v3877_v52 = vcombine.high %v224_v47, %v240_v48  ;;  %v209_v40 = vld [vmem:[#allocation3 + $0x4c0] sm:$0xff] }
  0x8e   :  { %1782 = vmatpush1.bf16.msra.mxu0 %v3870_v55  ;;  %1825 = vmatpush1.bf16.msra.mxu1 %v3872_v56  ;;  %v256_v55 = vld [vmem:[#allocation3 + $0x638] sm:$0xff] }
  0x8f   :  { %1783 = vmatprep.subr.bf16.mxu0 %v3903_v57  ;;  %1826 = vmatprep.subr.bf16.mxu1 %v3905_v58  ;;  %v272_v56 = vld [vmem:[#allocation3 + $0x6b8] sm:$0xff]  ;;  %v3874_v57 = vcombine.low %v223_v45, %v239_v46  ;;  %v3876_v58 = vcombine.low %v224_v47, %v240_v48  ;;  %v3847_v45 = vcombine.high %v193_v39, %v209_v40  ;;  %v225_v47 = vld [vmem:[#allocation3 + $0x540] sm:$0xff] }
  0x90   :  { %v3909_v60 = vcombine.high %v256_v55, %v272_v56  ;;  %v241_v48 = vld [vmem:[#allocation3 + $0x5c0] sm:$0xff] }
  0x92   :  { %1784 = vmatpush1.bf16.msra.mxu0 %v3902_v63  ;;  %1827 = vmatpush1.bf16.msra.mxu1 %v3904_v1  ;;  %v288_v63 = vld [vmem:[#allocation3 + $0x738] sm:$0xff] }
  0x93   :  { %1785 = vmatprep.subr.bf16.mxu0 %v3935_v2  ;;  %1828 = vmatprep.subr.bf16.mxu1 %v3937_v3  ;;  %v304_v1 = vld [vmem:[#allocation3 + $0x7b8] sm:$0xff]  ;;  %v3906_v2 = vcombine.low %v255_v53, %v271_v54  ;;  %v3908_v3 = vcombine.low %v256_v55, %v272_v56  ;;  %v3879_v53 = vcombine.high %v225_v47, %v241_v48  ;;  %v257_v55 = vld [vmem:[#allocation3 + $0x640] sm:$0xff] }
  0x94   :  { %v3941_v5 = vcombine.high %v288_v63, %v304_v1  ;;  %v273_v56 = vld [vmem:[#allocation3 + $0x6c0] sm:$0xff] }
  0x96   :  { %1786 = vmatpush1.bf16.msra.mxu0 %v3934_v8  ;;  %1829 = vmatpush1.bf16.msra.mxu1 %v3936_v9  ;;  %v66_v8 = vld [vmem:[#allocation3 + $0x48] sm:$0xff] }
  0x97   :  { %1857 = vmatprep.subr.bf16.mxu0 %v3715_v11  ;;  %1900 = vmatprep.subr.bf16.mxu1 %v3717_v12  ;;  %v82_v9 = vld [vmem:[#allocation3 + $0xc8] sm:$0xff]  ;;  %v3938_v11 = vcombine.low %v287_v61, %v303_v62  ;;  %v3940_v12 = vcombine.low %v288_v63, %v304_v1  ;;  %v3911_v61 = vcombine.high %v257_v55, %v273_v56  ;;  %v289_v63 = vld [vmem:[#allocation3 + $0x740] sm:$0xff] }
  0x98   :  { %v3721_v14 = vcombine.high %v66_v8, %v82_v9  ;;  %v305_v1 = vld [vmem:[#allocation3 + $0x7c0] sm:$0xff] }
  0x99   :  { %1804 = vmatmul.mubr.bf16.vlgmr.msra.gmra.mrb[8].mxu0 %v5239_v10  ;;  %1847 = vmatmul.mubr.bf16.vlgmr.msra.gmra.mrb[8].mxu1 %v5239_v10 }
  0x9a   :  { %1858 = vmatpush1.bf16.msra.mxu0 %v3714_v17  ;;  %1901 = vmatpush1.bf16.msra.mxu1 %v3716_v18  ;;  %v98_v17 = vld [vmem:[#allocation3 + $0x148] sm:$0xff] }
  0x9b   :  { %1859 = vmatprep.subr.bf16.mxu0 %v3747_v19  ;;  %1902 = vmatprep.subr.bf16.mxu1 %v3749_v20  ;;  %v114_v18 = vld [vmem:[#allocation3 + $0x1c8] sm:$0xff]  ;;  %v3718_v19 = vcombine.low %v65_v6, %v81_v7  ;;  %v3720_v20 = vcombine.low %v66_v8, %v82_v9  ;;  %v3943_v6 = vcombine.high %v289_v63, %v305_v1  ;;  %v67_v8 = vld [vmem:[#allocation3 + $0x50] sm:$0xff] }
  0x9c   :  { %1889 = vmatprep.mubr.bf16.mxu0 %v5164_v0  ;;  %1932 = vmatprep.mubr.bf16.mxu1 %v5164_v0  ;;  %v3753_v22 = vcombine.high %v98_v17, %v114_v18  ;;  %v83_v9 = vld [vmem:[#allocation3 + $0xd0] sm:$0xff] }
  0x9e   :  { %1860 = vmatpush1.bf16.msra.mxu0 %v3746_v25  ;;  %1903 = vmatpush1.bf16.msra.mxu1 %v3748_v26  ;;  %v130_v25 = vld [vmem:[#allocation3 + $0x248] sm:$0xff] }
  0x9f   :  { %1861 = vmatprep.subr.bf16.mxu0 %v3779_v27  ;;  %1904 = vmatprep.subr.bf16.mxu1 %v3781_v28  ;;  %v146_v26 = vld [vmem:[#allocation3 + $0x2c8] sm:$0xff]  ;;  %v3750_v27 = vcombine.low %v97_v15, %v113_v16  ;;  %v3752_v28 = vcombine.low %v98_v17, %v114_v18  ;;  %v3723_v15 = vcombine.high %v67_v8, %v83_v9  ;;  %v99_v17 = vld [vmem:[#allocation3 + $0x150] sm:$0xff] }
  0xa0   :  { %v3785_v30 = vcombine.high %v130_v25, %v146_v26  ;;  %v115_v18 = vld [vmem:[#allocation3 + $0x1d0] sm:$0xff] }
  0xa2   :  { %1862 = vmatpush1.bf16.msra.mxu0 %v3778_v33  ;;  %1905 = vmatpush1.bf16.msra.mxu1 %v3780_v34  ;;  %v162_v33 = vld [vmem:[#allocation3 + $0x348] sm:$0xff] }
  0xa3   :  { %1863 = vmatprep.subr.bf16.mxu0 %v3811_v35  ;;  %1906 = vmatprep.subr.bf16.mxu1 %v3813_v36  ;;  %v178_v34 = vld [vmem:[#allocation3 + $0x3c8] sm:$0xff]  ;;  %v3782_v35 = vcombine.low %v129_v23, %v145_v24  ;;  %v3784_v36 = vcombine.low %v130_v25, %v146_v26  ;;  %v3755_v23 = vcombine.high %v99_v17, %v115_v18  ;;  %v131_v25 = vld [vmem:[#allocation3 + $0x250] sm:$0xff] }
  0xa4   :  { %v3817_v38 = vcombine.high %v162_v33, %v178_v34  ;;  %v147_v26 = vld [vmem:[#allocation3 + $0x2d0] sm:$0xff] }
  0xa6   :  { %1864 = vmatpush1.bf16.msra.mxu0 %v3810_v41  ;;  %1907 = vmatpush1.bf16.msra.mxu1 %v3812_v42  ;;  %v194_v41 = vld [vmem:[#allocation3 + $0x448] sm:$0xff] }
  0xa7   :  { %1865 = vmatprep.subr.bf16.mxu0 %v3843_v43  ;;  %1908 = vmatprep.subr.bf16.mxu1 %v3845_v44  ;;  %v210_v42 = vld [vmem:[#allocation3 + $0x4c8] sm:$0xff]  ;;  %v3814_v43 = vcombine.low %v161_v31, %v177_v32  ;;  %v3816_v44 = vcombine.low %v162_v33, %v178_v34  ;;  %v3787_v31 = vcombine.high %v131_v25, %v147_v26  ;;  %v163_v33 = vld [vmem:[#allocation3 + $0x350] sm:$0xff] }
  0xa8   :  { %v3849_v46 = vcombine.high %v194_v41, %v210_v42  ;;  %v179_v34 = vld [vmem:[#allocation3 + $0x3d0] sm:$0xff] }
  0xaa   :  { %1866 = vmatpush1.bf16.msra.mxu0 %v3842_v49  ;;  %1909 = vmatpush1.bf16.msra.mxu1 %v3844_v50  ;;  %v226_v49 = vld [vmem:[#allocation3 + $0x548] sm:$0xff] }
  0xab   :  { %1867 = vmatprep.subr.bf16.mxu0 %v3875_v51  ;;  %1910 = vmatprep.subr.bf16.mxu1 %v3877_v52  ;;  %v242_v50 = vld [vmem:[#allocation3 + $0x5c8] sm:$0xff]  ;;  %v3846_v51 = vcombine.low %v193_v39, %v209_v40  ;;  %v3848_v52 = vcombine.low %v194_v41, %v210_v42  ;;  %v195_v40 = vld [vmem:[#allocation3 + $0x450] sm:$0xff]  ;;  %v196_v42 = vld [vmem:[#allocation3 + $0x458] sm:$0xff] }
  0xac   :  { %v3881_v54 = vcombine.high %v226_v49, %v242_v50  ;;  %v211_v41 = vld [vmem:[#allocation3 + $0x4d0] sm:$0xff] }
  0xae   :  { %1868 = vmatpush1.bf16.msra.mxu0 %v3874_v57  ;;  %1911 = vmatpush1.bf16.msra.mxu1 %v3876_v58  ;;  %v258_v57 = vld [vmem:[#allocation3 + $0x648] sm:$0xff] }
  0xaf   :  { %1869 = vmatprep.subr.bf16.mxu0 %v3907_v59  ;;  %1912 = vmatprep.subr.bf16.mxu1 %v3909_v60  ;;  %v274_v58 = vld [vmem:[#allocation3 + $0x6c8] sm:$0xff]  ;;  %v3878_v59 = vcombine.low %v225_v47, %v241_v48  ;;  %v3880_v60 = vcombine.low %v226_v49, %v242_v50  ;;  %v227_v48 = vld [vmem:[#allocation3 + $0x550] sm:$0xff]  ;;  %v228_v50 = vld [vmem:[#allocation3 + $0x558] sm:$0xff] }
  0xb0   :  { %v3913_v62 = vcombine.high %v258_v57, %v274_v58  ;;  %v243_v49 = vld [vmem:[#allocation3 + $0x5d0] sm:$0xff] }
  0xb2   :  { %1870 = vmatpush1.bf16.msra.mxu0 %v3906_v2  ;;  %1913 = vmatpush1.bf16.msra.mxu1 %v3908_v3  ;;  %v290_v2 = vld [vmem:[#allocation3 + $0x748] sm:$0xff] }
  0xb3   :  { %1871 = vmatprep.subr.bf16.mxu0 %v3939_v4  ;;  %1914 = vmatprep.subr.bf16.mxu1 %v3941_v5  ;;  %v306_v3 = vld [vmem:[#allocation3 + $0x7c8] sm:$0xff]  ;;  %v3910_v4 = vcombine.low %v257_v55, %v273_v56  ;;  %v3912_v5 = vcombine.low %v258_v57, %v274_v58  ;;  %v259_v56 = vld [vmem:[#allocation3 + $0x650] sm:$0xff]  ;;  %v260_v58 = vld [vmem:[#allocation3 + $0x658] sm:$0xff] }
  0xb4   :  { %v3945_v7 = vcombine.high %v290_v2, %v306_v3  ;;  %v275_v57 = vld [vmem:[#allocation3 + $0x6d0] sm:$0xff] }
  0xb6   :  { %1872 = vmatpush1.bf16.msra.mxu0 %v3938_v11  ;;  %1915 = vmatpush1.bf16.msra.mxu1 %v3940_v12  ;;  %v68_v11 = vld [vmem:[#allocation3 + $0x58] sm:$0xff] }
  0xb7   :  { %1943 = vmatprep.subr.bf16.mxu0 %v3719_v13  ;;  %1986 = vmatprep.subr.bf16.mxu1 %v3721_v14  ;;  %v84_v12 = vld [vmem:[#allocation3 + $0xd8] sm:$0xff]  ;;  %v3942_v13 = vcombine.low %v289_v63, %v305_v1  ;;  %v3944_v14 = vcombine.low %v290_v2, %v306_v3  ;;  %v291_v1 = vld [vmem:[#allocation3 + $0x750] sm:$0xff] }
  0xb8   :  { %v3725_v16 = vcombine.high %v68_v11, %v84_v12  ;;  %v307_v2 = vld [vmem:[#allocation3 + $0x7d0] sm:$0xff]  ;;  %v292_v3 = vld [vmem:[#allocation3 + $0x758] sm:$0xff] }
  0xb9   :  { %1890 = vmatmul.mubr.bf16.vlgmr.msra.gmra.mrb[12].mxu0 %v5239_v10  ;;  %1933 = vmatmul.mubr.bf16.vlgmr.msra.gmra.mrb[12].mxu1 %v5239_v10 }
  0xba   :  { %1944 = vmatpush1.bf16.msra.mxu0 %v3718_v19  ;;  %1987 = vmatpush1.bf16.msra.mxu1 %v3720_v20  ;;  %v100_v19 = vld [vmem:[#allocation3 + $0x158] sm:$0xff] }
  0xbb   :  { %1945 = vmatprep.subr.bf16.mxu0 %v3751_v21  ;;  %1988 = vmatprep.subr.bf16.mxu1 %v3753_v22  ;;  %v116_v20 = vld [vmem:[#allocation3 + $0x1d8] sm:$0xff]  ;;  %v3722_v21 = vcombine.low %v67_v8, %v83_v9  ;;  %v3724_v22 = vcombine.low %v68_v11, %v84_v12  ;;  %v69_v9 = vld [vmem:[#allocation3 + $0x60] sm:$0xff]  ;;  %v70_v12 = vld [vmem:[#allocation3 + $0x68] sm:$0xff] }
  0xbc   :  { %1975 = vmatprep.mubr.bf16.mxu0 %v5164_v0  ;;  %2018 = vmatprep.mubr.bf16.mxu1 %v5164_v0  ;;  %v3757_v24 = vcombine.high %v100_v19, %v116_v20  ;;  %v85_v11 = vld [vmem:[#allocation3 + $0xe0] sm:$0xff] }
  0xbe   :  { %1946 = vmatpush1.bf16.msra.mxu0 %v3750_v27  ;;  %1989 = vmatpush1.bf16.msra.mxu1 %v3752_v28  ;;  %v132_v27 = vld [vmem:[#allocation3 + $0x258] sm:$0xff] }
  0xbf   :  { %1947 = vmatprep.subr.bf16.mxu0 %v3783_v29  ;;  %1990 = vmatprep.subr.bf16.mxu1 %v3785_v30  ;;  %v148_v28 = vld [vmem:[#allocation3 + $0x2d8] sm:$0xff]  ;;  %v3754_v29 = vcombine.low %v99_v17, %v115_v18  ;;  %v3756_v30 = vcombine.low %v100_v19, %v116_v20  ;;  %v101_v18 = vld [vmem:[#allocation3 + $0x160] sm:$0xff]  ;;  %v102_v20 = vld [vmem:[#allocation3 + $0x168] sm:$0xff] }
  0xc0   :  { %v3789_v32 = vcombine.high %v132_v27, %v148_v28  ;;  %v117_v19 = vld [vmem:[#allocation3 + $0x1e0] sm:$0xff] }
  0xc2   :  { %1948 = vmatpush1.bf16.msra.mxu0 %v3782_v35  ;;  %1991 = vmatpush1.bf16.msra.mxu1 %v3784_v36  ;;  %v164_v35 = vld [vmem:[#allocation3 + $0x358] sm:$0xff] }
  0xc3   :  { %1949 = vmatprep.subr.bf16.mxu0 %v3815_v37  ;;  %1992 = vmatprep.subr.bf16.mxu1 %v3817_v38  ;;  %v180_v36 = vld [vmem:[#allocation3 + $0x3d8] sm:$0xff]  ;;  %v3786_v37 = vcombine.low %v131_v25, %v147_v26  ;;  %v3819_v38 = vcombine.high %v163_v33, %v179_v34  ;;  %v133_v26 = vld [vmem:[#allocation3 + $0x260] sm:$0xff] }
  0xc4   :  { %v3821_v39 = vcombine.high %v164_v35, %v180_v36 }
  0xc6   :  { %1950 = vmatpush1.bf16.msra.mxu0 %v3814_v43  ;;  %1993 = vmatpush1.bf16.msra.mxu1 %v3816_v44  ;;  %v212_v43 = vld [vmem:[#allocation3 + $0x4d8] sm:$0xff]  ;;  %v3818_v44 = vcombine.low %v163_v33, %v179_v34 }
  0xc7   :  { %1951 = vmatprep.subr.bf16.mxu0 %v3847_v45  ;;  %1994 = vmatprep.subr.bf16.mxu1 %v3849_v46  ;;  %v3820_v45 = vcombine.low %v164_v35, %v180_v36  ;;  %v3851_v46 = vcombine.high %v195_v40, %v211_v41  ;;  %v3853_v47 = vcombine.high %v196_v42, %v212_v43  ;;  %v165_v35 = vld [vmem:[#allocation3 + $0x360] sm:$0xff] }
  0xc8   :  { %v181_v36 = vld [vmem:[#allocation3 + $0x3e0] sm:$0xff] }
  0xca   :  { %1952 = vmatpush1.bf16.msra.mxu0 %v3846_v51  ;;  %1995 = vmatpush1.bf16.msra.mxu1 %v3848_v52  ;;  %v244_v51 = vld [vmem:[#allocation3 + $0x5d8] sm:$0xff]  ;;  %v3850_v52 = vcombine.low %v195_v40, %v211_v41  ;;  %v3823_v40 = vcombine.high %v165_v35, %v181_v36 }
  0xcb   :  { %1953 = vmatprep.subr.bf16.mxu0 %v3879_v53  ;;  %1996 = vmatprep.subr.bf16.mxu1 %v3881_v54  ;;  %v3852_v53 = vcombine.low %v196_v42, %v212_v43  ;;  %v3883_v54 = vcombine.high %v227_v48, %v243_v49  ;;  %v3885_v55 = vcombine.high %v228_v50, %v244_v51  ;;  %v197_v42 = vld [vmem:[#allocation3 + $0x460] sm:$0xff] }
  0xcc   :  { %v213_v43 = vld [vmem:[#allocation3 + $0x4e0] sm:$0xff] }
  0xce   :  { %1954 = vmatpush1.bf16.msra.mxu0 %v3878_v59  ;;  %1997 = vmatpush1.bf16.msra.mxu1 %v3880_v60  ;;  %v276_v59 = vld [vmem:[#allocation3 + $0x6d8] sm:$0xff]  ;;  %v3882_v60 = vcombine.low %v227_v48, %v243_v49  ;;  %v3855_v48 = vcombine.high %v197_v42, %v213_v43 }
  0xcf   :  { %1955 = vmatprep.subr.bf16.mxu0 %v3911_v61  ;;  %1998 = vmatprep.subr.bf16.mxu1 %v3913_v62  ;;  %v3884_v61 = vcombine.low %v228_v50, %v244_v51  ;;  %v3915_v62 = vcombine.high %v259_v56, %v275_v57  ;;  %v3917_v63 = vcombine.high %v260_v58, %v276_v59  ;;  %v229_v50 = vld [vmem:[#allocation3 + $0x560] sm:$0xff] }
  0xd0   :  { %v245_v51 = vld [vmem:[#allocation3 + $0x5e0] sm:$0xff] }
  0xd2   :  { %1956 = vmatpush1.bf16.msra.mxu0 %v3910_v4  ;;  %1999 = vmatpush1.bf16.msra.mxu1 %v3912_v5  ;;  %v308_v4 = vld [vmem:[#allocation3 + $0x7d8] sm:$0xff]  ;;  %v3914_v5 = vcombine.low %v259_v56, %v275_v57  ;;  %v3887_v56 = vcombine.high %v229_v50, %v245_v51 }
  0xd3   :  { %1957 = vmatprep.subr.bf16.mxu0 %v3943_v6  ;;  %2000 = vmatprep.subr.bf16.mxu1 %v3945_v7  ;;  %v3916_v6 = vcombine.low %v260_v58, %v276_v59  ;;  %v3947_v7 = vcombine.high %v291_v1, %v307_v2  ;;  %v3949_v8 = vcombine.high %v292_v3, %v308_v4  ;;  %v261_v58 = vld [vmem:[#allocation3 + $0x660] sm:$0xff] }
  0xd4   :  { %v277_v59 = vld [vmem:[#allocation3 + $0x6e0] sm:$0xff] }
  0xd6   :  { %1958 = vmatpush1.bf16.msra.mxu0 %v3942_v13  ;;  %2001 = vmatpush1.bf16.msra.mxu1 %v3944_v14  ;;  %v86_v13 = vld [vmem:[#allocation3 + $0xe8] sm:$0xff]  ;;  %v3946_v14 = vcombine.low %v291_v1, %v307_v2  ;;  %v3919_v1 = vcombine.high %v261_v58, %v277_v59 }
  0xd7   :  { %2029 = vmatprep.subr.bf16.mxu0 %v3723_v15  ;;  %2072 = vmatprep.subr.bf16.mxu1 %v3725_v16  ;;  %v3948_v15 = vcombine.low %v292_v3, %v308_v4  ;;  %v3727_v16 = vcombine.high %v69_v9, %v85_v11  ;;  %v3729_v17 = vcombine.high %v70_v12, %v86_v13  ;;  %v293_v3 = vld [vmem:[#allocation3 + $0x760] sm:$0xff] }
  0xd8   :  { %v309_v4 = vld [vmem:[#allocation3 + $0x7e0] sm:$0xff] }
  0xd9   :  { %1976 = vmatmul.mubr.bf16.vlgmr.msra.gmra.mrb[16].mxu0 %v5239_v10  ;;  %2019 = vmatmul.mubr.bf16.vlgmr.msra.gmra.mrb[16].mxu1 %v5239_v10  ;;  %v3788_v10 = vcombine.low %v132_v27, %v148_v28  ;;  %v149_v27 = vld [vmem:[#allocation3 + $0x2e0] sm:$0xff] }
  0xda   :  { %2030 = vmatpush1.bf16.msra.mxu0 %v3722_v21  ;;  %2073 = vmatpush1.bf16.msra.mxu1 %v3724_v22  ;;  %v118_v21 = vld [vmem:[#allocation3 + $0x1e8] sm:$0xff]  ;;  %v3726_v22 = vcombine.low %v69_v9, %v85_v11  ;;  %v5264_v28 = vld [vmem:[%s6735_s0] sm:$0xff]   ;;  %v3791_v33 = vcombine.high %v133_v26, %v149_v27  ;;  %v3951_v9 = vcombine.high %v293_v3, %v309_v4  ;;  %s5340_s0 = smov 0  }
  0xdb   :  { %2031 = vmatprep.subr.bf16.mxu0 %v3755_v23  ;;  %2074 = vmatprep.subr.bf16.mxu1 %v3757_v24  ;;  %v3728_v23 = vcombine.low %v70_v12, %v86_v13  ;;  %v3759_v24 = vcombine.high %v101_v18, %v117_v19  ;;  %v3761_v25 = vcombine.high %v102_v20, %v118_v21  ;;  %v71_v12 = vld [vmem:[#allocation3 + $0x70] sm:$0xff] }
  0xdc   :  { %2061 = vmatprep.mubr.bf16.mxu0 %v5164_v0  ;;  %2104 = vmatprep.mubr.bf16.mxu1 %v5164_v0  ;;  %v87_v13 = vld [vmem:[#allocation3 + $0xf0] sm:$0xff] }
  0xde   :  { %2032 = vmatpush1.bf16.msra.mxu0 %v3754_v29  ;;  %2075 = vmatpush1.bf16.msra.mxu1 %v3756_v30  ;;  %v134_v29 = vld [vmem:[#allocation3 + $0x268] sm:$0xff] }
  0xdf   :  { %2033 = vmatprep.subr.bf16.mxu0 %v3787_v31  ;;  %2076 = vmatprep.subr.bf16.mxu1 %v3789_v32  ;;  %v150_v30 = vld [vmem:[#allocation3 + $0x2e8] sm:$0xff]  ;;  %v3758_v31 = vcombine.low %v101_v18, %v117_v19  ;;  %v3760_v32 = vcombine.low %v102_v20, %v118_v21  ;;  %v3731_v18 = vcombine.high %v71_v12, %v87_v13  ;;  %v103_v20 = vld [vmem:[#allocation3 + $0x170] sm:$0xff] }
  0xe0   :  { %v3793_v34 = vcombine.high %v134_v29, %v150_v30  ;;  %v119_v21 = vld [vmem:[#allocation3 + $0x1f0] sm:$0xff] }
  0xe2   :  { %2034 = vmatpush1.bf16.msra.mxu0 %v3786_v37  ;;  %2077 = vmatpush1.bf16.msra.mxu1 %v3788_v10  ;;  %v166_v37 = vld [vmem:[#allocation3 + $0x368] sm:$0xff] }
  0xe3   :  { %2035 = vmatprep.subr.bf16.mxu0 %v3819_v38  ;;  %2078 = vmatprep.subr.bf16.mxu1 %v3821_v39  ;;  %v182_v10 = vld [vmem:[#allocation3 + $0x3e8] sm:$0xff]  ;;  %v3790_v38 = vcombine.low %v133_v26, %v149_v27  ;;  %v3792_v39 = vcombine.low %v134_v29, %v150_v30  ;;  %v3763_v26 = vcombine.high %v103_v20, %v119_v21  ;;  %v135_v29 = vld [vmem:[#allocation3 + $0x270] sm:$0xff] }
  0xe4   :  { %v3825_v41 = vcombine.high %v166_v37, %v182_v10  ;;  %v151_v30 = vld [vmem:[#allocation3 + $0x2f0] sm:$0xff] }
  0xe6   :  { %2036 = vmatpush1.bf16.msra.mxu0 %v3818_v44  ;;  %2079 = vmatpush1.bf16.msra.mxu1 %v3820_v45  ;;  %v198_v44 = vld [vmem:[#allocation3 + $0x468] sm:$0xff] }
  0xe7   :  { %2037 = vmatprep.subr.bf16.mxu0 %v3851_v46  ;;  %2080 = vmatprep.subr.bf16.mxu1 %v3853_v47  ;;  %v214_v45 = vld [vmem:[#allocation3 + $0x4e8] sm:$0xff]  ;;  %v3822_v46 = vcombine.low %v165_v35, %v181_v36  ;;  %v3824_v47 = vcombine.low %v166_v37, %v182_v10  ;;  %v3795_v35 = vcombine.high %v135_v29, %v151_v30  ;;  %v167_v37 = vld [vmem:[#allocation3 + $0x370] sm:$0xff] }
  0xe8   :  { %v3857_v49 = vcombine.high %v198_v44, %v214_v45  ;;  %v183_v10 = vld [vmem:[#allocation3 + $0x3f0] sm:$0xff] }
  0xea   :  { %2038 = vmatpush1.bf16.msra.mxu0 %v3850_v52  ;;  %2081 = vmatpush1.bf16.msra.mxu1 %v3852_v53  ;;  %v230_v52 = vld [vmem:[#allocation3 + $0x568] sm:$0xff] }
  0xeb   :  { %2039 = vmatprep.subr.bf16.mxu0 %v3883_v54  ;;  %2082 = vmatprep.subr.bf16.mxu1 %v3885_v55  ;;  %v246_v53 = vld [vmem:[#allocation3 + $0x5e8] sm:$0xff]  ;;  %v3854_v54 = vcombine.low %v197_v42, %v213_v43  ;;  %v3856_v55 = vcombine.low %v198_v44, %v214_v45  ;;  %v3827_v42 = vcombine.high %v167_v37, %v183_v10  ;;  %v199_v44 = vld [vmem:[#allocation3 + $0x470] sm:$0xff] }
  0xec   :  { %v3889_v57 = vcombine.high %v230_v52, %v246_v53  ;;  %v215_v45 = vld [vmem:[#allocation3 + $0x4f0] sm:$0xff] }
  0xee   :  { %2040 = vmatpush1.bf16.msra.mxu0 %v3882_v60  ;;  %2083 = vmatpush1.bf16.msra.mxu1 %v3884_v61  ;;  %v262_v60 = vld [vmem:[#allocation3 + $0x668] sm:$0xff] }
  0xef   :  { %2041 = vmatprep.subr.bf16.mxu0 %v3915_v62  ;;  %2084 = vmatprep.subr.bf16.mxu1 %v3917_v63  ;;  %v278_v61 = vld [vmem:[#allocation3 + $0x6e8] sm:$0xff]  ;;  %v3886_v62 = vcombine.low %v229_v50, %v245_v51  ;;  %v3888_v63 = vcombine.low %v230_v52, %v246_v53  ;;  %v3859_v50 = vcombine.high %v199_v44, %v215_v45  ;;  %v231_v51 = vld [vmem:[#allocation3 + $0x570] sm:$0xff]  ;;  %v232_v53 = vld [vmem:[#allocation3 + $0x578] sm:$0xff] }
  0xf0   :  { %v3921_v2 = vcombine.high %v262_v60, %v278_v61  ;;  %v247_v52 = vld [vmem:[#allocation3 + $0x5f0] sm:$0xff] }
  0xf2   :  { %2042 = vmatpush1.bf16.msra.mxu0 %v3914_v5  ;;  %2085 = vmatpush1.bf16.msra.mxu1 %v3916_v6  ;;  %v294_v5 = vld [vmem:[#allocation3 + $0x768] sm:$0xff] }
  0xf3   :  { %2043 = vmatprep.subr.bf16.mxu0 %v3947_v7  ;;  %2086 = vmatprep.subr.bf16.mxu1 %v3949_v8  ;;  %v310_v6 = vld [vmem:[#allocation3 + $0x7e8] sm:$0xff]  ;;  %v3918_v7 = vcombine.low %v261_v58, %v277_v59  ;;  %v3920_v8 = vcombine.low %v262_v60, %v278_v61  ;;  %v263_v59 = vld [vmem:[#allocation3 + $0x670] sm:$0xff]  ;;  %v264_v61 = vld [vmem:[#allocation3 + $0x678] sm:$0xff] }
  0xf4   :  { %v3953_v11 = vcombine.high %v294_v5, %v310_v6  ;;  %v279_v60 = vld [vmem:[#allocation3 + $0x6f0] sm:$0xff] }
  0xf6   :  { %2044 = vmatpush1.bf16.msra.mxu0 %v3946_v14  ;;  %2087 = vmatpush1.bf16.msra.mxu1 %v3948_v15  ;;  %v72_v14 = vld [vmem:[#allocation3 + $0x78] sm:$0xff] }
  0xf7   :  { %2115 = vmatprep.subr.bf16.mxu0 %v3727_v16  ;;  %2158 = vmatprep.subr.bf16.mxu1 %v3729_v17  ;;  %v88_v15 = vld [vmem:[#allocation3 + $0xf8] sm:$0xff]  ;;  %v3950_v16 = vcombine.low %v293_v3, %v309_v4  ;;  %v3952_v17 = vcombine.low %v294_v5, %v310_v6  ;;  %v295_v5 = vld [vmem:[#allocation3 + $0x770] sm:$0xff] }
  0xf8   :  { %v3733_v19 = vcombine.high %v72_v14, %v88_v15  ;;  %v311_v6 = vld [vmem:[#allocation3 + $0x7f0] sm:$0xff] }
  0xf9   :  { %2062 = vmatmul.mubr.bf16.vlgmr.msra.gmra.mrb[20].mxu0 %v5264_v28  ;;  %2105 = vmatmul.mubr.bf16.vlgmr.msra.gmra.mrb[20].mxu1 %v5264_v28 }
  0xfa   :  { %2116 = vmatpush1.bf16.msra.mxu0 %v3726_v22  ;;  %2159 = vmatpush1.bf16.msra.mxu1 %v3728_v23  ;;  %v104_v22 = vld [vmem:[#allocation3 + $0x178] sm:$0xff] }
  0xfb   :  { %2117 = vmatprep.subr.bf16.mxu0 %v3759_v24  ;;  %2160 = vmatprep.subr.bf16.mxu1 %v3761_v25  ;;  %v120_v23 = vld [vmem:[#allocation3 + $0x1f8] sm:$0xff]  ;;  %v3730_v24 = vcombine.low %v71_v12, %v87_v13  ;;  %v3732_v25 = vcombine.low %v72_v14, %v88_v15  ;;  %v3922_v14 = vcombine.low %v263_v59, %v279_v60 }
  0xfc   :  { %2147 = vmatprep.mubr.bf16.mxu0 %v5164_v0  ;;  %2190 = vmatprep.mubr.bf16.mxu1 %v5164_v0  ;;  %v3765_v27 = vcombine.high %v104_v22, %v120_v23 }
  0xfe   :  { %2118 = vmatpush1.bf16.msra.mxu0 %v3758_v31  ;;  %2161 = vmatpush1.bf16.msra.mxu1 %v3760_v32  ;;  %v136_v31 = vld [vmem:[#allocation3 + $0x278] sm:$0xff] }
  0xff   :  { %2119 = vmatprep.subr.bf16.mxu0 %v3791_v33  ;;  %2162 = vmatprep.subr.bf16.mxu1 %v3793_v34  ;;  %v152_v32 = vld [vmem:[#allocation3 + $0x2f8] sm:$0xff]  ;;  %v3762_v33 = vcombine.low %v103_v20, %v119_v21  ;;  %v3764_v34 = vcombine.low %v104_v22, %v120_v23  ;;  %v3954_v21 = vcombine.low %v295_v5, %v311_v6 }
 0x100   :  { %v3797_v36 = vcombine.high %v136_v31, %v152_v32 }
 0x102   :  { %2120 = vmatpush1.bf16.msra.mxu0 %v3790_v38  ;;  %2163 = vmatpush1.bf16.msra.mxu1 %v3792_v39  ;;  %v168_v38 = vld [vmem:[#allocation3 + $0x378] sm:$0xff] }
 0x103   :  { %2121 = vmatprep.subr.bf16.mxu0 %v3823_v40  ;;  %2164 = vmatprep.subr.bf16.mxu1 %v3825_v41  ;;  %v184_v39 = vld [vmem:[#allocation3 + $0x3f8] sm:$0xff]  ;;  %v3794_v40 = vcombine.low %v135_v29, %v151_v30  ;;  %v3796_v41 = vcombine.low %v136_v31, %v152_v32 }
 0x104   :  { %v3829_v43 = vcombine.high %v168_v38, %v184_v39 }
 0x106   :  { %2122 = vmatpush1.bf16.msra.mxu0 %v3822_v46  ;;  %2165 = vmatpush1.bf16.msra.mxu1 %v3824_v47  ;;  %v200_v46 = vld [vmem:[#allocation3 + $0x478] sm:$0xff] }
 0x107   :  { %2123 = vmatprep.subr.bf16.mxu0 %v3855_v48  ;;  %2166 = vmatprep.subr.bf16.mxu1 %v3857_v49  ;;  %v216_v47 = vld [vmem:[#allocation3 + $0x4f8] sm:$0xff]  ;;  %v3826_v48 = vcombine.low %v167_v37, %v183_v10  ;;  %v3828_v49 = vcombine.low %v168_v38, %v184_v39 }
 0x10a   :  { %2124 = vmatpush1.bf16.msra.mxu0 %v3854_v54  ;;  %2167 = vmatpush1.bf16.msra.mxu1 %v3856_v55  ;;  %v248_v54 = vld [vmem:[#allocation3 + $0x5f8] sm:$0xff]  ;;  %v3858_v55 = vcombine.low %v199_v44, %v215_v45 }
 0x10b   :  { %2125 = vmatprep.subr.bf16.mxu0 %v3887_v56  ;;  %2168 = vmatprep.subr.bf16.mxu1 %v3889_v57  ;;  %v3860_v56 = vcombine.low %v200_v46, %v216_v47  ;;  %v3891_v57 = vcombine.high %v231_v51, %v247_v52  ;;  %v3893_v58 = vcombine.high %v232_v53, %v248_v54 }
 0x10e   :  { %2126 = vmatpush1.bf16.msra.mxu0 %v3886_v62  ;;  %2169 = vmatpush1.bf16.msra.mxu1 %v3888_v63  ;;  %v280_v62 = vld [vmem:[#allocation3 + $0x6f8] sm:$0xff]  ;;  %v3890_v63 = vcombine.low %v231_v51, %v247_v52 }
 0x10f   :  { %2127 = vmatprep.subr.bf16.mxu0 %v3919_v1  ;;  %2170 = vmatprep.subr.bf16.mxu1 %v3921_v2  ;;  %v3892_v1 = vcombine.low %v232_v53, %v248_v54  ;;  %v3923_v2 = vcombine.high %v263_v59, %v279_v60  ;;  %v3925_v4 = vcombine.high %v264_v61, %v280_v62 }
 0x112   :  { %2128 = vmatpush1.bf16.msra.mxu0 %v3918_v7  ;;  %2171 = vmatpush1.bf16.msra.mxu1 %v3920_v8 }
 0x113   :  { %2129 = vmatprep.subr.bf16.mxu0 %v3951_v9  ;;  %2172 = vmatprep.subr.bf16.mxu1 %v3953_v11  ;;  %v296_v9 = vld [vmem:[#allocation3 + $0x778] sm:$0xff] }
 0x114   :  { %v312_v11 = vld [vmem:[#allocation3 + $0x7f8] sm:$0xff] }
 0x115   :  { %v3957_v20 = vcombine.high %v296_v9, %v312_v11  ;;  %v3956_v22 = vcombine.low %v296_v9, %v312_v11 }
 0x116   :  { %2130 = vmatpush1.bf16.msra.mxu0 %v3950_v16  ;;  %2173 = vmatpush1.bf16.msra.mxu1 %v3952_v17  ;;  %v3924_v17 = vcombine.low %v264_v61, %v280_v62 }
 0x117   :  { %2201 = vmatprep.subr.bf16.mxu0 %v3731_v18  ;;  %2244 = vmatprep.subr.bf16.mxu1 %v3733_v19  ;;  %v3955_v18 = vcombine.high %v295_v5, %v311_v6 }
 0x119   :  { %2148 = vmatmul.mubr.bf16.vlgmr.msra.gmra.mrb[24].mxu0 %v5264_v28  ;;  %2191 = vmatmul.mubr.bf16.vlgmr.msra.gmra.mrb[24].mxu1 %v5264_v28 }
 0x11a   :  { %2202 = vmatpush1.bf16.msra.mxu0 %v3730_v24  ;;  %2245 = vmatpush1.bf16.msra.mxu1 %v3732_v25 }
 0x11b   :  { %2203 = vmatprep.subr.bf16.mxu0 %v3763_v26  ;;  %2246 = vmatprep.subr.bf16.mxu1 %v3765_v27 }
 0x11c   :  { %2233 = vmatprep.mubr.bf16.mxu0 %v5164_v0  ;;  %2276 = vmatprep.mubr.bf16.mxu1 %v5164_v0  ;;  %v3861_v0 = vcombine.high %v200_v46, %v216_v47 }
 0x11e   :  { %2204 = vmatpush1.bf16.msra.mxu0 %v3762_v33  ;;  %2247 = vmatpush1.bf16.msra.mxu1 %v3764_v34 }
 0x11f   :  { %2205 = vmatprep.subr.bf16.mxu0 %v3795_v35  ;;  %2248 = vmatprep.subr.bf16.mxu1 %v3797_v36 }
 0x122   :  { %2206 = vmatpush1.bf16.msra.mxu0 %v3794_v40  ;;  %2249 = vmatpush1.bf16.msra.mxu1 %v3796_v41 }
 0x123   :  { %2207 = vmatprep.subr.bf16.mxu0 %v3827_v42  ;;  %2250 = vmatprep.subr.bf16.mxu1 %v3829_v43 }
 0x126   :  { %2208 = vmatpush1.bf16.msra.mxu0 %v3826_v48  ;;  %2251 = vmatpush1.bf16.msra.mxu1 %v3828_v49 }
 0x127   :  { %2209 = vmatprep.subr.bf16.mxu0 %v3859_v50  ;;  %2252 = vmatprep.subr.bf16.mxu1 %v3861_v0 }
 0x12a   :  { %2210 = vmatpush1.bf16.msra.mxu0 %v3858_v55  ;;  %2253 = vmatpush1.bf16.msra.mxu1 %v3860_v56 }
 0x12b   :  { %2211 = vmatprep.subr.bf16.mxu0 %v3891_v57  ;;  %2254 = vmatprep.subr.bf16.mxu1 %v3893_v58 }
 0x12c   :  { %v1633_v3 = vpop.f32.mrb[0].mxu0  ;;  %v1676_v7 = vpop.f32.mrb[0].mxu1 }
 0x12d   :  { %2287 = vst [vmem:[#allocation2] sm:$0xff] %v1633_v3  ;;  %v1635_v8 = vpop.f32.mrb[1].mxu0  ;;  %2289 = vst [vmem:[#allocation2 + $0x10] sm:$0xff] %v1676_v7  ;;  %v1678_v12 = vpop.f32.mrb[1].mxu1 }
 0x12e   :  { %2288 = vst [vmem:[#allocation2 + $0x8] sm:$0xff] %v1635_v8  ;;  %v1637_v13 = vpop.f32.mrb[2].mxu0  ;;  %2212 = vmatpush1.bf16.msra.mxu0 %v3890_v63  ;;  %2290 = vst [vmem:[#allocation2 + $0x18] sm:$0xff] %v1678_v12  ;;  %v1680_v15 = vpop.f32.mrb[2].mxu1  ;;  %2255 = vmatpush1.bf16.msra.mxu1 %v3892_v1 }
 0x12f   :  { %2319 = vst [vmem:[#allocation2 + $0x100] sm:$0xff] %v1637_v13  ;;  %v1639_v16 = vpop.f32.mrb[3].mxu0  ;;  %2213 = vmatprep.subr.bf16.mxu0 %v3923_v2  ;;  %2321 = vst [vmem:[#allocation2 + $0x110] sm:$0xff] %v1680_v15  ;;  %v1682_v19 = vpop.f32.mrb[3].mxu1  ;;  %2256 = vmatprep.subr.bf16.mxu1 %v3925_v4  ;;  %v5276_v15 = vmov 0.0  }
 0x130   :  { %2320 = vst [vmem:[#allocation2 + $0x108] sm:$0xff] %v1639_v16  ;;  %2322 = vst [vmem:[#allocation2 + $0x118] sm:$0xff] %v1682_v19  ;;  %v5278_v16 = vmov 0.0   ;;  %v5284_v19 = vmov 0.0  }
 0x132   :  { %2214 = vmatpush1.bf16.msra.mxu0 %v3922_v14  ;;  %2257 = vmatpush1.bf16.msra.mxu1 %v3924_v17  ;;  %v5280_v17 = vmov 0.0  }
 0x133   :  { %2215 = vmatprep.subr.bf16.mxu0 %v3955_v18  ;;  %2258 = vmatprep.subr.bf16.mxu1 %v3957_v20  ;;  %v5282_v18 = vmov 0.0   ;;  %v5286_v20 = vmov 0.0  }
 0x136   :  { %2216 = vmatpush1.bf16.msra.mxu0 %v3954_v21  ;;  %2259 = vmatpush1.bf16.msra.mxu1 %v3956_v22  ;;  %v5288_v21 = vmov 0.0   ;;  %v5290_v22 = vmov 0.0  }
 0x139   :  { %2234 = vmatmul.mubr.bf16.vlgmr.msra.gmra.mrb[28].mxu0 %v5264_v28  ;;  %2277 = vmatmul.mubr.bf16.vlgmr.msra.gmra.mrb[28].mxu1 %v5264_v28 }
 0x14c   :  { %v1719_v23 = vpop.f32.mrb[4].mxu0  ;;  %v1762_v24 = vpop.f32.mrb[4].mxu1 }
 0x14d   :  { %2291 = vst [vmem:[#allocation2 + $0x20] sm:$0xff] %v1719_v23  ;;  %v1721_v25 = vpop.f32.mrb[5].mxu0  ;;  %2293 = vst [vmem:[#allocation2 + $0x30] sm:$0xff] %v1762_v24  ;;  %v1764_v26 = vpop.f32.mrb[5].mxu1  ;;  %v5292_v23 = vmov 0.0   ;;  %v5294_v24 = vmov 0.0  }
 0x14e   :  { %2292 = vst [vmem:[#allocation2 + $0x28] sm:$0xff] %v1721_v25  ;;  %v1723_v27 = vpop.f32.mrb[6].mxu0  ;;  %2294 = vst [vmem:[#allocation2 + $0x38] sm:$0xff] %v1764_v26  ;;  %v1766_v29 = vpop.f32.mrb[6].mxu1  ;;  %v5296_v25 = vmov 0.0   ;;  %v5298_v26 = vmov 0.0  }
 0x14f   :  { %2323 = vst [vmem:[#allocation2 + $0x120] sm:$0xff] %v1723_v27  ;;  %v1725_v30 = vpop.f32.mrb[7].mxu0  ;;  %2325 = vst [vmem:[#allocation2 + $0x130] sm:$0xff] %v1766_v29  ;;  %v1768_v31 = vpop.f32.mrb[7].mxu1  ;;  %v5300_v27 = vmov 0.0   ;;  %v5302_v29 = vmov 0.0  }
 0x150   :  { %2324 = vst [vmem:[#allocation2 + $0x128] sm:$0xff] %v1725_v30  ;;  %2326 = vst [vmem:[#allocation2 + $0x138] sm:$0xff] %v1768_v31  ;;  %v5304_v30 = vmov 0.0   ;;  %v5306_v31 = vmov 0.0  }
 0x16c   :  { %v1805_v32 = vpop.f32.mrb[8].mxu0  ;;  %v1848_v33 = vpop.f32.mrb[8].mxu1 }
 0x16d   :  { %2295 = vst [vmem:[#allocation2 + $0x40] sm:$0xff] %v1805_v32  ;;  %v1807_v28 = vpop.f32.mrb[9].mxu0  ;;  %2297 = vst [vmem:[#allocation2 + $0x50] sm:$0xff] %v1848_v33  ;;  %v1850_v34 = vpop.f32.mrb[9].mxu1  ;;  %v5308_v32 = vmov 0.0   ;;  %v5310_v33 = vmov 0.0  }
 0x16e   :  { %2296 = vst [vmem:[#allocation2 + $0x48] sm:$0xff] %v1807_v28  ;;  %v1809_v35 = vpop.f32.mrb[10].mxu0  ;;  %2298 = vst [vmem:[#allocation2 + $0x58] sm:$0xff] %v1850_v34  ;;  %v1852_v36 = vpop.f32.mrb[10].mxu1  ;;  %v5312_v28 = vmov 0.0   ;;  %v5314_v34 = vmov 0.0  }
 0x16f   :  { %2327 = vst [vmem:[#allocation2 + $0x140] sm:$0xff] %v1809_v35  ;;  %v1811_v37 = vpop.f32.mrb[11].mxu0  ;;  %2329 = vst [vmem:[#allocation2 + $0x150] sm:$0xff] %v1852_v36  ;;  %v1854_v10 = vpop.f32.mrb[11].mxu1  ;;  %v5316_v35 = vmov 0.0   ;;  %v5318_v36 = vmov 0.0  }
 0x170   :  { %2328 = vst [vmem:[#allocation2 + $0x148] sm:$0xff] %v1811_v37  ;;  %2330 = vst [vmem:[#allocation2 + $0x158] sm:$0xff] %v1854_v10  ;;  %v5320_v37 = vmov 0.0   ;;  %v5322_v10 = vmov 0.0  }
 0x18c   :  { %v1891_v38 = vpop.f32.mrb[12].mxu0  ;;  %v1934_v39 = vpop.f32.mrb[12].mxu1 }
 0x18d   :  { %2299 = vst [vmem:[#allocation2 + $0x60] sm:$0xff] %v1891_v38  ;;  %v1893_v40 = vpop.f32.mrb[13].mxu0  ;;  %2301 = vst [vmem:[#allocation2 + $0x70] sm:$0xff] %v1934_v39  ;;  %v1936_v41 = vpop.f32.mrb[13].mxu1  ;;  %v5324_v38 = vmov 0.0   ;;  %v5326_v39 = vmov 0.0  }
 0x18e   :  { %2300 = vst [vmem:[#allocation2 + $0x68] sm:$0xff] %v1893_v40  ;;  %v1895_v42 = vpop.f32.mrb[14].mxu0  ;;  %2302 = vst [vmem:[#allocation2 + $0x78] sm:$0xff] %v1936_v41  ;;  %v1938_v43 = vpop.f32.mrb[14].mxu1  ;;  %v5328_v40 = vmov 0.0   ;;  %v5330_v41 = vmov 0.0  }
 0x18f   :  { %2331 = vst [vmem:[#allocation2 + $0x160] sm:$0xff] %v1895_v42  ;;  %v1897_v44 = vpop.f32.mrb[15].mxu0  ;;  %2333 = vst [vmem:[#allocation2 + $0x170] sm:$0xff] %v1938_v43  ;;  %v1940_v45 = vpop.f32.mrb[15].mxu1  ;;  %v5332_v42 = vmov 0.0   ;;  %v5334_v43 = vmov 0.0  }
 0x190   :  { %2332 = vst [vmem:[#allocation2 + $0x168] sm:$0xff] %v1897_v44  ;;  %2334 = vst [vmem:[#allocation2 + $0x178] sm:$0xff] %v1940_v45  ;;  %v5336_v44 = vmov 0.0   ;;  %v5338_v45 = vmov 0.0  }
 0x1ac   :  { %v1977_v46 = vpop.f32.mrb[16].mxu0  ;;  %v2020_v47 = vpop.f32.mrb[16].mxu1 }
 0x1ad   :  { %2303 = vst [vmem:[#allocation2 + $0x80] sm:$0xff] %v1977_v46  ;;  %v1979_v48 = vpop.f32.mrb[17].mxu0  ;;  %2305 = vst [vmem:[#allocation2 + $0x90] sm:$0xff] %v2020_v47  ;;  %v2022_v49 = vpop.f32.mrb[17].mxu1 }
 0x1ae   :  { %2304 = vst [vmem:[#allocation2 + $0x88] sm:$0xff] %v1979_v48  ;;  %v1981_v50 = vpop.f32.mrb[18].mxu0  ;;  %2306 = vst [vmem:[#allocation2 + $0x98] sm:$0xff] %v2022_v49  ;;  %v2024_v0 = vpop.f32.mrb[18].mxu1 }
 0x1af   :  { %2335 = vst [vmem:[#allocation2 + $0x180] sm:$0xff] %v1981_v50  ;;  %v1983_v51 = vpop.f32.mrb[19].mxu0  ;;  %2337 = vst [vmem:[#allocation2 + $0x190] sm:$0xff] %v2024_v0  ;;  %v2026_v52 = vpop.f32.mrb[19].mxu1 }
 0x1b0   :  { %2336 = vst [vmem:[#allocation2 + $0x188] sm:$0xff] %v1983_v51  ;;  %2338 = vst [vmem:[#allocation2 + $0x198] sm:$0xff] %v2026_v52 }
 0x1cc   :  { %v2063_v53 = vpop.f32.mrb[20].mxu0  ;;  %v2106_v54 = vpop.f32.mrb[20].mxu1 }
 0x1cd   :  { %2307 = vst [vmem:[#allocation2 + $0xa0] sm:$0xff] %v2063_v53  ;;  %v2065_v55 = vpop.f32.mrb[21].mxu0  ;;  %2309 = vst [vmem:[#allocation2 + $0xb0] sm:$0xff] %v2106_v54  ;;  %v2108_v56 = vpop.f32.mrb[21].mxu1 }
 0x1ce   :  { %2308 = vst [vmem:[#allocation2 + $0xa8] sm:$0xff] %v2065_v55  ;;  %v2067_v57 = vpop.f32.mrb[22].mxu0  ;;  %2310 = vst [vmem:[#allocation2 + $0xb8] sm:$0xff] %v2108_v56  ;;  %v2110_v58 = vpop.f32.mrb[22].mxu1 }
 0x1cf   :  { %2339 = vst [vmem:[#allocation2 + $0x1a0] sm:$0xff] %v2067_v57  ;;  %v2069_v59 = vpop.f32.mrb[23].mxu0  ;;  %2341 = vst [vmem:[#allocation2 + $0x1b0] sm:$0xff] %v2110_v58  ;;  %v2112_v60 = vpop.f32.mrb[23].mxu1 }
 0x1d0   :  { %2340 = vst [vmem:[#allocation2 + $0x1a8] sm:$0xff] %v2069_v59  ;;  %2342 = vst [vmem:[#allocation2 + $0x1b8] sm:$0xff] %v2112_v60 }
 0x1ec   :  { %v2149_v61 = vpop.f32.mrb[24].mxu0  ;;  %v2192_v62 = vpop.f32.mrb[24].mxu1 }
 0x1ed   :  { %2311 = vst [vmem:[#allocation2 + $0xc0] sm:$0xff] %v2149_v61  ;;  %v2151_v63 = vpop.f32.mrb[25].mxu0  ;;  %2313 = vst [vmem:[#allocation2 + $0xd0] sm:$0xff] %v2192_v62  ;;  %v2194_v1 = vpop.f32.mrb[25].mxu1 }
 0x1ee   :  { %2312 = vst [vmem:[#allocation2 + $0xc8] sm:$0xff] %v2151_v63  ;;  %v2153_v2 = vpop.f32.mrb[26].mxu0  ;;  %2314 = vst [vmem:[#allocation2 + $0xd8] sm:$0xff] %v2194_v1  ;;  %v2196_v3 = vpop.f32.mrb[26].mxu1 }
 0x1ef   :  { %2343 = vst [vmem:[#allocation2 + $0x1c0] sm:$0xff] %v2153_v2  ;;  %v2155_v4 = vpop.f32.mrb[27].mxu0  ;;  %2345 = vst [vmem:[#allocation2 + $0x1d0] sm:$0xff] %v2196_v3  ;;  %v2198_v5 = vpop.f32.mrb[27].mxu1 }
 0x1f0   :  { %2344 = vst [vmem:[#allocation2 + $0x1c8] sm:$0xff] %v2155_v4  ;;  %2346 = vst [vmem:[#allocation2 + $0x1d8] sm:$0xff] %v2198_v5 }
 0x20c   :  { %v2235_v6 = vpop.f32.mrb[28].mxu0  ;;  %v2278_v7 = vpop.f32.mrb[28].mxu1 }
 0x20d   :  { %2315 = vst [vmem:[#allocation2 + $0xe0] sm:$0xff] %v2235_v6  ;;  %v2237_v8 = vpop.f32.mrb[29].mxu0  ;;  %2317 = vst [vmem:[#allocation2 + $0xf0] sm:$0xff] %v2278_v7  ;;  %v2280_v9 = vpop.f32.mrb[29].mxu1 }
 0x20e   :  { %2316 = vst [vmem:[#allocation2 + $0xe8] sm:$0xff] %v2237_v8  ;;  %v2239_v11 = vpop.f32.mrb[30].mxu0  ;;  %2318 = vst [vmem:[#allocation2 + $0xf8] sm:$0xff] %v2280_v9  ;;  %v2282_v12 = vpop.f32.mrb[30].mxu1 }
 0x20f   :  { %2347 = vst [vmem:[#allocation2 + $0x1e0] sm:$0xff] %v2239_v11  ;;  %v2241_v13 = vpop.f32.mrb[31].mxu0  ;;  %2349 = vst [vmem:[#allocation2 + $0x1f0] sm:$0xff] %v2282_v12  ;;  %v2284_v14 = vpop.f32.mrb[31].mxu1 }
 0x210   :  { %2348 = vst [vmem:[#allocation2 + $0x1e8] sm:$0xff] %v2241_v13  ;;  %2350 = vst [vmem:[#allocation2 + $0x1f8] sm:$0xff] %v2284_v14 }
 0x211 LB: > { %6761 = vst [vmem:[#allocation10_spill] sm:$0xff] %v4893_v15  ;;  %6762 = vst [vmem:[#allocation11_spill] sm:$0xff] %v4897_v16  ;;  %s3958_s28 = sshll.u32 %s5021_s0, 3  ;;  %s2356_s6 = sadd.s32 1, %s5021_s0   ;;  %s5021_s0 = sphi %s5340_s0, %s6897_s0   ;;  %v5017_v45 = vphi %v5338_v45, %v6896_v45   ;;  %v5013_v44 = vphi %v5336_v44, %v6895_v44   ;;  %v5009_v43 = vphi %v5334_v43, %v6894_v43   ;;  %v5005_v42 = vphi %v5332_v42, %v6893_v42   ;;  %v5001_v41 = vphi %v5330_v41, %v6892_v41   ;;  %v4997_v40 = vphi %v5328_v40, %v6891_v40   ;;  %v4993_v39 = vphi %v5326_v39, %v6890_v39   ;;  %v4989_v38 = vphi %v5324_v38, %v6889_v38   ;;  %v4985_v10 = vphi %v5322_v10, %v6888_v10   ;;  %v4981_v37 = vphi %v5320_v37, %v6887_v37   ;;  %v4977_v36 = vphi %v5318_v36, %v6886_v36   ;;  %v4973_v35 = vphi %v5316_v35, %v6885_v35   ;;  %v4969_v34 = vphi %v5314_v34, %v6884_v34   ;;  %v4965_v28 = vphi %v5312_v28, %v6883_v28   ;;  %v4961_v33 = vphi %v5310_v33, %v6882_v33   ;;  %v4957_v32 = vphi %v5308_v32, %v6881_v32   ;;  %v4953_v31 = vphi %v5306_v31, %v6880_v31   ;;  %v4949_v30 = vphi %v5304_v30, %v6879_v30   ;;  %v4945_v29 = vphi %v5302_v29, %v6878_v29   ;;  %v4941_v27 = vphi %v5300_v27, %v6877_v27   ;;  %v4937_v26 = vphi %v5298_v26, %v6876_v26   ;;  %v4933_v25 = vphi %v5296_v25, %v6875_v25   ;;  %v4929_v24 = vphi %v5294_v24, %v6874_v24   ;;  %v4925_v23 = vphi %v5292_v23, %v6873_v23   ;;  %v4921_v22 = vphi %v5290_v22, %v6872_v22   ;;  %v4917_v21 = vphi %v5288_v21, %v6870_v21   ;;  %v4913_v20 = vphi %v5286_v20, %v6868_v20   ;;  %v4909_v19 = vphi %v5284_v19, %v6866_v19   ;;  %v4905_v18 = vphi %v5282_v18, %v6864_v18   ;;  %v4901_v17 = vphi %v5280_v17, %v6862_v17   ;;  %v4897_v16 = vphi %v5278_v16, %v6860_v16   ;;  %v4893_v15 = vphi %v5276_v15, %v6858_v15  }
 0x212   : > { %6763 = vst [vmem:[#allocation12_spill] sm:$0xff] %v4901_v17  ;;  %6764 = vst [vmem:[#allocation13_spill] sm:$0xff] %v4905_v18  ;;  %s2390_s29 = sshra.s32 %s3958_s28, 3  ;;  %p5647_p10 = scmp.ge.s32.totalorder %s2356_s6, 2  }
 0x213   : > { %6765 = vst [vmem:[#allocation14_spill] sm:$0xff] %v4909_v19  ;;  %6766 = vst [vmem:[#allocation15_spill] sm:$0xff] %v4913_v20  ;;  %s3984_s30 = sshll.u32 %s2390_s29, 8  ;;  %s6897_s0 = smov %s2356_s6 }
 0x214   : > { %6767 = vst [vmem:[#allocation16_spill] sm:$0xff] %v4917_v21  ;;  %6768 = vst [vmem:[#allocation17_spill] sm:$0xff] %v4921_v22  ;;  %s5442_s5 = scalar_lea.vmem [#allocation2], %s3984_s30  ;;  %s5853_s8 = smov (%p5647_p10), 0  }
 0x215   : > { %6769 = vst [vmem:[#allocation18_spill] sm:$0xff] %v4925_v23  ;;  %6770 = vst [vmem:[#allocation19_spill] sm:$0xff] %v4929_v24 }
 0x216   : > { %6771 = vst [vmem:[#allocation20_spill] sm:$0xff] %v4933_v25  ;;  %6772 = vst [vmem:[#allocation21_spill] sm:$0xff] %v4937_v26 }
 0x217   : > { %6773 = vst [vmem:[#allocation22_spill] sm:$0xff] %v4941_v27  ;;  %6774 = vst [vmem:[#allocation23_spill] sm:$0xff] %v4945_v29  ;;  %v2395_v46 = vld [vmem:[%s5442_s5] sm:$0xff]  ;;  %v2396_v47 = vld [vmem:[%s5442_s5 + $0x8] sm:$0xff] }
 0x218   : > { %6775 = vst [vmem:[#allocation24_spill] sm:$0xff] %v4949_v30  ;;  %6776 = vst [vmem:[#allocation25_spill] sm:$0xff] %v4953_v31  ;;  %v2397_v48 = vld [vmem:[%s5442_s5 + $0x10] sm:$0xff]  ;;  %v2398_v49 = vld [vmem:[%s5442_s5 + $0x18] sm:$0xff]  ;;  %v2427_v53 = vrot.slane %v2395_v46, 4  ;;  %v2433_v54 = vrot.slane %v2396_v47, 4 }
 0x219   : > { %6777 = vst [vmem:[#allocation26_spill] sm:$0xff] %v4957_v32  ;;  %6778 = vst [vmem:[#allocation27_spill] sm:$0xff] %v4961_v33  ;;  %v2399_v50 = vld [vmem:[%s5442_s5 + $0x20] sm:$0xff]  ;;  %v2400_v0 = vld [vmem:[%s5442_s5 + $0x28] sm:$0xff]  ;;  %v2439_v55 = vrot.slane %v2397_v48, 4  ;;  %v2445_v56 = vrot.slane %v2398_v49, 4 }
 0x21a   : > { %v2401_v51 = vld [vmem:[%s5442_s5 + $0x30] sm:$0xff]  ;;  %v2402_v52 = vld [vmem:[%s5442_s5 + $0x38] sm:$0xff]  ;;  %v2451_v57 = vrot.slane %v2399_v50, 4  ;;  %v2457_v58 = vrot.slane %v2400_v0, 4  ;;  %v2428_v61 = vadd.f32 %v2427_v53, %v2395_v46  ;;  %v2434_v62 = vadd.f32 %v2433_v54, %v2396_v47  ;;  %v2404_v54 = vld [vmem:[%s5442_s5 + $0x48] sm:$0xff] }
 0x21b   : > { %v2463_v59 = vrot.slane %v2401_v51, 4  ;;  %v2469_v60 = vrot.slane %v2402_v52, 4  ;;  %v2440_v63 = vadd.f32 %v2439_v55, %v2397_v48  ;;  %v2446_v1 = vadd.f32 %v2445_v56, %v2398_v49  ;;  %v2405_v55 = vld [vmem:[%s5442_s5 + $0x50] sm:$0xff] }
 0x21c   : > { %v2452_v2 = vadd.f32 %v2451_v57, %v2399_v50  ;;  %v2458_v3 = vadd.f32 %v2457_v58, %v2400_v0  ;;  %v2429_v6 = vrot.slane %v2428_v61, 2  ;;  %v2435_v7 = vrot.slane %v2434_v62, 2  ;;  %v2403_v50 = vld [vmem:[%s5442_s5 + $0x40] sm:$0xff] }
 0x21d   : > { %v2464_v4 = vadd.f32 %v2463_v59, %v2401_v51  ;;  %v2470_v5 = vadd.f32 %v2469_v60, %v2402_v52  ;;  %v2441_v8 = vrot.slane %v2440_v63, 2  ;;  %v2447_v9 = vrot.slane %v2446_v1, 2  ;;  %v2406_v60 = vld [vmem:[%s5442_s5 + $0x58] sm:$0xff] }
 0x21e   : > { %v2453_v11 = vrot.slane %v2452_v2, 2  ;;  %v2459_v12 = vrot.slane %v2458_v3, 2  ;;  %v2430_v46 = vadd.f32 %v2429_v6, %v2428_v61  ;;  %v2436_v47 = vadd.f32 %v2435_v7, %v2434_v62  ;;  %v2407_v61 = vld [vmem:[%s5442_s5 + $0x60] sm:$0xff]  ;;  %v2408_v7 = vld [vmem:[%s5442_s5 + $0x68] sm:$0xff] }
 0x21f   : > { %v2465_v13 = vrot.slane %v2464_v4, 2  ;;  %v2471_v14 = vrot.slane %v2470_v5, 2  ;;  %v2442_v48 = vadd.f32 %v2441_v8, %v2440_v63  ;;  %v2448_v49 = vadd.f32 %v2447_v9, %v2446_v1  ;;  %v2410_v8 = vld [vmem:[%s5442_s5 + $0x78] sm:$0xff] }
 0x220   : > { %v2454_v0 = vadd.f32 %v2453_v11, %v2452_v2  ;;  %v2460_v51 = vadd.f32 %v2459_v12, %v2458_v3  ;;  %v2431_v56 = vrot.slane %v2430_v46, 1  ;;  %v2437_v57 = vrot.slane %v2436_v47, 1  ;;  %v2409_v2 = vld [vmem:[%s5442_s5 + $0x70] sm:$0xff] }
 0x221   : > { %v2466_v52 = vadd.f32 %v2465_v13, %v2464_v4  ;;  %v2472_v53 = vadd.f32 %v2471_v14, %v2470_v5  ;;  %v2443_v58 = vrot.slane %v2442_v48, 1  ;;  %v2449_v59 = vrot.slane %v2448_v49, 1 }
 0x222   : > { %v2455_v6 = vrot.slane %v2454_v0, 1  ;;  %v2461_v62 = vrot.slane %v2460_v51, 1  ;;  %v5460_v3 = vadd.f32 %v2431_v56, %v2430_v46  ;;  %v5462_v4 = vadd.f32 %v2437_v57, %v2436_v47 }
 0x223   : > { %v2467_v63 = vrot.slane %v2466_v52, 1  ;;  %v2473_v1 = vrot.slane %v2472_v53, 1  ;;  %v5464_v5 = vadd.f32 %v2443_v58, %v2442_v48  ;;  %v5466_v9 = vadd.f32 %v2449_v59, %v2448_v49 }
 0x224   : > { %v5468_v11 = vadd.f32 %v2455_v6, %v2454_v0  ;;  %v5470_v12 = vadd.f32 %v2461_v62, %v2460_v51  ;;  %v2475_v15 = vrot.slane %v2403_v50, 4  ;;  %v2481_v16 = vrot.slane %v2404_v54, 4 }
 0x225   : > { %v5472_v13 = vadd.f32 %v2467_v63, %v2466_v52  ;;  %v5474_v14 = vadd.f32 %v2473_v1, %v2472_v53  ;;  %v2487_v17 = vrot.slane %v2405_v55, 4  ;;  %v2493_v18 = vrot.slane %v2406_v60, 4 }
 0x226   : > { %v2499_v46 = vrot.slane %v2407_v61, 4  ;;  %v2505_v56 = vrot.slane %v2408_v7, 4  ;;  %v2511_v47 = vrot.slane %v2409_v2, 4  ;;  %v2517_v57 = vrot.slane %v2410_v8, 4 }
 0x227   : > { %v2476_v48 = vadd.f32 %v2475_v15, %v2403_v50  ;;  %v2482_v58 = vadd.f32 %v2481_v16, %v2404_v54  ;;  %v2488_v49 = vadd.f32 %v2487_v17, %v2405_v55  ;;  %v2494_v59 = vadd.f32 %v2493_v18, %v2406_v60  ;;  %v2411_v50 = vld [vmem:[%s5442_s5 + $0x80] sm:$0xff] }
 0x228   : > { %v2500_v0 = vadd.f32 %v2499_v46, %v2407_v61  ;;  %v2506_v51 = vadd.f32 %v2505_v56, %v2408_v7  ;;  %v2512_v6 = vadd.f32 %v2511_v47, %v2409_v2  ;;  %v2518_v52 = vadd.f32 %v2517_v57, %v2410_v8  ;;  %v2412_v7 = vld [vmem:[%s5442_s5 + $0x88] sm:$0xff]  ;;  %v2413_v2 = vld [vmem:[%s5442_s5 + $0x90] sm:$0xff]  ;;  %v2414_v57 = vld [vmem:[%s5442_s5 + $0x98] sm:$0xff] }
 0x229   : > { %v2477_v62 = vrot.slane %v2476_v48, 2  ;;  %v2483_v53 = vrot.slane %v2482_v58, 2  ;;  %v2489_v63 = vrot.slane %v2488_v49, 2  ;;  %v2495_v1 = vrot.slane %v2494_v59, 2 }
 0x22a   : > { %v2501_v19 = vrot.slane %v2500_v0, 2  ;;  %v2507_v20 = vrot.slane %v2506_v51, 2  ;;  %v2513_v21 = vrot.slane %v2512_v6, 2  ;;  %v2519_v22 = vrot.slane %v2518_v52, 2 }
 0x22b   : > { %v2478_v15 = vadd.f32 %v2477_v62, %v2476_v48  ;;  %v2484_v16 = vadd.f32 %v2483_v53, %v2482_v58  ;;  %v2490_v17 = vadd.f32 %v2489_v63, %v2488_v49  ;;  %v2496_v18 = vadd.f32 %v2495_v1, %v2494_v59  ;;  %v2415_v48 = vld [vmem:[%s5442_s5 + $0xa0] sm:$0xff]  ;;  %v2416_v53 = vld [vmem:[%s5442_s5 + $0xa8] sm:$0xff] }
 0x22c   : > { %v2502_v54 = vadd.f32 %v2501_v19, %v2500_v0  ;;  %v2508_v55 = vadd.f32 %v2507_v20, %v2506_v51  ;;  %v2514_v60 = vadd.f32 %v2513_v21, %v2512_v6  ;;  %v2520_v61 = vadd.f32 %v2519_v22, %v2518_v52  ;;  %v2417_v19 = vld [vmem:[%s5442_s5 + $0xb0] sm:$0xff]  ;;  %v2418_v0 = vld [vmem:[%s5442_s5 + $0xb8] sm:$0xff] }
 0x22d   : > { %v2479_v8 = vrot.slane %v2478_v15, 1  ;;  %v2485_v46 = vrot.slane %v2484_v16, 1  ;;  %v2491_v56 = vrot.slane %v2490_v17, 1  ;;  %v2497_v47 = vrot.slane %v2496_v18, 1 }
 0x22e   : > { %v2503_v62 = vrot.slane %v2502_v54, 1  ;;  %v2509_v58 = vrot.slane %v2508_v55, 1  ;;  %v2515_v49 = vrot.slane %v2514_v60, 1  ;;  %v2521_v59 = vrot.slane %v2520_v61, 1 }
 0x22f   : > { %v5484_v20 = vadd.f32 %v2479_v8, %v2478_v15  ;;  %v5486_v21 = vadd.f32 %v2485_v46, %v2484_v16  ;;  %v5488_v22 = vadd.f32 %v2491_v56, %v2490_v17  ;;  %v5490_v51 = vadd.f32 %v2497_v47, %v2496_v18 }
 0x230   : > { %v5492_v6 = vadd.f32 %v2503_v62, %v2502_v54  ;;  %v5494_v52 = vadd.f32 %v2509_v58, %v2508_v55  ;;  %v5496_v63 = vadd.f32 %v2515_v49, %v2514_v60  ;;  %v5498_v1 = vadd.f32 %v2521_v59, %v2520_v61 }
 0x231   : > { %v2523_v23 = vrot.slane %v2411_v50, 4  ;;  %v2529_v24 = vrot.slane %v2412_v7, 4  ;;  %v2535_v25 = vrot.slane %v2413_v2, 4  ;;  %v2541_v26 = vrot.slane %v2414_v57, 4 }
 0x232   : > { %6779 = vst [vmem:[#allocation28_spill] sm:$0xff] %v5496_v63  ;;  %6780 = vst [vmem:[#allocation29_spill] sm:$0xff] %v5498_v1  ;;  %v2547_v15 = vrot.slane %v2415_v48, 4  ;;  %v2553_v8 = vrot.slane %v2416_v53, 4  ;;  %v2559_v16 = vrot.slane %v2417_v19, 4  ;;  %v2565_v46 = vrot.slane %v2418_v0, 4 }
 0x233   : > { %v2524_v17 = vadd.f32 %v2523_v23, %v2411_v50  ;;  %v2530_v56 = vadd.f32 %v2529_v24, %v2412_v7  ;;  %v2536_v18 = vadd.f32 %v2535_v25, %v2413_v2  ;;  %v2542_v47 = vadd.f32 %v2541_v26, %v2414_v57  ;;  %v2419_v50 = vld [vmem:[%s5442_s5 + $0xc0] sm:$0xff] }
 0x234   : > { %v2548_v54 = vadd.f32 %v2547_v15, %v2415_v48  ;;  %v2554_v55 = vadd.f32 %v2553_v8, %v2416_v53  ;;  %v2560_v62 = vadd.f32 %v2559_v16, %v2417_v19  ;;  %v2566_v60 = vadd.f32 %v2565_v46, %v2418_v0  ;;  %v2420_v53 = vld [vmem:[%s5442_s5 + $0xc8] sm:$0xff]  ;;  %v2421_v19 = vld [vmem:[%s5442_s5 + $0xd0] sm:$0xff]  ;;  %v2422_v46 = vld [vmem:[%s5442_s5 + $0xd8] sm:$0xff] }
 0x235   : > { %v2525_v58 = vrot.slane %v2524_v17, 2  ;;  %v2531_v61 = vrot.slane %v2530_v56, 2  ;;  %v2537_v49 = vrot.slane %v2536_v18, 2  ;;  %v2543_v59 = vrot.slane %v2542_v47, 2 }
 0x236   : > { %v2549_v27 = vrot.slane %v2548_v54, 2  ;;  %v2555_v29 = vrot.slane %v2554_v55, 2  ;;  %v2561_v30 = vrot.slane %v2560_v62, 2  ;;  %v2567_v31 = vrot.slane %v2566_v60, 2 }
 0x237   : > { %v2526_v23 = vadd.f32 %v2525_v58, %v2524_v17  ;;  %v2532_v24 = vadd.f32 %v2531_v61, %v2530_v56  ;;  %v2538_v25 = vadd.f32 %v2537_v49, %v2536_v18  ;;  %v2544_v26 = vadd.f32 %v2543_v59, %v2542_v47  ;;  %v2423_v17 = vld [vmem:[%s5442_s5 + $0xe0] sm:$0xff]  ;;  %v2424_v61 = vld [vmem:[%s5442_s5 + $0xe8] sm:$0xff] }
 0x238   : > { %v2550_v7 = vadd.f32 %v2549_v27, %v2548_v54  ;;  %v2556_v2 = vadd.f32 %v2555_v29, %v2554_v55  ;;  %v2562_v57 = vadd.f32 %v2561_v30, %v2560_v62  ;;  %v2568_v48 = vadd.f32 %v2567_v31, %v2566_v60  ;;  %v2425_v27 = vld [vmem:[%s5442_s5 + $0xf0] sm:$0xff]  ;;  %v2426_v54 = vld [vmem:[%s5442_s5 + $0xf8] sm:$0xff] }
 0x239   : > { %v2527_v0 = vrot.slane %v2526_v23, 1  ;;  %v2533_v15 = vrot.slane %v2532_v24, 1  ;;  %v2539_v8 = vrot.slane %v2538_v25, 1  ;;  %v2545_v16 = vrot.slane %v2544_v26, 1 }
 0x23a   : > { %v2551_v58 = vrot.slane %v2550_v7, 1  ;;  %v2557_v56 = vrot.slane %v2556_v2, 1  ;;  %v2563_v18 = vrot.slane %v2562_v57, 1  ;;  %v2569_v47 = vrot.slane %v2568_v48, 1 }
 0x23b   : > { %v5508_v29 = vadd.f32 %v2527_v0, %v2526_v23  ;;  %v5510_v30 = vadd.f32 %v2533_v15, %v2532_v24  ;;  %v5512_v31 = vadd.f32 %v2539_v8, %v2538_v25  ;;  %v5514_v55 = vadd.f32 %v2545_v16, %v2544_v26 }
 0x23c   : > { %v5516_v62 = vadd.f32 %v2551_v58, %v2550_v7  ;;  %v5518_v60 = vadd.f32 %v2557_v56, %v2556_v2  ;;  %v5520_v49 = vadd.f32 %v2563_v18, %v2562_v57  ;;  %v5522_v59 = vadd.f32 %v2569_v47, %v2568_v48 }
 0x23d   : > { %6781 = vst [vmem:[#allocation30_spill] sm:$0xff] %v5508_v29  ;;  %6782 = vst [vmem:[#allocation31_spill] sm:$0xff] %v5510_v30  ;;  %v2571_v32 = vrot.slane %v2419_v50, 4  ;;  %v2577_v1 = vrot.slane %v2420_v53, 4  ;;  %v2583_v33 = vrot.slane %v2421_v19, 4  ;;  %v2589_v63 = vrot.slane %v2422_v46, 4 }
 0x23e   : > { %6783 = vst [vmem:[#allocation32_spill] sm:$0xff] %v5512_v31  ;;  %6784 = vst [vmem:[#allocation33_spill] sm:$0xff] %v5514_v55  ;;  %v2595_v23 = vrot.slane %v2423_v17, 4  ;;  %v2601_v0 = vrot.slane %v2424_v61, 4  ;;  %v2607_v24 = vrot.slane %v2425_v27, 4  ;;  %v2613_v15 = vrot.slane %v2426_v54, 4 }
 0x23f   : > { %6785 = vst [vmem:[#allocation34_spill] sm:$0xff] %v5516_v62  ;;  %6786 = vst [vmem:[#allocation35_spill] sm:$0xff] %v5518_v60  ;;  %v2572_v25 = vadd.f32 %v2571_v32, %v2419_v50  ;;  %v2578_v8 = vadd.f32 %v2577_v1, %v2420_v53  ;;  %v2584_v26 = vadd.f32 %v2583_v33, %v2421_v19 }
 0x240   : > { %6787 = vst [vmem:[#allocation36_spill] sm:$0xff] %v5520_v49  ;;  %6788 = vst [vmem:[#allocation37_spill] sm:$0xff] %v5522_v59  ;;  %v2590_v16 = vadd.f32 %v2589_v63, %v2422_v46  ;;  %v2596_v7 = vadd.f32 %v2595_v23, %v2423_v17  ;;  %v2602_v58 = vadd.f32 %v2601_v0, %v2424_v61 }
 0x241   : > { %v2608_v2 = vadd.f32 %v2607_v24, %v2425_v27  ;;  %v2614_v56 = vadd.f32 %v2613_v15, %v2426_v54  ;;  %v2573_v57 = vrot.slane %v2572_v25, 2  ;;  %v2579_v18 = vrot.slane %v2578_v8, 2 }
 0x242   : > { %v2585_v48 = vrot.slane %v2584_v26, 2  ;;  %v2591_v47 = vrot.slane %v2590_v16, 2  ;;  %v2597_v59 = vrot.slane %v2596_v7, 2  ;;  %v2603_v49 = vrot.slane %v2602_v58, 2 }
 0x243   : > { %v2609_v60 = vrot.slane %v2608_v2, 2  ;;  %v2615_v62 = vrot.slane %v2614_v56, 2  ;;  %v2574_v55 = vadd.f32 %v2573_v57, %v2572_v25  ;;  %v2580_v31 = vadd.f32 %v2579_v18, %v2578_v8 }
 0x244   : > { %v2586_v30 = vadd.f32 %v2585_v48, %v2584_v26  ;;  %v2592_v29 = vadd.f32 %v2591_v47, %v2590_v16  ;;  %v2598_v32 = vadd.f32 %v2597_v59, %v2596_v7  ;;  %v2604_v1 = vadd.f32 %v2603_v49, %v2602_v58  ;;  %v6828_v47 = vld [vmem:[#allocation19_spill] sm:$0xff] }
 0x245   : > { %v2610_v33 = vadd.f32 %v2609_v60, %v2608_v2  ;;  %v2616_v63 = vadd.f32 %v2615_v62, %v2614_v56  ;;  %v2575_v50 = vrot.slane %v2574_v55, 1  ;;  %v2581_v53 = vrot.slane %v2580_v31, 1 }
 0x246   : > { %v2587_v19 = vrot.slane %v2586_v30, 1  ;;  %v2593_v46 = vrot.slane %v2592_v29, 1  ;;  %v2599_v17 = vrot.slane %v2598_v32, 1  ;;  %v2605_v61 = vrot.slane %v2604_v1, 1 }
 0x247   : > { %v2611_v27 = vrot.slane %v2610_v33, 1  ;;  %v2617_v54 = vrot.slane %v2616_v63, 1  ;;  %v2576_v23 = vadd.f32 %v2575_v50, %v2574_v55  ;;  %v2582_v0 = vadd.f32 %v2581_v53, %v2580_v31  ;;  %v6835_v53 = vld [vmem:[#allocation16_spill] sm:$0xff] }
 0x248   : > { %v2588_v24 = vadd.f32 %v2587_v19, %v2586_v30  ;;  %v2594_v15 = vadd.f32 %v2593_v46, %v2592_v29  ;;  %v2600_v25 = vadd.f32 %v2599_v17, %v2598_v32  ;;  %v2606_v8 = vadd.f32 %v2605_v61, %v2604_v1  ;;  %v6838_v19 = vld [vmem:[#allocation15_spill] sm:$0xff]  ;;  %v6841_v17 = vld [vmem:[#allocation14_spill] sm:$0xff] }
 0x249   : > { %v2612_v26 = vadd.f32 %v2611_v27, %v2610_v33  ;;  %v2618_v16 = vadd.f32 %v2617_v54, %v2616_v63  ;;  %v5526_v45 = vadd.f32 %v5017_v45, %v5460_v3   ;;  %v5530_v44 = vadd.f32 %v5013_v44, %v5462_v4  }
 0x24a   : > { %v5534_v43 = vadd.f32 %v5009_v43, %v5464_v5   ;;  %v5538_v42 = vadd.f32 %v5005_v42, %v5466_v9   ;;  %v5542_v41 = vadd.f32 %v5001_v41, %v5468_v11   ;;  %v5546_v40 = vadd.f32 %v4997_v40, %v5470_v12  }
 0x24b   : > { %6789 = vst [vmem:[#allocation38_spill] sm:$0xff] %v5526_v45  ;;  %6790 = vst [vmem:[#allocation39_spill] sm:$0xff] %v5530_v44  ;;  %v5550_v39 = vadd.f32 %v4993_v39, %v5472_v13   ;;  %v5554_v38 = vadd.f32 %v4989_v38, %v5474_v14   ;;  %v5558_v10 = vadd.f32 %v4985_v10, %v5484_v20   ;;  %v6821_v44 = vld [vmem:[#allocation34_spill] sm:$0xff]  ;;  %v6822_v45 = vld [vmem:[#allocation21_spill] sm:$0xff] }
 0x24c   : > { %6791 = vst [vmem:[#allocation40_spill] sm:$0xff] %v5534_v43  ;;  %v6792_v55 = vmov %v5538_v42  ;;  %v6793_v59 = vmov %v5542_v41  ;;  %v6794_v3 = vmov %v5546_v40  ;;  %v5562_v37 = vadd.f32 %v4981_v37, %v5486_v21   ;;  %v6810_v40 = vld [vmem:[#allocation25_spill] sm:$0xff]  ;;  %v6813_v41 = vld [vmem:[#allocation24_spill] sm:$0xff]  ;;  %v6816_v42 = vld [vmem:[#allocation23_spill] sm:$0xff] }
 0x24d   : > { %v6795_v4 = vmov %v5550_v39  ;;  %v6796_v5 = vmov %v5554_v38  ;;  %v6797_v9 = vmov %v5558_v10  ;;  %v5566_v36 = vadd.f32 %v4977_v36, %v5488_v22   ;;  %v6803_v10 = vld [vmem:[#allocation28_spill] sm:$0xff]  ;;  %v6804_v38 = vld [vmem:[#allocation27_spill] sm:$0xff]  ;;  %v6807_v39 = vld [vmem:[#allocation26_spill] sm:$0xff] }
 0x24e   : > { %v6798_v11 = vmov %v5562_v37  ;;  %v5570_v35 = vadd.f32 %v4973_v35, %v5490_v51   ;;  %v5574_v34 = vadd.f32 %v4969_v34, %v5492_v6   ;;  %v5578_v28 = vadd.f32 %v4965_v28, %v5494_v52   ;;  %v6806_v37 = vld [vmem:[#allocation29_spill] sm:$0xff]  ;;  %v6819_v43 = vld [vmem:[#allocation22_spill] sm:$0xff]  ;;  %v6824_v21 = vld [vmem:[#allocation35_spill] sm:$0xff] }
 0x24f   : > { %v6799_v12 = vmov %v5566_v36  ;;  %v5582_v33 = vadd.f32 %v6804_v38, %v6803_v10   ;;  %v5586_v32 = vadd.f32 %v6807_v39, %v6806_v37   ;;  %v6809_v36 = vld [vmem:[#allocation30_spill] sm:$0xff]  ;;  %v5606_v20 = vadd.f32 %v6822_v45, %v6821_v44   ;;  %v6825_v22 = vld [vmem:[#allocation20_spill] sm:$0xff]  ;;  %v6850_v38 = vld [vmem:[#allocation11_spill] sm:$0xff] }
 0x250   : > { %v6800_v13 = vmov %v5570_v35  ;;  %v6801_v14 = vmov %v5574_v34  ;;  %v6802_v7 = vmov %v5578_v28  ;;  %v5590_v31 = vadd.f32 %v6810_v40, %v6809_v36   ;;  %v6812_v35 = vld [vmem:[#allocation31_spill] sm:$0xff]  ;;  %v6815_v34 = vld [vmem:[#allocation32_spill] sm:$0xff]  ;;  %v6818_v28 = vld [vmem:[#allocation33_spill] sm:$0xff] }
 0x251   : > { %v6805_v58 = vmov %v5582_v33  ;;  %v6808_v2 = vmov %v5586_v32  ;;  %v5594_v30 = vadd.f32 %v6813_v41, %v6812_v35   ;;  %v5598_v29 = vadd.f32 %v6816_v42, %v6815_v34   ;;  %v6831_v33 = vld [vmem:[#allocation18_spill] sm:$0xff]  ;;  %v6847_v10 = vld [vmem:[#allocation12_spill] sm:$0xff] }
 0x252   : > { %v6811_v51 = vmov %v5590_v31  ;;  %v5602_v27 = vadd.f32 %v6819_v43, %v6818_v28   ;;  %v6823_v57 = vmov %v5606_v20  ;;  %v5610_v18 = vadd.f32 %v6825_v22, %v6824_v21   ;;  %v6827_v31 = vld [vmem:[#allocation36_spill] sm:$0xff]  ;;  %v6896_v45 = vld [vmem:[#allocation38_spill] sm:$0xff] }
 0x253   : > { %v6814_v6 = vmov %v5594_v30  ;;  %v6817_v52 = vmov %v5598_v29  ;;  %v5614_v32 = vadd.f32 %v6828_v47, %v6827_v31   ;;  %v6830_v30 = vld [vmem:[#allocation37_spill] sm:$0xff]  ;;  %v5624_v21 = vadd.f32 %v6835_v53, %v2582_v0   ;;  %v6895_v44 = vld [vmem:[#allocation39_spill] sm:$0xff]  ;;  %v6898_v0 = vld [vmem:[#allocation38_spill] sm:$0xff] (%p5647_p10) }
 0x254   : > { %v6820_v56 = vmov %v5602_v27  ;;  %v6826_v48 = vmov %v5610_v18  ;;  %v5618_v63 = vadd.f32 %v6831_v33, %v6830_v30   ;;  %v6832_v29 = vld [vmem:[#allocation17_spill] sm:$0xff]  ;;  %v5627_v20 = vadd.f32 %v6838_v19, %v2588_v24  }
 0x255   : > { %v6829_v1 = vmov %v5614_v32  ;;  %v5621_v22 = vadd.f32 %v6832_v29, %v2576_v23   ;;  %6836 = vst [vmem:[#allocation42_spill] sm:$0xff] %v5624_v21  ;;  %v5630_v19 = vadd.f32 %v6841_v17, %v2594_v15   ;;  %v6844_v27 = vld [vmem:[#allocation13_spill] sm:$0xff]  ;;  %v5636_v17 = vadd.f32 %v6847_v10, %v2606_v8   ;;  %v6853_v23 = vld [vmem:[#allocation10_spill] sm:$0xff] }
 0x256   : > { %6839 = vst [vmem:[#allocation43_spill] sm:$0xff] %v5627_v20  ;;  %v5633_v18 = vadd.f32 %v6844_v27, %v2600_v25   ;;  %v5639_v37 = vadd.f32 %v6850_v38, %v2612_v26   ;;  %v5642_v15 = vadd.f32 %v6853_v23, %v2618_v16   ;;  %v6867_v61 = vmov %v5627_v20  ;;  %v6894_v43 = vld [vmem:[#allocation40_spill] sm:$0xff] }
 0x257   : > { %6833 = vst [vmem:[#allocation41_spill] sm:$0xff] %v5621_v22  ;;  %6842 = vst [vmem:[#allocation44_spill] sm:$0xff] %v5630_v19  ;;  %v6861_v62 = vmov %v5636_v17  ;;  %v6865_v54 = vmov %v5630_v19  ;;  %v6868_v20 = vmov %v6867_v61  ;;  %v6869_v46 = vmov %v5624_v21  ;;  %v6899_v8 = vld [vmem:[#allocation40_spill] sm:$0xff] (%p5647_p10) }
 0x258   : > { %6845 = vst [vmem:[#allocation45_spill] sm:$0xff] %v5633_v18  ;;  %6848 = vst [vmem:[#allocation46_spill] sm:$0xff] %v5636_v17  ;;  %v6857_v49 = vmov %v5642_v15  ;;  %v6859_v60 = vmov %v5639_v37  ;;  %v6862_v17 = vmov %v6861_v62  ;;  %v6863_v47 = vmov %v5633_v18 }
 0x259   : > { %6851 = vst [vmem:[#allocation47_spill] sm:$0xff] %v5639_v37  ;;  %6854 = vst [vmem:[#allocation48_spill] sm:$0xff] %v5642_v15  ;;  %v6858_v15 = vmov %v6857_v49  ;;  %v6860_v16 = vmov %v6859_v60  ;;  %v6864_v18 = vmov %v6863_v47  ;;  %v6866_v19 = vmov %v6865_v54  ;;  %2355 = sbr.rel (!%p5647_p10) target bundleno = 529 (0x211), region = 73  ;;  %v6900_v49 = vld [vmem:[#allocation39_spill] sm:$0xff] (%p5647_p10) }
 0x25a   : > { %v6870_v21 = vmov %v6869_v46  ;;  %v6871_v50 = vmov %v5621_v22  ;;  %v6873_v23 = vmov %v5618_v63  ;;  %v6874_v24 = vmov %v6829_v1 }
 0x25b   : > { %v6872_v22 = vmov %v6871_v50  ;;  %v6875_v25 = vmov %v6826_v48  ;;  %v6876_v26 = vmov %v6823_v57  ;;  %v6877_v27 = vmov %v6820_v56 }
 0x25c   : > { %v6878_v29 = vmov %v6817_v52  ;;  %v6879_v30 = vmov %v6814_v6  ;;  %v6880_v31 = vmov %v6811_v51  ;;  %v6881_v32 = vmov %v6808_v2 }
 0x25d   : > { %v6882_v33 = vmov %v6805_v58  ;;  %v6883_v28 = vmov %v6802_v7  ;;  %v6884_v34 = vmov %v6801_v14  ;;  %v6885_v35 = vmov %v6800_v13 }
 0x25e   : > { %v6886_v36 = vmov %v6799_v12  ;;  %v6887_v37 = vmov %v6798_v11  ;;  %v6888_v10 = vmov %v6797_v9  ;;  %v6889_v38 = vmov %v6796_v5 }
 0x25f   : > { %v6890_v39 = vmov %v6795_v4  ;;  %v6891_v40 = vmov %v6794_v3  ;;  %v6892_v41 = vmov %v6793_v59  ;;  %v6893_v42 = vmov %v6792_v55 }
 0x260   :  { %v2651_v53 = vadd.f32 %v6899_v8, %v6898_v0  ;;  %v2652_v60 = vadd.f32 %v6792_v55, %v6900_v49  ;;  %v6906_v40 = vld [vmem:[#allocation46_spill] sm:$0xff]  ;;  %v6907_v35 = vld [vmem:[#allocation47_spill] sm:$0xff]  ;;  %v5789_v28 = vmov 0.0   ;;  %v5791_v43 = vmov 0.0  }
 0x261   :  { %v5795_v44 = vmov 0.0   ;;  %v5797_v20 = vmov 0.0   ;;  %v5801_v21 = vmov 0.0   ;;  %v5803_v22 = vmov 0.0  }
 0x262   :  { %v2653_v62 = vadd.f32 %v2651_v53, %v6793_v59  ;;  %v2654_v47 = vadd.f32 %v2652_v60, %v6794_v3  ;;  %v5805_v18 = vmov 0.0   ;;  %v5809_v31 = vmov 0.0  }
 0x263   :  { %v5811_v32 = vmov 0.0   ;;  %v5815_v30 = vmov 0.0   ;;  %v5817_v33 = vmov 0.0   ;;  %v5821_v29 = vmov 0.0  }
 0x264   :  { %v2655_v54 = vadd.f32 %v2653_v62, %v6795_v4  ;;  %v2656_v61 = vadd.f32 %v2654_v47, %v6796_v5  ;;  %v5827_v19 = vmov 0.0   ;;  %v5831_v17 = vmov 0.0  }
 0x265   :  { %v5835_v27 = vmov 0.0   ;;  %v5837_v47 = vmov 0.0   ;;  %v5839_v10 = vmov 0.0   ;;  %v5841_v38 = vmov 0.0  }
 0x266   :  { %v2657_v45 = vadd.f32 %v2655_v54, %v6797_v9  ;;  %v2658_v46 = vadd.f32 %v2656_v61, %v6798_v11  ;;  %v6901_v9 = vld [vmem:[#allocation41_spill] sm:$0xff]  ;;  %v5829_v61 = vmov 0.0   ;;  %v5833_v54 = vmov 0.0  }
 0x267   :  { %v5843_v37 = vmov 0.0   ;;  %v5845_v23 = vmov 0.0   ;;  %v5847_v0 = vmov 0.0   ;;  %v5849_v8 = vmov 0.0  }
 0x268   :  { %v2659_v50 = vadd.f32 %v2657_v45, %v6799_v12  ;;  %v2660_v24 = vadd.f32 %v2658_v46, %v6800_v13  ;;  %v6902_v12 = vld [vmem:[#allocation42_spill] sm:$0xff]  ;;  %v5825_v46 = vmov 0.0   ;;  %v5851_v53 = vmov 0.0  }
 0x26a   :  { %v2661_v15 = vadd.f32 %v2659_v50, %v6801_v14  ;;  %v2662_v25 = vadd.f32 %v2660_v24, %v6802_v7  ;;  %v6903_v14 = vld [vmem:[#allocation43_spill] sm:$0xff]  ;;  %v5823_v50 = vmov 0.0  }
 0x26c   :  { %v2663_v26 = vadd.f32 %v2661_v15, %v6805_v58  ;;  %v2664_v16 = vadd.f32 %v2662_v25, %v6808_v2  ;;  %v6904_v58 = vld [vmem:[#allocation44_spill] sm:$0xff]  ;;  %v6905_v2 = vld [vmem:[#allocation45_spill] sm:$0xff] }
 0x26e   :  { %v2665_v62 = vadd.f32 %v2663_v26, %v6811_v51  ;;  %v2666_v60 = vadd.f32 %v2664_v16, %v6814_v6  ;;  %v6908_v6 = vld [vmem:[#allocation48_spill] sm:$0xff] }
 0x270   :  { %v2667_v49 = vadd.f32 %v2665_v62, %v6817_v52  ;;  %v2668_v55 = vadd.f32 %v2666_v60, %v6820_v56  ;;  %v5793_v56 = vmov 0.0  }
 0x272   :  { %v2669_v59 = vadd.f32 %v2667_v49, %v6823_v57  ;;  %v2670_v3 = vadd.f32 %v2668_v55, %v6826_v48  ;;  %v5799_v57 = vmov 0.0   ;;  %v5807_v48 = vmov 0.0  }
 0x274   :  { %v2671_v4 = vadd.f32 %v2669_v59, %v6829_v1  ;;  %v2672_v5 = vadd.f32 %v2670_v3, %v5618_v63  ;;  %v5813_v1 = vmov 0.0   ;;  %v5819_v63 = vmov 0.0  }
 0x276   :  { %v2673_v11 = vadd.f32 %v2671_v4, %v6901_v9  ;;  %v2674_v13 = vadd.f32 %v2672_v5, %v6902_v12 }
 0x278   :  { %v2675_v7 = vadd.f32 %v2673_v11, %v6903_v14  ;;  %v2676_v39 = vadd.f32 %v2674_v13, %v6904_v58 }
 0x27a   :  { %v2677_v36 = vadd.f32 %v2675_v7, %v6905_v2  ;;  %v2678_v51 = vadd.f32 %v2676_v39, %v6906_v40 }
 0x27c   :  { %v2679_v41 = vadd.f32 %v2677_v36, %v6907_v35  ;;  %v2680_v34 = vadd.f32 %v2678_v51, %v6908_v6 }
 0x27e   :  { %v5785_v42 = vmul.f32 0.03125, %v2679_v41  ;;  %v5787_v52 = vmul.f32 0.03125, %v2680_v34 }
 0x280   :  { %6909 = vst [vmem:[#allocation38_spill] sm:$0xff] %v5785_v42  ;;  %6910 = vst [vmem:[#allocation40_spill] sm:$0xff] %v5787_v52 }
 0x281 LB: > { %6911 = vst [vmem:[#allocation49_spill] sm:$0xff] %v5025_v28  ;;  %6912 = vst [vmem:[#allocation50_spill] sm:$0xff] %v5029_v43  ;;  %s3961_s9 = sshll.u32 %s5153_s8, 3  ;;  %v2760_v45 = vlaneseq  ;;  %s2689_s12 = sadd.s32 1, %s5153_s8   ;;  %s5153_s8 = sphi %s5853_s8, %s7046_s8   ;;  %v5149_v53 = vphi %v5851_v53, %v7045_v53   ;;  %v5145_v8 = vphi %v5849_v8, %v7044_v8   ;;  %v5141_v0 = vphi %v5847_v0, %v7043_v0   ;;  %v5137_v23 = vphi %v5845_v23, %v7042_v23   ;;  %v5133_v37 = vphi %v5843_v37, %v7041_v37   ;;  %v5129_v38 = vphi %v5841_v38, %v7040_v38   ;;  %v5125_v10 = vphi %v5839_v10, %v7039_v10   ;;  %v5121_v47 = vphi %v5837_v47, %v7038_v47   ;;  %v5117_v27 = vphi %v5835_v27, %v7037_v27   ;;  %v5113_v54 = vphi %v5833_v54, %v7036_v54   ;;  %v5109_v17 = vphi %v5831_v17, %v7035_v17   ;;  %v5105_v61 = vphi %v5829_v61, %v7034_v61   ;;  %v5101_v19 = vphi %v5827_v19, %v7033_v19   ;;  %v5097_v46 = vphi %v5825_v46, %v7032_v46   ;;  %v5093_v50 = vphi %v5823_v50, %v7031_v50   ;;  %v5089_v29 = vphi %v5821_v29, %v7030_v29   ;;  %v5085_v63 = vphi %v5819_v63, %v7029_v63   ;;  %v5081_v33 = vphi %v5817_v33, %v7028_v33   ;;  %v5077_v30 = vphi %v5815_v30, %v7027_v30   ;;  %v5073_v1 = vphi %v5813_v1, %v7026_v1   ;;  %v5069_v32 = vphi %v5811_v32, %v7025_v32   ;;  %v5065_v31 = vphi %v5809_v31, %v7024_v31   ;;  %v5061_v48 = vphi %v5807_v48, %v7023_v48   ;;  %v5057_v18 = vphi %v5805_v18, %v7022_v18   ;;  %v5053_v22 = vphi %v5803_v22, %v7021_v22   ;;  %v5049_v21 = vphi %v5801_v21, %v7019_v21   ;;  %v5045_v57 = vphi %v5799_v57, %v7018_v57   ;;  %v5041_v20 = vphi %v5797_v20, %v7017_v20   ;;  %v5037_v44 = vphi %v5795_v44, %v7016_v44   ;;  %v5033_v56 = vphi %v5793_v56, %v7015_v56   ;;  %v5029_v43 = vphi %v5791_v43, %v7013_v43   ;;  %v5025_v28 = vphi %v5789_v28, %v7011_v28  }
 0x282   : > { %6913 = vst [vmem:[#allocation51_spill] sm:$0xff] %v5033_v56  ;;  %6914 = vst [vmem:[#allocation52_spill] sm:$0xff] %v5037_v44  ;;  %s2723_s10 = sshra.s32 %s3961_s9, 3  ;;  %v2802_v24 = vstv %s3961_s9  ;;  %p6429_p11 = scmp.ge.s32.totalorder %s2689_s12, 2  }
 0x283   : > { %6915 = vst [vmem:[#allocation53_spill] sm:$0xff] %v5041_v20  ;;  %6916 = vst [vmem:[#allocation54_spill] sm:$0xff] %v5045_v57  ;;  %s3985_s2 = sshll.u32 %s2723_s10, 8  ;;  %v5955_v15 = vshrl.u32 %v2760_v45, 7  ;;  %s7046_s8 = smov %s2689_s12 }
 0x284   : > { %6917 = vst [vmem:[#allocation55_spill] sm:$0xff] %v5049_v21  ;;  %6918 = vst [vmem:[#allocation56_spill] sm:$0xff] %v5053_v22  ;;  %s5957_s11 = scalar_lea.vmem [#allocation2], %s3985_s2  ;;  %s6585_s14 = smov (%p6429_p11), 0  }
 0x285   : > { %6919 = vst [vmem:[#allocation57_spill] sm:$0xff] %v5057_v18  ;;  %6920 = vst [vmem:[#allocation58_spill] sm:$0xff] %v5061_v48  ;;  %v5960_v25 = vld [vmem:[%s5957_s11] sm:$0xff]  ;;  %v5963_v26 = vld [vmem:[%s5957_s11 + $0x8] sm:$0xff]  ;;  %v5984_v3 = vsub.s32 0, %v5955_v15  ;;  %v5987_v4 = vadd.s32 %v2802_v24, %v5955_v15 }
 0x286   : > { %6921 = vst [vmem:[#allocation59_spill] sm:$0xff] %v5065_v31  ;;  %6922 = vst [vmem:[#allocation60_spill] sm:$0xff] %v5069_v32  ;;  %v5966_v16 = vld [vmem:[%s5957_s11 + $0x10] sm:$0xff]  ;;  %v5969_v62 = vld [vmem:[%s5957_s11 + $0x18] sm:$0xff] }
 0x287   : > { %6923 = vst [vmem:[#allocation61_spill] sm:$0xff] %v5073_v1  ;;  %6924 = vst [vmem:[#allocation62_spill] sm:$0xff] %v5077_v30  ;;  %v5972_v60 = vld [vmem:[%s5957_s11 + $0x20] sm:$0xff]  ;;  %v5975_v49 = vld [vmem:[%s5957_s11 + $0x28] sm:$0xff]  ;;  %vm2804_vm0 = vcmp.lt.s32.totalorder %v5987_v4, 2 }
 0x288   : > { %6925 = vst [vmem:[#allocation63_spill] sm:$0xff] %v5081_v33  ;;  %6926 = vst [vmem:[#allocation64_spill] sm:$0xff] %v5085_v63  ;;  %v5978_v55 = vld [vmem:[%s5957_s11 + $0x30] sm:$0xff]  ;;  %v5981_v59 = vld [vmem:[%s5957_s11 + $0x38] sm:$0xff] }
 0x289   : > { %6927 = vst [vmem:[#allocation65_spill] sm:$0xff] %v5089_v29  ;;  %6928 = vst [vmem:[#allocation66_spill] sm:$0xff] %v5093_v50  ;;  %v5990_v5 = vld [vmem:[%s5957_s11 + $0x40] sm:$0xff]  ;;  %v5993_v9 = vld [vmem:[%s5957_s11 + $0x48] sm:$0xff] }
 0x28a   : > { %6929 = vst [vmem:[#allocation67_spill] sm:$0xff] %v5097_v46  ;;  %6930 = vst [vmem:[#allocation68_spill] sm:$0xff] %v5101_v19  ;;  %v5996_v11 = vld [vmem:[%s5957_s11 + $0x50] sm:$0xff]  ;;  %v5999_v12 = vld [vmem:[%s5957_s11 + $0x58] sm:$0xff] }
 0x28b   : > { %6931 = vst [vmem:[#allocation69_spill] sm:$0xff] %v5105_v61  ;;  %6932 = vst [vmem:[#allocation70_spill] sm:$0xff] %v5109_v17  ;;  %v6002_v13 = vld [vmem:[%s5957_s11 + $0x60] sm:$0xff]  ;;  %v6005_v14 = vld [vmem:[%s5957_s11 + $0x68] sm:$0xff] }
 0x28c   : > { %6933 = vst [vmem:[#allocation71_spill] sm:$0xff] %v5113_v54  ;;  %6934 = vst [vmem:[#allocation72_spill] sm:$0xff] %v5117_v27  ;;  %v6941_v42 = vld [vmem:[#allocation38_spill] sm:$0xff]  ;;  %v6942_v52 = vld [vmem:[#allocation40_spill] sm:$0xff] }
 0x28d   : > { %6935 = vst [vmem:[#allocation73_spill] sm:$0xff] %v5121_v47  ;;  %6936 = vst [vmem:[#allocation74_spill] sm:$0xff] %v5125_v10  ;;  %v6009_v7 = vrot.slane %v6941_v42, %v5984_v3  ;;  %v6013_v58 = vrot.slane %v6942_v52, %v5984_v3  ;;  %v6016_v39 = vld [vmem:[%s5957_s11 + $0x70] sm:$0xff]  ;;  %v6019_v2 = vld [vmem:[%s5957_s11 + $0x78] sm:$0xff] }
 0x28e   : > { %6937 = vst [vmem:[#allocation75_spill] sm:$0xff] %v5129_v38  ;;  %6938 = vst [vmem:[#allocation76_spill] sm:$0xff] %v5133_v37  ;;  %v6022_v36 = vld [vmem:[%s5957_s11 + $0x80] sm:$0xff]  ;;  %v6026_v40 = vld [vmem:[%s5957_s11 + $0x88] sm:$0xff] }
 0x28f   : > { %6939 = vst [vmem:[#allocation39_spill] sm:$0xff] %v5955_v15  ;;  %6940 = vst [vmem:[#allocation41_spill] sm:$0xff] %v5984_v3  ;;  %v6029_v51 = vld [vmem:[%s5957_s11 + $0x90] sm:$0xff]  ;;  %v6032_v35 = vld [vmem:[%s5957_s11 + $0x98] sm:$0xff]  ;;  %v2768_v41 = vsub.f32 %v5960_v25, %v6009_v7  ;;  %v2769_v6 = vsub.f32 %v5963_v26, %v6013_v58  ;;  %v2770_v34 = vsub.f32 %v5966_v16, %v6009_v7 }
 0x290   : > { %v2771_v45 = vsub.f32 %v5969_v62, %v6013_v58  ;;  %v2748_v24 = vld [vmem:[%s5957_s11 + $0xa0] sm:$0xff]  ;;  %v2749_v52 = vld [vmem:[%s5957_s11 + $0xa8] sm:$0xff]  ;;  %v2750_v42 = vld [vmem:[%s5957_s11 + $0xb0] sm:$0xff]  ;;  %v2772_v3 = vsub.f32 %v5972_v60, %v6009_v7  ;;  %v2773_v25 = vsub.f32 %v5975_v49, %v6013_v58  ;;  %v2774_v26 = vsub.f32 %v5978_v55, %v6009_v7 }
 0x291   : > { %v2775_v16 = vsub.f32 %v5981_v59, %v6013_v58  ;;  %v2751_v62 = vld [vmem:[%s5957_s11 + $0xb8] sm:$0xff]  ;;  %v2752_v15 = vld [vmem:[%s5957_s11 + $0xc0] sm:$0xff]  ;;  %v2753_v28 = vld [vmem:[%s5957_s11 + $0xc8] sm:$0xff]  ;;  %v2776_v43 = vsub.f32 %v5990_v5, %v6009_v7  ;;  %v2777_v60 = vsub.f32 %v5993_v9, %v6013_v58  ;;  %v2778_v49 = vsub.f32 %v5996_v11, %v6009_v7 }
 0x292   : > { %v2779_v55 = vsub.f32 %v5999_v12, %v6013_v58  ;;  %v2754_v56 = vld [vmem:[%s5957_s11 + $0xd0] sm:$0xff]  ;;  %v2755_v44 = vld [vmem:[%s5957_s11 + $0xd8] sm:$0xff]  ;;  %v2756_v59 = vld [vmem:[%s5957_s11 + $0xe0] sm:$0xff]  ;;  %v2780_v20 = vsub.f32 %v6002_v13, %v6009_v7  ;;  %v2781_v57 = vsub.f32 %v6005_v14, %v6013_v58  ;;  %v2782_v5 = vsub.f32 %v6016_v39, %v6009_v7 }
 0x293   : > { %v2783_v9 = vsub.f32 %v6019_v2, %v6013_v58  ;;  %v2757_v21 = vld [vmem:[%s5957_s11 + $0xe8] sm:$0xff]  ;;  %v2758_v11 = vld [vmem:[%s5957_s11 + $0xf0] sm:$0xff]  ;;  %v2759_v22 = vld [vmem:[%s5957_s11 + $0xf8] sm:$0xff]  ;;  %v2784_v12 = vsub.f32 %v6022_v36, %v6009_v7  ;;  %v2785_v18 = vsub.f32 %v6026_v40, %v6013_v58  ;;  %v2786_v13 = vsub.f32 %v6029_v51, %v6009_v7 }
 0x294   : > { %v2787_v14 = vsub.f32 %v6032_v35, %v6013_v58  ;;  %v2788_v39 = vsub.f32 %v2748_v24, %v6009_v7  ;;  %v2789_v48 = vsub.f32 %v2749_v52, %v6013_v58  ;;  %v2790_v2 = vsub.f32 %v2750_v42, %v6009_v7 }
 0x295   : > { %v2791_v31 = vsub.f32 %v2751_v62, %v6013_v58  ;;  %v2792_v32 = vsub.f32 %v2752_v15, %v6009_v7  ;;  %v2793_v36 = vsub.f32 %v2753_v28, %v6013_v58  ;;  %v2794_v40 = vsub.f32 %v2754_v56, %v6009_v7 }
 0x296   : > { %v2795_v1 = vsub.f32 %v2755_v44, %v6013_v58  ;;  %v2796_v51 = vsub.f32 %v2756_v59, %v6009_v7  ;;  %v2797_v35 = vsub.f32 %v2757_v21, %v6013_v58  ;;  %v2798_v24 = vsub.f32 %v2758_v11, %v6009_v7 }
 0x297   : > { %v2799_v52 = vsub.f32 %v2759_v22, %v6013_v58  ;;  %v2807_v42 = vsel %vm2804_vm0, %v2768_v41, 0.0  ;;  %v2808_v15 = vsel %vm2804_vm0, %v2769_v6, 0.0  ;;  %v2809_v28 = vsel %vm2804_vm0, %v2770_v34, 0.0 }
 0x298   : > { %v2810_v56 = vsel %vm2804_vm0, %v2771_v45, 0.0  ;;  %v2811_v44 = vsel %vm2804_vm0, %v2772_v3, 0.0  ;;  %v2812_v21 = vsel %vm2804_vm0, %v2773_v25, 0.0  ;;  %v2813_v22 = vsel %vm2804_vm0, %v2774_v26, 0.0 }
 0x299   : > { %v2814_v7 = vsel %vm2804_vm0, %v2775_v16, 0.0  ;;  %v2815_v58 = vsel %vm2804_vm0, %v2776_v43, 0.0  ;;  %v2816_v41 = vsel %vm2804_vm0, %v2777_v60, 0.0  ;;  %v2817_v6 = vsel %vm2804_vm0, %v2778_v49, 0.0 }
 0x29a   : > { %v2818_v3 = vsel %vm2804_vm0, %v2779_v55, 0.0  ;;  %v2819_v34 = vsel %vm2804_vm0, %v2780_v20, 0.0  ;;  %v2820_v45 = vsel %vm2804_vm0, %v2781_v57, 0.0  ;;  %v2821_v25 = vsel %vm2804_vm0, %v2782_v5, 0.0 }
 0x29b   : > { %v2822_v43 = vsel %vm2804_vm0, %v2783_v9, 0.0  ;;  %v2823_v26 = vsel %vm2804_vm0, %v2784_v12, 0.0  ;;  %v2824_v16 = vsel %vm2804_vm0, %v2785_v18, 0.0  ;;  %v2825_v62 = vsel %vm2804_vm0, %v2786_v13, 0.0 }
 0x29c   : > { %v2826_v20 = vsel %vm2804_vm0, %v2787_v14, 0.0  ;;  %v2827_v57 = vsel %vm2804_vm0, %v2788_v39, 0.0  ;;  %v2828_v60 = vsel %vm2804_vm0, %v2789_v48, 0.0  ;;  %v2829_v49 = vsel %vm2804_vm0, %v2790_v2, 0.0 }
 0x29d   : > { %v2830_v55 = vsel %vm2804_vm0, %v2791_v31, 0.0  ;;  %v2831_v18 = vsel %vm2804_vm0, %v2792_v32, 0.0  ;;  %v2832_v59 = vsel %vm2804_vm0, %v2793_v36, 0.0  ;;  %v2833_v5 = vsel %vm2804_vm0, %v2794_v40, 0.0 }
 0x29e   : > { %v2834_v9 = vsel %vm2804_vm0, %v2795_v1, 0.0  ;;  %v2835_v48 = vsel %vm2804_vm0, %v2796_v51, 0.0  ;;  %v2836_v11 = vsel %vm2804_vm0, %v2797_v35, 0.0  ;;  %v2837_v31 = vsel %vm2804_vm0, %v2798_v24, 0.0 }
 0x29f   : > { %v2838_v32 = vsel %vm2804_vm0, %v2799_v52, 0.0  ;;  %v2839_v12 = vmul.f32 %v2807_v42, %v2807_v42  ;;  %v2840_v13 = vmul.f32 %v2808_v15, %v2808_v15  ;;  %v2841_v14 = vmul.f32 %v2809_v28, %v2809_v28 }
 0x2a0   : > { %v2842_v39 = vmul.f32 %v2810_v56, %v2810_v56  ;;  %v2843_v2 = vmul.f32 %v2811_v44, %v2811_v44  ;;  %v2844_v36 = vmul.f32 %v2812_v21, %v2812_v21  ;;  %v2845_v40 = vmul.f32 %v2813_v22, %v2813_v22 }
 0x2a1   : > { %v2846_v1 = vmul.f32 %v2814_v7, %v2814_v7  ;;  %v6162_v30 = vmul.f32 %v2815_v58, %v2815_v58  ;;  %v6164_v51 = vmul.f32 %v2816_v41, %v2816_v41  ;;  %v6166_v33 = vmul.f32 %v2817_v6, %v2817_v6 }
 0x2a2   : > { %v6168_v35 = vmul.f32 %v2818_v3, %v2818_v3  ;;  %v6170_v24 = vmul.f32 %v2819_v34, %v2819_v34  ;;  %v6172_v4 = vmul.f32 %v2820_v45, %v2820_v45  ;;  %v6174_v52 = vmul.f32 %v2821_v25, %v2821_v25 }
 0x2a3   : > { %v6176_v42 = vmul.f32 %v2822_v43, %v2822_v43  ;;  %v6178_v15 = vmul.f32 %v2823_v26, %v2823_v26  ;;  %v6180_v28 = vmul.f32 %v2824_v16, %v2824_v16  ;;  %v6182_v56 = vmul.f32 %v2825_v62, %v2825_v62 }
 0x2a4   : > { %v6184_v44 = vmul.f32 %v2826_v20, %v2826_v20  ;;  %v6186_v21 = vmul.f32 %v2827_v57, %v2827_v57  ;;  %v6188_v22 = vmul.f32 %v2828_v60, %v2828_v60  ;;  %v6190_v7 = vmul.f32 %v2829_v49, %v2829_v49 }
 0x2a5   : > { %v6192_v58 = vmul.f32 %v2830_v55, %v2830_v55  ;;  %v6194_v41 = vmul.f32 %v2831_v18, %v2831_v18  ;;  %v6196_v6 = vmul.f32 %v2832_v59, %v2832_v59  ;;  %v6198_v3 = vmul.f32 %v2833_v5, %v2833_v5 }
 0x2a6   : > { %v6200_v34 = vmul.f32 %v2834_v9, %v2834_v9  ;;  %v6202_v45 = vmul.f32 %v2835_v48, %v2835_v48  ;;  %v6204_v25 = vmul.f32 %v2836_v11, %v2836_v11  ;;  %v6206_v43 = vmul.f32 %v2837_v31, %v2837_v31 }
 0x2a7   : > { %v6208_v26 = vmul.f32 %v2838_v32, %v2838_v32  ;;  %v2871_v16 = vrot.slane %v2839_v12, 4  ;;  %v2877_v62 = vrot.slane %v2840_v13, 4  ;;  %v2883_v20 = vrot.slane %v2841_v14, 4 }
 0x2a8   : > { %v2889_v57 = vrot.slane %v2842_v39, 4  ;;  %v2895_v60 = vrot.slane %v2843_v2, 4  ;;  %v2901_v49 = vrot.slane %v2844_v36, 4  ;;  %v2907_v55 = vrot.slane %v2845_v40, 4 }
 0x2a9   : > { %v2913_v18 = vrot.slane %v2846_v1, 4  ;;  %v2872_v59 = vadd.f32 %v2871_v16, %v2839_v12  ;;  %v2878_v5 = vadd.f32 %v2877_v62, %v2840_v13  ;;  %v2884_v9 = vadd.f32 %v2883_v20, %v2841_v14 }
 0x2aa   : > { %v2890_v63 = vadd.f32 %v2889_v57, %v2842_v39  ;;  %v2896_v48 = vadd.f32 %v2895_v60, %v2843_v2  ;;  %v2902_v29 = vadd.f32 %v2901_v49, %v2844_v36  ;;  %v2908_v11 = vadd.f32 %v2907_v55, %v2845_v40 }
 0x2ab   : > { %v2914_v50 = vadd.f32 %v2913_v18, %v2846_v1  ;;  %v2873_v31 = vrot.slane %v2872_v59, 2  ;;  %v2879_v46 = vrot.slane %v2878_v5, 2  ;;  %v2885_v32 = vrot.slane %v2884_v9, 2 }
 0x2ac   : > { %v2891_v19 = vrot.slane %v2890_v63, 2  ;;  %v2897_v61 = vrot.slane %v2896_v48, 2  ;;  %v2903_v17 = vrot.slane %v2902_v29, 2  ;;  %v2909_v54 = vrot.slane %v2908_v11, 2 }
 0x2ad   : > { %v2915_v27 = vrot.slane %v2914_v50, 2  ;;  %v2874_v47 = vadd.f32 %v2873_v31, %v2872_v59  ;;  %v2880_v10 = vadd.f32 %v2879_v46, %v2878_v5  ;;  %v2886_v38 = vadd.f32 %v2885_v32, %v2884_v9 }
 0x2ae   : > { %v2892_v37 = vadd.f32 %v2891_v19, %v2890_v63  ;;  %v2898_v12 = vadd.f32 %v2897_v61, %v2896_v48  ;;  %v2904_v13 = vadd.f32 %v2903_v17, %v2902_v29  ;;  %v2910_v14 = vadd.f32 %v2909_v54, %v2908_v11 }
 0x2af   : > { %v2916_v39 = vadd.f32 %v2915_v27, %v2914_v50  ;;  %v2875_v2 = vrot.slane %v2874_v47, 1  ;;  %v2881_v36 = vrot.slane %v2880_v10, 1  ;;  %v2887_v40 = vrot.slane %v2886_v38, 1 }
 0x2b0   : > { %v2893_v1 = vrot.slane %v2892_v37, 1  ;;  %v2899_v16 = vrot.slane %v2898_v12, 1  ;;  %v2905_v62 = vrot.slane %v2904_v13, 1  ;;  %v2911_v20 = vrot.slane %v2910_v14, 1 }
 0x2b1   : > { %v2917_v57 = vrot.slane %v2916_v39, 1  ;;  %v6210_v60 = vadd.f32 %v2875_v2, %v2874_v47  ;;  %v6212_v49 = vadd.f32 %v2881_v36, %v2880_v10  ;;  %v6214_v55 = vadd.f32 %v2887_v40, %v2886_v38 }
 0x2b2   : > { %v6216_v46 = vadd.f32 %v2893_v1, %v2892_v37  ;;  %v6218_v63 = vadd.f32 %v2899_v16, %v2898_v12  ;;  %v6220_v29 = vadd.f32 %v2905_v62, %v2904_v13  ;;  %v6222_v50 = vadd.f32 %v2911_v20, %v2910_v14 }
 0x2b3   : > { %v6224_v19 = vadd.f32 %v2917_v57, %v2916_v39  ;;  %v2919_v61 = vrot.slane %v6162_v30, 4  ;;  %v2925_v17 = vrot.slane %v6164_v51, 4  ;;  %v2931_v54 = vrot.slane %v6166_v33, 4 }
 0x2b4   : > { %v2937_v27 = vrot.slane %v6168_v35, 4  ;;  %v2943_v47 = vrot.slane %v6170_v24, 4  ;;  %v2949_v10 = vrot.slane %v6172_v4, 4  ;;  %v2955_v38 = vrot.slane %v6174_v52, 4 }
 0x2b5   : > { %v2961_v37 = vrot.slane %v6176_v42, 4  ;;  %v2920_v18 = vadd.f32 %v2919_v61, %v6162_v30  ;;  %v2926_v59 = vadd.f32 %v2925_v17, %v6164_v51  ;;  %v2932_v5 = vadd.f32 %v2931_v54, %v6166_v33 }
 0x2b6   : > { %v2938_v9 = vadd.f32 %v2937_v27, %v6168_v35  ;;  %v2944_v48 = vadd.f32 %v2943_v47, %v6170_v24  ;;  %v2950_v11 = vadd.f32 %v2949_v10, %v6172_v4  ;;  %v2956_v31 = vadd.f32 %v2955_v38, %v6174_v52 }
 0x2b7   : > { %v2962_v32 = vadd.f32 %v2961_v37, %v6176_v42  ;;  %v2921_v12 = vrot.slane %v2920_v18, 2  ;;  %v2927_v13 = vrot.slane %v2926_v59, 2  ;;  %v2933_v14 = vrot.slane %v2932_v5, 2 }
 0x2b8   : > { %v2939_v39 = vrot.slane %v2938_v9, 2  ;;  %v2945_v2 = vrot.slane %v2944_v48, 2  ;;  %v2951_v30 = vrot.slane %v2950_v11, 2  ;;  %v2957_v36 = vrot.slane %v2956_v31, 2 }
 0x2b9   : > { %v2963_v51 = vrot.slane %v2962_v32, 2  ;;  %v2922_v40 = vadd.f32 %v2921_v12, %v2920_v18  ;;  %v2928_v33 = vadd.f32 %v2927_v13, %v2926_v59  ;;  %v2934_v1 = vadd.f32 %v2933_v14, %v2932_v5 }
 0x2ba   : > { %v2940_v35 = vadd.f32 %v2939_v39, %v2938_v9  ;;  %v2946_v16 = vadd.f32 %v2945_v2, %v2944_v48  ;;  %v2952_v24 = vadd.f32 %v2951_v30, %v2950_v11  ;;  %v2958_v62 = vadd.f32 %v2957_v36, %v2956_v31 }
 0x2bb   : > { %v2964_v4 = vadd.f32 %v2963_v51, %v2962_v32  ;;  %v2923_v20 = vrot.slane %v2922_v40, 1  ;;  %v2929_v52 = vrot.slane %v2928_v33, 1  ;;  %v2935_v57 = vrot.slane %v2934_v1, 1 }
 0x2bc   : > { %v2941_v42 = vrot.slane %v2940_v35, 1  ;;  %v2947_v61 = vrot.slane %v2946_v16, 1  ;;  %v2953_v17 = vrot.slane %v2952_v24, 1  ;;  %v2959_v54 = vrot.slane %v2958_v62, 1 }
 0x2bd   : > { %v2965_v27 = vrot.slane %v2964_v4, 1  ;;  %v6242_v47 = vadd.f32 %v2923_v20, %v2922_v40  ;;  %v6244_v10 = vadd.f32 %v2929_v52, %v2928_v33  ;;  %v6246_v38 = vadd.f32 %v2935_v57, %v2934_v1 }
 0x2be   : > { %v6248_v37 = vadd.f32 %v2941_v42, %v2940_v35  ;;  %v6250_v18 = vadd.f32 %v2947_v61, %v2946_v16  ;;  %v6252_v59 = vadd.f32 %v2953_v17, %v2952_v24  ;;  %v6254_v5 = vadd.f32 %v2959_v54, %v2958_v62 }
 0x2bf   : > { %v6256_v9 = vadd.f32 %v2965_v27, %v2964_v4  ;;  %v2967_v48 = vrot.slane %v6178_v15, 4  ;;  %v2973_v11 = vrot.slane %v6180_v28, 4  ;;  %v2979_v31 = vrot.slane %v6182_v56, 4 }
 0x2c0   : > { %v2985_v32 = vrot.slane %v6184_v44, 4  ;;  %v2991_v12 = vrot.slane %v6186_v21, 4  ;;  %v2997_v13 = vrot.slane %v6188_v22, 4  ;;  %v3003_v14 = vrot.slane %v6190_v7, 4 }
 0x2c1   : > { %v3009_v39 = vrot.slane %v6192_v58, 4  ;;  %v2968_v2 = vadd.f32 %v2967_v48, %v6178_v15  ;;  %v2974_v30 = vadd.f32 %v2973_v11, %v6180_v28  ;;  %v2980_v36 = vadd.f32 %v2979_v31, %v6182_v56 }
 0x2c2   : > { %v2986_v51 = vadd.f32 %v2985_v32, %v6184_v44  ;;  %v2992_v40 = vadd.f32 %v2991_v12, %v6186_v21  ;;  %v2998_v33 = vadd.f32 %v2997_v13, %v6188_v22  ;;  %v3004_v1 = vadd.f32 %v3003_v14, %v6190_v7 }
 0x2c3   : > { %v3010_v35 = vadd.f32 %v3009_v39, %v6192_v58  ;;  %v2969_v16 = vrot.slane %v2968_v2, 2  ;;  %v2975_v24 = vrot.slane %v2974_v30, 2  ;;  %v2981_v62 = vrot.slane %v2980_v36, 2 }
 0x2c4   : > { %v2987_v4 = vrot.slane %v2986_v51, 2  ;;  %v2993_v20 = vrot.slane %v2992_v40, 2  ;;  %v2999_v15 = vrot.slane %v2998_v33, 2  ;;  %v3005_v52 = vrot.slane %v3004_v1, 2 }
 0x2c5   : > { %v3011_v28 = vrot.slane %v3010_v35, 2  ;;  %v2970_v57 = vadd.f32 %v2969_v16, %v2968_v2  ;;  %v2976_v56 = vadd.f32 %v2975_v24, %v2974_v30  ;;  %v2982_v42 = vadd.f32 %v2981_v62, %v2980_v36 }
 0x2c6   : > { %v2988_v44 = vadd.f32 %v2987_v4, %v2986_v51  ;;  %v2994_v61 = vadd.f32 %v2993_v20, %v2992_v40  ;;  %v3000_v21 = vadd.f32 %v2999_v15, %v2998_v33  ;;  %v3006_v17 = vadd.f32 %v3005_v52, %v3004_v1 }
 0x2c7   : > { %v3012_v22 = vadd.f32 %v3011_v28, %v3010_v35  ;;  %v2971_v54 = vrot.slane %v2970_v57, 1  ;;  %v2977_v7 = vrot.slane %v2976_v56, 1  ;;  %v2983_v27 = vrot.slane %v2982_v42, 1 }
 0x2c8   : > { %v2989_v58 = vrot.slane %v2988_v44, 1  ;;  %v2995_v48 = vrot.slane %v2994_v61, 1  ;;  %v3001_v11 = vrot.slane %v3000_v21, 1  ;;  %v3007_v31 = vrot.slane %v3006_v17, 1 }
 0x2c9   : > { %v3013_v32 = vrot.slane %v3012_v22, 1  ;;  %v6274_v12 = vadd.f32 %v2971_v54, %v2970_v57  ;;  %v6276_v13 = vadd.f32 %v2977_v7, %v2976_v56  ;;  %v6278_v14 = vadd.f32 %v2983_v27, %v2982_v42 }
 0x2ca   : > { %v6280_v39 = vadd.f32 %v2989_v58, %v2988_v44  ;;  %v6282_v2 = vadd.f32 %v2995_v48, %v2994_v61  ;;  %v6284_v30 = vadd.f32 %v3001_v11, %v3000_v21  ;;  %v6286_v36 = vadd.f32 %v3007_v31, %v3006_v17 }
 0x2cb   : > { %v6288_v51 = vadd.f32 %v3013_v32, %v3012_v22  ;;  %v3015_v40 = vrot.slane %v6194_v41, 4  ;;  %v3021_v33 = vrot.slane %v6196_v6, 4  ;;  %v3027_v1 = vrot.slane %v6198_v3, 4 }
 0x2cc   : > { %v3033_v35 = vrot.slane %v6200_v34, 4  ;;  %v3039_v16 = vrot.slane %v6202_v45, 4  ;;  %v3045_v24 = vrot.slane %v6204_v25, 4  ;;  %v3051_v62 = vrot.slane %v6206_v43, 4 }
 0x2cd   : > { %v3057_v4 = vrot.slane %v6208_v26, 4  ;;  %v3016_v20 = vadd.f32 %v3015_v40, %v6194_v41  ;;  %v3022_v15 = vadd.f32 %v3021_v33, %v6196_v6  ;;  %v3028_v52 = vadd.f32 %v3027_v1, %v6198_v3 }
 0x2ce   : > { %v3034_v28 = vadd.f32 %v3033_v35, %v6200_v34  ;;  %v3040_v57 = vadd.f32 %v3039_v16, %v6202_v45  ;;  %v3046_v56 = vadd.f32 %v3045_v24, %v6204_v25  ;;  %v3052_v42 = vadd.f32 %v3051_v62, %v6206_v43 }
 0x2cf   : > { %v3058_v44 = vadd.f32 %v3057_v4, %v6208_v26  ;;  %v3017_v61 = vrot.slane %v3016_v20, 2  ;;  %v3023_v21 = vrot.slane %v3022_v15, 2  ;;  %v3029_v17 = vrot.slane %v3028_v52, 2 }
 0x2d0   : > { %v3035_v22 = vrot.slane %v3034_v28, 2  ;;  %v3041_v54 = vrot.slane %v3040_v57, 2  ;;  %v3047_v41 = vrot.slane %v3046_v56, 2  ;;  %v3053_v7 = vrot.slane %v3052_v42, 2 }
 0x2d1   : > { %v3059_v6 = vrot.slane %v3058_v44, 2  ;;  %v3018_v27 = vadd.f32 %v3017_v61, %v3016_v20  ;;  %v3024_v3 = vadd.f32 %v3023_v21, %v3022_v15  ;;  %v3030_v58 = vadd.f32 %v3029_v17, %v3028_v52  ;;  %v6978_v21 = vld [vmem:[#allocation60_spill] sm:$0xff] }
 0x2d2   : > { %v3036_v34 = vadd.f32 %v3035_v22, %v3034_v28  ;;  %v3042_v48 = vadd.f32 %v3041_v54, %v3040_v57  ;;  %v3048_v45 = vadd.f32 %v3047_v41, %v3046_v56  ;;  %v3054_v11 = vadd.f32 %v3053_v7, %v3052_v42  ;;  %v6947_v57 = vld [vmem:[#allocation76_spill] sm:$0xff]  ;;  %v6982_v22 = vld [vmem:[#allocation58_spill] sm:$0xff] }
 0x2d3   : > { %v3060_v25 = vadd.f32 %v3059_v6, %v3058_v44  ;;  %v3019_v31 = vrot.slane %v3018_v27, 1  ;;  %v3025_v43 = vrot.slane %v3024_v3, 1  ;;  %v3031_v32 = vrot.slane %v3030_v58, 1  ;;  %v6949_v44 = vld [vmem:[#allocation75_spill] sm:$0xff] }
 0x2d4   : > { %v3037_v26 = vrot.slane %v3036_v34, 1  ;;  %v3043_v40 = vrot.slane %v3042_v48, 1  ;;  %v3049_v33 = vrot.slane %v3048_v45, 1  ;;  %v3055_v1 = vrot.slane %v3054_v11, 1 }
 0x2d5   : > { %v3061_v35 = vrot.slane %v3060_v25, 1  ;;  %v3020_v16 = vadd.f32 %v3019_v31, %v3018_v27  ;;  %v3026_v24 = vadd.f32 %v3025_v43, %v3024_v3  ;;  %v3032_v62 = vadd.f32 %v3031_v32, %v3030_v58  ;;  %v6989_v43 = vld [vmem:[#allocation55_spill] sm:$0xff] }
 0x2d6   : > { %v3038_v4 = vadd.f32 %v3037_v26, %v3036_v34  ;;  %v3044_v20 = vadd.f32 %v3043_v40, %v3042_v48  ;;  %v3050_v15 = vadd.f32 %v3049_v33, %v3048_v45  ;;  %v3056_v52 = vadd.f32 %v3055_v1, %v3054_v11 }
 0x2d7   : > { %v3062_v28 = vadd.f32 %v3061_v35, %v3060_v25  ;;  %v6308_v53 = vadd.f32 %v5149_v53, %v6210_v60   ;;  %v6312_v8 = vadd.f32 %v5145_v8, %v6212_v49   ;;  %v6316_v0 = vadd.f32 %v5141_v0, %v6214_v55  }
 0x2d8   : > { %v6320_v23 = vadd.f32 %v5137_v23, %v6216_v46   ;;  %v6324_v56 = vadd.f32 %v6947_v57, %v6218_v63   ;;  %v6328_v60 = vadd.f32 %v6949_v44, %v6220_v29   ;;  %v6958_v46 = vld [vmem:[#allocation70_spill] sm:$0xff]  ;;  %v6960_v63 = vld [vmem:[#allocation69_spill] sm:$0xff]  ;;  %v6962_v29 = vld [vmem:[#allocation68_spill] sm:$0xff]  ;;  %v6388_v32 = vadd.f32 %v6978_v21, %v6282_v2  }
 0x2d9   : > { %6943 = vst [vmem:[#allocation42_spill] sm:$0xff] %v6308_v53  ;;  %6944 = vst [vmem:[#allocation43_spill] sm:$0xff] %v6312_v8  ;;  %v6951_v53 = vld [vmem:[#allocation74_spill] sm:$0xff]  ;;  %v6953_v8 = vld [vmem:[#allocation73_spill] sm:$0xff]  ;;  %v6348_v17 = vadd.f32 %v6958_v46, %v6246_v38   ;;  %v6352_v61 = vadd.f32 %v6960_v63, %v6248_v37   ;;  %v6396_v48 = vadd.f32 %v6982_v22, %v6286_v36  }
 0x2da   : > { %6945 = vst [vmem:[#allocation44_spill] sm:$0xff] %v6316_v0  ;;  %6946 = vst [vmem:[#allocation45_spill] sm:$0xff] %v6320_v23  ;;  %v6332_v49 = vadd.f32 %v6951_v53, %v6222_v50   ;;  %v6336_v55 = vadd.f32 %v6953_v8, %v6224_v19   ;;  %v6954_v0 = vld [vmem:[#allocation72_spill] sm:$0xff]  ;;  %v6956_v23 = vld [vmem:[#allocation71_spill] sm:$0xff]  ;;  %v6356_v19 = vadd.f32 %v6962_v29, %v6250_v18  }
 0x2db   : > { %6948 = vst [vmem:[#allocation46_spill] sm:$0xff] %v6324_v56  ;;  %6950 = vst [vmem:[#allocation47_spill] sm:$0xff] %v6328_v60  ;;  %v6340_v27 = vadd.f32 %v6954_v0, %v6242_v47   ;;  %v6344_v54 = vadd.f32 %v6956_v23, %v6244_v10   ;;  %v6959_v45 = vmov %v6348_v17  ;;  %v6961_v11 = vmov %v6352_v61  ;;  %v6964_v50 = vld [vmem:[#allocation67_spill] sm:$0xff]  ;;  %v6966_v47 = vld [vmem:[#allocation66_spill] sm:$0xff] }
 0x2dc   : > { %6952 = vst [vmem:[#allocation48_spill] sm:$0xff] %v6332_v49  ;;  %v6963_v25 = vmov %v6356_v19  ;;  %v6360_v46 = vadd.f32 %v6964_v50, %v6252_v59   ;;  %v6364_v50 = vadd.f32 %v6966_v47, %v6254_v5   ;;  %v6968_v10 = vld [vmem:[#allocation65_spill] sm:$0xff]  ;;  %v6970_v38 = vld [vmem:[#allocation64_spill] sm:$0xff]  ;;  %v6972_v37 = vld [vmem:[#allocation63_spill] sm:$0xff]  ;;  %v6406_v21 = vadd.f32 %v6989_v43, %v3026_v24  }
 0x2dd   : > { %v6955_v58 = vmov %v6340_v27  ;;  %v6957_v34 = vmov %v6344_v54  ;;  %v6368_v29 = vadd.f32 %v6968_v10, %v6256_v9   ;;  %v6372_v63 = vadd.f32 %v6970_v38, %v6274_v12   ;;  %v6974_v19 = vld [vmem:[#allocation62_spill] sm:$0xff]  ;;  %v6976_v61 = vld [vmem:[#allocation61_spill] sm:$0xff]  ;;  %v6980_v17 = vld [vmem:[#allocation59_spill] sm:$0xff] }
 0x2de   : > { %v6965_v26 = vmov %v6360_v46  ;;  %v6967_v40 = vmov %v6364_v50  ;;  %v6376_v33 = vadd.f32 %v6972_v37, %v6276_v13   ;;  %v6380_v18 = vadd.f32 %v6974_v19, %v6278_v14   ;;  %v6984_v54 = vld [vmem:[#allocation57_spill] sm:$0xff]  ;;  %v6986_v27 = vld [vmem:[#allocation56_spill] sm:$0xff]  ;;  %6990 = vst [vmem:[#allocation78_spill] sm:$0xff] %v6406_v21  ;;  %v6992_v2 = vld [vmem:[#allocation54_spill] sm:$0xff] }
 0x2df   : > { %v6969_v35 = vmov %v6368_v29  ;;  %v6971_v42 = vmov %v6372_v63  ;;  %v6384_v1 = vadd.f32 %v6976_v61, %v6280_v39   ;;  %v6979_v9 = vmov %v6388_v32  ;;  %v6995_v32 = vld [vmem:[#allocation53_spill] sm:$0xff] }
 0x2e0   : > { %v6973_v41 = vmov %v6376_v33  ;;  %v6975_v59 = vmov %v6380_v18  ;;  %v6392_v31 = vadd.f32 %v6980_v17, %v6284_v30   ;;  %v6983_v13 = vmov %v6396_v48  ;;  %v7001_v48 = vld [vmem:[#allocation51_spill] sm:$0xff]  ;;  %v7007_v33 = vld [vmem:[#allocation49_spill] sm:$0xff]  ;;  %v7045_v53 = vld [vmem:[#allocation42_spill] sm:$0xff] }
 0x2e1   : > { %v6977_v5 = vmov %v6384_v1  ;;  %v6400_v18 = vadd.f32 %v6984_v54, %v6288_v51   ;;  %v6403_v22 = vadd.f32 %v6986_v27, %v3020_v16   ;;  %v6991_v7 = vmov %v6406_v21  ;;  %v7004_v51 = vld [vmem:[#allocation50_spill] sm:$0xff]  ;;  %v7042_v23 = vld [vmem:[#allocation45_spill] sm:$0xff]  ;;  %v7043_v0 = vld [vmem:[#allocation44_spill] sm:$0xff] }
 0x2e2   : > { %v6981_v12 = vmov %v6392_v31  ;;  %v6409_v57 = vadd.f32 %v6992_v2, %v3032_v62   ;;  %v6412_v30 = vadd.f32 %v6995_v32, %v3038_v4   ;;  %v6998_v31 = vld [vmem:[#allocation52_spill] sm:$0xff]  ;;  %v6418_v56 = vadd.f32 %v7001_v48, %v3050_v15   ;;  %v7040_v38 = vld [vmem:[#allocation47_spill] sm:$0xff]  ;;  %v7041_v37 = vld [vmem:[#allocation46_spill] sm:$0xff] }
 0x2e3   : > { %v6985_v14 = vmov %v6400_v18  ;;  %6987 = vst [vmem:[#allocation77_spill] sm:$0xff] %v6403_v22  ;;  %v6415_v44 = vadd.f32 %v6998_v31, %v3044_v20   ;;  %v6421_v43 = vadd.f32 %v7004_v51, %v3056_v52   ;;  %v6424_v28 = vadd.f32 %v7007_v33, %v3062_v28   ;;  %v7039_v10 = vld [vmem:[#allocation48_spill] sm:$0xff]  ;;  %v7044_v8 = vld [vmem:[#allocation43_spill] sm:$0xff]  ;;  %v7047_v24 = vld [vmem:[#allocation42_spill] sm:$0xff] (%p6429_p11) }
 0x2e4   : > { %6993 = vst [vmem:[#allocation79_spill] sm:$0xff] %v6409_v57  ;;  %v6994_v6 = vmov %v6409_v57  ;;  %6996 = vst [vmem:[#allocation80_spill] sm:$0xff] %v6412_v30  ;;  %v6997_v3 = vmov %v6412_v30  ;;  %v7014_v60 = vmov %v6418_v56  ;;  %v7019_v21 = vmov %v6991_v7  ;;  %v7048_v62 = vld [vmem:[#allocation44_spill] sm:$0xff] (%p6429_p11)  ;;  %v7049_v15 = vld [vmem:[#allocation43_spill] sm:$0xff] (%p6429_p11) }
 0x2e5   : > { %6999 = vst [vmem:[#allocation81_spill] sm:$0xff] %v6415_v44  ;;  %v7000_v36 = vmov %v6415_v44  ;;  %7002 = vst [vmem:[#allocation82_spill] sm:$0xff] %v6418_v56  ;;  %v7009_v16 = vmov %v6424_v28  ;;  %v7012_v49 = vmov %v6421_v43  ;;  %v7015_v56 = vmov %v7014_v60  ;;  %2688 = sbr.rel (!%p6429_p11) target bundleno = 641 (0x281), region = 84  ;;  %v7050_v52 = vld [vmem:[#allocation45_spill] sm:$0xff] (%p6429_p11)  ;;  %v7051_v51 = vld [vmem:[#allocation46_spill] sm:$0xff] (%p6429_p11) }
 0x2e6   : > { %7005 = vst [vmem:[#allocation83_spill] sm:$0xff] %v6421_v43  ;;  %7008 = vst [vmem:[#allocation84_spill] sm:$0xff] %v6424_v28  ;;  %v7011_v28 = vmov %v7009_v16  ;;  %v7013_v43 = vmov %v7012_v49  ;;  %v7016_v44 = vmov %v7000_v36  ;;  %v7017_v20 = vmov %v6997_v3  ;;  %v7052_v49 = vld [vmem:[#allocation47_spill] sm:$0xff] (%p6429_p11)  ;;  %v7053_v36 = vld [vmem:[#allocation48_spill] sm:$0xff] (%p6429_p11) }
 0x2e7   : > { %v7018_v57 = vmov %v6994_v6  ;;  %v7020_v39 = vmov %v6403_v22  ;;  %v7022_v18 = vmov %v6985_v14  ;;  %v7023_v48 = vmov %v6983_v13  ;;  %v7055_v23 = vld [vmem:[#allocation78_spill] sm:$0xff] (%p6429_p11)  ;;  %v7063_v21 = vld [vmem:[#allocation41_spill] sm:$0xff] (%p6429_p11)  ;;  %v7065_v43 = vld [vmem:[#allocation40_spill] sm:$0xff] (%p6429_p11) }
 0x2e8   : > { %v7021_v22 = vmov %v7020_v39  ;;  %v7024_v31 = vmov %v6981_v12  ;;  %v7025_v32 = vmov %v6979_v9  ;;  %v7026_v1 = vmov %v6977_v5  ;;  %v7062_v18 = vld [vmem:[#allocation39_spill] sm:$0xff] (%p6429_p11)  ;;  %v3145_v48 = vld [vmem:[#allocation7] sm:$0x3] (%p6429_p11) }
 0x2e9   : > { %v7027_v30 = vmov %v6975_v59  ;;  %v7028_v33 = vmov %v6973_v41  ;;  %v7029_v63 = vmov %v6971_v42  ;;  %v7030_v29 = vmov %v6969_v35 }
 0x2ea   : > { %v7031_v50 = vmov %v6967_v40  ;;  %v7032_v46 = vmov %v6965_v26  ;;  %v7033_v19 = vmov %v6963_v25  ;;  %v7034_v61 = vmov %v6961_v11  ;;  %v7054_v0 = vld [vmem:[#allocation77_spill] sm:$0xff] (%p6429_p11) }
 0x2eb   : > { %v7035_v17 = vmov %v6959_v45  ;;  %v7036_v54 = vmov %v6957_v34  ;;  %v7037_v27 = vmov %v6955_v58  ;;  %v7038_v47 = vmov %v6336_v55  ;;  %v7056_v46 = vld [vmem:[#allocation79_spill] sm:$0xff] (%p6429_p11)  ;;  %v3131_v19 = vld [vmem:[#allocation5] sm:$0x3] (%p6429_p11) }
 0x2ec   :  { %v3095_v4 = vadd.f32 %v7048_v62, %v7047_v24  ;;  %v3096_v2 = vadd.f32 %v7050_v52, %v7049_v15  ;;  %v7058_v63 = vld [vmem:[#allocation81_spill] sm:$0xff]  ;;  %v7059_v29 = vld [vmem:[#allocation82_spill] sm:$0xff]  ;;  %v5165_v61 = vmov 1966171168  }
 0x2ed   :  { %v7060_v50 = vld [vmem:[#allocation83_spill] sm:$0xff]  ;;  %v7061_v47 = vld [vmem:[#allocation84_spill] sm:$0xff]  ;;  %v7064_v27 = vld [vmem:[#allocation38_spill] sm:$0xff] }
 0x2ee   :  { %v3097_v16 = vadd.f32 %v3095_v4, %v7051_v51  ;;  %v3098_v60 = vadd.f32 %v3096_v2, %v7052_v49 }
 0x2f0   :  { %v3099_v3 = vadd.f32 %v3097_v16, %v7053_v36  ;;  %v3100_v6 = vadd.f32 %v3098_v60, %v6336_v55 }
 0x2f2   :  { %v3101_v53 = vadd.f32 %v3099_v3, %v6955_v58  ;;  %v3102_v7 = vadd.f32 %v3100_v6, %v6957_v34 }
 0x2f4   :  { %v3103_v39 = vadd.f32 %v3101_v53, %v6959_v45  ;;  %v3104_v1 = vadd.f32 %v3102_v7, %v6961_v11  ;;  %v7057_v45 = vld [vmem:[#allocation80_spill] sm:$0xff] }
 0x2f6   :  { %v3105_v20 = vadd.f32 %v3103_v39, %v6963_v25  ;;  %v3106_v28 = vadd.f32 %v3104_v1, %v6965_v26 }
 0x2f8   :  { %v3107_v57 = vadd.f32 %v3105_v20, %v6967_v40  ;;  %v3108_v56 = vadd.f32 %v3106_v28, %v6969_v35 }
 0x2fa   :  { %v3109_v44 = vadd.f32 %v3107_v57, %v6971_v42  ;;  %v3110_v60 = vadd.f32 %v3108_v56, %v6973_v41 }
 0x2fc   :  { %v3111_v3 = vadd.f32 %v3109_v44, %v6975_v59  ;;  %v3112_v6 = vadd.f32 %v3110_v60, %v6977_v5  ;;  %v3139_v59 = vsub.s32 1, %v7062_v18  ;;  %v3152_v5 = vunpack.c.l.s4 %v5165_v61 }
 0x2fe   :  { %v3113_v49 = vadd.f32 %v3111_v3, %v6979_v9  ;;  %v3114_v7 = vadd.f32 %v3112_v6, %v6981_v12  ;;  %v3136_v9 = vrot.slane %v3131_v19, %v7063_v21  ;;  %v3140_v17 = vrot.slane %v3131_v19, %v3139_v59 }
 0x2ff   :  { %v3153_v22 = vunpack.c.0.s8 %v3152_v5 }
 0x300   :  { %v3115_v8 = vadd.f32 %v3113_v49, %v6983_v13  ;;  %v3116_v55 = vadd.f32 %v3114_v7, %v6985_v14 }
 0x301   :  { %v3156_v30 = vsub.s32 %v3153_v22, %v7062_v18 }
 0x302   :  { %v3117_v58 = vadd.f32 %v3115_v8, %v7054_v0  ;;  %v3118_v34 = vadd.f32 %v3116_v55, %v7055_v23 }
 0x304   :  { %v3119_v42 = vadd.f32 %v3117_v58, %v7056_v46  ;;  %v3120_v41 = vadd.f32 %v3118_v34, %v7057_v45 }
 0x306   :  { %v3121_v11 = vadd.f32 %v3119_v42, %v7058_v63  ;;  %v3122_v25 = vadd.f32 %v3120_v41, %v7059_v29 }
 0x308   :  { %v3123_v26 = vadd.f32 %v3121_v11, %v7060_v50  ;;  %v3124_v40 = vadd.f32 %v3122_v25, %v7061_v47 }
 0x30a   :  { %v3125_v10 = vmul.f32 0.03125, %v3123_v26  ;;  %v3126_v35 = vmul.f32 0.03125, %v3124_v40 }
 0x30c   :  { %v3127_v38 = vadd.f32 1e-05, %v3125_v10  ;;  %v3128_v37 = vadd.f32 1e-05, %v3126_v35 }
 0x30e   :  { %4549 = vrsqrt.f32 %v3127_v38 }
 0x30f   :  { %4551 = vrsqrt.f32 %v3128_v37 }
 0x318   :  { %v4550_v12 = vpop.eup %4549 }
 0x319   :  { %v4552_v13 = vpop.eup %4551  ;;  %v6569_v54 = vmul.f32 %v4550_v12, %v3136_v9 }
 0x31a   :  { %v6571_v14 = vmul.f32 %v4552_v13, %v3140_v17 }
 0x31b   :  { %v3146_v39 = vmul.f32 %v6569_v54, %v7064_v27 }
 0x31c   :  { %v3147_v32 = vmul.f32 %v6571_v14, %v7065_v43 }
 0x31e   :  { %v3150_v31 = vcombine.low %v3146_v39, %v3147_v32 }
 0x320   :  { %v3157_v36 = vrot.slane %v3150_v31, %v3156_v30 }
 0x322   :  { %v3164_v33 = vrot.slane %v3157_v36, %v3156_v30 }
 0x324   :  { %v6578_v16 = vsub.f32 %v3145_v48, %v3164_v33 }
 0x326   :  { %v3171_v24 = vrot.slane %v6578_v16, %v7063_v21  ;;  %v6583_v62 = vrot.slane %v6578_v16, %v3139_v59 }
 0x327 LB: > { %s3964_s15 = sshll.u32 %s5157_s14, 3  ;;  %v7066_v4 = vld [vmem:[#allocation41_spill] sm:$0xff]  ;;  %s3183_s14 = sadd.s32 1, %s5157_s14   ;;  %s5157_s14 = sphi %s6585_s14, %s3183_s14  }
 0x328   : > { %s6591_s16 = sshra.s32 %s3964_s15, 3  ;;  %v6595_v15 = vrot.slane %v6569_v54, %v7066_v4  ;;  %v6599_v52 = vrot.slane %v6571_v14, %v7066_v4  ;;  %v6606_v2 = vrot.slane %v3171_v24, %v7066_v4  ;;  %v6610_v51 = vrot.slane %v6583_v62, %v7066_v4  ;;  %p3180_p12 = scmp.ge.s32.totalorder %s3183_s14, 2  }
 0x329   : > { %s3986_s17 = sshll.u32 %s6591_s16, 8  ;;  %s4003_s20 = sshll.u32 %s6591_s16, 7 }
 0x32a   : > { %s6612_s19 = scalar_lea.vmem [#allocation2], %s3986_s17  ;;  %s6644_s23 = scalar_lea.vmem %s6739_s4, %s4003_s20 }
 0x32b   : > { %v3190_v53 = vld [vmem:[%s6612_s19] sm:$0xff]  ;;  %v3191_v1 = vld [vmem:[%s6612_s19 + $0x8] sm:$0xff]  ;;  %v3192_v20 = vld [vmem:[%s6612_s19 + $0x10] sm:$0xff] }
 0x32c   : > { %v3230_v28 = vmul.f32 %v6595_v15, %v3190_v53  ;;  %v3231_v57 = vmul.f32 %v6599_v52, %v3191_v1  ;;  %v3193_v56 = vld [vmem:[%s6612_s19 + $0x18] sm:$0xff]  ;;  %v3232_v44 = vmul.f32 %v6595_v15, %v3192_v20  ;;  %v3194_v60 = vld [vmem:[%s6612_s19 + $0x20] sm:$0xff]  ;;  %v3195_v3 = vld [vmem:[%s6612_s19 + $0x28] sm:$0xff] }
 0x32d   : > { %v3233_v6 = vmul.f32 %v6599_v52, %v3193_v56  ;;  %v3234_v49 = vmul.f32 %v6595_v15, %v3194_v60  ;;  %v3235_v7 = vmul.f32 %v6599_v52, %v3195_v3  ;;  %v3196_v8 = vld [vmem:[%s6612_s19 + $0x30] sm:$0xff]  ;;  %v3197_v55 = vld [vmem:[%s6612_s19 + $0x38] sm:$0xff]  ;;  %v3198_v63 = vld [vmem:[%s6612_s19 + $0x40] sm:$0xff] }
 0x32e   : > { %v3270_v0 = vadd.f32 %v6606_v2, %v3230_v28  ;;  %v3271_v58 = vadd.f32 %v6610_v51, %v3231_v57  ;;  %v3272_v23 = vadd.f32 %v6606_v2, %v3232_v44  ;;  %v3236_v34 = vmul.f32 %v6595_v15, %v3196_v8  ;;  %v3199_v11 = vld [vmem:[%s6612_s19 + $0x48] sm:$0xff]  ;;  %v3200_v47 = vld [vmem:[%s6612_s19 + $0x50] sm:$0xff]  ;;  %v3201_v37 = vld [vmem:[%s6612_s19 + $0x58] sm:$0xff] }
 0x32f   : > { %v3273_v46 = vadd.f32 %v6610_v51, %v3233_v6  ;;  %v3274_v42 = vadd.f32 %v6606_v2, %v3234_v49  ;;  %v3275_v45 = vadd.f32 %v6610_v51, %v3235_v7  ;;  %v3237_v41 = vmul.f32 %v6599_v52, %v3197_v55  ;;  %v3202_v19 = vld [vmem:[%s6612_s19 + $0x60] sm:$0xff]  ;;  %v3203_v21 = vld [vmem:[%s6612_s19 + $0x68] sm:$0xff]  ;;  %v3204_v9 = vld [vmem:[%s6612_s19 + $0x70] sm:$0xff] }
 0x330   : > { %v3302_v29 = vmax.f32 %v3270_v0, 0.0  ;;  %v3303_v25 = vmax.f32 %v3271_v58, 0.0  ;;  %v3304_v50 = vmax.f32 %v3272_v23, 0.0  ;;  %v3276_v26 = vadd.f32 %v6606_v2, %v3236_v34  ;;  %v3205_v30 = vld [vmem:[%s6612_s19 + $0x78] sm:$0xff]  ;;  %v3206_v4 = vld [vmem:[%s6612_s19 + $0x80] sm:$0xff]  ;;  %v3207_v57 = vld [vmem:[%s6612_s19 + $0x88] sm:$0xff] }
 0x331   : > { %v3305_v40 = vmax.f32 %v3273_v46, 0.0  ;;  %v3306_v10 = vmax.f32 %v3274_v42, 0.0  ;;  %v3307_v35 = vmax.f32 %v3275_v45, 0.0  ;;  %v3277_v38 = vadd.f32 %v6610_v51, %v3237_v41  ;;  %v3208_v6 = vld [vmem:[%s6612_s19 + $0x90] sm:$0xff]  ;;  %v3209_v49 = vld [vmem:[%s6612_s19 + $0x98] sm:$0xff]  ;;  %v3210_v58 = vld [vmem:[%s6612_s19 + $0xa0] sm:$0xff] }
 0x332   : > { %v3987_v18 = vpack.c.bf16 %v3303_v25, %v3302_v29  ;;  %v3308_v59 = vmax.f32 %v3276_v26, 0.0  ;;  %v3238_v61 = vmul.f32 %v6595_v15, %v3198_v63  ;;  %v3239_v5 = vmul.f32 %v6599_v52, %v3199_v11  ;;  %v3211_v45 = vld [vmem:[%s6612_s19 + $0xa8] sm:$0xff]  ;;  %v3212_v25 = vld [vmem:[%s6612_s19 + $0xb0] sm:$0xff] }
 0x333   : > { %v3988_v17 = vpack.c.bf16 %v3305_v40, %v3304_v50  ;;  %v3989_v12 = vpack.c.bf16 %v3307_v35, %v3306_v10  ;;  %v3309_v22 = vmax.f32 %v3277_v38, 0.0  ;;  %v3240_v13 = vmul.f32 %v6595_v15, %v3200_v47  ;;  %v3213_v10 = vld [vmem:[%s6612_s19 + $0xb8] sm:$0xff] }
 0x334   : > { %3464 = vst [vmem:[%s6644_s23] sm:$0xff] %v3987_v18  ;;  %v3278_v27 = vadd.f32 %v6606_v2, %v3238_v61  ;;  %v3279_v39 = vadd.f32 %v6610_v51, %v3239_v5  ;;  %v3241_v43 = vmul.f32 %v6599_v52, %v3201_v37  ;;  %v3242_v32 = vmul.f32 %v6595_v15, %v3202_v19  ;;  %v3214_v18 = vld [vmem:[%s6612_s19 + $0xc0] sm:$0xff] }
 0x335   : > { %3465 = vst [vmem:[%s6644_s23 + $0x8] sm:$0xff] %v3988_v17  ;;  %3466 = vst [vmem:[%s6644_s23 + $0x10] sm:$0xff] %v3989_v12  ;;  %v3990_v31 = vpack.c.bf16 %v3309_v22, %v3308_v59  ;;  %v3280_v36 = vadd.f32 %v6606_v2, %v3240_v13  ;;  %v3243_v48 = vmul.f32 %v6599_v52, %v3203_v21 }
 0x336   : > { %v3244_v33 = vmul.f32 %v6595_v15, %v3204_v9  ;;  %v3310_v53 = vmax.f32 %v3278_v27, 0.0  ;;  %v3311_v1 = vmax.f32 %v3279_v39, 0.0  ;;  %v3281_v20 = vadd.f32 %v6610_v51, %v3241_v43  ;;  %v3215_v9 = vld [vmem:[%s6612_s19 + $0xc8] sm:$0xff]  ;;  %v3216_v27 = vld [vmem:[%s6612_s19 + $0xd0] sm:$0xff]  ;;  %v3217_v39 = vld [vmem:[%s6612_s19 + $0xd8] sm:$0xff] }
 0x337   : > { %v3282_v28 = vadd.f32 %v6606_v2, %v3242_v32  ;;  %3467 = vst [vmem:[%s6644_s23 + $0x18] sm:$0xff] %v3990_v31  ;;  %v3312_v56 = vmax.f32 %v3280_v36, 0.0  ;;  %v3283_v44 = vadd.f32 %v6610_v51, %v3243_v48  ;;  %v3245_v60 = vmul.f32 %v6599_v52, %v3205_v30  ;;  %v3218_v36 = vld [vmem:[%s6612_s19 + $0xe0] sm:$0xff] }
 0x338   : > { %v3284_v3 = vadd.f32 %v6606_v2, %v3244_v33  ;;  %v3991_v7 = vpack.c.bf16 %v3311_v1, %v3310_v53  ;;  %v3313_v8 = vmax.f32 %v3281_v20, 0.0  ;;  %v3246_v0 = vmul.f32 %v6595_v15, %v3206_v4  ;;  %v3219_v1 = vld [vmem:[%s6612_s19 + $0xe8] sm:$0xff] }
 0x339   : > { %v3314_v55 = vmax.f32 %v3282_v28, 0.0  ;;  %v3315_v23 = vmax.f32 %v3283_v44, 0.0  ;;  %v3285_v34 = vadd.f32 %v6610_v51, %v3245_v60  ;;  %v3247_v42 = vmul.f32 %v6599_v52, %v3207_v57  ;;  %v3220_v44 = vld [vmem:[%s6612_s19 + $0xf0] sm:$0xff] }
 0x33a   : > { %v3316_v46 = vmax.f32 %v3284_v3, 0.0  ;;  %3468 = vst [vmem:[%s6644_s23 + $0x20] sm:$0xff] %v3991_v7  ;;  %v3992_v41 = vpack.c.bf16 %v3313_v8, %v3312_v56  ;;  %v3286_v63 = vadd.f32 %v6606_v2, %v3246_v0  ;;  %v3248_v11 = vmul.f32 %v6595_v15, %v3208_v6  ;;  %v3221_v7 = vld [vmem:[%s6612_s19 + $0xf8] sm:$0xff] }
 0x33b   : > { %v3249_v29 = vmul.f32 %v6599_v52, %v3209_v49  ;;  %v3993_v50 = vpack.c.bf16 %v3315_v23, %v3314_v55  ;;  %v3317_v26 = vmax.f32 %v3285_v34, 0.0  ;;  %v3287_v47 = vadd.f32 %v6610_v51, %v3247_v42 }
 0x33c   : > { %v3250_v40 = vmul.f32 %v6595_v15, %v3210_v58  ;;  %3469 = vst [vmem:[%s6644_s23 + $0x28] sm:$0xff] %v3992_v41  ;;  %v3318_v35 = vmax.f32 %v3286_v63, 0.0  ;;  %v3288_v38 = vadd.f32 %v6606_v2, %v3248_v11  ;;  %v3251_v19 = vmul.f32 %v6599_v52, %v3211_v45 }
 0x33d   : > { %v3289_v37 = vadd.f32 %v6610_v51, %v3249_v29  ;;  %3470 = vst [vmem:[%s6644_s23 + $0x30] sm:$0xff] %v3993_v50  ;;  %v3994_v59 = vpack.c.bf16 %v3317_v26, %v3316_v46  ;;  %v3319_v61 = vmax.f32 %v3287_v47, 0.0  ;;  %v3252_v21 = vmul.f32 %v6595_v15, %v3212_v25 }
 0x33e   : > { %v3290_v5 = vadd.f32 %v6606_v2, %v3250_v40  ;;  %v3320_v17 = vmax.f32 %v3288_v38, 0.0  ;;  %v3291_v22 = vadd.f32 %v6610_v51, %v3251_v19  ;;  %v3253_v13 = vmul.f32 %v6599_v52, %v3213_v10 }
 0x33f   : > { %v3321_v12 = vmax.f32 %v3289_v37, 0.0  ;;  %3471 = vst [vmem:[%s6644_s23 + $0x38] sm:$0xff] %v3994_v59  ;;  %v3995_v43 = vpack.c.bf16 %v3319_v61, %v3318_v35  ;;  %v3292_v30 = vadd.f32 %v6606_v2, %v3252_v21  ;;  %v3254_v31 = vmul.f32 %v6595_v15, %v3214_v18 }
 0x340   : > { %v3322_v32 = vmax.f32 %v3290_v5, 0.0  ;;  %v3323_v33 = vmax.f32 %v3291_v22, 0.0  ;;  %v3293_v4 = vadd.f32 %v6610_v51, %v3253_v13  ;;  %v3255_v53 = vmul.f32 %v6599_v52, %v3215_v9 }
 0x341   : > { %v3996_v48 = vpack.c.bf16 %v3321_v12, %v3320_v17  ;;  %3472 = vst [vmem:[%s6644_s23 + $0x40] sm:$0xff] %v3995_v43  ;;  %v3324_v20 = vmax.f32 %v3292_v30, 0.0  ;;  %v3294_v28 = vadd.f32 %v6606_v2, %v3254_v31  ;;  %v3256_v57 = vmul.f32 %v6595_v15, %v3216_v27 }
 0x342   : > { %v3257_v56 = vmul.f32 %v6599_v52, %v3217_v39  ;;  %v3997_v60 = vpack.c.bf16 %v3323_v33, %v3322_v32  ;;  %v3325_v3 = vmax.f32 %v3293_v4, 0.0  ;;  %v3295_v6 = vadd.f32 %v6610_v51, %v3255_v53 }
 0x343   : > { %3473 = vst [vmem:[%s6644_s23 + $0x48] sm:$0xff] %v3996_v48  ;;  %v3258_v49 = vmul.f32 %v6595_v15, %v3218_v36  ;;  %v3326_v8 = vmax.f32 %v3294_v28, 0.0  ;;  %v3296_v55 = vadd.f32 %v6606_v2, %v3256_v57  ;;  %v3259_v58 = vmul.f32 %v6599_v52, %v3219_v1 }
 0x344   : > { %v3297_v0 = vadd.f32 %v6610_v51, %v3257_v56  ;;  %3474 = vst [vmem:[%s6644_s23 + $0x50] sm:$0xff] %v3997_v60  ;;  %v3998_v23 = vpack.c.bf16 %v3325_v3, %v3324_v20  ;;  %v3327_v34 = vmax.f32 %v3295_v6, 0.0  ;;  %v3260_v42 = vmul.f32 %v6595_v15, %v3220_v44 }
 0x345   : > { %v3298_v46 = vadd.f32 %v6606_v2, %v3258_v49  ;;  %v3328_v45 = vmax.f32 %v3296_v55, 0.0  ;;  %v3299_v63 = vadd.f32 %v6610_v51, %v3259_v58  ;;  %v3261_v11 = vmul.f32 %v6599_v52, %v3221_v7 }
 0x346   : > { %v3329_v41 = vmax.f32 %v3297_v0, 0.0  ;;  %3475 = vst [vmem:[%s6644_s23 + $0x58] sm:$0xff] %v3998_v23  ;;  %v3999_v29 = vpack.c.bf16 %v3327_v34, %v3326_v8  ;;  %v3300_v50 = vadd.f32 %v6606_v2, %v3260_v42 }
 0x347   : > { %v3330_v25 = vmax.f32 %v3298_v46, 0.0  ;;  %v3331_v47 = vmax.f32 %v3299_v63, 0.0  ;;  %v3301_v40 = vadd.f32 %v6610_v51, %v3261_v11  ;;  %3182 = sbr.rel (!%p3180_p12) target bundleno = 807 (0x327), region = 95 }
 0x348   : > { %v4000_v26 = vpack.c.bf16 %v3329_v41, %v3328_v45  ;;  %3476 = vst [vmem:[%s6644_s23 + $0x60] sm:$0xff] %v3999_v29  ;;  %v3332_v10 = vmax.f32 %v3300_v50, 0.0 }
 0x349   : > { %v4001_v15 = vpack.c.bf16 %v3331_v47, %v3330_v25  ;;  %v3333_v35 = vmax.f32 %v3301_v40, 0.0 }
 0x34a   : > { %3477 = vst [vmem:[%s6644_s23 + $0x68] sm:$0xff] %v4000_v26 }
 0x34b   : > { %3478 = vst [vmem:[%s6644_s23 + $0x70] sm:$0xff] %v4001_v15  ;;  %v4002_v38 = vpack.c.bf16 %v3333_v35, %v3332_v10 }
 0x34d   : > { %3479 = vst [vmem:[%s6644_s23 + $0x78] sm:$0xff] %v4002_v38 }
 0x34e   :  { %3484 = vsyncpa [#allocation4], 1 }
 0x34f   :  { %3485 = vsyncpa [#allocation6], 1 }

// kernel: generator_forward.6
= control target key start
LH: loop header
LB: loop body
LE: loop exit
PB: predicated region body
PF: predicated region fallthrough
CT: control target
= control target key end

     0   :  { %s4704_s1 = inlined_call_operand.vmem [shape: bf16[2304,256], index: 1, kind: input, shape index: {}]   ;;  %s4705_s2 = inlined_call_operand.vmem [shape: f32[1,256], index: 2, kind: input, shape index: {}]   ;;  %s4706_s3 = inlined_call_operand.vmem [shape: f32[1,256], index: 3, kind: input, shape index: {}]   ;;  %s4707_s4 = inlined_call_operand.vmem [shape: bf16[32,256], index: 4, kind: output, shape index: {}]   ;;  %s4708_s0 = inlined_call_operand.vmem [shape: bf16[32,2304], index: 0, kind: input, shape index: {}]  }
   0x1   :  { %v3137_v0 = vld [vmem:[%s4704_s1 + $0x4] ss:$8 sps:$4 sm:$0xff]   ;;  %v3141_v2 = vld [vmem:[%s4704_s1] ss:$8 sps:$4 sm:$0xff]   ;;  %v3143_v4 = vld [vmem:[%s4704_s1 + $0x14] ss:$8 sps:$4 sm:$0xff]  }
   0x2   :  { %v3139_v1 = vld [vmem:[%s4704_s1 + $0x404] ss:$8 sps:$4 sm:$0xff]   ;;  %1961 = vmatprep.subr.bf16.mxu1 %v3137_v0  ;;  %v3142_v3 = vld [vmem:[%s4704_s1 + $0x400] ss:$8 sps:$4 sm:$0xff]   ;;  %v3145_v5 = vld [vmem:[%s4704_s1 + $0x414] ss:$8 sps:$4 sm:$0xff]  }
   0x3   :  { %2173 = vmatprep.subr.bf16.mxu0 %v3139_v1  ;;  %1962 = vmatpush1.bf16.msra.mxu1 %v3141_v2  ;;  %v3147_v6 = vld [vmem:[%s4704_s1 + $0x10] ss:$8 sps:$4 sm:$0xff]   ;;  %v3149_v8 = vld [vmem:[%s4704_s1 + $0x24] ss:$8 sps:$4 sm:$0xff]   ;;  %v3153_v10 = vld [vmem:[%s4704_s1 + $0x20] ss:$8 sps:$4 sm:$0xff]  }
   0x4   :  { %2174 = vmatpush1.bf16.msra.mxu0 %v3142_v3  ;;  %1963 = vmatprep.subr.bf16.mxu1 %v3143_v4  ;;  %v3148_v7 = vld [vmem:[%s4704_s1 + $0x410] ss:$8 sps:$4 sm:$0xff]   ;;  %v3151_v9 = vld [vmem:[%s4704_s1 + $0x424] ss:$8 sps:$4 sm:$0xff]   ;;  %v3154_v11 = vld [vmem:[%s4704_s1 + $0x420] ss:$8 sps:$4 sm:$0xff]  }
   0x5   :  { %2175 = vmatprep.subr.bf16.mxu0 %v3145_v5  ;;  %v3155_v12 = vld [vmem:[%s4704_s1 + $0x34] ss:$8 sps:$4 sm:$0xff]   ;;  %v3159_v14 = vld [vmem:[%s4704_s1 + $0x30] ss:$8 sps:$4 sm:$0xff]   ;;  %v3161_v16 = vld [vmem:[%s4704_s1 + $0x44] ss:$8 sps:$4 sm:$0xff]  }
   0x6   :  { %v3157_v13 = vld [vmem:[%s4704_s1 + $0x434] ss:$8 sps:$4 sm:$0xff]   ;;  %v3160_v15 = vld [vmem:[%s4704_s1 + $0x430] ss:$8 sps:$4 sm:$0xff]   ;;  %v3163_v17 = vld [vmem:[%s4704_s1 + $0x444] ss:$8 sps:$4 sm:$0xff]  }
   0x7   :  { %1964 = vmatpush1.bf16.msra.mxu1 %v3147_v6  ;;  %v3165_v18 = vld [vmem:[%s4704_s1 + $0x40] ss:$8 sps:$4 sm:$0xff]   ;;  %v3167_v20 = vld [vmem:[%s4704_s1 + $0x54] ss:$8 sps:$4 sm:$0xff]   ;;  %v3171_v22 = vld [vmem:[%s4704_s1 + $0x50] ss:$8 sps:$4 sm:$0xff]  }
   0x8   :  { %2176 = vmatpush1.bf16.msra.mxu0 %v3148_v7  ;;  %1965 = vmatprep.subr.bf16.mxu1 %v3149_v8  ;;  %v3166_v19 = vld [vmem:[%s4704_s1 + $0x440] ss:$8 sps:$4 sm:$0xff]   ;;  %v3169_v21 = vld [vmem:[%s4704_s1 + $0x454] ss:$8 sps:$4 sm:$0xff]   ;;  %v3172_v23 = vld [vmem:[%s4704_s1 + $0x450] ss:$8 sps:$4 sm:$0xff]  }
   0x9   :  { %2177 = vmatprep.subr.bf16.mxu0 %v3151_v9  ;;  %v3173_v24 = vld [vmem:[%s4704_s1 + $0x64] ss:$8 sps:$4 sm:$0xff]   ;;  %v3177_v26 = vld [vmem:[%s4704_s1 + $0x60] ss:$8 sps:$4 sm:$0xff]   ;;  %v3179_v28 = vld [vmem:[%s4704_s1 + $0x74] ss:$8 sps:$4 sm:$0xff]  }
   0xa   :  { %v3175_v25 = vld [vmem:[%s4704_s1 + $0x464] ss:$8 sps:$4 sm:$0xff]   ;;  %v3178_v27 = vld [vmem:[%s4704_s1 + $0x460] ss:$8 sps:$4 sm:$0xff]   ;;  %v3181_v29 = vld [vmem:[%s4704_s1 + $0x474] ss:$8 sps:$4 sm:$0xff]  }
   0xb   :  { %1966 = vmatpush1.bf16.msra.mxu1 %v3153_v10  ;;  %v3183_v30 = vld [vmem:[%s4704_s1 + $0x70] ss:$8 sps:$4 sm:$0xff]   ;;  %v3185_v32 = vld [vmem:[%s4704_s1 + $0x84] ss:$8 sps:$4 sm:$0xff]   ;;  %v3189_v34 = vld [vmem:[%s4704_s1 + $0x80] ss:$8 sps:$4 sm:$0xff]  }
   0xc   :  { %2178 = vmatpush1.bf16.msra.mxu0 %v3154_v11  ;;  %1967 = vmatprep.subr.bf16.mxu1 %v3155_v12  ;;  %v3184_v31 = vld [vmem:[%s4704_s1 + $0x470] ss:$8 sps:$4 sm:$0xff]   ;;  %v3187_v33 = vld [vmem:[%s4704_s1 + $0x484] ss:$8 sps:$4 sm:$0xff]   ;;  %v3190_v35 = vld [vmem:[%s4704_s1 + $0x480] ss:$8 sps:$4 sm:$0xff]  }
   0xd   :  { %2179 = vmatprep.subr.bf16.mxu0 %v3157_v13  ;;  %v3191_v36 = vld [vmem:[%s4704_s1 + $0x94] ss:$8 sps:$4 sm:$0xff]   ;;  %v3195_v38 = vld [vmem:[%s4704_s1 + $0x90] ss:$8 sps:$4 sm:$0xff]   ;;  %v3197_v40 = vld [vmem:[%s4704_s1 + $0xa4] ss:$8 sps:$4 sm:$0xff]  }
   0xe   :  { %v3193_v37 = vld [vmem:[%s4704_s1 + $0x494] ss:$8 sps:$4 sm:$0xff]   ;;  %v3196_v39 = vld [vmem:[%s4704_s1 + $0x490] ss:$8 sps:$4 sm:$0xff]   ;;  %v3199_v41 = vld [vmem:[%s4704_s1 + $0x4a4] ss:$8 sps:$4 sm:$0xff]  }
   0xf   :  { %1968 = vmatpush1.bf16.msra.mxu1 %v3159_v14  ;;  %v3201_v42 = vld [vmem:[%s4704_s1 + $0xa0] ss:$8 sps:$4 sm:$0xff]   ;;  %v3203_v44 = vld [vmem:[%s4704_s1 + $0xb4] ss:$8 sps:$4 sm:$0xff]   ;;  %v3207_v46 = vld [vmem:[%s4704_s1 + $0xb0] ss:$8 sps:$4 sm:$0xff]  }
  0x10   :  { %2180 = vmatpush1.bf16.msra.mxu0 %v3160_v15  ;;  %1969 = vmatprep.subr.bf16.mxu1 %v3161_v16  ;;  %v3202_v43 = vld [vmem:[%s4704_s1 + $0x4a0] ss:$8 sps:$4 sm:$0xff]   ;;  %v3205_v45 = vld [vmem:[%s4704_s1 + $0x4b4] ss:$8 sps:$4 sm:$0xff]   ;;  %v3208_v47 = vld [vmem:[%s4704_s1 + $0x4b0] ss:$8 sps:$4 sm:$0xff]  }
  0x11   :  { %2181 = vmatprep.subr.bf16.mxu0 %v3163_v17  ;;  %v3235_v48 = vld [vmem:[%s4708_s0 + $0x4] ss:$72 sps:$4 sm:$0xff]   ;;  %v3213_v52 = vld [vmem:[%s4704_s1 + $0xc0] ss:$8 sps:$4 sm:$0xff]   ;;  %v3215_v54 = vld [vmem:[%s4704_s1 + $0xd4] ss:$8 sps:$4 sm:$0xff]  }
  0x12   :  { %v3209_v49 = vld [vmem:[%s4704_s1 + $0xc4] ss:$8 sps:$4 sm:$0xff]   ;;  %1993 = vmatprep.mubr.bf16.mxu1 %v3235_v48  ;;  %v3214_v53 = vld [vmem:[%s4704_s1 + $0x4c0] ss:$8 sps:$4 sm:$0xff]   ;;  %v3217_v55 = vld [vmem:[%s4704_s1 + $0x4d4] ss:$8 sps:$4 sm:$0xff]  }
  0x13   :  { %1970 = vmatpush1.bf16.msra.mxu1 %v3165_v18  ;;  %v3211_v50 = vld [vmem:[%s4704_s1 + $0x4c4] ss:$8 sps:$4 sm:$0xff]   ;;  %v3219_v56 = vld [vmem:[%s4704_s1 + $0xd0] ss:$8 sps:$4 sm:$0xff]   ;;  %v3225_v60 = vld [vmem:[%s4704_s1 + $0xe0] ss:$8 sps:$4 sm:$0xff]  }
  0x14   :  { %2182 = vmatpush1.bf16.msra.mxu0 %v3166_v19  ;;  %1971 = vmatprep.subr.bf16.mxu1 %v3167_v20  ;;  %v3241_v51 = vld [vmem:[%s4708_s0 + $0x24] ss:$72 sps:$4 sm:$0xff]   ;;  %v3220_v57 = vld [vmem:[%s4704_s1 + $0x4d0] ss:$8 sps:$4 sm:$0xff]   ;;  %v3226_v61 = vld [vmem:[%s4704_s1 + $0x4e0] ss:$8 sps:$4 sm:$0xff]  }
  0x15   :  { %2183 = vmatprep.subr.bf16.mxu0 %v3169_v21  ;;  %2205 = vmatprep.mubr.bf16.mxu0 %v3241_v51  ;;  %v3221_v58 = vld [vmem:[%s4704_s1 + $0xe4] ss:$8 sps:$4 sm:$0xff]   ;;  %v3227_v62 = vld [vmem:[%s4704_s1 + $0xf4] ss:$8 sps:$4 sm:$0xff]   ;;  %v3231_v0 = vld [vmem:[%s4704_s1 + $0xf0] ss:$8 sps:$4 sm:$0xff]  }
  0x16   :  { %v3223_v59 = vld [vmem:[%s4704_s1 + $0x4e4] ss:$8 sps:$4 sm:$0xff]   ;;  %v3229_v63 = vld [vmem:[%s4704_s1 + $0x4f4] ss:$8 sps:$4 sm:$0xff]   ;;  %v3232_v1 = vld [vmem:[%s4704_s1 + $0x4f0] ss:$8 sps:$4 sm:$0xff]  }
  0x17   :  { %1972 = vmatpush1.bf16.msra.mxu1 %v3171_v22  ;;  %v3238_v2 = vld [vmem:[%s4704_s1 + $0x104] ss:$8 sps:$4 sm:$0xff]   ;;  %v3233_v4 = vld [vmem:[%s4708_s0] ss:$72 sps:$4 sm:$0xff]   ;;  %v3247_v8 = vld [vmem:[%s4704_s1 + $0x114] ss:$8 sps:$4 sm:$0xff]  }
  0x18   :  { %2184 = vmatpush1.bf16.msra.mxu0 %v3172_v23  ;;  %1973 = vmatprep.subr.bf16.mxu1 %v3173_v24  ;;  %v3244_v3 = vld [vmem:[%s4704_s1 + $0x504] ss:$8 sps:$4 sm:$0xff]   ;;  %v3236_v5 = vld [vmem:[%s4704_s1 + $0x100] ss:$8 sps:$4 sm:$0xff]   ;;  %v3250_v9 = vld [vmem:[%s4704_s1 + $0x514] ss:$8 sps:$4 sm:$0xff]  }
  0x19   :  { %2185 = vmatprep.subr.bf16.mxu0 %v3175_v25  ;;  %v3239_v6 = vld [vmem:[%s4708_s0 + $0x20] ss:$72 sps:$4 sm:$0xff]   ;;  %v3245_v10 = vld [vmem:[%s4704_s1 + $0x110] ss:$8 sps:$4 sm:$0xff]   ;;  %v3253_v12 = vld [vmem:[%s4704_s1 + $0x124] ss:$8 sps:$4 sm:$0xff]  }
  0x1a   :  { %v3242_v7 = vld [vmem:[%s4704_s1 + $0x500] ss:$8 sps:$4 sm:$0xff]   ;;  %v3248_v11 = vld [vmem:[%s4704_s1 + $0x510] ss:$8 sps:$4 sm:$0xff]   ;;  %v3256_v13 = vld [vmem:[%s4704_s1 + $0x524] ss:$8 sps:$4 sm:$0xff]  }
  0x1b   :  { %1974 = vmatpush1.bf16.msra.mxu1 %v3177_v26  ;;  %v3251_v14 = vld [vmem:[%s4704_s1 + $0x120] ss:$8 sps:$4 sm:$0xff]   ;;  %v3259_v16 = vld [vmem:[%s4704_s1 + $0x134] ss:$8 sps:$4 sm:$0xff]   ;;  %v3257_v18 = vld [vmem:[%s4704_s1 + $0x130] ss:$8 sps:$4 sm:$0xff]  }
  0x1c   :  { %2186 = vmatpush1.bf16.msra.mxu0 %v3178_v27  ;;  %1975 = vmatprep.subr.bf16.mxu1 %v3179_v28  ;;  %v3254_v15 = vld [vmem:[%s4704_s1 + $0x520] ss:$8 sps:$4 sm:$0xff]   ;;  %v3262_v17 = vld [vmem:[%s4704_s1 + $0x534] ss:$8 sps:$4 sm:$0xff]   ;;  %v3260_v19 = vld [vmem:[%s4704_s1 + $0x530] ss:$8 sps:$4 sm:$0xff]  }
  0x1d   :  { %2187 = vmatprep.subr.bf16.mxu0 %v3181_v29  ;;  %v3265_v20 = vld [vmem:[%s4704_s1 + $0x144] ss:$8 sps:$4 sm:$0xff]   ;;  %v3263_v22 = vld [vmem:[%s4704_s1 + $0x140] ss:$8 sps:$4 sm:$0xff]   ;;  %v3271_v24 = vld [vmem:[%s4704_s1 + $0x154] ss:$8 sps:$4 sm:$0xff]  }
  0x1e   :  { %v3268_v21 = vld [vmem:[%s4704_s1 + $0x544] ss:$8 sps:$4 sm:$0xff]   ;;  %v3266_v23 = vld [vmem:[%s4704_s1 + $0x540] ss:$8 sps:$4 sm:$0xff]   ;;  %v3274_v25 = vld [vmem:[%s4704_s1 + $0x554] ss:$8 sps:$4 sm:$0xff]  }
  0x1f   :  { %1976 = vmatpush1.bf16.msra.mxu1 %v3183_v30  ;;  %v3269_v26 = vld [vmem:[%s4704_s1 + $0x150] ss:$8 sps:$4 sm:$0xff]   ;;  %v3323_v28 = vld [vmem:[%s4708_s0 + $0x94] ss:$72 sps:$4 sm:$0xff]   ;;  %v3277_v29 = vld [vmem:[%s4704_s1 + $0x164] ss:$8 sps:$4 sm:$0xff]  }
  0x20   :  { %2188 = vmatpush1.bf16.msra.mxu0 %v3184_v31  ;;  %1977 = vmatprep.subr.bf16.mxu1 %v3185_v32  ;;  %v3272_v27 = vld [vmem:[%s4704_s1 + $0x550] ss:$8 sps:$4 sm:$0xff]   ;;  %v3280_v30 = vld [vmem:[%s4704_s1 + $0x564] ss:$8 sps:$4 sm:$0xff]   ;;  %v3328_v31 = vld [vmem:[%s4708_s0 + $0xb4] ss:$72 sps:$4 sm:$0xff]  }
  0x21   :  { %2189 = vmatprep.subr.bf16.mxu0 %v3187_v33  ;;  %v3275_v32 = vld [vmem:[%s4704_s1 + $0x160] ss:$8 sps:$4 sm:$0xff]   ;;  %v3293_v48 = vld [vmem:[%s4704_s1 + $0x190] ss:$8 sps:$4 sm:$0xff]   ;;  %v3304_v51 = vld [vmem:[%s4704_s1 + $0x5a4] ss:$8 sps:$4 sm:$0xff]  }
  0x22   :  { %v3278_v33 = vld [vmem:[%s4704_s1 + $0x560] ss:$8 sps:$4 sm:$0xff]  }
  0x23   :  { %1978 = vmatpush1.bf16.msra.mxu1 %v3189_v34  ;;  %v3333_v34 = vld [vmem:[%s4708_s0 + $0x90] ss:$72 sps:$4 sm:$0xff]  }
  0x24   :  { %2190 = vmatpush1.bf16.msra.mxu0 %v3190_v35  ;;  %1979 = vmatprep.subr.bf16.mxu1 %v3191_v36  ;;  %v3334_v35 = vld [vmem:[%s4708_s0 + $0xb0] ss:$72 sps:$4 sm:$0xff]   ;;  %v3283_v36 = vld [vmem:[%s4704_s1 + $0x174] ss:$8 sps:$4 sm:$0xff]  }
  0x25   :  { %2191 = vmatprep.subr.bf16.mxu0 %v3193_v37  ;;  %v3286_v37 = vld [vmem:[%s4704_s1 + $0x574] ss:$8 sps:$4 sm:$0xff]  }
  0x27   :  { %1980 = vmatpush1.bf16.msra.mxu1 %v3195_v38  ;;  %v3281_v38 = vld [vmem:[%s4704_s1 + $0x170] ss:$8 sps:$4 sm:$0xff]  }
  0x28   :  { %2192 = vmatpush1.bf16.msra.mxu0 %v3196_v39  ;;  %1981 = vmatprep.subr.bf16.mxu1 %v3197_v40  ;;  %v3284_v39 = vld [vmem:[%s4704_s1 + $0x570] ss:$8 sps:$4 sm:$0xff]   ;;  %v3343_v40 = vld [vmem:[%s4708_s0 + $0xc] ss:$72 sps:$4 sm:$0xff]  }
  0x29   :  { %2193 = vmatprep.subr.bf16.mxu0 %v3199_v41  ;;  %v3289_v41 = vld [vmem:[%s4704_s1 + $0x184] ss:$8 sps:$4 sm:$0xff]  }
  0x2b   :  { %1982 = vmatpush1.bf16.msra.mxu1 %v3201_v42  ;;  %v3292_v42 = vld [vmem:[%s4704_s1 + $0x584] ss:$8 sps:$4 sm:$0xff]  }
  0x2c   :  { %2194 = vmatpush1.bf16.msra.mxu0 %v3202_v43  ;;  %1983 = vmatprep.subr.bf16.mxu1 %v3203_v44  ;;  %v3349_v43 = vld [vmem:[%s4708_s0 + $0x2c] ss:$72 sps:$4 sm:$0xff]   ;;  %v3287_v44 = vld [vmem:[%s4704_s1 + $0x180] ss:$8 sps:$4 sm:$0xff]  }
  0x2d   :  { %2195 = vmatprep.subr.bf16.mxu0 %v3205_v45  ;;  %v3290_v45 = vld [vmem:[%s4704_s1 + $0x580] ss:$8 sps:$4 sm:$0xff]  }
  0x2f   :  { %1984 = vmatpush1.bf16.msra.mxu1 %v3207_v46  ;;  %v3295_v46 = vld [vmem:[%s4704_s1 + $0x194] ss:$8 sps:$4 sm:$0xff]  }
  0x30   :  { %2196 = vmatpush1.bf16.msra.mxu0 %v3208_v47  ;;  %1985 = vmatprep.subr.bf16.mxu1 %v3209_v49  ;;  %v3298_v47 = vld [vmem:[%s4704_s1 + $0x594] ss:$8 sps:$4 sm:$0xff]   ;;  %v3296_v49 = vld [vmem:[%s4704_s1 + $0x590] ss:$8 sps:$4 sm:$0xff]  }
  0x31   :  { %2197 = vmatprep.subr.bf16.mxu0 %v3211_v50  ;;  %v3301_v50 = vld [vmem:[%s4704_s1 + $0x1a4] ss:$8 sps:$4 sm:$0xff]  }
  0x33   :  { %1986 = vmatpush1.bf16.msra.mxu1 %v3213_v52  ;;  %v3299_v52 = vld [vmem:[%s4704_s1 + $0x1a0] ss:$8 sps:$4 sm:$0xff]  }
  0x34   :  { %2198 = vmatpush1.bf16.msra.mxu0 %v3214_v53  ;;  %1987 = vmatprep.subr.bf16.mxu1 %v3215_v54  ;;  %v3302_v53 = vld [vmem:[%s4704_s1 + $0x5a0] ss:$8 sps:$4 sm:$0xff]   ;;  %v3307_v54 = vld [vmem:[%s4704_s1 + $0x1b4] ss:$8 sps:$4 sm:$0xff]  }
  0x35   :  { %2199 = vmatprep.subr.bf16.mxu0 %v3217_v55  ;;  %v3310_v55 = vld [vmem:[%s4704_s1 + $0x5b4] ss:$8 sps:$4 sm:$0xff]  }
  0x37   :  { %1988 = vmatpush1.bf16.msra.mxu1 %v3219_v56  ;;  %v3305_v56 = vld [vmem:[%s4704_s1 + $0x1b0] ss:$8 sps:$4 sm:$0xff]  }
  0x38   :  { %2200 = vmatpush1.bf16.msra.mxu0 %v3220_v57  ;;  %1989 = vmatprep.subr.bf16.mxu1 %v3221_v58  ;;  %v3308_v57 = vld [vmem:[%s4704_s1 + $0x5b0] ss:$8 sps:$4 sm:$0xff]   ;;  %v3313_v58 = vld [vmem:[%s4704_s1 + $0x1c4] ss:$8 sps:$4 sm:$0xff]  }
  0x39   :  { %2201 = vmatprep.subr.bf16.mxu0 %v3223_v59  ;;  %v3316_v59 = vld [vmem:[%s4704_s1 + $0x5c4] ss:$8 sps:$4 sm:$0xff]  }
  0x3b   :  { %1990 = vmatpush1.bf16.msra.mxu1 %v3225_v60  ;;  %v3311_v60 = vld [vmem:[%s4704_s1 + $0x1c0] ss:$8 sps:$4 sm:$0xff]  }
  0x3c   :  { %2202 = vmatpush1.bf16.msra.mxu0 %v3226_v61  ;;  %1991 = vmatprep.subr.bf16.mxu1 %v3227_v62  ;;  %v3314_v61 = vld [vmem:[%s4704_s1 + $0x5c0] ss:$8 sps:$4 sm:$0xff]   ;;  %v3319_v62 = vld [vmem:[%s4704_s1 + $0x1d4] ss:$8 sps:$4 sm:$0xff]  }
  0x3d   :  { %2203 = vmatprep.subr.bf16.mxu0 %v3229_v63  ;;  %v3322_v63 = vld [vmem:[%s4704_s1 + $0x5d4] ss:$8 sps:$4 sm:$0xff]  }
  0x3f   :  { %1992 = vmatpush1.bf16.msra.mxu1 %v3231_v0  ;;  %v3317_v0 = vld [vmem:[%s4704_s1 + $0x1d0] ss:$8 sps:$4 sm:$0xff]  }
  0x40   :  { %2204 = vmatpush1.bf16.msra.mxu0 %v3232_v1  ;;  %2014 = vmatprep.subr.bf16.mxu1 %v3238_v2  ;;  %v3320_v1 = vld [vmem:[%s4704_s1 + $0x5d0] ss:$8 sps:$4 sm:$0xff]   ;;  %v3327_v2 = vld [vmem:[%s4704_s1 + $0x1e4] ss:$8 sps:$4 sm:$0xff]  }
  0x41   :  { %2226 = vmatprep.subr.bf16.mxu0 %v3244_v3  ;;  %v3332_v3 = vld [vmem:[%s4704_s1 + $0x5e4] ss:$8 sps:$4 sm:$0xff]  }
  0x42   :  { %1994 = vmatmul.mubr.bf16.vlgmr.msra.gmra.mrb[0].mxu1 %v3233_v4  ;;  %v3325_v4 = vld [vmem:[%s4704_s1 + $0x1e0] ss:$8 sps:$4 sm:$0xff]  }
  0x43   :  { %2206 = vmatmul.mubr.bf16.vlgmr.msra.gmra.mrb[0].mxu0 %v3239_v6  ;;  %2015 = vmatpush1.bf16.msra.mxu1 %v3236_v5  ;;  %v3330_v5 = vld [vmem:[%s4704_s1 + $0x5e0] ss:$8 sps:$4 sm:$0xff]   ;;  %v3337_v6 = vld [vmem:[%s4704_s1 + $0x1f4] ss:$8 sps:$4 sm:$0xff]  }
  0x44   :  { %2227 = vmatpush1.bf16.msra.mxu0 %v3242_v7  ;;  %2016 = vmatprep.subr.bf16.mxu1 %v3247_v8  ;;  %v3340_v7 = vld [vmem:[%s4704_s1 + $0x5f4] ss:$8 sps:$4 sm:$0xff]   ;;  %v3335_v8 = vld [vmem:[%s4704_s1 + $0x1f0] ss:$8 sps:$4 sm:$0xff]  }
  0x45   :  { %2228 = vmatprep.subr.bf16.mxu0 %v3250_v9  ;;  %2003 = vmatprep.mubr.bf16.mxu1 %v3323_v28  ;;  %v3338_v9 = vld [vmem:[%s4704_s1 + $0x5f0] ss:$8 sps:$4 sm:$0xff]   ;;  %v3367_v28 = vld [vmem:[%s4704_s1 + $0x234] ss:$8 sps:$4 sm:$0xff]  }
  0x46   :  { %2215 = vmatprep.mubr.bf16.mxu0 %v3328_v31  ;;  %v3368_v31 = vld [vmem:[%s4704_s1 + $0x630] ss:$8 sps:$4 sm:$0xff]  }
  0x47   :  { %2017 = vmatpush1.bf16.msra.mxu1 %v3245_v10  ;;  %v3346_v10 = vld [vmem:[%s4704_s1 + $0x204] ss:$8 sps:$4 sm:$0xff]  }
  0x48   :  { %2229 = vmatpush1.bf16.msra.mxu0 %v3248_v11  ;;  %2018 = vmatprep.subr.bf16.mxu1 %v3253_v12  ;;  %v3352_v11 = vld [vmem:[%s4704_s1 + $0x604] ss:$8 sps:$4 sm:$0xff]   ;;  %v3341_v12 = vld [vmem:[%s4708_s0 + $0x8] ss:$72 sps:$4 sm:$0xff]  }
  0x49   :  { %2230 = vmatprep.subr.bf16.mxu0 %v3256_v13  ;;  %v3344_v13 = vld [vmem:[%s4704_s1 + $0x200] ss:$8 sps:$4 sm:$0xff]  }
  0x4a   :  { %2004 = vmatmul.mubr.bf16.gmra.mrb[4].mxu1 %v3333_v34  ;;  %v3376_v34 = vld [vmem:[%s4704_s1 + $0x644] ss:$8 sps:$4 sm:$0xff]  }
  0x4b   :  { %2019 = vmatpush1.bf16.msra.mxu1 %v3251_v14  ;;  %2216 = vmatmul.mubr.bf16.gmra.mrb[4].mxu0 %v3334_v35  ;;  %v3347_v14 = vld [vmem:[%s4708_s0 + $0x28] ss:$72 sps:$4 sm:$0xff]   ;;  %v3457_v35 = vld [vmem:[%s4708_s0 + $0x34] ss:$72 sps:$4 sm:$0xff]  }
  0x4c   :  { %2231 = vmatpush1.bf16.msra.mxu0 %v3254_v15  ;;  %2020 = vmatprep.subr.bf16.mxu1 %v3259_v16  ;;  %v3350_v15 = vld [vmem:[%s4704_s1 + $0x600] ss:$8 sps:$4 sm:$0xff]   ;;  %v3355_v16 = vld [vmem:[%s4704_s1 + $0x214] ss:$8 sps:$4 sm:$0xff]  }
  0x4d   :  { %2232 = vmatprep.subr.bf16.mxu0 %v3262_v17  ;;  %2046 = vmatprep.mubr.bf16.mxu1 %v3343_v40  ;;  %v3358_v17 = vld [vmem:[%s4704_s1 + $0x614] ss:$8 sps:$4 sm:$0xff]   ;;  %v3377_v40 = vld [vmem:[%s4704_s1 + $0x250] ss:$8 sps:$4 sm:$0xff]  }
  0x4e   :  { %2258 = vmatprep.mubr.bf16.mxu0 %v3349_v43  ;;  %v3388_v43 = vld [vmem:[%s4704_s1 + $0x664] ss:$8 sps:$4 sm:$0xff]  }
  0x4f   :  { %2021 = vmatpush1.bf16.msra.mxu1 %v3257_v18  ;;  %v3353_v18 = vld [vmem:[%s4704_s1 + $0x210] ss:$8 sps:$4 sm:$0xff]  }
  0x50   :  { %2233 = vmatpush1.bf16.msra.mxu0 %v3260_v19  ;;  %2022 = vmatprep.subr.bf16.mxu1 %v3265_v20  ;;  %v3356_v19 = vld [vmem:[%s4704_s1 + $0x610] ss:$8 sps:$4 sm:$0xff]   ;;  %v3431_v20 = vld [vmem:[%s4708_s0 + $0x9c] ss:$72 sps:$4 sm:$0xff]  }
  0x51   :  { %2234 = vmatprep.subr.bf16.mxu0 %v3268_v21  ;;  %v3361_v21 = vld [vmem:[%s4704_s1 + $0x224] ss:$8 sps:$4 sm:$0xff]  }
  0x53   :  { %2023 = vmatpush1.bf16.msra.mxu1 %v3263_v22  ;;  %v3364_v22 = vld [vmem:[%s4704_s1 + $0x624] ss:$8 sps:$4 sm:$0xff]  }
  0x54   :  { %2235 = vmatpush1.bf16.msra.mxu0 %v3266_v23  ;;  %2024 = vmatprep.subr.bf16.mxu1 %v3271_v24  ;;  %v3436_v23 = vld [vmem:[%s4708_s0 + $0xbc] ss:$72 sps:$4 sm:$0xff]   ;;  %v3359_v24 = vld [vmem:[%s4704_s1 + $0x220] ss:$8 sps:$4 sm:$0xff]  }
  0x55   :  { %2236 = vmatprep.subr.bf16.mxu0 %v3274_v25  ;;  %v3362_v25 = vld [vmem:[%s4704_s1 + $0x620] ss:$8 sps:$4 sm:$0xff]  }
  0x57   :  { %2025 = vmatpush1.bf16.msra.mxu1 %v3269_v26  ;;  %v3441_v26 = vld [vmem:[%s4708_s0 + $0x98] ss:$72 sps:$4 sm:$0xff]  }
  0x58   :  { %2237 = vmatpush1.bf16.msra.mxu0 %v3272_v27  ;;  %2026 = vmatprep.subr.bf16.mxu1 %v3277_v29  ;;  %v3442_v27 = vld [vmem:[%s4708_s0 + $0xb8] ss:$72 sps:$4 sm:$0xff]   ;;  %v3370_v29 = vld [vmem:[%s4704_s1 + $0x634] ss:$8 sps:$4 sm:$0xff]  }
  0x59   :  { %2238 = vmatprep.subr.bf16.mxu0 %v3280_v30  ;;  %v3365_v30 = vld [vmem:[%s4704_s1 + $0x230] ss:$8 sps:$4 sm:$0xff]  }
  0x5b   :  { %2027 = vmatpush1.bf16.msra.mxu1 %v3275_v32  ;;  %v3451_v32 = vld [vmem:[%s4708_s0 + $0x14] ss:$72 sps:$4 sm:$0xff]  }
  0x5c   :  { %2239 = vmatpush1.bf16.msra.mxu0 %v3278_v33  ;;  %2028 = vmatprep.subr.bf16.mxu1 %v3283_v36  ;;  %v3373_v33 = vld [vmem:[%s4704_s1 + $0x244] ss:$8 sps:$4 sm:$0xff]   ;;  %v3371_v36 = vld [vmem:[%s4704_s1 + $0x240] ss:$8 sps:$4 sm:$0xff]  }
  0x5d   :  { %2240 = vmatprep.subr.bf16.mxu0 %v3286_v37  ;;  %v3374_v37 = vld [vmem:[%s4704_s1 + $0x640] ss:$8 sps:$4 sm:$0xff]  }
  0x5f   :  { %2029 = vmatpush1.bf16.msra.mxu1 %v3281_v38  ;;  %v3379_v38 = vld [vmem:[%s4704_s1 + $0x254] ss:$8 sps:$4 sm:$0xff]  }
  0x60   :  { %2241 = vmatpush1.bf16.msra.mxu0 %v3284_v39  ;;  %2030 = vmatprep.subr.bf16.mxu1 %v3289_v41  ;;  %v3382_v39 = vld [vmem:[%s4704_s1 + $0x654] ss:$8 sps:$4 sm:$0xff]   ;;  %v3380_v41 = vld [vmem:[%s4704_s1 + $0x650] ss:$8 sps:$4 sm:$0xff]  }
  0x61   :  { %2242 = vmatprep.subr.bf16.mxu0 %v3292_v42  ;;  %v3385_v42 = vld [vmem:[%s4704_s1 + $0x264] ss:$8 sps:$4 sm:$0xff]  }
  0x63   :  { %2031 = vmatpush1.bf16.msra.mxu1 %v3287_v44  ;;  %v3383_v44 = vld [vmem:[%s4704_s1 + $0x260] ss:$8 sps:$4 sm:$0xff]  }
  0x64   :  { %2243 = vmatpush1.bf16.msra.mxu0 %v3290_v45  ;;  %2032 = vmatprep.subr.bf16.mxu1 %v3295_v46  ;;  %v3386_v45 = vld [vmem:[%s4704_s1 + $0x660] ss:$8 sps:$4 sm:$0xff]   ;;  %v3391_v46 = vld [vmem:[%s4704_s1 + $0x274] ss:$8 sps:$4 sm:$0xff]  }
  0x65   :  { %2244 = vmatprep.subr.bf16.mxu0 %v3298_v47  ;;  %v3394_v47 = vld [vmem:[%s4704_s1 + $0x674] ss:$8 sps:$4 sm:$0xff]  }
  0x67   :  { %2033 = vmatpush1.bf16.msra.mxu1 %v3293_v48  ;;  %v3389_v48 = vld [vmem:[%s4704_s1 + $0x270] ss:$8 sps:$4 sm:$0xff]  }
  0x68   :  { %2245 = vmatpush1.bf16.msra.mxu0 %v3296_v49  ;;  %2034 = vmatprep.subr.bf16.mxu1 %v3301_v50  ;;  %v3392_v49 = vld [vmem:[%s4704_s1 + $0x670] ss:$8 sps:$4 sm:$0xff]   ;;  %v3397_v50 = vld [vmem:[%s4704_s1 + $0x284] ss:$8 sps:$4 sm:$0xff]  }
  0x69   :  { %2246 = vmatprep.subr.bf16.mxu0 %v3304_v51  ;;  %v3400_v51 = vld [vmem:[%s4704_s1 + $0x684] ss:$8 sps:$4 sm:$0xff]  }
  0x6b   :  { %2035 = vmatpush1.bf16.msra.mxu1 %v3299_v52  ;;  %v3395_v52 = vld [vmem:[%s4704_s1 + $0x280] ss:$8 sps:$4 sm:$0xff]  }
  0x6c   :  { %2247 = vmatpush1.bf16.msra.mxu0 %v3302_v53  ;;  %2036 = vmatprep.subr.bf16.mxu1 %v3307_v54  ;;  %v3398_v53 = vld [vmem:[%s4704_s1 + $0x680] ss:$8 sps:$4 sm:$0xff]   ;;  %v3403_v54 = vld [vmem:[%s4704_s1 + $0x294] ss:$8 sps:$4 sm:$0xff]  }
  0x6d   :  { %2248 = vmatprep.subr.bf16.mxu0 %v3310_v55  ;;  %v3406_v55 = vld [vmem:[%s4704_s1 + $0x694] ss:$8 sps:$4 sm:$0xff]  }
  0x6f   :  { %2037 = vmatpush1.bf16.msra.mxu1 %v3305_v56  ;;  %v3401_v56 = vld [vmem:[%s4704_s1 + $0x290] ss:$8 sps:$4 sm:$0xff]  }
  0x70   :  { %2249 = vmatpush1.bf16.msra.mxu0 %v3308_v57  ;;  %2038 = vmatprep.subr.bf16.mxu1 %v3313_v58  ;;  %v3404_v57 = vld [vmem:[%s4704_s1 + $0x690] ss:$8 sps:$4 sm:$0xff]   ;;  %v3409_v58 = vld [vmem:[%s4704_s1 + $0x2a4] ss:$8 sps:$4 sm:$0xff]  }
  0x71   :  { %2250 = vmatprep.subr.bf16.mxu0 %v3316_v59  ;;  %v3412_v59 = vld [vmem:[%s4704_s1 + $0x6a4] ss:$8 sps:$4 sm:$0xff]  }
  0x73   :  { %2039 = vmatpush1.bf16.msra.mxu1 %v3311_v60  ;;  %v3407_v60 = vld [vmem:[%s4704_s1 + $0x2a0] ss:$8 sps:$4 sm:$0xff]  }
  0x74   :  { %2251 = vmatpush1.bf16.msra.mxu0 %v3314_v61  ;;  %2040 = vmatprep.subr.bf16.mxu1 %v3319_v62  ;;  %v3410_v61 = vld [vmem:[%s4704_s1 + $0x6a0] ss:$8 sps:$4 sm:$0xff]   ;;  %v3415_v62 = vld [vmem:[%s4704_s1 + $0x2b4] ss:$8 sps:$4 sm:$0xff]  }
  0x75   :  { %2252 = vmatprep.subr.bf16.mxu0 %v3322_v63  ;;  %v3418_v63 = vld [vmem:[%s4704_s1 + $0x6b4] ss:$8 sps:$4 sm:$0xff]  }
  0x77   :  { %2041 = vmatpush1.bf16.msra.mxu1 %v3317_v0  ;;  %v3413_v0 = vld [vmem:[%s4704_s1 + $0x2b0] ss:$8 sps:$4 sm:$0xff]  }
  0x78   :  { %2253 = vmatpush1.bf16.msra.mxu0 %v3320_v1  ;;  %2042 = vmatprep.subr.bf16.mxu1 %v3327_v2  ;;  %v3416_v1 = vld [vmem:[%s4704_s1 + $0x6b0] ss:$8 sps:$4 sm:$0xff]   ;;  %v3421_v2 = vld [vmem:[%s4704_s1 + $0x2c4] ss:$8 sps:$4 sm:$0xff]  }
  0x79   :  { %2254 = vmatprep.subr.bf16.mxu0 %v3332_v3  ;;  %v3424_v3 = vld [vmem:[%s4704_s1 + $0x6c4] ss:$8 sps:$4 sm:$0xff]  }
  0x7b   :  { %2043 = vmatpush1.bf16.msra.mxu1 %v3325_v4  ;;  %v3419_v4 = vld [vmem:[%s4704_s1 + $0x2c0] ss:$8 sps:$4 sm:$0xff]  }
  0x7c   :  { %2255 = vmatpush1.bf16.msra.mxu0 %v3330_v5  ;;  %2044 = vmatprep.subr.bf16.mxu1 %v3337_v6  ;;  %v3422_v5 = vld [vmem:[%s4704_s1 + $0x6c0] ss:$8 sps:$4 sm:$0xff]   ;;  %v3427_v6 = vld [vmem:[%s4704_s1 + $0x2d4] ss:$8 sps:$4 sm:$0xff]  }
  0x7d   :  { %2256 = vmatprep.subr.bf16.mxu0 %v3340_v7  ;;  %v3430_v7 = vld [vmem:[%s4704_s1 + $0x6d4] ss:$8 sps:$4 sm:$0xff]  }
  0x7f   :  { %2045 = vmatpush1.bf16.msra.mxu1 %v3335_v8  ;;  %v3425_v8 = vld [vmem:[%s4704_s1 + $0x2d0] ss:$8 sps:$4 sm:$0xff]  }
  0x80   :  { %2257 = vmatpush1.bf16.msra.mxu0 %v3338_v9  ;;  %2067 = vmatprep.subr.bf16.mxu1 %v3346_v10  ;;  %v3428_v9 = vld [vmem:[%s4704_s1 + $0x6d0] ss:$8 sps:$4 sm:$0xff]   ;;  %v3435_v10 = vld [vmem:[%s4704_s1 + $0x2e4] ss:$8 sps:$4 sm:$0xff]  }
  0x81   :  { %2279 = vmatprep.subr.bf16.mxu0 %v3352_v11  ;;  %v3440_v11 = vld [vmem:[%s4704_s1 + $0x6e4] ss:$8 sps:$4 sm:$0xff]  }
  0x82   :  { %2047 = vmatmul.mubr.bf16.vlgmr.msra.gmra.mrb[0].mxu1 %v3341_v12  ;;  %v3433_v12 = vld [vmem:[%s4704_s1 + $0x2e0] ss:$8 sps:$4 sm:$0xff]  }
  0x83   :  { %2259 = vmatmul.mubr.bf16.vlgmr.msra.gmra.mrb[0].mxu0 %v3347_v14  ;;  %2068 = vmatpush1.bf16.msra.mxu1 %v3344_v13  ;;  %v3438_v13 = vld [vmem:[%s4704_s1 + $0x6e0] ss:$8 sps:$4 sm:$0xff]   ;;  %v3445_v14 = vld [vmem:[%s4704_s1 + $0x2f4] ss:$8 sps:$4 sm:$0xff]  }
  0x84   :  { %2280 = vmatpush1.bf16.msra.mxu0 %v3350_v15  ;;  %2069 = vmatprep.subr.bf16.mxu1 %v3355_v16  ;;  %v3448_v15 = vld [vmem:[%s4704_s1 + $0x6f4] ss:$8 sps:$4 sm:$0xff]   ;;  %v3443_v16 = vld [vmem:[%s4704_s1 + $0x2f0] ss:$8 sps:$4 sm:$0xff]  }
  0x85   :  { %2281 = vmatprep.subr.bf16.mxu0 %v3358_v17  ;;  %2056 = vmatprep.mubr.bf16.mxu1 %v3431_v20  ;;  %v3446_v17 = vld [vmem:[%s4704_s1 + $0x6f0] ss:$8 sps:$4 sm:$0xff]  }
  0x86   :  { %2268 = vmatprep.mubr.bf16.mxu0 %v3436_v23  ;;  %v3449_v20 = vld [vmem:[%s4708_s0 + $0x10] ss:$72 sps:$4 sm:$0xff]   ;;  %v3458_v23 = vld [vmem:[%s4704_s1 + $0x700] ss:$8 sps:$4 sm:$0xff]  }
  0x87   :  { %2070 = vmatpush1.bf16.msra.mxu1 %v3353_v18  ;;  %v3454_v18 = vld [vmem:[%s4704_s1 + $0x304] ss:$8 sps:$4 sm:$0xff]  }
  0x88   :  { %2282 = vmatpush1.bf16.msra.mxu0 %v3356_v19  ;;  %2071 = vmatprep.subr.bf16.mxu1 %v3361_v21  ;;  %v3460_v19 = vld [vmem:[%s4704_s1 + $0x704] ss:$8 sps:$4 sm:$0xff]   ;;  %v3452_v21 = vld [vmem:[%s4704_s1 + $0x300] ss:$8 sps:$4 sm:$0xff]  }
  0x89   :  { %2283 = vmatprep.subr.bf16.mxu0 %v3364_v22  ;;  %v3455_v22 = vld [vmem:[%s4708_s0 + $0x30] ss:$72 sps:$4 sm:$0xff]  }
  0x8a   :  { %2057 = vmatmul.mubr.bf16.gmra.mrb[4].mxu1 %v3441_v26  ;;  %v3539_v26 = vld [vmem:[%s4708_s0 + $0xa4] ss:$72 sps:$4 sm:$0xff]  }
  0x8b   :  { %2269 = vmatmul.mubr.bf16.gmra.mrb[4].mxu0 %v3442_v27  ;;  %2072 = vmatpush1.bf16.msra.mxu1 %v3359_v24  ;;  %v3463_v24 = vld [vmem:[%s4704_s1 + $0x314] ss:$8 sps:$4 sm:$0xff]   ;;  %v3541_v27 = vld [vmem:[%s4708_s0 + $0xc4] ss:$72 sps:$4 sm:$0xff]  }
  0x8c   :  { %2284 = vmatpush1.bf16.msra.mxu0 %v3362_v25  ;;  %2073 = vmatprep.subr.bf16.mxu1 %v3367_v28  ;;  %v3466_v25 = vld [vmem:[%s4704_s1 + $0x714] ss:$8 sps:$4 sm:$0xff]   ;;  %v3461_v28 = vld [vmem:[%s4704_s1 + $0x310] ss:$8 sps:$4 sm:$0xff]  }
  0x8d   :  { %2285 = vmatprep.subr.bf16.mxu0 %v3370_v29  ;;  %2099 = vmatprep.mubr.bf16.mxu1 %v3451_v32  ;;  %v3464_v29 = vld [vmem:[%s4704_s1 + $0x710] ss:$8 sps:$4 sm:$0xff]   ;;  %v3467_v32 = vld [vmem:[%s4704_s1 + $0x320] ss:$8 sps:$4 sm:$0xff]  }
  0x8e   :  { %2311 = vmatprep.mubr.bf16.mxu0 %v3457_v35  ;;  %v3547_v35 = vld [vmem:[%s4708_s0 + $0xc0] ss:$72 sps:$4 sm:$0xff]  }
  0x8f   :  { %2074 = vmatpush1.bf16.msra.mxu1 %v3365_v30  ;;  %v3469_v30 = vld [vmem:[%s4704_s1 + $0x324] ss:$8 sps:$4 sm:$0xff]  }
  0x90   :  { %2286 = vmatpush1.bf16.msra.mxu0 %v3368_v31  ;;  %2075 = vmatprep.subr.bf16.mxu1 %v3373_v33  ;;  %v3472_v31 = vld [vmem:[%s4704_s1 + $0x724] ss:$8 sps:$4 sm:$0xff]   ;;  %v3470_v33 = vld [vmem:[%s4704_s1 + $0x720] ss:$8 sps:$4 sm:$0xff]  }
  0x91   :  { %2287 = vmatprep.subr.bf16.mxu0 %v3376_v34  ;;  %v3543_v34 = vld [vmem:[%s4708_s0 + $0xa0] ss:$72 sps:$4 sm:$0xff]  }
  0x93   :  { %2076 = vmatpush1.bf16.msra.mxu1 %v3371_v36  ;;  %v3475_v36 = vld [vmem:[%s4704_s1 + $0x334] ss:$8 sps:$4 sm:$0xff]  }
  0x94   :  { %2288 = vmatpush1.bf16.msra.mxu0 %v3374_v37  ;;  %2077 = vmatprep.subr.bf16.mxu1 %v3379_v38  ;;  %v3478_v37 = vld [vmem:[%s4704_s1 + $0x734] ss:$8 sps:$4 sm:$0xff]  }
  0x95   :  { %2289 = vmatprep.subr.bf16.mxu0 %v3382_v39  ;;  %v3559_v38 = vld [vmem:[%s4708_s0 + $0x1c] ss:$72 sps:$4 sm:$0xff]  }
  0x96   :  { %v3562_v39 = vld [vmem:[%s4708_s0 + $0x3c] ss:$72 sps:$4 sm:$0xff]  }
  0x97   :  { %2078 = vmatpush1.bf16.msra.mxu1 %v3377_v40  ;;  %v3473_v40 = vld [vmem:[%s4704_s1 + $0x330] ss:$8 sps:$4 sm:$0xff]  }
  0x98   :  { %2290 = vmatpush1.bf16.msra.mxu0 %v3380_v41  ;;  %2079 = vmatprep.subr.bf16.mxu1 %v3385_v42  ;;  %v3476_v41 = vld [vmem:[%s4704_s1 + $0x730] ss:$8 sps:$4 sm:$0xff]   ;;  %v3481_v42 = vld [vmem:[%s4704_s1 + $0x344] ss:$8 sps:$4 sm:$0xff]  }
  0x99   :  { %2291 = vmatprep.subr.bf16.mxu0 %v3388_v43  ;;  %v3484_v43 = vld [vmem:[%s4704_s1 + $0x744] ss:$8 sps:$4 sm:$0xff]  }
  0x9b   :  { %2080 = vmatpush1.bf16.msra.mxu1 %v3383_v44  ;;  %v3479_v44 = vld [vmem:[%s4704_s1 + $0x340] ss:$8 sps:$4 sm:$0xff]  }
  0x9c   :  { %2292 = vmatpush1.bf16.msra.mxu0 %v3386_v45  ;;  %2081 = vmatprep.subr.bf16.mxu1 %v3391_v46  ;;  %v3482_v45 = vld [vmem:[%s4704_s1 + $0x740] ss:$8 sps:$4 sm:$0xff]   ;;  %v3487_v46 = vld [vmem:[%s4704_s1 + $0x354] ss:$8 sps:$4 sm:$0xff]  }
  0x9d   :  { %2293 = vmatprep.subr.bf16.mxu0 %v3394_v47  ;;  %v3490_v47 = vld [vmem:[%s4704_s1 + $0x754] ss:$8 sps:$4 sm:$0xff]  }
  0x9f   :  { %2082 = vmatpush1.bf16.msra.mxu1 %v3389_v48  ;;  %v3485_v48 = vld [vmem:[%s4704_s1 + $0x350] ss:$8 sps:$4 sm:$0xff]  }
  0xa0   :  { %2294 = vmatpush1.bf16.msra.mxu0 %v3392_v49  ;;  %2083 = vmatprep.subr.bf16.mxu1 %v3397_v50  ;;  %v3488_v49 = vld [vmem:[%s4704_s1 + $0x750] ss:$8 sps:$4 sm:$0xff]   ;;  %v3493_v50 = vld [vmem:[%s4704_s1 + $0x364] ss:$8 sps:$4 sm:$0xff]  }
  0xa1   :  { %2295 = vmatprep.subr.bf16.mxu0 %v3400_v51  ;;  %v3496_v51 = vld [vmem:[%s4704_s1 + $0x764] ss:$8 sps:$4 sm:$0xff]  }
  0xa3   :  { %2084 = vmatpush1.bf16.msra.mxu1 %v3395_v52  ;;  %v3491_v52 = vld [vmem:[%s4704_s1 + $0x360] ss:$8 sps:$4 sm:$0xff]  }
  0xa4   :  { %2296 = vmatpush1.bf16.msra.mxu0 %v3398_v53  ;;  %2085 = vmatprep.subr.bf16.mxu1 %v3403_v54  ;;  %v3494_v53 = vld [vmem:[%s4704_s1 + $0x760] ss:$8 sps:$4 sm:$0xff]   ;;  %v3499_v54 = vld [vmem:[%s4704_s1 + $0x374] ss:$8 sps:$4 sm:$0xff]  }
  0xa5   :  { %2297 = vmatprep.subr.bf16.mxu0 %v3406_v55  ;;  %v3502_v55 = vld [vmem:[%s4704_s1 + $0x774] ss:$8 sps:$4 sm:$0xff]  }
  0xa7   :  { %2086 = vmatpush1.bf16.msra.mxu1 %v3401_v56  ;;  %v3497_v56 = vld [vmem:[%s4704_s1 + $0x370] ss:$8 sps:$4 sm:$0xff]  }
  0xa8   :  { %2298 = vmatpush1.bf16.msra.mxu0 %v3404_v57  ;;  %2087 = vmatprep.subr.bf16.mxu1 %v3409_v58  ;;  %v3500_v57 = vld [vmem:[%s4704_s1 + $0x770] ss:$8 sps:$4 sm:$0xff]   ;;  %v3505_v58 = vld [vmem:[%s4704_s1 + $0x384] ss:$8 sps:$4 sm:$0xff]  }
  0xa9   :  { %2299 = vmatprep.subr.bf16.mxu0 %v3412_v59  ;;  %v3508_v59 = vld [vmem:[%s4704_s1 + $0x784] ss:$8 sps:$4 sm:$0xff]  }
  0xab   :  { %2088 = vmatpush1.bf16.msra.mxu1 %v3407_v60  ;;  %v3503_v60 = vld [vmem:[%s4704_s1 + $0x380] ss:$8 sps:$4 sm:$0xff]  }
  0xac   :  { %2300 = vmatpush1.bf16.msra.mxu0 %v3410_v61  ;;  %2089 = vmatprep.subr.bf16.mxu1 %v3415_v62  ;;  %v3506_v61 = vld [vmem:[%s4704_s1 + $0x780] ss:$8 sps:$4 sm:$0xff]   ;;  %v3511_v62 = vld [vmem:[%s4704_s1 + $0x394] ss:$8 sps:$4 sm:$0xff]  }
  0xad   :  { %2301 = vmatprep.subr.bf16.mxu0 %v3418_v63  ;;  %v3514_v63 = vld [vmem:[%s4704_s1 + $0x794] ss:$8 sps:$4 sm:$0xff]  }
  0xaf   :  { %2090 = vmatpush1.bf16.msra.mxu1 %v3413_v0  ;;  %v3509_v0 = vld [vmem:[%s4704_s1 + $0x390] ss:$8 sps:$4 sm:$0xff]  }
  0xb0   :  { %2302 = vmatpush1.bf16.msra.mxu0 %v3416_v1  ;;  %2091 = vmatprep.subr.bf16.mxu1 %v3421_v2  ;;  %v3512_v1 = vld [vmem:[%s4704_s1 + $0x790] ss:$8 sps:$4 sm:$0xff]   ;;  %v3517_v2 = vld [vmem:[%s4704_s1 + $0x3a4] ss:$8 sps:$4 sm:$0xff]  }
  0xb1   :  { %2303 = vmatprep.subr.bf16.mxu0 %v3424_v3  ;;  %v3520_v3 = vld [vmem:[%s4704_s1 + $0x7a4] ss:$8 sps:$4 sm:$0xff]  }
  0xb3   :  { %2092 = vmatpush1.bf16.msra.mxu1 %v3419_v4  ;;  %v3515_v4 = vld [vmem:[%s4704_s1 + $0x3a0] ss:$8 sps:$4 sm:$0xff]  }
  0xb4   :  { %2304 = vmatpush1.bf16.msra.mxu0 %v3422_v5  ;;  %2093 = vmatprep.subr.bf16.mxu1 %v3427_v6  ;;  %v3518_v5 = vld [vmem:[%s4704_s1 + $0x7a0] ss:$8 sps:$4 sm:$0xff]   ;;  %v3523_v6 = vld [vmem:[%s4704_s1 + $0x3b4] ss:$8 sps:$4 sm:$0xff]  }
  0xb5   :  { %2305 = vmatprep.subr.bf16.mxu0 %v3430_v7  ;;  %v3526_v7 = vld [vmem:[%s4704_s1 + $0x7b4] ss:$8 sps:$4 sm:$0xff]  }
  0xb7   :  { %2094 = vmatpush1.bf16.msra.mxu1 %v3425_v8  ;;  %v3521_v8 = vld [vmem:[%s4704_s1 + $0x3b0] ss:$8 sps:$4 sm:$0xff]  }
  0xb8   :  { %2306 = vmatpush1.bf16.msra.mxu0 %v3428_v9  ;;  %2095 = vmatprep.subr.bf16.mxu1 %v3435_v10  ;;  %v3524_v9 = vld [vmem:[%s4704_s1 + $0x7b0] ss:$8 sps:$4 sm:$0xff]   ;;  %v3529_v10 = vld [vmem:[%s4704_s1 + $0x3c4] ss:$8 sps:$4 sm:$0xff]  }
  0xb9   :  { %2307 = vmatprep.subr.bf16.mxu0 %v3440_v11  ;;  %v3532_v11 = vld [vmem:[%s4704_s1 + $0x7c4] ss:$8 sps:$4 sm:$0xff]  }
  0xbb   :  { %2096 = vmatpush1.bf16.msra.mxu1 %v3433_v12  ;;  %v3527_v12 = vld [vmem:[%s4704_s1 + $0x3c0] ss:$8 sps:$4 sm:$0xff]  }
  0xbc   :  { %2308 = vmatpush1.bf16.msra.mxu0 %v3438_v13  ;;  %2097 = vmatprep.subr.bf16.mxu1 %v3445_v14  ;;  %v3530_v13 = vld [vmem:[%s4704_s1 + $0x7c0] ss:$8 sps:$4 sm:$0xff]   ;;  %v3535_v14 = vld [vmem:[%s4704_s1 + $0x3d4] ss:$8 sps:$4 sm:$0xff]  }
  0xbd   :  { %2309 = vmatprep.subr.bf16.mxu0 %v3448_v15  ;;  %v3538_v15 = vld [vmem:[%s4704_s1 + $0x7d4] ss:$8 sps:$4 sm:$0xff]  }
  0xbf   :  { %2098 = vmatpush1.bf16.msra.mxu1 %v3443_v16  ;;  %v3533_v16 = vld [vmem:[%s4704_s1 + $0x3d0] ss:$8 sps:$4 sm:$0xff]  }
  0xc0   :  { %2310 = vmatpush1.bf16.msra.mxu0 %v3446_v17  ;;  %2120 = vmatprep.subr.bf16.mxu1 %v3454_v18  ;;  %v3536_v17 = vld [vmem:[%s4704_s1 + $0x7d0] ss:$8 sps:$4 sm:$0xff]   ;;  %v3546_v18 = vld [vmem:[%s4704_s1 + $0x3e4] ss:$8 sps:$4 sm:$0xff]  }
  0xc1   :  { %2332 = vmatprep.subr.bf16.mxu0 %v3460_v19  ;;  %v3550_v19 = vld [vmem:[%s4704_s1 + $0x7e4] ss:$8 sps:$4 sm:$0xff]  }
  0xc2   :  { %2100 = vmatmul.mubr.bf16.vlgmr.msra.gmra.mrb[0].mxu1 %v3449_v20  ;;  %v3544_v20 = vld [vmem:[%s4704_s1 + $0x3e0] ss:$8 sps:$4 sm:$0xff]  }
  0xc3   :  { %2312 = vmatmul.mubr.bf16.vlgmr.msra.gmra.mrb[0].mxu0 %v3455_v22  ;;  %2121 = vmatpush1.bf16.msra.mxu1 %v3452_v21  ;;  %v3548_v21 = vld [vmem:[%s4704_s1 + $0x7e0] ss:$8 sps:$4 sm:$0xff]   ;;  %v3553_v22 = vld [vmem:[%s4704_s1 + $0x3f4] ss:$8 sps:$4 sm:$0xff]  }
  0xc4   :  { %2333 = vmatpush1.bf16.msra.mxu0 %v3458_v23  ;;  %2122 = vmatprep.subr.bf16.mxu1 %v3463_v24  ;;  %v3556_v23 = vld [vmem:[%s4704_s1 + $0x7f4] ss:$8 sps:$4 sm:$0xff]   ;;  %v3551_v24 = vld [vmem:[%s4704_s1 + $0x3f0] ss:$8 sps:$4 sm:$0xff]  }
  0xc5   :  { %2334 = vmatprep.subr.bf16.mxu0 %v3466_v25  ;;  %2109 = vmatprep.mubr.bf16.mxu1 %v3539_v26  ;;  %v3554_v25 = vld [vmem:[%s4704_s1 + $0x7f0] ss:$8 sps:$4 sm:$0xff]   ;;  %v3565_v26 = vld [vmem:[%s4704_s1 + $0x804] ss:$8 sps:$4 sm:$0xff]  }
  0xc6   :  { %2321 = vmatprep.mubr.bf16.mxu0 %v3541_v27  ;;  %v3557_v27 = vld [vmem:[%s4708_s0 + $0x18] ss:$72 sps:$4 sm:$0xff]  }
  0xc7   :  { %2123 = vmatpush1.bf16.msra.mxu1 %v3461_v28  ;;  %v3560_v28 = vld [vmem:[%s4708_s0 + $0x38] ss:$72 sps:$4 sm:$0xff]  }
  0xc8   :  { %2335 = vmatpush1.bf16.msra.mxu0 %v3464_v29  ;;  %2124 = vmatprep.subr.bf16.mxu1 %v3469_v30  ;;  %v3563_v29 = vld [vmem:[%s4704_s1 + $0x800] ss:$8 sps:$4 sm:$0xff]   ;;  %v3568_v30 = vld [vmem:[%s4704_s1 + $0x814] ss:$8 sps:$4 sm:$0xff]  }
  0xc9   :  { %2336 = vmatprep.subr.bf16.mxu0 %v3472_v31  ;;  %v3569_v31 = vld [vmem:[%s4708_s0 + $0xac] ss:$72 sps:$4 sm:$0xff]  }
  0xca   :  { %2110 = vmatmul.mubr.bf16.gmra.mrb[4].mxu1 %v3543_v34  ;;  %v3577_v34 = vld [vmem:[%s4704_s1 + $0x824] ss:$8 sps:$4 sm:$0xff]  }
  0xcb   :  { %2322 = vmatmul.mubr.bf16.gmra.mrb[4].mxu0 %v3547_v35  ;;  %2125 = vmatpush1.bf16.msra.mxu1 %v3467_v32  ;;  %v3571_v32 = vld [vmem:[%s4708_s0 + $0xcc] ss:$72 sps:$4 sm:$0xff]   ;;  %v3573_v35 = vld [vmem:[%s4708_s0 + $0xa8] ss:$72 sps:$4 sm:$0xff]  }
  0xcc   :  { %2337 = vmatpush1.bf16.msra.mxu0 %v3470_v33  ;;  %2126 = vmatprep.subr.bf16.mxu1 %v3475_v36  ;;  %v3566_v33 = vld [vmem:[%s4704_s1 + $0x810] ss:$8 sps:$4 sm:$0xff]  }
  0xcd   :  { %2338 = vmatprep.subr.bf16.mxu0 %v3478_v37  ;;  %2152 = vmatprep.mubr.bf16.mxu1 %v3559_v38  ;;  %v3574_v36 = vld [vmem:[%s4708_s0 + $0xc8] ss:$72 sps:$4 sm:$0xff]   ;;  %v3580_v38 = vld [vmem:[%s4704_s1 + $0x834] ss:$8 sps:$4 sm:$0xff]  }
  0xce   :  { %2364 = vmatprep.mubr.bf16.mxu0 %v3562_v39  ;;  %v3575_v37 = vld [vmem:[%s4704_s1 + $0x820] ss:$8 sps:$4 sm:$0xff]   ;;  %v3619_v39 = vld [vmem:[%s4708_s0 + $0x44] ss:$72 sps:$4 sm:$0xff]  }
  0xcf   :  { %2127 = vmatpush1.bf16.msra.mxu1 %v3473_v40  ;;  %v3622_v40 = vld [vmem:[%s4708_s0 + $0xd4] ss:$72 sps:$4 sm:$0xff]  }
  0xd0   :  { %2339 = vmatpush1.bf16.msra.mxu0 %v3476_v41  ;;  %2128 = vmatprep.subr.bf16.mxu1 %v3481_v42  ;;  %v3578_v41 = vld [vmem:[%s4704_s1 + $0x830] ss:$8 sps:$4 sm:$0xff]   ;;  %v3583_v42 = vld [vmem:[%s4704_s1 + $0x844] ss:$8 sps:$4 sm:$0xff]  }
  0xd1   :  { %2340 = vmatprep.subr.bf16.mxu0 %v3484_v43  ;;  %v3581_v43 = vld [vmem:[%s4704_s1 + $0x840] ss:$8 sps:$4 sm:$0xff]  }
  0xd3   :  { %2129 = vmatpush1.bf16.msra.mxu1 %v3479_v44  ;;  %v3586_v44 = vld [vmem:[%s4704_s1 + $0x854] ss:$8 sps:$4 sm:$0xff]  }
  0xd4   :  { %2341 = vmatpush1.bf16.msra.mxu0 %v3482_v45  ;;  %2130 = vmatprep.subr.bf16.mxu1 %v3487_v46  ;;  %v3584_v45 = vld [vmem:[%s4704_s1 + $0x850] ss:$8 sps:$4 sm:$0xff]   ;;  %v3589_v46 = vld [vmem:[%s4704_s1 + $0x864] ss:$8 sps:$4 sm:$0xff]  }
  0xd5   :  { %2342 = vmatprep.subr.bf16.mxu0 %v3490_v47  ;;  %v3587_v47 = vld [vmem:[%s4704_s1 + $0x860] ss:$8 sps:$4 sm:$0xff]  }
  0xd7   :  { %2131 = vmatpush1.bf16.msra.mxu1 %v3485_v48  ;;  %v3592_v48 = vld [vmem:[%s4704_s1 + $0x874] ss:$8 sps:$4 sm:$0xff]  }
  0xd8   :  { %2343 = vmatpush1.bf16.msra.mxu0 %v3488_v49  ;;  %2132 = vmatprep.subr.bf16.mxu1 %v3493_v50  ;;  %v3590_v49 = vld [vmem:[%s4704_s1 + $0x870] ss:$8 sps:$4 sm:$0xff]   ;;  %v3595_v50 = vld [vmem:[%s4704_s1 + $0x884] ss:$8 sps:$4 sm:$0xff]  }
  0xd9   :  { %2344 = vmatprep.subr.bf16.mxu0 %v3496_v51  ;;  %v3593_v51 = vld [vmem:[%s4704_s1 + $0x880] ss:$8 sps:$4 sm:$0xff]  }
  0xdb   :  { %2133 = vmatpush1.bf16.msra.mxu1 %v3491_v52  ;;  %v3598_v52 = vld [vmem:[%s4704_s1 + $0x894] ss:$8 sps:$4 sm:$0xff]  }
  0xdc   :  { %2345 = vmatpush1.bf16.msra.mxu0 %v3494_v53  ;;  %2134 = vmatprep.subr.bf16.mxu1 %v3499_v54  ;;  %v3596_v53 = vld [vmem:[%s4704_s1 + $0x890] ss:$8 sps:$4 sm:$0xff]   ;;  %v3601_v54 = vld [vmem:[%s4704_s1 + $0x8a4] ss:$8 sps:$4 sm:$0xff]  }
  0xdd   :  { %2346 = vmatprep.subr.bf16.mxu0 %v3502_v55  ;;  %v3599_v55 = vld [vmem:[%s4704_s1 + $0x8a0] ss:$8 sps:$4 sm:$0xff]  }
  0xdf   :  { %2135 = vmatpush1.bf16.msra.mxu1 %v3497_v56  ;;  %v3604_v56 = vld [vmem:[%s4704_s1 + $0x8b4] ss:$8 sps:$4 sm:$0xff]  }
  0xe0   :  { %2347 = vmatpush1.bf16.msra.mxu0 %v3500_v57  ;;  %2136 = vmatprep.subr.bf16.mxu1 %v3505_v58  ;;  %v3602_v57 = vld [vmem:[%s4704_s1 + $0x8b0] ss:$8 sps:$4 sm:$0xff]   ;;  %v3607_v58 = vld [vmem:[%s4704_s1 + $0x8c4] ss:$8 sps:$4 sm:$0xff]  }
  0xe1   :  { %2348 = vmatprep.subr.bf16.mxu0 %v3508_v59  ;;  %v3605_v59 = vld [vmem:[%s4704_s1 + $0x8c0] ss:$8 sps:$4 sm:$0xff]  }
  0xe3   :  { %2137 = vmatpush1.bf16.msra.mxu1 %v3503_v60  ;;  %v3610_v60 = vld [vmem:[%s4704_s1 + $0x8d4] ss:$8 sps:$4 sm:$0xff]  }
  0xe4   :  { %2349 = vmatpush1.bf16.msra.mxu0 %v3506_v61  ;;  %2138 = vmatprep.subr.bf16.mxu1 %v3511_v62  ;;  %v3608_v61 = vld [vmem:[%s4704_s1 + $0x8d0] ss:$8 sps:$4 sm:$0xff]   ;;  %v3613_v62 = vld [vmem:[%s4704_s1 + $0x8e4] ss:$8 sps:$4 sm:$0xff]  }
  0xe5   :  { %2350 = vmatprep.subr.bf16.mxu0 %v3514_v63  ;;  %v3611_v63 = vld [vmem:[%s4704_s1 + $0x8e0] ss:$8 sps:$4 sm:$0xff]  }
  0xe7   :  { %2139 = vmatpush1.bf16.msra.mxu1 %v3509_v0  ;;  %v3616_v0 = vld [vmem:[%s4704_s1 + $0x8f4] ss:$8 sps:$4 sm:$0xff]  }
  0xe8   :  { %2351 = vmatpush1.bf16.msra.mxu0 %v3512_v1  ;;  %2140 = vmatprep.subr.bf16.mxu1 %v3517_v2  ;;  %v3614_v1 = vld [vmem:[%s4704_s1 + $0x8f0] ss:$8 sps:$4 sm:$0xff]   ;;  %v3617_v2 = vld [vmem:[%s4708_s0 + $0x40] ss:$72 sps:$4 sm:$0xff]  }
  0xe9   :  { %2352 = vmatprep.subr.bf16.mxu0 %v3520_v3  ;;  %v3620_v3 = vld [vmem:[%s4708_s0 + $0xd0] ss:$72 sps:$4 sm:$0xff]   ;;  %s4681_s0 = smov 0  }
  0xeb   :  { %2141 = vmatpush1.bf16.msra.mxu1 %v3515_v4 }
  0xec   :  { %2353 = vmatpush1.bf16.msra.mxu0 %v3518_v5  ;;  %2142 = vmatprep.subr.bf16.mxu1 %v3523_v6 }
  0xed   :  { %2354 = vmatprep.subr.bf16.mxu0 %v3526_v7 }
  0xef   :  { %2143 = vmatpush1.bf16.msra.mxu1 %v3521_v8 }
  0xf0   :  { %2355 = vmatpush1.bf16.msra.mxu0 %v3524_v9  ;;  %2144 = vmatprep.subr.bf16.mxu1 %v3529_v10 }
  0xf1   :  { %2356 = vmatprep.subr.bf16.mxu0 %v3532_v11 }
  0xf3   :  { %2145 = vmatpush1.bf16.msra.mxu1 %v3527_v12 }
  0xf4   :  { %2357 = vmatpush1.bf16.msra.mxu0 %v3530_v13  ;;  %2146 = vmatprep.subr.bf16.mxu1 %v3535_v14 }
  0xf5   :  { %2358 = vmatprep.subr.bf16.mxu0 %v3538_v15 }
  0xf7   :  { %2147 = vmatpush1.bf16.msra.mxu1 %v3533_v16 }
  0xf8   :  { %2359 = vmatpush1.bf16.msra.mxu0 %v3536_v17  ;;  %2148 = vmatprep.subr.bf16.mxu1 %v3546_v18 }
  0xf9   :  { %2360 = vmatprep.subr.bf16.mxu0 %v3550_v19 }
  0xfb   :  { %2149 = vmatpush1.bf16.msra.mxu1 %v3544_v20 }
  0xfc   :  { %2361 = vmatpush1.bf16.msra.mxu0 %v3548_v21  ;;  %2150 = vmatprep.subr.bf16.mxu1 %v3553_v22 }
  0xfd   :  { %2362 = vmatprep.subr.bf16.mxu0 %v3556_v23 }
  0xff   :  { %2151 = vmatpush1.bf16.msra.mxu1 %v3551_v24 }
 0x100   :  { %2363 = vmatpush1.bf16.msra.mxu0 %v3554_v25  ;;  %2984 = vmatprep.subr.bf16.mxu1 %v3565_v26 }
 0x101   :  { %2385 = vmatprep.subr.bf16.mxu0 %v3565_v26 }
 0x102   :  { %2153 = vmatmul.mubr.bf16.vlgmr.msra.gmra.mrb[0].mxu1 %v3557_v27 }
 0x103   :  { %2365 = vmatmul.mubr.bf16.vlgmr.msra.gmra.mrb[0].mxu0 %v3560_v28  ;;  %3000 = vmatpush1.bf16.msra.mxu1 %v3563_v29 }
 0x104   :  { %2386 = vmatpush1.bf16.msra.mxu0 %v3563_v29  ;;  %2985 = vmatprep.subr.bf16.mxu1 %v3568_v30 }
 0x105   :  { %2387 = vmatprep.subr.bf16.mxu0 %v3568_v30  ;;  %2162 = vmatprep.mubr.bf16.mxu1 %v3569_v31 }
 0x106   :  { %2374 = vmatprep.mubr.bf16.mxu0 %v3571_v32 }
 0x107   :  { %3001 = vmatpush1.bf16.msra.mxu1 %v3566_v33 }
 0x108   :  { %2388 = vmatpush1.bf16.msra.mxu0 %v3566_v33  ;;  %2986 = vmatprep.subr.bf16.mxu1 %v3577_v34 }
 0x109   :  { %2389 = vmatprep.subr.bf16.mxu0 %v3577_v34 }
 0x10a   :  { %2163 = vmatmul.mubr.bf16.gmra.mrb[4].mxu1 %v3573_v35 }
 0x10b   :  { %2375 = vmatmul.mubr.bf16.gmra.mrb[4].mxu0 %v3574_v36  ;;  %3002 = vmatpush1.bf16.msra.mxu1 %v3575_v37  ;;  %v3655_v36 = vmov 0.0  }
 0x10c   :  { %2390 = vmatpush1.bf16.msra.mxu0 %v3575_v37  ;;  %2987 = vmatprep.subr.bf16.mxu1 %v3580_v38  ;;  %v3659_v37 = vmov 0.0  }
 0x10d   :  { %2391 = vmatprep.subr.bf16.mxu0 %v3580_v38  ;;  %2417 = vmatprep.mubr.bf16.mxu0 %v3619_v39 }
 0x10e   :  { %2427 = vmatprep.mubr.bf16.mxu1 %v3622_v40 }
 0x10f   :  { %3003 = vmatpush1.bf16.msra.mxu1 %v3578_v41 }
 0x110   :  { %2392 = vmatpush1.bf16.msra.mxu0 %v3578_v41  ;;  %2988 = vmatprep.subr.bf16.mxu1 %v3583_v42 }
 0x111   :  { %2393 = vmatprep.subr.bf16.mxu0 %v3583_v42 }
 0x113   :  { %3004 = vmatpush1.bf16.msra.mxu1 %v3581_v43 }
 0x114   :  { %2394 = vmatpush1.bf16.msra.mxu0 %v3581_v43  ;;  %2989 = vmatprep.subr.bf16.mxu1 %v3586_v44 }
 0x115   :  { %2395 = vmatprep.subr.bf16.mxu0 %v3586_v44 }
 0x117   :  { %3005 = vmatpush1.bf16.msra.mxu1 %v3584_v45 }
 0x118   :  { %2396 = vmatpush1.bf16.msra.mxu0 %v3584_v45  ;;  %2990 = vmatprep.subr.bf16.mxu1 %v3589_v46 }
 0x119   :  { %2397 = vmatprep.subr.bf16.mxu0 %v3589_v46 }
 0x11b   :  { %3006 = vmatpush1.bf16.msra.mxu1 %v3587_v47 }
 0x11c   :  { %2398 = vmatpush1.bf16.msra.mxu0 %v3587_v47  ;;  %2991 = vmatprep.subr.bf16.mxu1 %v3592_v48 }
 0x11d   :  { %2399 = vmatprep.subr.bf16.mxu0 %v3592_v48 }
 0x11f   :  { %3007 = vmatpush1.bf16.msra.mxu1 %v3590_v49 }
 0x120   :  { %2400 = vmatpush1.bf16.msra.mxu0 %v3590_v49  ;;  %2992 = vmatprep.subr.bf16.mxu1 %v3595_v50 }
 0x121   :  { %2401 = vmatprep.subr.bf16.mxu0 %v3595_v50 }
 0x123   :  { %3008 = vmatpush1.bf16.msra.mxu1 %v3593_v51 }
 0x124   :  { %2402 = vmatpush1.bf16.msra.mxu0 %v3593_v51  ;;  %2993 = vmatprep.subr.bf16.mxu1 %v3598_v52 }
 0x125   :  { %2403 = vmatprep.subr.bf16.mxu0 %v3598_v52 }
 0x127   :  { %3009 = vmatpush1.bf16.msra.mxu1 %v3596_v53 }
 0x128   :  { %2404 = vmatpush1.bf16.msra.mxu0 %v3596_v53  ;;  %2994 = vmatprep.subr.bf16.mxu1 %v3601_v54 }
 0x129   :  { %2405 = vmatprep.subr.bf16.mxu0 %v3601_v54 }
 0x12b   :  { %3010 = vmatpush1.bf16.msra.mxu1 %v3599_v55 }
 0x12c   :  { %2406 = vmatpush1.bf16.msra.mxu0 %v3599_v55  ;;  %2995 = vmatprep.subr.bf16.mxu1 %v3604_v56 }
 0x12d   :  { %2407 = vmatprep.subr.bf16.mxu0 %v3604_v56 }
 0x12f   :  { %3011 = vmatpush1.bf16.msra.mxu1 %v3602_v57 }
 0x130   :  { %2408 = vmatpush1.bf16.msra.mxu0 %v3602_v57  ;;  %2996 = vmatprep.subr.bf16.mxu1 %v3607_v58 }
 0x131   :  { %2409 = vmatprep.subr.bf16.mxu0 %v3607_v58 }
 0x133   :  { %3012 = vmatpush1.bf16.msra.mxu1 %v3605_v59 }
 0x134   :  { %2410 = vmatpush1.bf16.msra.mxu0 %v3605_v59  ;;  %2997 = vmatprep.subr.bf16.mxu1 %v3610_v60 }
 0x135   :  { %2411 = vmatprep.subr.bf16.mxu0 %v3610_v60 }
 0x137   :  { %3013 = vmatpush1.bf16.msra.mxu1 %v3608_v61 }
 0x138   :  { %2412 = vmatpush1.bf16.msra.mxu0 %v3608_v61  ;;  %2998 = vmatprep.subr.bf16.mxu1 %v3613_v62 }
 0x139   :  { %2413 = vmatprep.subr.bf16.mxu0 %v3613_v62 }
 0x13b   :  { %3014 = vmatpush1.bf16.msra.mxu1 %v3611_v63 }
 0x13c   :  { %2414 = vmatpush1.bf16.msra.mxu0 %v3611_v63  ;;  %2999 = vmatprep.subr.bf16.mxu1 %v3616_v0 }
 0x13d   :  { %2415 = vmatprep.subr.bf16.mxu0 %v3616_v0 }
 0x13f   :  { %3015 = vmatpush1.bf16.msra.mxu1 %v3614_v1 }
 0x140   :  { %2416 = vmatpush1.bf16.msra.mxu0 %v3614_v1 }
 0x142   :  { %2428 = vmatmul.mubr.bf16.vlgmr.msra.gmra.mrb[8].mxu1 %v3620_v3 }
 0x143   :  { %2418 = vmatmul.mubr.bf16.vlgmr.msra.gmra.mrb[0].mxu0 %v3617_v2 }
 0x1d5   :  { %v2154_v4 = vpop.f32.mrb[0].mxu1 }
 0x1d6   :  { %v2156_v5 = vpop.f32.mrb[1].mxu1 }
 0x1d7   :  { %v2158_v6 = vpop.f32.mrb[2].mxu1 }
 0x1d8   :  { %v2160_v7 = vpop.f32.mrb[3].mxu1 }
 0x1dd   :  { %v2164_v8 = vpop.f32.mrb[4].mxu1 }
 0x1de   :  { %v2376_v9 = vpop.f32.mrb[4].mxu0  ;;  %v2166_v11 = vpop.f32.mrb[5].mxu1 }
 0x1df   :  { %v3020_v10 = vadd.f32 %v2376_v9, %v2164_v8  ;;  %v2378_v12 = vpop.f32.mrb[5].mxu0  ;;  %v2168_v14 = vpop.f32.mrb[6].mxu1 }
 0x1e0   :  { %v3022_v13 = vadd.f32 %v2378_v12, %v2166_v11  ;;  %v2380_v15 = vpop.f32.mrb[6].mxu0  ;;  %v2170_v17 = vpop.f32.mrb[7].mxu1 }
 0x1e1   :  { %v3024_v16 = vadd.f32 %v2380_v15, %v2168_v14  ;;  %v2382_v18 = vpop.f32.mrb[7].mxu0 }
 0x1e2   :  { %v3026_v19 = vadd.f32 %v2382_v18, %v2170_v17 }
 0x215   :  { %v2429_v21 = vpop.f32.mrb[8].mxu1 }
 0x216   :  { %v2419_v20 = vpop.f32.mrb[0].mxu0  ;;  %v3021_v23 = vadd.f32 %v3020_v10, %v2429_v21  ;;  %v2431_v25 = vpop.f32.mrb[9].mxu1 }
 0x217   :  { %v3016_v22 = vadd.f32 %v2419_v20, %v2154_v4  ;;  %v2421_v24 = vpop.f32.mrb[1].mxu0  ;;  %v3023_v27 = vadd.f32 %v3022_v13, %v2431_v25  ;;  %v2433_v29 = vpop.f32.mrb[10].mxu1 }
 0x218   :  { %v3017_v26 = vadd.f32 %v2421_v24, %v2156_v5  ;;  %v2423_v28 = vpop.f32.mrb[2].mxu0  ;;  %2442 = vst [vmem:[#allocation2 + $0x20] sm:$0xff] %v3021_v23  ;;  %v3025_v31 = vadd.f32 %v3024_v16, %v2433_v29  ;;  %v2435_v33 = vpop.f32.mrb[11].mxu1 }
 0x219   :  { %2438 = vst [vmem:[#allocation2] sm:$0xff] %v3016_v22  ;;  %v3018_v30 = vadd.f32 %v2423_v28, %v2158_v6  ;;  %v2425_v32 = vpop.f32.mrb[3].mxu0  ;;  %2443 = vst [vmem:[#allocation2 + $0x28] sm:$0xff] %v3023_v27  ;;  %v3027_v35 = vadd.f32 %v3026_v19, %v2435_v33 }
 0x21a   :  { %2439 = vst [vmem:[#allocation2 + $0x8] sm:$0xff] %v3017_v26  ;;  %v3019_v34 = vadd.f32 %v2425_v32, %v2160_v7  ;;  %2444 = vst [vmem:[#allocation2 + $0x30] sm:$0xff] %v3025_v31 }
 0x21b   :  { %2440 = vst [vmem:[#allocation2 + $0x10] sm:$0xff] %v3018_v30  ;;  %2445 = vst [vmem:[#allocation2 + $0x38] sm:$0xff] %v3027_v35 }
 0x21c   :  { %2441 = vst [vmem:[#allocation2 + $0x18] sm:$0xff] %v3019_v34 }
 0x21d LB: > { %s2968_s1 = sshll.u32 %s3665_s0, 3  ;;  %s2451_s0 = sadd.s32 1, %s3665_s0   ;;  %s3665_s0 = sphi %s4681_s0, %s2451_s0   ;;  %v3661_v37 = vphi %v3659_v37, %v3660_v37   ;;  %v3657_v36 = vphi %v3655_v36, %v3656_v36  }
 0x21e   : > { %s2455_s13 = sshra.s32 %s2968_s1, 3  ;;  %p2448_p0 = scmp.ge.s32.totalorder %s2451_s0, 4  }
 0x21f   : > { %s2979_s14 = sshll.u32 %s2455_s13, 4  ;;  %v3667_v56 = vmov (%p2448_p0), 0.0   ;;  %v3671_v57 = vmov (%p2448_p0), 0.0   ;;  %s4686_s16 = smov (%p2448_p0), 0  }
 0x220   : > { %s2459_s15 = scalar_lea.vmem [#allocation2], %s2979_s14 }
 0x223   : > { %v2460_v38 = vld [vmem:[%s2459_s15] sm:$0xff]  ;;  %v2461_v39 = vld [vmem:[%s2459_s15 + $0x8] sm:$0xff] }
 0x224   : > { %v2462_v40 = vrot.slane %v2460_v38, 4  ;;  %v2468_v41 = vrot.slane %v2461_v39, 4 }
 0x226   : > { %v2463_v42 = vadd.f32 %v2462_v40, %v2460_v38  ;;  %v2469_v43 = vadd.f32 %v2468_v41, %v2461_v39 }
 0x228   : > { %v2464_v44 = vrot.slane %v2463_v42, 2  ;;  %v2470_v45 = vrot.slane %v2469_v43, 2 }
 0x22a   : > { %v2465_v46 = vadd.f32 %v2464_v44, %v2463_v42  ;;  %v2471_v47 = vadd.f32 %v2470_v45, %v2469_v43 }
 0x22c   : > { %v2466_v48 = vrot.slane %v2465_v46, 1  ;;  %v2472_v49 = vrot.slane %v2471_v47, 1  ;;  %2450 = sbr.rel (!%p2448_p0) target bundleno = 541 (0x21d), region = 61 }
 0x22e   : > { %v2467_v50 = vadd.f32 %v2466_v48, %v2465_v46  ;;  %v2473_v51 = vadd.f32 %v2472_v49, %v2471_v47 }
 0x230   : > { %v2474_v52 = vadd.f32 %v3661_v37, %v2467_v50   ;;  %v2475_v53 = vadd.f32 %v3657_v36, %v2473_v51  }
 0x232   : > { %v3656_v36 = vmov %v2475_v53   ;;  %v3660_v37 = vmov %v2474_v52   ;;  %v2477_v54 = vmul.f32 (%p2448_p0), 0.03125, %v2474_v52  ;;  %v2478_v55 = vmul.f32 (%p2448_p0), 0.03125, %v2475_v53 }
 0x233 LB: > { %s2971_s17 = sshll.u32 %s3677_s16, 3  ;;  %s2484_s16 = sadd.s32 1, %s3677_s16   ;;  %s3677_s16 = sphi %s4686_s16, %s2484_s16   ;;  %v3673_v57 = vphi %v3671_v57, %v3672_v57   ;;  %v3669_v56 = vphi %v3667_v56, %v3668_v56  }
 0x234   : > { %s2488_s18 = sshra.s32 %s2971_s17, 3  ;;  %p2481_p1 = scmp.ge.s32.totalorder %s2484_s16, 4  }
 0x235   : > { %s2980_s19 = sshll.u32 %s2488_s18, 4  ;;  %v2521_v16 = vlaneseq (%p2481_p1)  ;;  %v2519_v21 = vld [vmem:[%s4705_s2] sm:$0x3] (%p2481_p1)  ;;  %v3683_v23 = vmov (%p2481_p1), 1966171168   ;;  %s3679_s2 = smov (%p2481_p1), 0  }
 0x236   : > { %s2492_s20 = scalar_lea.vmem [#allocation2], %s2980_s19  ;;  %v2540_v24 = vunpack.c.l.s4 (%p2481_p1), %v3683_v23  ;;  %v2533_v37 = vld [vmem:[%s4706_s3] sm:$0x3] (%p2481_p1) }
 0x237   : > { %v2493_v58 = vld [vmem:[%s2492_s20] sm:$0xff]  ;;  %v2494_v59 = vld [vmem:[%s2492_s20 + $0x8] sm:$0xff]  ;;  %v2522_v19 = vshrl.u32 (%p2481_p1), %v2521_v16, 7 }
 0x238   : > { %v2495_v60 = vsub.f32 %v2493_v58, %v2477_v54  ;;  %v2496_v61 = vsub.f32 %v2494_v59, %v2478_v55  ;;  %v2541_v28 = vunpack.c.0.s8 (%p2481_p1), %v2540_v24 }
 0x239   :  { %v2523_v20 = vsub.s32 (%p2481_p1), 0, %v2522_v19  ;;  %v2527_v22 = vsub.s32 (%p2481_p1), 1, %v2522_v19 }
 0x23a   : > { %v2497_v62 = vmul.f32 %v2495_v60, %v2495_v60  ;;  %v2498_v63 = vmul.f32 %v2496_v61, %v2496_v61  ;;  %v2544_v34 = vsub.s32 (%p2481_p1), %v2541_v28, %v2522_v19 }
 0x23b   :  { %v2524_v25 = vrot.slane (%p2481_p1), %v2519_v21, %v2523_v20  ;;  %v2528_v26 = vrot.slane (%p2481_p1), %v2519_v21, %v2527_v22 }
 0x23c   : > { %v2499_v0 = vrot.slane %v2497_v62, 4  ;;  %v2505_v1 = vrot.slane %v2498_v63, 4 }
 0x23e   : > { %v2500_v2 = vadd.f32 %v2499_v0, %v2497_v62  ;;  %v2506_v3 = vadd.f32 %v2505_v1, %v2498_v63 }
 0x240   : > { %v2501_v4 = vrot.slane %v2500_v2, 2  ;;  %v2507_v5 = vrot.slane %v2506_v3, 2 }
 0x242   : > { %v2502_v6 = vadd.f32 %v2501_v4, %v2500_v2  ;;  %v2508_v7 = vadd.f32 %v2507_v5, %v2506_v3 }
 0x244   : > { %v2503_v8 = vrot.slane %v2502_v6, 1  ;;  %v2509_v9 = vrot.slane %v2508_v7, 1  ;;  %2483 = sbr.rel (!%p2481_p1) target bundleno = 563 (0x233), region = 72 }
 0x246   : > { %v2504_v10 = vadd.f32 %v2503_v8, %v2502_v6  ;;  %v2510_v11 = vadd.f32 %v2509_v9, %v2508_v7 }
 0x248   : > { %v2511_v12 = vadd.f32 %v3673_v57, %v2504_v10   ;;  %v2512_v13 = vadd.f32 %v3669_v56, %v2510_v11  }
 0x24a   : > { %v3668_v56 = vmov %v2512_v13   ;;  %v3672_v57 = vmov %v2511_v12   ;;  %v2513_v14 = vmul.f32 (%p2481_p1), 0.03125, %v2511_v12  ;;  %v2514_v15 = vmul.f32 (%p2481_p1), 0.03125, %v2512_v13 }
 0x24c   :  { %v2515_v17 = vadd.f32 1e-05, %v2513_v14  ;;  %v2516_v18 = vadd.f32 1e-05, %v2514_v15 }
 0x24e   :  { %3623 = vrsqrt.f32 %v2515_v17 }
 0x24f   :  { %3625 = vrsqrt.f32 %v2516_v18 }
 0x258   :  { %v3624_v27 = vpop.eup %3623 }
 0x259   :  { %v3626_v29 = vpop.eup %3625  ;;  %v2531_v30 = vmul.f32 %v3624_v27, %v2524_v25 }
 0x25a   :  { %v2532_v31 = vmul.f32 %v3626_v29, %v2528_v26 }
 0x25b   :  { %v2534_v32 = vmul.f32 %v2531_v30, %v2477_v54 }
 0x25c   :  { %v2535_v33 = vmul.f32 %v2532_v31, %v2478_v55 }
 0x25e   :  { %v2538_v35 = vcombine.low %v2534_v32, %v2535_v33 }
 0x260   :  { %v2545_v36 = vrot.slane %v2538_v35, %v2544_v34 }
 0x262   :  { %v2552_v38 = vrot.slane %v2545_v36, %v2544_v34 }
 0x264   :  { %v2554_v39 = vsub.f32 %v2533_v37, %v2552_v38 }
 0x265 LB: > { %s2974_s25 = sshll.u32 %s3681_s2, 3  ;;  %v2572_v40 = vrot.slane %v2531_v30, %v2523_v20  ;;  %v2576_v41 = vrot.slane %v2532_v31, %v2523_v20  ;;  %s2560_s2 = sadd.s32 1, %s3681_s2   ;;  %s3681_s2 = sphi %s3679_s2, %s2560_s2  }
 0x266   : > { %s2562_s26 = sshra.s32 %s2974_s25, 3  ;;  %v2583_v42 = vrot.slane %v2554_v39, %v2523_v20  ;;  %v2587_v43 = vrot.slane %v2554_v39, %v2527_v22  ;;  %s2603_s30 = scalar_lea.vmem %s4707_s4, %s2974_s25 }
 0x267   : > { %s2981_s27 = sshll.u32 %s2562_s26, 4  ;;  %p2557_p2 = scmp.ge.s32.totalorder %s2560_s2, 4  }
 0x268   : > { %s2566_s28 = scalar_lea.vmem [#allocation2], %s2981_s27 }
 0x269   : > { %v2567_v44 = vld [vmem:[%s2566_s28] sm:$0xff]  ;;  %v2568_v45 = vld [vmem:[%s2566_s28 + $0x8] sm:$0xff] }
 0x26a   : > { %v2577_v46 = vmul.f32 %v2572_v40, %v2567_v44  ;;  %v2578_v47 = vmul.f32 %v2576_v41, %v2568_v45 }
 0x26c   : > { %v2590_v48 = vadd.f32 %v2583_v42, %v2577_v46  ;;  %v2591_v49 = vadd.f32 %v2587_v43, %v2578_v47  ;;  %2559 = sbr.rel (!%p2557_p2) target bundleno = 613 (0x265), region = 83 }
 0x26e   : > { %v2592_v50 = vmax.f32 %v2590_v48, 0.0  ;;  %v2593_v51 = vmax.f32 %v2591_v49, 0.0 }
 0x270   : > { %v2982_v52 = vpack.c.bf16 %v2593_v51, %v2592_v50 }
 0x272   : > { %2604 = vst [vmem:[%s2603_s30] sm:$0xff] %v2982_v52 }

// kernel: generator_forward.7
= control target key start
LH: loop header
LB: loop body
LE: loop exit
PB: predicated region body
PF: predicated region fallthrough
CT: control target
= control target key end

     0   :  { %s8670_s1 = inlined_call_operand.vmem [shape: bf16[2304,512], index: 1, kind: input, shape index: {}]   ;;  %s8671_s2 = inlined_call_operand.vmem [shape: f32[1,128], index: 2, kind: input, shape index: {}]   ;;  %s8672_s3 = inlined_call_operand.vmem [shape: f32[1,128], index: 3, kind: input, shape index: {}]   ;;  %s8673_s4 = inlined_call_operand.vmem [shape: bf16[32,512], index: 4, kind: output, shape index: {}]   ;;  %s8674_s0 = inlined_call_operand.vmem [shape: bf16[32,2304], index: 0, kind: input, shape index: {}]  }
   0x1   :  { %v5736_v0 = vld [vmem:[%s8670_s1 + $0x4] ss:$16 sps:$4 sm:$0xff]   ;;  %v5738_v1 = vld [vmem:[%s8670_s1 + $0xc] ss:$16 sps:$4 sm:$0xff]   ;;  %v5740_v2 = vld [vmem:[%s8670_s1] ss:$16 sps:$4 sm:$0xff]  }
   0x2   :  { %3689 = vmatprep.subr.bf16.mxu0 %v5736_v0  ;;  %v5741_v3 = vld [vmem:[%s8670_s1 + $0x8] ss:$16 sps:$4 sm:$0xff]   ;;  %4166 = vmatprep.subr.bf16.mxu1 %v5738_v1  ;;  %v5742_v4 = vld [vmem:[%s8670_s1 + $0x24] ss:$16 sps:$4 sm:$0xff]   ;;  %v5744_v5 = vld [vmem:[%s8670_s1 + $0x2c] ss:$16 sps:$4 sm:$0xff]  }
   0x3   :  { %3690 = vmatpush1.bf16.msra.mxu0 %v5740_v2  ;;  %4167 = vmatpush1.bf16.msra.mxu1 %v5741_v3  ;;  %v5746_v6 = vld [vmem:[%s8670_s1 + $0x20] ss:$16 sps:$4 sm:$0xff]   ;;  %v5747_v7 = vld [vmem:[%s8670_s1 + $0x28] ss:$16 sps:$4 sm:$0xff]   ;;  %v5748_v8 = vld [vmem:[%s8670_s1 + $0x44] ss:$16 sps:$4 sm:$0xff]  }
   0x4   :  { %3691 = vmatprep.subr.bf16.mxu0 %v5742_v4  ;;  %4168 = vmatprep.subr.bf16.mxu1 %v5744_v5  ;;  %v5750_v9 = vld [vmem:[%s8670_s1 + $0x4c] ss:$16 sps:$4 sm:$0xff]   ;;  %v5752_v10 = vld [vmem:[%s8670_s1 + $0x40] ss:$16 sps:$4 sm:$0xff]   ;;  %v5753_v11 = vld [vmem:[%s8670_s1 + $0x48] ss:$16 sps:$4 sm:$0xff]  }
   0x5   :  { %v5754_v12 = vld [vmem:[%s8670_s1 + $0x64] ss:$16 sps:$4 sm:$0xff]   ;;  %v5756_v13 = vld [vmem:[%s8670_s1 + $0x6c] ss:$16 sps:$4 sm:$0xff]   ;;  %v5758_v14 = vld [vmem:[%s8670_s1 + $0x60] ss:$16 sps:$4 sm:$0xff]  }
   0x6   :  { %v5759_v15 = vld [vmem:[%s8670_s1 + $0x68] ss:$16 sps:$4 sm:$0xff]   ;;  %v5760_v16 = vld [vmem:[%s8670_s1 + $0x84] ss:$16 sps:$4 sm:$0xff]   ;;  %v5762_v17 = vld [vmem:[%s8670_s1 + $0x8c] ss:$16 sps:$4 sm:$0xff]  }
   0x7   :  { %3692 = vmatpush1.bf16.msra.mxu0 %v5746_v6  ;;  %4169 = vmatpush1.bf16.msra.mxu1 %v5747_v7  ;;  %v5764_v18 = vld [vmem:[%s8670_s1 + $0x80] ss:$16 sps:$4 sm:$0xff]   ;;  %v5765_v19 = vld [vmem:[%s8670_s1 + $0x88] ss:$16 sps:$4 sm:$0xff]   ;;  %v5766_v20 = vld [vmem:[%s8670_s1 + $0xa4] ss:$16 sps:$4 sm:$0xff]  }
   0x8   :  { %3693 = vmatprep.subr.bf16.mxu0 %v5748_v8  ;;  %4170 = vmatprep.subr.bf16.mxu1 %v5750_v9  ;;  %v5768_v21 = vld [vmem:[%s8670_s1 + $0xac] ss:$16 sps:$4 sm:$0xff]   ;;  %v5770_v22 = vld [vmem:[%s8670_s1 + $0xa0] ss:$16 sps:$4 sm:$0xff]   ;;  %v5771_v23 = vld [vmem:[%s8670_s1 + $0xa8] ss:$16 sps:$4 sm:$0xff]  }
   0x9   :  { %v5772_v24 = vld [vmem:[%s8670_s1 + $0xc4] ss:$16 sps:$4 sm:$0xff]   ;;  %v5774_v25 = vld [vmem:[%s8670_s1 + $0xcc] ss:$16 sps:$4 sm:$0xff]   ;;  %v5776_v26 = vld [vmem:[%s8670_s1 + $0xc0] ss:$16 sps:$4 sm:$0xff]  }
   0xa   :  { %v5777_v27 = vld [vmem:[%s8670_s1 + $0xc8] ss:$16 sps:$4 sm:$0xff]   ;;  %v5778_v28 = vld [vmem:[%s8670_s1 + $0xe4] ss:$16 sps:$4 sm:$0xff]   ;;  %v5780_v29 = vld [vmem:[%s8670_s1 + $0xec] ss:$16 sps:$4 sm:$0xff]  }
   0xb   :  { %3694 = vmatpush1.bf16.msra.mxu0 %v5752_v10  ;;  %4171 = vmatpush1.bf16.msra.mxu1 %v5753_v11  ;;  %v5782_v30 = vld [vmem:[%s8670_s1 + $0xe0] ss:$16 sps:$4 sm:$0xff]   ;;  %v5783_v31 = vld [vmem:[%s8670_s1 + $0xe8] ss:$16 sps:$4 sm:$0xff]   ;;  %v5784_v32 = vld [vmem:[%s8670_s1 + $0x104] ss:$16 sps:$4 sm:$0xff]  }
   0xc   :  { %3695 = vmatprep.subr.bf16.mxu0 %v5754_v12  ;;  %4172 = vmatprep.subr.bf16.mxu1 %v5756_v13  ;;  %v5786_v33 = vld [vmem:[%s8670_s1 + $0x10c] ss:$16 sps:$4 sm:$0xff]   ;;  %v5788_v34 = vld [vmem:[%s8670_s1 + $0x100] ss:$16 sps:$4 sm:$0xff]   ;;  %v5789_v35 = vld [vmem:[%s8670_s1 + $0x108] ss:$16 sps:$4 sm:$0xff]  }
   0xd   :  { %v5790_v36 = vld [vmem:[%s8670_s1 + $0x124] ss:$16 sps:$4 sm:$0xff]   ;;  %v5792_v37 = vld [vmem:[%s8670_s1 + $0x12c] ss:$16 sps:$4 sm:$0xff]   ;;  %v5794_v38 = vld [vmem:[%s8670_s1 + $0x120] ss:$16 sps:$4 sm:$0xff]  }
   0xe   :  { %v5795_v39 = vld [vmem:[%s8670_s1 + $0x128] ss:$16 sps:$4 sm:$0xff]   ;;  %v5796_v40 = vld [vmem:[%s8670_s1 + $0x144] ss:$16 sps:$4 sm:$0xff]   ;;  %v5798_v41 = vld [vmem:[%s8670_s1 + $0x14c] ss:$16 sps:$4 sm:$0xff]  }
   0xf   :  { %3696 = vmatpush1.bf16.msra.mxu0 %v5758_v14  ;;  %4173 = vmatpush1.bf16.msra.mxu1 %v5759_v15  ;;  %v5800_v42 = vld [vmem:[%s8670_s1 + $0x140] ss:$16 sps:$4 sm:$0xff]   ;;  %v5801_v43 = vld [vmem:[%s8670_s1 + $0x148] ss:$16 sps:$4 sm:$0xff]   ;;  %v5802_v44 = vld [vmem:[%s8670_s1 + $0x164] ss:$16 sps:$4 sm:$0xff]  }
  0x10   :  { %3697 = vmatprep.subr.bf16.mxu0 %v5760_v16  ;;  %4174 = vmatprep.subr.bf16.mxu1 %v5762_v17  ;;  %v5804_v45 = vld [vmem:[%s8670_s1 + $0x16c] ss:$16 sps:$4 sm:$0xff]   ;;  %v5806_v46 = vld [vmem:[%s8670_s1 + $0x160] ss:$16 sps:$4 sm:$0xff]   ;;  %v5807_v47 = vld [vmem:[%s8670_s1 + $0x168] ss:$16 sps:$4 sm:$0xff]  }
  0x11   :  { %v5834_v48 = vld [vmem:[%s8674_s0 + $0x4] ss:$72 sps:$4 sm:$0xff]   ;;  %v5812_v51 = vld [vmem:[%s8670_s1 + $0x180] ss:$16 sps:$4 sm:$0xff]   ;;  %v5813_v52 = vld [vmem:[%s8670_s1 + $0x188] ss:$16 sps:$4 sm:$0xff]  }
  0x12   :  { %v5808_v49 = vld [vmem:[%s8670_s1 + $0x184] ss:$16 sps:$4 sm:$0xff]   ;;  %v5810_v50 = vld [vmem:[%s8670_s1 + $0x18c] ss:$16 sps:$4 sm:$0xff]   ;;  %3721 = vmatprep.mubr.bf16.mxu0 %v5834_v48  ;;  %4198 = vmatprep.mubr.bf16.mxu1 %v5834_v48  ;;  %v5818_v55 = vld [vmem:[%s8670_s1 + $0x1a0] ss:$16 sps:$4 sm:$0xff]  }
  0x13   :  { %3698 = vmatpush1.bf16.msra.mxu0 %v5764_v18  ;;  %4175 = vmatpush1.bf16.msra.mxu1 %v5765_v19  ;;  %v5814_v53 = vld [vmem:[%s8670_s1 + $0x1a4] ss:$16 sps:$4 sm:$0xff]   ;;  %v5816_v54 = vld [vmem:[%s8670_s1 + $0x1ac] ss:$16 sps:$4 sm:$0xff]   ;;  %v5819_v56 = vld [vmem:[%s8670_s1 + $0x1a8] ss:$16 sps:$4 sm:$0xff]  }
  0x14   :  { %3699 = vmatprep.subr.bf16.mxu0 %v5766_v20  ;;  %4176 = vmatprep.subr.bf16.mxu1 %v5768_v21  ;;  %v5820_v57 = vld [vmem:[%s8670_s1 + $0x1c4] ss:$16 sps:$4 sm:$0xff]   ;;  %v5822_v58 = vld [vmem:[%s8670_s1 + $0x1cc] ss:$16 sps:$4 sm:$0xff]   ;;  %v5824_v59 = vld [vmem:[%s8670_s1 + $0x1c0] ss:$16 sps:$4 sm:$0xff]  }
  0x15   :  { %v5825_v60 = vld [vmem:[%s8670_s1 + $0x1c8] ss:$16 sps:$4 sm:$0xff]   ;;  %v5826_v61 = vld [vmem:[%s8670_s1 + $0x1e4] ss:$16 sps:$4 sm:$0xff]   ;;  %v5828_v62 = vld [vmem:[%s8670_s1 + $0x1ec] ss:$16 sps:$4 sm:$0xff]  }
  0x16   :  { %v5830_v63 = vld [vmem:[%s8670_s1 + $0x1e0] ss:$16 sps:$4 sm:$0xff]   ;;  %v5831_v0 = vld [vmem:[%s8670_s1 + $0x1e8] ss:$16 sps:$4 sm:$0xff]   ;;  %v5837_v1 = vld [vmem:[%s8670_s1 + $0x204] ss:$16 sps:$4 sm:$0xff]  }
  0x17   :  { %3700 = vmatpush1.bf16.msra.mxu0 %v5770_v22  ;;  %4177 = vmatpush1.bf16.msra.mxu1 %v5771_v23  ;;  %v5840_v2 = vld [vmem:[%s8670_s1 + $0x20c] ss:$16 sps:$4 sm:$0xff]   ;;  %v5832_v3 = vld [vmem:[%s8674_s0] ss:$72 sps:$4 sm:$0xff]   ;;  %v5843_v6 = vld [vmem:[%s8670_s1 + $0x224] ss:$16 sps:$4 sm:$0xff]  }
  0x18   :  { %3701 = vmatprep.subr.bf16.mxu0 %v5772_v24  ;;  %4178 = vmatprep.subr.bf16.mxu1 %v5774_v25  ;;  %v5835_v4 = vld [vmem:[%s8670_s1 + $0x200] ss:$16 sps:$4 sm:$0xff]   ;;  %v5838_v5 = vld [vmem:[%s8670_s1 + $0x208] ss:$16 sps:$4 sm:$0xff]   ;;  %v5846_v7 = vld [vmem:[%s8670_s1 + $0x22c] ss:$16 sps:$4 sm:$0xff]  }
  0x19   :  { %v5841_v8 = vld [vmem:[%s8670_s1 + $0x220] ss:$16 sps:$4 sm:$0xff]   ;;  %v5844_v9 = vld [vmem:[%s8670_s1 + $0x228] ss:$16 sps:$4 sm:$0xff]   ;;  %v5849_v10 = vld [vmem:[%s8670_s1 + $0x244] ss:$16 sps:$4 sm:$0xff]  }
  0x1a   :  { %v5852_v11 = vld [vmem:[%s8670_s1 + $0x24c] ss:$16 sps:$4 sm:$0xff]   ;;  %v5847_v12 = vld [vmem:[%s8670_s1 + $0x240] ss:$16 sps:$4 sm:$0xff]   ;;  %v5850_v13 = vld [vmem:[%s8670_s1 + $0x248] ss:$16 sps:$4 sm:$0xff]  }
  0x1b   :  { %3702 = vmatpush1.bf16.msra.mxu0 %v5776_v26  ;;  %4179 = vmatpush1.bf16.msra.mxu1 %v5777_v27  ;;  %v5855_v14 = vld [vmem:[%s8670_s1 + $0x264] ss:$16 sps:$4 sm:$0xff]   ;;  %v5858_v15 = vld [vmem:[%s8670_s1 + $0x26c] ss:$16 sps:$4 sm:$0xff]   ;;  %v5853_v16 = vld [vmem:[%s8670_s1 + $0x260] ss:$16 sps:$4 sm:$0xff]  }
  0x1c   :  { %3703 = vmatprep.subr.bf16.mxu0 %v5778_v28  ;;  %4180 = vmatprep.subr.bf16.mxu1 %v5780_v29  ;;  %v5856_v17 = vld [vmem:[%s8670_s1 + $0x268] ss:$16 sps:$4 sm:$0xff]   ;;  %v5861_v18 = vld [vmem:[%s8670_s1 + $0x284] ss:$16 sps:$4 sm:$0xff]   ;;  %v5864_v19 = vld [vmem:[%s8670_s1 + $0x28c] ss:$16 sps:$4 sm:$0xff]  }
  0x1d   :  { %v5859_v20 = vld [vmem:[%s8670_s1 + $0x280] ss:$16 sps:$4 sm:$0xff]   ;;  %v5862_v21 = vld [vmem:[%s8670_s1 + $0x288] ss:$16 sps:$4 sm:$0xff]   ;;  %v5867_v22 = vld [vmem:[%s8670_s1 + $0x2a4] ss:$16 sps:$4 sm:$0xff]  }
  0x1e   :  { %v5870_v23 = vld [vmem:[%s8670_s1 + $0x2ac] ss:$16 sps:$4 sm:$0xff]   ;;  %v5865_v25 = vld [vmem:[%s8670_s1 + $0x2a0] ss:$16 sps:$4 sm:$0xff]   ;;  %v5868_v26 = vld [vmem:[%s8670_s1 + $0x2a8] ss:$16 sps:$4 sm:$0xff]  }
  0x1f   :  { %3704 = vmatpush1.bf16.msra.mxu0 %v5782_v30  ;;  %4181 = vmatpush1.bf16.msra.mxu1 %v5783_v31  ;;  %v5919_v24 = vld [vmem:[%s8674_s0 + $0x94] ss:$72 sps:$4 sm:$0xff]   ;;  %v5927_v29 = vld [vmem:[%s8674_s0 + $0x90] ss:$72 sps:$4 sm:$0xff]  }
  0x20   :  { %3705 = vmatprep.subr.bf16.mxu0 %v5784_v32  ;;  %4182 = vmatprep.subr.bf16.mxu1 %v5786_v33  ;;  %v5873_v27 = vld [vmem:[%s8670_s1 + $0x2c4] ss:$16 sps:$4 sm:$0xff]   ;;  %v5876_v28 = vld [vmem:[%s8670_s1 + $0x2cc] ss:$16 sps:$4 sm:$0xff]   ;;  %v5871_v30 = vld [vmem:[%s8670_s1 + $0x2c0] ss:$16 sps:$4 sm:$0xff]  }
  0x21   :  { %v5874_v31 = vld [vmem:[%s8670_s1 + $0x2c8] ss:$16 sps:$4 sm:$0xff]   ;;  %v5879_v32 = vld [vmem:[%s8670_s1 + $0x2e4] ss:$16 sps:$4 sm:$0xff]   ;;  %v5882_v33 = vld [vmem:[%s8670_s1 + $0x2ec] ss:$16 sps:$4 sm:$0xff]  }
  0x22   :  { %v5898_v48 = vld [vmem:[%s8670_s1 + $0x348] ss:$16 sps:$4 sm:$0xff]  }
  0x23   :  { %3706 = vmatpush1.bf16.msra.mxu0 %v5788_v34  ;;  %4183 = vmatpush1.bf16.msra.mxu1 %v5789_v35  ;;  %v5936_v34 = vld [vmem:[%s8674_s0 + $0xc] ss:$72 sps:$4 sm:$0xff]   ;;  %v5877_v35 = vld [vmem:[%s8670_s1 + $0x2e0] ss:$16 sps:$4 sm:$0xff]  }
  0x24   :  { %3707 = vmatprep.subr.bf16.mxu0 %v5790_v36  ;;  %4184 = vmatprep.subr.bf16.mxu1 %v5792_v37  ;;  %v5880_v36 = vld [vmem:[%s8670_s1 + $0x2e8] ss:$16 sps:$4 sm:$0xff]   ;;  %v5885_v37 = vld [vmem:[%s8670_s1 + $0x304] ss:$16 sps:$4 sm:$0xff]  }
  0x27   :  { %3708 = vmatpush1.bf16.msra.mxu0 %v5794_v38  ;;  %4185 = vmatpush1.bf16.msra.mxu1 %v5795_v39  ;;  %v5888_v38 = vld [vmem:[%s8670_s1 + $0x30c] ss:$16 sps:$4 sm:$0xff]   ;;  %v5883_v39 = vld [vmem:[%s8670_s1 + $0x300] ss:$16 sps:$4 sm:$0xff]  }
  0x28   :  { %3709 = vmatprep.subr.bf16.mxu0 %v5796_v40  ;;  %4186 = vmatprep.subr.bf16.mxu1 %v5798_v41  ;;  %v5886_v40 = vld [vmem:[%s8670_s1 + $0x308] ss:$16 sps:$4 sm:$0xff]   ;;  %v5891_v41 = vld [vmem:[%s8670_s1 + $0x324] ss:$16 sps:$4 sm:$0xff]  }
  0x2b   :  { %3710 = vmatpush1.bf16.msra.mxu0 %v5800_v42  ;;  %4187 = vmatpush1.bf16.msra.mxu1 %v5801_v43  ;;  %v5894_v42 = vld [vmem:[%s8670_s1 + $0x32c] ss:$16 sps:$4 sm:$0xff]   ;;  %v5889_v43 = vld [vmem:[%s8670_s1 + $0x320] ss:$16 sps:$4 sm:$0xff]  }
  0x2c   :  { %3711 = vmatprep.subr.bf16.mxu0 %v5802_v44  ;;  %4188 = vmatprep.subr.bf16.mxu1 %v5804_v45  ;;  %v5892_v44 = vld [vmem:[%s8670_s1 + $0x328] ss:$16 sps:$4 sm:$0xff]   ;;  %v5897_v45 = vld [vmem:[%s8670_s1 + $0x344] ss:$16 sps:$4 sm:$0xff]  }
  0x2f   :  { %3712 = vmatpush1.bf16.msra.mxu0 %v5806_v46  ;;  %4189 = vmatpush1.bf16.msra.mxu1 %v5807_v47  ;;  %v5900_v46 = vld [vmem:[%s8670_s1 + $0x34c] ss:$16 sps:$4 sm:$0xff]   ;;  %v5895_v47 = vld [vmem:[%s8670_s1 + $0x340] ss:$16 sps:$4 sm:$0xff]  }
  0x30   :  { %3713 = vmatprep.subr.bf16.mxu0 %v5808_v49  ;;  %4190 = vmatprep.subr.bf16.mxu1 %v5810_v50  ;;  %v5903_v49 = vld [vmem:[%s8670_s1 + $0x364] ss:$16 sps:$4 sm:$0xff]   ;;  %v5906_v50 = vld [vmem:[%s8670_s1 + $0x36c] ss:$16 sps:$4 sm:$0xff]  }
  0x33   :  { %3714 = vmatpush1.bf16.msra.mxu0 %v5812_v51  ;;  %4191 = vmatpush1.bf16.msra.mxu1 %v5813_v52  ;;  %v5901_v51 = vld [vmem:[%s8670_s1 + $0x360] ss:$16 sps:$4 sm:$0xff]   ;;  %v5904_v52 = vld [vmem:[%s8670_s1 + $0x368] ss:$16 sps:$4 sm:$0xff]  }
  0x34   :  { %3715 = vmatprep.subr.bf16.mxu0 %v5814_v53  ;;  %4192 = vmatprep.subr.bf16.mxu1 %v5816_v54  ;;  %v5909_v53 = vld [vmem:[%s8670_s1 + $0x384] ss:$16 sps:$4 sm:$0xff]   ;;  %v5912_v54 = vld [vmem:[%s8670_s1 + $0x38c] ss:$16 sps:$4 sm:$0xff]  }
  0x37   :  { %3716 = vmatpush1.bf16.msra.mxu0 %v5818_v55  ;;  %4193 = vmatpush1.bf16.msra.mxu1 %v5819_v56  ;;  %v5907_v55 = vld [vmem:[%s8670_s1 + $0x380] ss:$16 sps:$4 sm:$0xff]   ;;  %v5910_v56 = vld [vmem:[%s8670_s1 + $0x388] ss:$16 sps:$4 sm:$0xff]  }
  0x38   :  { %3717 = vmatprep.subr.bf16.mxu0 %v5820_v57  ;;  %4194 = vmatprep.subr.bf16.mxu1 %v5822_v58  ;;  %v5915_v57 = vld [vmem:[%s8670_s1 + $0x3a4] ss:$16 sps:$4 sm:$0xff]   ;;  %v5918_v58 = vld [vmem:[%s8670_s1 + $0x3ac] ss:$16 sps:$4 sm:$0xff]  }
  0x3b   :  { %3718 = vmatpush1.bf16.msra.mxu0 %v5824_v59  ;;  %4195 = vmatpush1.bf16.msra.mxu1 %v5825_v60  ;;  %v5913_v59 = vld [vmem:[%s8670_s1 + $0x3a0] ss:$16 sps:$4 sm:$0xff]   ;;  %v5916_v60 = vld [vmem:[%s8670_s1 + $0x3a8] ss:$16 sps:$4 sm:$0xff]  }
  0x3c   :  { %3719 = vmatprep.subr.bf16.mxu0 %v5826_v61  ;;  %4196 = vmatprep.subr.bf16.mxu1 %v5828_v62  ;;  %v5923_v61 = vld [vmem:[%s8670_s1 + $0x3c4] ss:$16 sps:$4 sm:$0xff]   ;;  %v5926_v62 = vld [vmem:[%s8670_s1 + $0x3cc] ss:$16 sps:$4 sm:$0xff]  }
  0x3f   :  { %3720 = vmatpush1.bf16.msra.mxu0 %v5830_v63  ;;  %4197 = vmatpush1.bf16.msra.mxu1 %v5831_v0  ;;  %v5921_v63 = vld [vmem:[%s8670_s1 + $0x3c0] ss:$16 sps:$4 sm:$0xff]   ;;  %v5924_v0 = vld [vmem:[%s8670_s1 + $0x3c8] ss:$16 sps:$4 sm:$0xff]  }
  0x40   :  { %3742 = vmatprep.subr.bf16.mxu0 %v5837_v1  ;;  %4219 = vmatprep.subr.bf16.mxu1 %v5840_v2  ;;  %v5930_v1 = vld [vmem:[%s8670_s1 + $0x3e4] ss:$16 sps:$4 sm:$0xff]   ;;  %v5933_v2 = vld [vmem:[%s8670_s1 + $0x3ec] ss:$16 sps:$4 sm:$0xff]  }
  0x42   :  { %3722 = vmatmul.mubr.bf16.vlgmr.msra.gmra.mrb[0].mxu0 %v5832_v3  ;;  %4199 = vmatmul.mubr.bf16.vlgmr.msra.gmra.mrb[0].mxu1 %v5832_v3  ;;  %v5928_v3 = vld [vmem:[%s8670_s1 + $0x3e0] ss:$16 sps:$4 sm:$0xff]  }
  0x43   :  { %3743 = vmatpush1.bf16.msra.mxu0 %v5835_v4  ;;  %4220 = vmatpush1.bf16.msra.mxu1 %v5838_v5  ;;  %v5931_v4 = vld [vmem:[%s8670_s1 + $0x3e8] ss:$16 sps:$4 sm:$0xff]   ;;  %v5939_v5 = vld [vmem:[%s8670_s1 + $0x404] ss:$16 sps:$4 sm:$0xff]  }
  0x44   :  { %3744 = vmatprep.subr.bf16.mxu0 %v5843_v6  ;;  %4221 = vmatprep.subr.bf16.mxu1 %v5846_v7  ;;  %v5942_v6 = vld [vmem:[%s8670_s1 + $0x40c] ss:$16 sps:$4 sm:$0xff]   ;;  %v5934_v7 = vld [vmem:[%s8674_s0 + $0x8] ss:$72 sps:$4 sm:$0xff]  }
  0x45   :  { %3731 = vmatprep.mubr.bf16.mxu0 %v5919_v24  ;;  %4208 = vmatprep.mubr.bf16.mxu1 %v5919_v24  ;;  %v5958_v24 = vld [vmem:[%s8670_s1 + $0x468] ss:$16 sps:$4 sm:$0xff]  }
  0x47   :  { %3745 = vmatpush1.bf16.msra.mxu0 %v5841_v8  ;;  %4222 = vmatpush1.bf16.msra.mxu1 %v5844_v9  ;;  %v5937_v8 = vld [vmem:[%s8670_s1 + $0x400] ss:$16 sps:$4 sm:$0xff]   ;;  %v5940_v9 = vld [vmem:[%s8670_s1 + $0x408] ss:$16 sps:$4 sm:$0xff]  }
  0x48   :  { %3746 = vmatprep.subr.bf16.mxu0 %v5849_v10  ;;  %4223 = vmatprep.subr.bf16.mxu1 %v5852_v11  ;;  %v5945_v10 = vld [vmem:[%s8670_s1 + $0x424] ss:$16 sps:$4 sm:$0xff]   ;;  %v5948_v11 = vld [vmem:[%s8670_s1 + $0x42c] ss:$16 sps:$4 sm:$0xff]  }
  0x4a   :  { %3732 = vmatmul.mubr.bf16.gmra.mrb[4].mxu0 %v5927_v29  ;;  %4209 = vmatmul.mubr.bf16.gmra.mrb[4].mxu1 %v5927_v29  ;;  %v5969_v29 = vld [vmem:[%s8670_s1 + $0x4a4] ss:$16 sps:$4 sm:$0xff]  }
  0x4b   :  { %3747 = vmatpush1.bf16.msra.mxu0 %v5847_v12  ;;  %4224 = vmatpush1.bf16.msra.mxu1 %v5850_v13  ;;  %v6021_v12 = vld [vmem:[%s8674_s0 + $0x9c] ss:$72 sps:$4 sm:$0xff]   ;;  %v5943_v13 = vld [vmem:[%s8670_s1 + $0x420] ss:$16 sps:$4 sm:$0xff]  }
  0x4c   :  { %3748 = vmatprep.subr.bf16.mxu0 %v5855_v14  ;;  %4225 = vmatprep.subr.bf16.mxu1 %v5858_v15  ;;  %v5946_v14 = vld [vmem:[%s8670_s1 + $0x428] ss:$16 sps:$4 sm:$0xff]   ;;  %v5951_v15 = vld [vmem:[%s8670_s1 + $0x444] ss:$16 sps:$4 sm:$0xff]  }
  0x4d   :  { %3774 = vmatprep.mubr.bf16.mxu0 %v5936_v34  ;;  %4251 = vmatprep.mubr.bf16.mxu1 %v5936_v34  ;;  %v5978_v34 = vld [vmem:[%s8670_s1 + $0x4cc] ss:$16 sps:$4 sm:$0xff]  }
  0x4f   :  { %3749 = vmatpush1.bf16.msra.mxu0 %v5853_v16  ;;  %4226 = vmatpush1.bf16.msra.mxu1 %v5856_v17  ;;  %v5954_v16 = vld [vmem:[%s8670_s1 + $0x44c] ss:$16 sps:$4 sm:$0xff]   ;;  %v5949_v17 = vld [vmem:[%s8670_s1 + $0x440] ss:$16 sps:$4 sm:$0xff]  }
  0x50   :  { %3750 = vmatprep.subr.bf16.mxu0 %v5861_v18  ;;  %4227 = vmatprep.subr.bf16.mxu1 %v5864_v19  ;;  %v5952_v18 = vld [vmem:[%s8670_s1 + $0x448] ss:$16 sps:$4 sm:$0xff]  }
  0x51   :  { %v6029_v19 = vld [vmem:[%s8674_s0 + $0x98] ss:$72 sps:$4 sm:$0xff]  }
  0x53   :  { %3751 = vmatpush1.bf16.msra.mxu0 %v5859_v20  ;;  %4228 = vmatpush1.bf16.msra.mxu1 %v5862_v21  ;;  %v5957_v20 = vld [vmem:[%s8670_s1 + $0x464] ss:$16 sps:$4 sm:$0xff]   ;;  %v5960_v21 = vld [vmem:[%s8670_s1 + $0x46c] ss:$16 sps:$4 sm:$0xff]  }
  0x54   :  { %3752 = vmatprep.subr.bf16.mxu0 %v5867_v22  ;;  %4229 = vmatprep.subr.bf16.mxu1 %v5870_v23  ;;  %v6038_v22 = vld [vmem:[%s8674_s0 + $0x14] ss:$72 sps:$4 sm:$0xff]   ;;  %v5955_v23 = vld [vmem:[%s8670_s1 + $0x460] ss:$16 sps:$4 sm:$0xff]  }
  0x57   :  { %3753 = vmatpush1.bf16.msra.mxu0 %v5865_v25  ;;  %4230 = vmatpush1.bf16.msra.mxu1 %v5868_v26  ;;  %v5963_v25 = vld [vmem:[%s8670_s1 + $0x484] ss:$16 sps:$4 sm:$0xff]   ;;  %v5966_v26 = vld [vmem:[%s8670_s1 + $0x48c] ss:$16 sps:$4 sm:$0xff]  }
  0x58   :  { %3754 = vmatprep.subr.bf16.mxu0 %v5873_v27  ;;  %4231 = vmatprep.subr.bf16.mxu1 %v5876_v28  ;;  %v5961_v27 = vld [vmem:[%s8670_s1 + $0x480] ss:$16 sps:$4 sm:$0xff]   ;;  %v5964_v28 = vld [vmem:[%s8670_s1 + $0x488] ss:$16 sps:$4 sm:$0xff]  }
  0x5b   :  { %3755 = vmatpush1.bf16.msra.mxu0 %v5871_v30  ;;  %4232 = vmatpush1.bf16.msra.mxu1 %v5874_v31  ;;  %v5972_v30 = vld [vmem:[%s8670_s1 + $0x4ac] ss:$16 sps:$4 sm:$0xff]   ;;  %v5967_v31 = vld [vmem:[%s8670_s1 + $0x4a0] ss:$16 sps:$4 sm:$0xff]  }
  0x5c   :  { %3756 = vmatprep.subr.bf16.mxu0 %v5879_v32  ;;  %4233 = vmatprep.subr.bf16.mxu1 %v5882_v33  ;;  %v5970_v32 = vld [vmem:[%s8670_s1 + $0x4a8] ss:$16 sps:$4 sm:$0xff]   ;;  %v5975_v33 = vld [vmem:[%s8670_s1 + $0x4c4] ss:$16 sps:$4 sm:$0xff]  }
  0x5f   :  { %3757 = vmatpush1.bf16.msra.mxu0 %v5877_v35  ;;  %4234 = vmatpush1.bf16.msra.mxu1 %v5880_v36  ;;  %v5973_v35 = vld [vmem:[%s8670_s1 + $0x4c0] ss:$16 sps:$4 sm:$0xff]   ;;  %v5976_v36 = vld [vmem:[%s8670_s1 + $0x4c8] ss:$16 sps:$4 sm:$0xff]  }
  0x60   :  { %3758 = vmatprep.subr.bf16.mxu0 %v5885_v37  ;;  %4235 = vmatprep.subr.bf16.mxu1 %v5888_v38  ;;  %v5981_v37 = vld [vmem:[%s8670_s1 + $0x4e4] ss:$16 sps:$4 sm:$0xff]   ;;  %v5984_v38 = vld [vmem:[%s8670_s1 + $0x4ec] ss:$16 sps:$4 sm:$0xff]  }
  0x63   :  { %3759 = vmatpush1.bf16.msra.mxu0 %v5883_v39  ;;  %4236 = vmatpush1.bf16.msra.mxu1 %v5886_v40  ;;  %v5979_v39 = vld [vmem:[%s8670_s1 + $0x4e0] ss:$16 sps:$4 sm:$0xff]   ;;  %v5982_v40 = vld [vmem:[%s8670_s1 + $0x4e8] ss:$16 sps:$4 sm:$0xff]  }
  0x64   :  { %3760 = vmatprep.subr.bf16.mxu0 %v5891_v41  ;;  %4237 = vmatprep.subr.bf16.mxu1 %v5894_v42  ;;  %v5987_v41 = vld [vmem:[%s8670_s1 + $0x504] ss:$16 sps:$4 sm:$0xff]   ;;  %v5990_v42 = vld [vmem:[%s8670_s1 + $0x50c] ss:$16 sps:$4 sm:$0xff]  }
  0x67   :  { %3761 = vmatpush1.bf16.msra.mxu0 %v5889_v43  ;;  %4238 = vmatpush1.bf16.msra.mxu1 %v5892_v44  ;;  %v5985_v43 = vld [vmem:[%s8670_s1 + $0x500] ss:$16 sps:$4 sm:$0xff]   ;;  %v5988_v44 = vld [vmem:[%s8670_s1 + $0x508] ss:$16 sps:$4 sm:$0xff]  }
  0x68   :  { %3762 = vmatprep.subr.bf16.mxu0 %v5897_v45  ;;  %4239 = vmatprep.subr.bf16.mxu1 %v5900_v46  ;;  %v5993_v45 = vld [vmem:[%s8670_s1 + $0x524] ss:$16 sps:$4 sm:$0xff]   ;;  %v5996_v46 = vld [vmem:[%s8670_s1 + $0x52c] ss:$16 sps:$4 sm:$0xff]  }
  0x6b   :  { %3763 = vmatpush1.bf16.msra.mxu0 %v5895_v47  ;;  %4240 = vmatpush1.bf16.msra.mxu1 %v5898_v48  ;;  %v5991_v47 = vld [vmem:[%s8670_s1 + $0x520] ss:$16 sps:$4 sm:$0xff]   ;;  %v5994_v48 = vld [vmem:[%s8670_s1 + $0x528] ss:$16 sps:$4 sm:$0xff]  }
  0x6c   :  { %3764 = vmatprep.subr.bf16.mxu0 %v5903_v49  ;;  %4241 = vmatprep.subr.bf16.mxu1 %v5906_v50  ;;  %v5999_v49 = vld [vmem:[%s8670_s1 + $0x544] ss:$16 sps:$4 sm:$0xff]   ;;  %v6002_v50 = vld [vmem:[%s8670_s1 + $0x54c] ss:$16 sps:$4 sm:$0xff]  }
  0x6f   :  { %3765 = vmatpush1.bf16.msra.mxu0 %v5901_v51  ;;  %4242 = vmatpush1.bf16.msra.mxu1 %v5904_v52  ;;  %v5997_v51 = vld [vmem:[%s8670_s1 + $0x540] ss:$16 sps:$4 sm:$0xff]   ;;  %v6000_v52 = vld [vmem:[%s8670_s1 + $0x548] ss:$16 sps:$4 sm:$0xff]  }
  0x70   :  { %3766 = vmatprep.subr.bf16.mxu0 %v5909_v53  ;;  %4243 = vmatprep.subr.bf16.mxu1 %v5912_v54  ;;  %v6005_v53 = vld [vmem:[%s8670_s1 + $0x564] ss:$16 sps:$4 sm:$0xff]   ;;  %v6008_v54 = vld [vmem:[%s8670_s1 + $0x56c] ss:$16 sps:$4 sm:$0xff]  }
  0x73   :  { %3767 = vmatpush1.bf16.msra.mxu0 %v5907_v55  ;;  %4244 = vmatpush1.bf16.msra.mxu1 %v5910_v56  ;;  %v6003_v55 = vld [vmem:[%s8670_s1 + $0x560] ss:$16 sps:$4 sm:$0xff]   ;;  %v6006_v56 = vld [vmem:[%s8670_s1 + $0x568] ss:$16 sps:$4 sm:$0xff]  }
  0x74   :  { %3768 = vmatprep.subr.bf16.mxu0 %v5915_v57  ;;  %4245 = vmatprep.subr.bf16.mxu1 %v5918_v58  ;;  %v6011_v57 = vld [vmem:[%s8670_s1 + $0x584] ss:$16 sps:$4 sm:$0xff]   ;;  %v6014_v58 = vld [vmem:[%s8670_s1 + $0x58c] ss:$16 sps:$4 sm:$0xff]  }
  0x77   :  { %3769 = vmatpush1.bf16.msra.mxu0 %v5913_v59  ;;  %4246 = vmatpush1.bf16.msra.mxu1 %v5916_v60  ;;  %v6009_v59 = vld [vmem:[%s8670_s1 + $0x580] ss:$16 sps:$4 sm:$0xff]   ;;  %v6012_v60 = vld [vmem:[%s8670_s1 + $0x588] ss:$16 sps:$4 sm:$0xff]  }
  0x78   :  { %3770 = vmatprep.subr.bf16.mxu0 %v5923_v61  ;;  %4247 = vmatprep.subr.bf16.mxu1 %v5926_v62  ;;  %v6017_v61 = vld [vmem:[%s8670_s1 + $0x5a4] ss:$16 sps:$4 sm:$0xff]   ;;  %v6020_v62 = vld [vmem:[%s8670_s1 + $0x5ac] ss:$16 sps:$4 sm:$0xff]  }
  0x7b   :  { %3771 = vmatpush1.bf16.msra.mxu0 %v5921_v63  ;;  %4248 = vmatpush1.bf16.msra.mxu1 %v5924_v0  ;;  %v6015_v63 = vld [vmem:[%s8670_s1 + $0x5a0] ss:$16 sps:$4 sm:$0xff]   ;;  %v6018_v0 = vld [vmem:[%s8670_s1 + $0x5a8] ss:$16 sps:$4 sm:$0xff]  }
  0x7c   :  { %3772 = vmatprep.subr.bf16.mxu0 %v5930_v1  ;;  %4249 = vmatprep.subr.bf16.mxu1 %v5933_v2  ;;  %v6025_v1 = vld [vmem:[%s8670_s1 + $0x5c4] ss:$16 sps:$4 sm:$0xff]   ;;  %v6028_v2 = vld [vmem:[%s8670_s1 + $0x5cc] ss:$16 sps:$4 sm:$0xff]  }
  0x7f   :  { %3773 = vmatpush1.bf16.msra.mxu0 %v5928_v3  ;;  %4250 = vmatpush1.bf16.msra.mxu1 %v5931_v4  ;;  %v6023_v3 = vld [vmem:[%s8670_s1 + $0x5c0] ss:$16 sps:$4 sm:$0xff]   ;;  %v6026_v4 = vld [vmem:[%s8670_s1 + $0x5c8] ss:$16 sps:$4 sm:$0xff]  }
  0x80   :  { %3795 = vmatprep.subr.bf16.mxu0 %v5939_v5  ;;  %4272 = vmatprep.subr.bf16.mxu1 %v5942_v6  ;;  %v6032_v5 = vld [vmem:[%s8670_s1 + $0x5e4] ss:$16 sps:$4 sm:$0xff]   ;;  %v6035_v6 = vld [vmem:[%s8670_s1 + $0x5ec] ss:$16 sps:$4 sm:$0xff]  }
  0x82   :  { %3775 = vmatmul.mubr.bf16.vlgmr.msra.gmra.mrb[0].mxu0 %v5934_v7  ;;  %4252 = vmatmul.mubr.bf16.vlgmr.msra.gmra.mrb[0].mxu1 %v5934_v7  ;;  %v6030_v7 = vld [vmem:[%s8670_s1 + $0x5e0] ss:$16 sps:$4 sm:$0xff]  }
  0x83   :  { %3796 = vmatpush1.bf16.msra.mxu0 %v5937_v8  ;;  %4273 = vmatpush1.bf16.msra.mxu1 %v5940_v9  ;;  %v6033_v8 = vld [vmem:[%s8670_s1 + $0x5e8] ss:$16 sps:$4 sm:$0xff]   ;;  %v6041_v9 = vld [vmem:[%s8670_s1 + $0x604] ss:$16 sps:$4 sm:$0xff]  }
  0x84   :  { %3797 = vmatprep.subr.bf16.mxu0 %v5945_v10  ;;  %4274 = vmatprep.subr.bf16.mxu1 %v5948_v11  ;;  %v6044_v10 = vld [vmem:[%s8670_s1 + $0x60c] ss:$16 sps:$4 sm:$0xff]   ;;  %v6036_v11 = vld [vmem:[%s8674_s0 + $0x10] ss:$72 sps:$4 sm:$0xff]  }
  0x85   :  { %3784 = vmatprep.mubr.bf16.mxu0 %v6021_v12  ;;  %4261 = vmatprep.mubr.bf16.mxu1 %v6021_v12  ;;  %v6039_v12 = vld [vmem:[%s8670_s1 + $0x600] ss:$16 sps:$4 sm:$0xff]  }
  0x87   :  { %3798 = vmatpush1.bf16.msra.mxu0 %v5943_v13  ;;  %4275 = vmatpush1.bf16.msra.mxu1 %v5946_v14  ;;  %v6042_v13 = vld [vmem:[%s8670_s1 + $0x608] ss:$16 sps:$4 sm:$0xff]   ;;  %v6047_v14 = vld [vmem:[%s8670_s1 + $0x624] ss:$16 sps:$4 sm:$0xff]  }
  0x88   :  { %3799 = vmatprep.subr.bf16.mxu0 %v5951_v15  ;;  %4276 = vmatprep.subr.bf16.mxu1 %v5954_v16  ;;  %v6050_v15 = vld [vmem:[%s8670_s1 + $0x62c] ss:$16 sps:$4 sm:$0xff]  }
  0x89   :  { %v6123_v16 = vld [vmem:[%s8674_s0 + $0xa4] ss:$72 sps:$4 sm:$0xff]  }
  0x8a   :  { %3785 = vmatmul.mubr.bf16.gmra.mrb[4].mxu0 %v6029_v19  ;;  %4262 = vmatmul.mubr.bf16.gmra.mrb[4].mxu1 %v6029_v19  ;;  %v6053_v19 = vld [vmem:[%s8670_s1 + $0x644] ss:$16 sps:$4 sm:$0xff]  }
  0x8b   :  { %3800 = vmatpush1.bf16.msra.mxu0 %v5949_v17  ;;  %4277 = vmatpush1.bf16.msra.mxu1 %v5952_v18  ;;  %v6045_v17 = vld [vmem:[%s8670_s1 + $0x620] ss:$16 sps:$4 sm:$0xff]   ;;  %v6048_v18 = vld [vmem:[%s8670_s1 + $0x628] ss:$16 sps:$4 sm:$0xff]  }
  0x8c   :  { %3801 = vmatprep.subr.bf16.mxu0 %v5957_v20  ;;  %4278 = vmatprep.subr.bf16.mxu1 %v5960_v21  ;;  %v6056_v20 = vld [vmem:[%s8670_s1 + $0x64c] ss:$16 sps:$4 sm:$0xff]   ;;  %v6051_v21 = vld [vmem:[%s8670_s1 + $0x640] ss:$16 sps:$4 sm:$0xff]  }
  0x8d   :  { %3827 = vmatprep.mubr.bf16.mxu0 %v6038_v22  ;;  %4304 = vmatprep.mubr.bf16.mxu1 %v6038_v22  ;;  %v6054_v22 = vld [vmem:[%s8670_s1 + $0x648] ss:$16 sps:$4 sm:$0xff]  }
  0x8f   :  { %3802 = vmatpush1.bf16.msra.mxu0 %v5955_v23  ;;  %4279 = vmatpush1.bf16.msra.mxu1 %v5958_v24  ;;  %v6131_v23 = vld [vmem:[%s8674_s0 + $0xa0] ss:$72 sps:$4 sm:$0xff]   ;;  %v6059_v24 = vld [vmem:[%s8670_s1 + $0x664] ss:$16 sps:$4 sm:$0xff]  }
  0x90   :  { %3803 = vmatprep.subr.bf16.mxu0 %v5963_v25  ;;  %4280 = vmatprep.subr.bf16.mxu1 %v5966_v26  ;;  %v6062_v25 = vld [vmem:[%s8670_s1 + $0x66c] ss:$16 sps:$4 sm:$0xff]  }
  0x91   :  { %v6140_v26 = vld [vmem:[%s8674_s0 + $0x1c] ss:$72 sps:$4 sm:$0xff]  }
  0x93   :  { %3804 = vmatpush1.bf16.msra.mxu0 %v5961_v27  ;;  %4281 = vmatpush1.bf16.msra.mxu1 %v5964_v28  ;;  %v6057_v27 = vld [vmem:[%s8670_s1 + $0x660] ss:$16 sps:$4 sm:$0xff]   ;;  %v6060_v28 = vld [vmem:[%s8670_s1 + $0x668] ss:$16 sps:$4 sm:$0xff]  }
  0x94   :  { %3805 = vmatprep.subr.bf16.mxu0 %v5969_v29  ;;  %4282 = vmatprep.subr.bf16.mxu1 %v5972_v30  ;;  %v6065_v29 = vld [vmem:[%s8670_s1 + $0x684] ss:$16 sps:$4 sm:$0xff]   ;;  %v6068_v30 = vld [vmem:[%s8670_s1 + $0x68c] ss:$16 sps:$4 sm:$0xff]  }
  0x97   :  { %3806 = vmatpush1.bf16.msra.mxu0 %v5967_v31  ;;  %4283 = vmatpush1.bf16.msra.mxu1 %v5970_v32  ;;  %v6063_v31 = vld [vmem:[%s8670_s1 + $0x680] ss:$16 sps:$4 sm:$0xff]   ;;  %v6066_v32 = vld [vmem:[%s8670_s1 + $0x688] ss:$16 sps:$4 sm:$0xff]  }
  0x98   :  { %3807 = vmatprep.subr.bf16.mxu0 %v5975_v33  ;;  %4284 = vmatprep.subr.bf16.mxu1 %v5978_v34  ;;  %v6071_v33 = vld [vmem:[%s8670_s1 + $0x6a4] ss:$16 sps:$4 sm:$0xff]   ;;  %v6074_v34 = vld [vmem:[%s8670_s1 + $0x6ac] ss:$16 sps:$4 sm:$0xff]  }
  0x9b   :  { %3808 = vmatpush1.bf16.msra.mxu0 %v5973_v35  ;;  %4285 = vmatpush1.bf16.msra.mxu1 %v5976_v36  ;;  %v6069_v35 = vld [vmem:[%s8670_s1 + $0x6a0] ss:$16 sps:$4 sm:$0xff]   ;;  %v6072_v36 = vld [vmem:[%s8670_s1 + $0x6a8] ss:$16 sps:$4 sm:$0xff]  }
  0x9c   :  { %3809 = vmatprep.subr.bf16.mxu0 %v5981_v37  ;;  %4286 = vmatprep.subr.bf16.mxu1 %v5984_v38  ;;  %v6077_v37 = vld [vmem:[%s8670_s1 + $0x6c4] ss:$16 sps:$4 sm:$0xff]   ;;  %v6080_v38 = vld [vmem:[%s8670_s1 + $0x6cc] ss:$16 sps:$4 sm:$0xff]  }
  0x9f   :  { %3810 = vmatpush1.bf16.msra.mxu0 %v5979_v39  ;;  %4287 = vmatpush1.bf16.msra.mxu1 %v5982_v40  ;;  %v6075_v39 = vld [vmem:[%s8670_s1 + $0x6c0] ss:$16 sps:$4 sm:$0xff]   ;;  %v6078_v40 = vld [vmem:[%s8670_s1 + $0x6c8] ss:$16 sps:$4 sm:$0xff]  }
  0xa0   :  { %3811 = vmatprep.subr.bf16.mxu0 %v5987_v41  ;;  %4288 = vmatprep.subr.bf16.mxu1 %v5990_v42  ;;  %v6083_v41 = vld [vmem:[%s8670_s1 + $0x6e4] ss:$16 sps:$4 sm:$0xff]   ;;  %v6086_v42 = vld [vmem:[%s8670_s1 + $0x6ec] ss:$16 sps:$4 sm:$0xff]  }
  0xa3   :  { %3812 = vmatpush1.bf16.msra.mxu0 %v5985_v43  ;;  %4289 = vmatpush1.bf16.msra.mxu1 %v5988_v44  ;;  %v6081_v43 = vld [vmem:[%s8670_s1 + $0x6e0] ss:$16 sps:$4 sm:$0xff]   ;;  %v6084_v44 = vld [vmem:[%s8670_s1 + $0x6e8] ss:$16 sps:$4 sm:$0xff]  }
  0xa4   :  { %3813 = vmatprep.subr.bf16.mxu0 %v5993_v45  ;;  %4290 = vmatprep.subr.bf16.mxu1 %v5996_v46  ;;  %v6089_v45 = vld [vmem:[%s8670_s1 + $0x704] ss:$16 sps:$4 sm:$0xff]   ;;  %v6092_v46 = vld [vmem:[%s8670_s1 + $0x70c] ss:$16 sps:$4 sm:$0xff]  }
  0xa7   :  { %3814 = vmatpush1.bf16.msra.mxu0 %v5991_v47  ;;  %4291 = vmatpush1.bf16.msra.mxu1 %v5994_v48  ;;  %v6087_v47 = vld [vmem:[%s8670_s1 + $0x700] ss:$16 sps:$4 sm:$0xff]   ;;  %v6090_v48 = vld [vmem:[%s8670_s1 + $0x708] ss:$16 sps:$4 sm:$0xff]  }
  0xa8   :  { %3815 = vmatprep.subr.bf16.mxu0 %v5999_v49  ;;  %4292 = vmatprep.subr.bf16.mxu1 %v6002_v50  ;;  %v6095_v49 = vld [vmem:[%s8670_s1 + $0x724] ss:$16 sps:$4 sm:$0xff]   ;;  %v6098_v50 = vld [vmem:[%s8670_s1 + $0x72c] ss:$16 sps:$4 sm:$0xff]  }
  0xab   :  { %3816 = vmatpush1.bf16.msra.mxu0 %v5997_v51  ;;  %4293 = vmatpush1.bf16.msra.mxu1 %v6000_v52  ;;  %v6093_v51 = vld [vmem:[%s8670_s1 + $0x720] ss:$16 sps:$4 sm:$0xff]   ;;  %v6096_v52 = vld [vmem:[%s8670_s1 + $0x728] ss:$16 sps:$4 sm:$0xff]  }
  0xac   :  { %3817 = vmatprep.subr.bf16.mxu0 %v6005_v53  ;;  %4294 = vmatprep.subr.bf16.mxu1 %v6008_v54  ;;  %v6101_v53 = vld [vmem:[%s8670_s1 + $0x744] ss:$16 sps:$4 sm:$0xff]   ;;  %v6104_v54 = vld [vmem:[%s8670_s1 + $0x74c] ss:$16 sps:$4 sm:$0xff]  }
  0xaf   :  { %3818 = vmatpush1.bf16.msra.mxu0 %v6003_v55  ;;  %4295 = vmatpush1.bf16.msra.mxu1 %v6006_v56  ;;  %v6099_v55 = vld [vmem:[%s8670_s1 + $0x740] ss:$16 sps:$4 sm:$0xff]   ;;  %v6102_v56 = vld [vmem:[%s8670_s1 + $0x748] ss:$16 sps:$4 sm:$0xff]  }
  0xb0   :  { %3819 = vmatprep.subr.bf16.mxu0 %v6011_v57  ;;  %4296 = vmatprep.subr.bf16.mxu1 %v6014_v58  ;;  %v6107_v57 = vld [vmem:[%s8670_s1 + $0x764] ss:$16 sps:$4 sm:$0xff]   ;;  %v6110_v58 = vld [vmem:[%s8670_s1 + $0x76c] ss:$16 sps:$4 sm:$0xff]  }
  0xb3   :  { %3820 = vmatpush1.bf16.msra.mxu0 %v6009_v59  ;;  %4297 = vmatpush1.bf16.msra.mxu1 %v6012_v60  ;;  %v6105_v59 = vld [vmem:[%s8670_s1 + $0x760] ss:$16 sps:$4 sm:$0xff]   ;;  %v6108_v60 = vld [vmem:[%s8670_s1 + $0x768] ss:$16 sps:$4 sm:$0xff]  }
  0xb4   :  { %3821 = vmatprep.subr.bf16.mxu0 %v6017_v61  ;;  %4298 = vmatprep.subr.bf16.mxu1 %v6020_v62  ;;  %v6113_v61 = vld [vmem:[%s8670_s1 + $0x784] ss:$16 sps:$4 sm:$0xff]   ;;  %v6116_v62 = vld [vmem:[%s8670_s1 + $0x78c] ss:$16 sps:$4 sm:$0xff]  }
  0xb7   :  { %3822 = vmatpush1.bf16.msra.mxu0 %v6015_v63  ;;  %4299 = vmatpush1.bf16.msra.mxu1 %v6018_v0  ;;  %v6111_v63 = vld [vmem:[%s8670_s1 + $0x780] ss:$16 sps:$4 sm:$0xff]   ;;  %v6114_v0 = vld [vmem:[%s8670_s1 + $0x788] ss:$16 sps:$4 sm:$0xff]  }
  0xb8   :  { %3823 = vmatprep.subr.bf16.mxu0 %v6025_v1  ;;  %4300 = vmatprep.subr.bf16.mxu1 %v6028_v2  ;;  %v6119_v1 = vld [vmem:[%s8670_s1 + $0x7a4] ss:$16 sps:$4 sm:$0xff]   ;;  %v6122_v2 = vld [vmem:[%s8670_s1 + $0x7ac] ss:$16 sps:$4 sm:$0xff]  }
  0xbb   :  { %3824 = vmatpush1.bf16.msra.mxu0 %v6023_v3  ;;  %4301 = vmatpush1.bf16.msra.mxu1 %v6026_v4  ;;  %v6117_v3 = vld [vmem:[%s8670_s1 + $0x7a0] ss:$16 sps:$4 sm:$0xff]   ;;  %v6120_v4 = vld [vmem:[%s8670_s1 + $0x7a8] ss:$16 sps:$4 sm:$0xff]  }
  0xbc   :  { %3825 = vmatprep.subr.bf16.mxu0 %v6032_v5  ;;  %4302 = vmatprep.subr.bf16.mxu1 %v6035_v6  ;;  %v6127_v5 = vld [vmem:[%s8670_s1 + $0x7c4] ss:$16 sps:$4 sm:$0xff]   ;;  %v6130_v6 = vld [vmem:[%s8670_s1 + $0x7cc] ss:$16 sps:$4 sm:$0xff]  }
  0xbf   :  { %3826 = vmatpush1.bf16.msra.mxu0 %v6030_v7  ;;  %4303 = vmatpush1.bf16.msra.mxu1 %v6033_v8  ;;  %v6125_v7 = vld [vmem:[%s8670_s1 + $0x7c0] ss:$16 sps:$4 sm:$0xff]   ;;  %v6128_v8 = vld [vmem:[%s8670_s1 + $0x7c8] ss:$16 sps:$4 sm:$0xff]  }
  0xc0   :  { %3848 = vmatprep.subr.bf16.mxu0 %v6041_v9  ;;  %4325 = vmatprep.subr.bf16.mxu1 %v6044_v10  ;;  %v6134_v9 = vld [vmem:[%s8670_s1 + $0x7e4] ss:$16 sps:$4 sm:$0xff]   ;;  %v6137_v10 = vld [vmem:[%s8670_s1 + $0x7ec] ss:$16 sps:$4 sm:$0xff]  }
  0xc2   :  { %3828 = vmatmul.mubr.bf16.vlgmr.msra.gmra.mrb[0].mxu0 %v6036_v11  ;;  %4305 = vmatmul.mubr.bf16.vlgmr.msra.gmra.mrb[0].mxu1 %v6036_v11  ;;  %v6132_v11 = vld [vmem:[%s8670_s1 + $0x7e0] ss:$16 sps:$4 sm:$0xff]  }
  0xc3   :  { %3849 = vmatpush1.bf16.msra.mxu0 %v6039_v12  ;;  %4326 = vmatpush1.bf16.msra.mxu1 %v6042_v13  ;;  %v6135_v12 = vld [vmem:[%s8670_s1 + $0x7e8] ss:$16 sps:$4 sm:$0xff]   ;;  %v6143_v13 = vld [vmem:[%s8670_s1 + $0x804] ss:$16 sps:$4 sm:$0xff]  }
  0xc4   :  { %3850 = vmatprep.subr.bf16.mxu0 %v6047_v14  ;;  %4327 = vmatprep.subr.bf16.mxu1 %v6050_v15  ;;  %v6146_v14 = vld [vmem:[%s8670_s1 + $0x80c] ss:$16 sps:$4 sm:$0xff]   ;;  %v6138_v15 = vld [vmem:[%s8674_s0 + $0x18] ss:$72 sps:$4 sm:$0xff]  }
  0xc5   :  { %3837 = vmatprep.mubr.bf16.mxu0 %v6123_v16  ;;  %4314 = vmatprep.mubr.bf16.mxu1 %v6123_v16  ;;  %v6141_v16 = vld [vmem:[%s8670_s1 + $0x800] ss:$16 sps:$4 sm:$0xff]  }
  0xc7   :  { %3851 = vmatpush1.bf16.msra.mxu0 %v6045_v17  ;;  %4328 = vmatpush1.bf16.msra.mxu1 %v6048_v18  ;;  %v6144_v17 = vld [vmem:[%s8670_s1 + $0x808] ss:$16 sps:$4 sm:$0xff]   ;;  %v6149_v18 = vld [vmem:[%s8670_s1 + $0x824] ss:$16 sps:$4 sm:$0xff]  }
  0xc8   :  { %3852 = vmatprep.subr.bf16.mxu0 %v6053_v19  ;;  %4329 = vmatprep.subr.bf16.mxu1 %v6056_v20  ;;  %v6152_v19 = vld [vmem:[%s8670_s1 + $0x82c] ss:$16 sps:$4 sm:$0xff]  }
  0xc9   :  { %v6225_v20 = vld [vmem:[%s8674_s0 + $0xac] ss:$72 sps:$4 sm:$0xff]  }
  0xca   :  { %3838 = vmatmul.mubr.bf16.gmra.mrb[4].mxu0 %v6131_v23  ;;  %4315 = vmatmul.mubr.bf16.gmra.mrb[4].mxu1 %v6131_v23  ;;  %v6155_v23 = vld [vmem:[%s8670_s1 + $0x844] ss:$16 sps:$4 sm:$0xff]  }
  0xcb   :  { %3853 = vmatpush1.bf16.msra.mxu0 %v6051_v21  ;;  %4330 = vmatpush1.bf16.msra.mxu1 %v6054_v22  ;;  %v6147_v21 = vld [vmem:[%s8670_s1 + $0x820] ss:$16 sps:$4 sm:$0xff]   ;;  %v6150_v22 = vld [vmem:[%s8670_s1 + $0x828] ss:$16 sps:$4 sm:$0xff]  }
  0xcc   :  { %3854 = vmatprep.subr.bf16.mxu0 %v6059_v24  ;;  %4331 = vmatprep.subr.bf16.mxu1 %v6062_v25  ;;  %v6158_v24 = vld [vmem:[%s8670_s1 + $0x84c] ss:$16 sps:$4 sm:$0xff]   ;;  %v6153_v25 = vld [vmem:[%s8670_s1 + $0x840] ss:$16 sps:$4 sm:$0xff]  }
  0xcd   :  { %3880 = vmatprep.mubr.bf16.mxu0 %v6140_v26  ;;  %4357 = vmatprep.mubr.bf16.mxu1 %v6140_v26  ;;  %v6233_v26 = vld [vmem:[%s8674_s0 + $0xa8] ss:$72 sps:$4 sm:$0xff]  }
  0xcf   :  { %3855 = vmatpush1.bf16.msra.mxu0 %v6057_v27  ;;  %4332 = vmatpush1.bf16.msra.mxu1 %v6060_v28  ;;  %v6156_v27 = vld [vmem:[%s8670_s1 + $0x848] ss:$16 sps:$4 sm:$0xff]   ;;  %v6161_v28 = vld [vmem:[%s8670_s1 + $0x864] ss:$16 sps:$4 sm:$0xff]  }
  0xd0   :  { %3856 = vmatprep.subr.bf16.mxu0 %v6065_v29  ;;  %4333 = vmatprep.subr.bf16.mxu1 %v6068_v30  ;;  %v6164_v29 = vld [vmem:[%s8670_s1 + $0x86c] ss:$16 sps:$4 sm:$0xff]  }
  0xd1   :  { %v6242_v30 = vld [vmem:[%s8674_s0 + $0x24] ss:$72 sps:$4 sm:$0xff]  }
  0xd3   :  { %3857 = vmatpush1.bf16.msra.mxu0 %v6063_v31  ;;  %4334 = vmatpush1.bf16.msra.mxu1 %v6066_v32  ;;  %v6159_v31 = vld [vmem:[%s8670_s1 + $0x860] ss:$16 sps:$4 sm:$0xff]   ;;  %v6162_v32 = vld [vmem:[%s8670_s1 + $0x868] ss:$16 sps:$4 sm:$0xff]  }
  0xd4   :  { %3858 = vmatprep.subr.bf16.mxu0 %v6071_v33  ;;  %4335 = vmatprep.subr.bf16.mxu1 %v6074_v34  ;;  %v6167_v33 = vld [vmem:[%s8670_s1 + $0x884] ss:$16 sps:$4 sm:$0xff]   ;;  %v6170_v34 = vld [vmem:[%s8670_s1 + $0x88c] ss:$16 sps:$4 sm:$0xff]  }
  0xd7   :  { %3859 = vmatpush1.bf16.msra.mxu0 %v6069_v35  ;;  %4336 = vmatpush1.bf16.msra.mxu1 %v6072_v36  ;;  %v6165_v35 = vld [vmem:[%s8670_s1 + $0x880] ss:$16 sps:$4 sm:$0xff]   ;;  %v6168_v36 = vld [vmem:[%s8670_s1 + $0x888] ss:$16 sps:$4 sm:$0xff]  }
  0xd8   :  { %3860 = vmatprep.subr.bf16.mxu0 %v6077_v37  ;;  %4337 = vmatprep.subr.bf16.mxu1 %v6080_v38  ;;  %v6173_v37 = vld [vmem:[%s8670_s1 + $0x8a4] ss:$16 sps:$4 sm:$0xff]   ;;  %v6176_v38 = vld [vmem:[%s8670_s1 + $0x8ac] ss:$16 sps:$4 sm:$0xff]  }
  0xdb   :  { %3861 = vmatpush1.bf16.msra.mxu0 %v6075_v39  ;;  %4338 = vmatpush1.bf16.msra.mxu1 %v6078_v40  ;;  %v6171_v39 = vld [vmem:[%s8670_s1 + $0x8a0] ss:$16 sps:$4 sm:$0xff]   ;;  %v6174_v40 = vld [vmem:[%s8670_s1 + $0x8a8] ss:$16 sps:$4 sm:$0xff]  }
  0xdc   :  { %3862 = vmatprep.subr.bf16.mxu0 %v6083_v41  ;;  %4339 = vmatprep.subr.bf16.mxu1 %v6086_v42  ;;  %v6179_v41 = vld [vmem:[%s8670_s1 + $0x8c4] ss:$16 sps:$4 sm:$0xff]   ;;  %v6182_v42 = vld [vmem:[%s8670_s1 + $0x8cc] ss:$16 sps:$4 sm:$0xff]  }
  0xdf   :  { %3863 = vmatpush1.bf16.msra.mxu0 %v6081_v43  ;;  %4340 = vmatpush1.bf16.msra.mxu1 %v6084_v44  ;;  %v6177_v43 = vld [vmem:[%s8670_s1 + $0x8c0] ss:$16 sps:$4 sm:$0xff]   ;;  %v6180_v44 = vld [vmem:[%s8670_s1 + $0x8c8] ss:$16 sps:$4 sm:$0xff]  }
  0xe0   :  { %3864 = vmatprep.subr.bf16.mxu0 %v6089_v45  ;;  %4341 = vmatprep.subr.bf16.mxu1 %v6092_v46  ;;  %v6185_v45 = vld [vmem:[%s8670_s1 + $0x8e4] ss:$16 sps:$4 sm:$0xff]   ;;  %v6188_v46 = vld [vmem:[%s8670_s1 + $0x8ec] ss:$16 sps:$4 sm:$0xff]  }
  0xe3   :  { %3865 = vmatpush1.bf16.msra.mxu0 %v6087_v47  ;;  %4342 = vmatpush1.bf16.msra.mxu1 %v6090_v48  ;;  %v6183_v47 = vld [vmem:[%s8670_s1 + $0x8e0] ss:$16 sps:$4 sm:$0xff]   ;;  %v6186_v48 = vld [vmem:[%s8670_s1 + $0x8e8] ss:$16 sps:$4 sm:$0xff]  }
  0xe4   :  { %3866 = vmatprep.subr.bf16.mxu0 %v6095_v49  ;;  %4343 = vmatprep.subr.bf16.mxu1 %v6098_v50  ;;  %v6191_v49 = vld [vmem:[%s8670_s1 + $0x904] ss:$16 sps:$4 sm:$0xff]   ;;  %v6194_v50 = vld [vmem:[%s8670_s1 + $0x90c] ss:$16 sps:$4 sm:$0xff]  }
  0xe7   :  { %3867 = vmatpush1.bf16.msra.mxu0 %v6093_v51  ;;  %4344 = vmatpush1.bf16.msra.mxu1 %v6096_v52  ;;  %v6189_v51 = vld [vmem:[%s8670_s1 + $0x900] ss:$16 sps:$4 sm:$0xff]   ;;  %v6192_v52 = vld [vmem:[%s8670_s1 + $0x908] ss:$16 sps:$4 sm:$0xff]  }
  0xe8   :  { %3868 = vmatprep.subr.bf16.mxu0 %v6101_v53  ;;  %4345 = vmatprep.subr.bf16.mxu1 %v6104_v54  ;;  %v6197_v53 = vld [vmem:[%s8670_s1 + $0x924] ss:$16 sps:$4 sm:$0xff]   ;;  %v6200_v54 = vld [vmem:[%s8670_s1 + $0x92c] ss:$16 sps:$4 sm:$0xff]  }
  0xeb   :  { %3869 = vmatpush1.bf16.msra.mxu0 %v6099_v55  ;;  %4346 = vmatpush1.bf16.msra.mxu1 %v6102_v56  ;;  %v6195_v55 = vld [vmem:[%s8670_s1 + $0x920] ss:$16 sps:$4 sm:$0xff]   ;;  %v6198_v56 = vld [vmem:[%s8670_s1 + $0x928] ss:$16 sps:$4 sm:$0xff]  }
  0xec   :  { %3870 = vmatprep.subr.bf16.mxu0 %v6107_v57  ;;  %4347 = vmatprep.subr.bf16.mxu1 %v6110_v58  ;;  %v6203_v57 = vld [vmem:[%s8670_s1 + $0x944] ss:$16 sps:$4 sm:$0xff]   ;;  %v6206_v58 = vld [vmem:[%s8670_s1 + $0x94c] ss:$16 sps:$4 sm:$0xff]  }
  0xef   :  { %3871 = vmatpush1.bf16.msra.mxu0 %v6105_v59  ;;  %4348 = vmatpush1.bf16.msra.mxu1 %v6108_v60  ;;  %v6201_v59 = vld [vmem:[%s8670_s1 + $0x940] ss:$16 sps:$4 sm:$0xff]   ;;  %v6204_v60 = vld [vmem:[%s8670_s1 + $0x948] ss:$16 sps:$4 sm:$0xff]  }
  0xf0   :  { %3872 = vmatprep.subr.bf16.mxu0 %v6113_v61  ;;  %4349 = vmatprep.subr.bf16.mxu1 %v6116_v62  ;;  %v6209_v61 = vld [vmem:[%s8670_s1 + $0x964] ss:$16 sps:$4 sm:$0xff]   ;;  %v6212_v62 = vld [vmem:[%s8670_s1 + $0x96c] ss:$16 sps:$4 sm:$0xff]  }
  0xf3   :  { %3873 = vmatpush1.bf16.msra.mxu0 %v6111_v63  ;;  %4350 = vmatpush1.bf16.msra.mxu1 %v6114_v0  ;;  %v6207_v63 = vld [vmem:[%s8670_s1 + $0x960] ss:$16 sps:$4 sm:$0xff]   ;;  %v6210_v0 = vld [vmem:[%s8670_s1 + $0x968] ss:$16 sps:$4 sm:$0xff]  }
  0xf4   :  { %3874 = vmatprep.subr.bf16.mxu0 %v6119_v1  ;;  %4351 = vmatprep.subr.bf16.mxu1 %v6122_v2  ;;  %v6215_v1 = vld [vmem:[%s8670_s1 + $0x984] ss:$16 sps:$4 sm:$0xff]   ;;  %v6218_v2 = vld [vmem:[%s8670_s1 + $0x98c] ss:$16 sps:$4 sm:$0xff]  }
  0xf7   :  { %3875 = vmatpush1.bf16.msra.mxu0 %v6117_v3  ;;  %4352 = vmatpush1.bf16.msra.mxu1 %v6120_v4  ;;  %v6213_v3 = vld [vmem:[%s8670_s1 + $0x980] ss:$16 sps:$4 sm:$0xff]   ;;  %v6216_v4 = vld [vmem:[%s8670_s1 + $0x988] ss:$16 sps:$4 sm:$0xff]  }
  0xf8   :  { %3876 = vmatprep.subr.bf16.mxu0 %v6127_v5  ;;  %4353 = vmatprep.subr.bf16.mxu1 %v6130_v6  ;;  %v6221_v5 = vld [vmem:[%s8670_s1 + $0x9a4] ss:$16 sps:$4 sm:$0xff]   ;;  %v6224_v6 = vld [vmem:[%s8670_s1 + $0x9ac] ss:$16 sps:$4 sm:$0xff]  }
  0xfb   :  { %3877 = vmatpush1.bf16.msra.mxu0 %v6125_v7  ;;  %4354 = vmatpush1.bf16.msra.mxu1 %v6128_v8  ;;  %v6219_v7 = vld [vmem:[%s8670_s1 + $0x9a0] ss:$16 sps:$4 sm:$0xff]   ;;  %v6222_v8 = vld [vmem:[%s8670_s1 + $0x9a8] ss:$16 sps:$4 sm:$0xff]  }
  0xfc   :  { %3878 = vmatprep.subr.bf16.mxu0 %v6134_v9  ;;  %4355 = vmatprep.subr.bf16.mxu1 %v6137_v10  ;;  %v6229_v9 = vld [vmem:[%s8670_s1 + $0x9c4] ss:$16 sps:$4 sm:$0xff]   ;;  %v6232_v10 = vld [vmem:[%s8670_s1 + $0x9cc] ss:$16 sps:$4 sm:$0xff]  }
  0xff   :  { %3879 = vmatpush1.bf16.msra.mxu0 %v6132_v11  ;;  %4356 = vmatpush1.bf16.msra.mxu1 %v6135_v12  ;;  %v6227_v11 = vld [vmem:[%s8670_s1 + $0x9c0] ss:$16 sps:$4 sm:$0xff]   ;;  %v6230_v12 = vld [vmem:[%s8670_s1 + $0x9c8] ss:$16 sps:$4 sm:$0xff]  }
 0x100   :  { %3901 = vmatprep.subr.bf16.mxu0 %v6143_v13  ;;  %4378 = vmatprep.subr.bf16.mxu1 %v6146_v14  ;;  %v6236_v13 = vld [vmem:[%s8670_s1 + $0x9e4] ss:$16 sps:$4 sm:$0xff]   ;;  %v6239_v14 = vld [vmem:[%s8670_s1 + $0x9ec] ss:$16 sps:$4 sm:$0xff]  }
 0x102   :  { %3881 = vmatmul.mubr.bf16.vlgmr.msra.gmra.mrb[0].mxu0 %v6138_v15  ;;  %4358 = vmatmul.mubr.bf16.vlgmr.msra.gmra.mrb[0].mxu1 %v6138_v15  ;;  %v6234_v15 = vld [vmem:[%s8670_s1 + $0x9e0] ss:$16 sps:$4 sm:$0xff]  }
 0x103   :  { %3902 = vmatpush1.bf16.msra.mxu0 %v6141_v16  ;;  %4379 = vmatpush1.bf16.msra.mxu1 %v6144_v17  ;;  %v6237_v16 = vld [vmem:[%s8670_s1 + $0x9e8] ss:$16 sps:$4 sm:$0xff]  }
 0x104   :  { %3903 = vmatprep.subr.bf16.mxu0 %v6149_v18  ;;  %4380 = vmatprep.subr.bf16.mxu1 %v6152_v19  ;;  %v6240_v17 = vld [vmem:[%s8674_s0 + $0x20] ss:$72 sps:$4 sm:$0xff]   ;;  %v6245_v18 = vld [vmem:[%s8670_s1 + $0xa04] ss:$16 sps:$4 sm:$0xff]   ;;  %v6248_v19 = vld [vmem:[%s8670_s1 + $0xa0c] ss:$16 sps:$4 sm:$0xff]  }
 0x105   :  { %3890 = vmatprep.mubr.bf16.mxu0 %v6225_v20  ;;  %4367 = vmatprep.mubr.bf16.mxu1 %v6225_v20  ;;  %v6243_v20 = vld [vmem:[%s8670_s1 + $0xa00] ss:$16 sps:$4 sm:$0xff]  }
 0x107   :  { %3904 = vmatpush1.bf16.msra.mxu0 %v6147_v21  ;;  %4381 = vmatpush1.bf16.msra.mxu1 %v6150_v22  ;;  %v6246_v21 = vld [vmem:[%s8670_s1 + $0xa08] ss:$16 sps:$4 sm:$0xff]   ;;  %v6251_v22 = vld [vmem:[%s8670_s1 + $0xa24] ss:$16 sps:$4 sm:$0xff]  }
 0x108   :  { %3905 = vmatprep.subr.bf16.mxu0 %v6155_v23  ;;  %4382 = vmatprep.subr.bf16.mxu1 %v6158_v24  ;;  %v6254_v23 = vld [vmem:[%s8670_s1 + $0xa2c] ss:$16 sps:$4 sm:$0xff]  }
 0x109   :  { %v6327_v24 = vld [vmem:[%s8674_s0 + $0xb4] ss:$72 sps:$4 sm:$0xff]  }
 0x10a   :  { %3891 = vmatmul.mubr.bf16.gmra.mrb[4].mxu0 %v6233_v26  ;;  %4368 = vmatmul.mubr.bf16.gmra.mrb[4].mxu1 %v6233_v26  ;;  %v6252_v26 = vld [vmem:[%s8670_s1 + $0xa28] ss:$16 sps:$4 sm:$0xff]  }
 0x10b   :  { %3906 = vmatpush1.bf16.msra.mxu0 %v6153_v25  ;;  %4383 = vmatpush1.bf16.msra.mxu1 %v6156_v27  ;;  %v6249_v25 = vld [vmem:[%s8670_s1 + $0xa20] ss:$16 sps:$4 sm:$0xff]   ;;  %v6257_v27 = vld [vmem:[%s8670_s1 + $0xa44] ss:$16 sps:$4 sm:$0xff]  }
 0x10c   :  { %3907 = vmatprep.subr.bf16.mxu0 %v6161_v28  ;;  %4384 = vmatprep.subr.bf16.mxu1 %v6164_v29  ;;  %v6260_v28 = vld [vmem:[%s8670_s1 + $0xa4c] ss:$16 sps:$4 sm:$0xff]   ;;  %v6335_v29 = vld [vmem:[%s8674_s0 + $0xb0] ss:$72 sps:$4 sm:$0xff]  }
 0x10d   :  { %3933 = vmatprep.mubr.bf16.mxu0 %v6242_v30  ;;  %4410 = vmatprep.mubr.bf16.mxu1 %v6242_v30  ;;  %v6255_v30 = vld [vmem:[%s8670_s1 + $0xa40] ss:$16 sps:$4 sm:$0xff]  }
 0x10f   :  { %3908 = vmatpush1.bf16.msra.mxu0 %v6159_v31  ;;  %4385 = vmatpush1.bf16.msra.mxu1 %v6162_v32  ;;  %v6258_v31 = vld [vmem:[%s8670_s1 + $0xa48] ss:$16 sps:$4 sm:$0xff]   ;;  %v6263_v32 = vld [vmem:[%s8670_s1 + $0xa64] ss:$16 sps:$4 sm:$0xff]  }
 0x110   :  { %3909 = vmatprep.subr.bf16.mxu0 %v6167_v33  ;;  %4386 = vmatprep.subr.bf16.mxu1 %v6170_v34  ;;  %v6266_v33 = vld [vmem:[%s8670_s1 + $0xa6c] ss:$16 sps:$4 sm:$0xff]  }
 0x111   :  { %v6344_v34 = vld [vmem:[%s8674_s0 + $0x2c] ss:$72 sps:$4 sm:$0xff]  }
 0x113   :  { %3910 = vmatpush1.bf16.msra.mxu0 %v6165_v35  ;;  %4387 = vmatpush1.bf16.msra.mxu1 %v6168_v36  ;;  %v6261_v35 = vld [vmem:[%s8670_s1 + $0xa60] ss:$16 sps:$4 sm:$0xff]   ;;  %v6264_v36 = vld [vmem:[%s8670_s1 + $0xa68] ss:$16 sps:$4 sm:$0xff]  }
 0x114   :  { %3911 = vmatprep.subr.bf16.mxu0 %v6173_v37  ;;  %4388 = vmatprep.subr.bf16.mxu1 %v6176_v38  ;;  %v6269_v37 = vld [vmem:[%s8670_s1 + $0xa84] ss:$16 sps:$4 sm:$0xff]   ;;  %v6272_v38 = vld [vmem:[%s8670_s1 + $0xa8c] ss:$16 sps:$4 sm:$0xff]  }
 0x117   :  { %3912 = vmatpush1.bf16.msra.mxu0 %v6171_v39  ;;  %4389 = vmatpush1.bf16.msra.mxu1 %v6174_v40  ;;  %v6267_v39 = vld [vmem:[%s8670_s1 + $0xa80] ss:$16 sps:$4 sm:$0xff]   ;;  %v6270_v40 = vld [vmem:[%s8670_s1 + $0xa88] ss:$16 sps:$4 sm:$0xff]  }
 0x118   :  { %3913 = vmatprep.subr.bf16.mxu0 %v6179_v41  ;;  %4390 = vmatprep.subr.bf16.mxu1 %v6182_v42  ;;  %v6275_v41 = vld [vmem:[%s8670_s1 + $0xaa4] ss:$16 sps:$4 sm:$0xff]   ;;  %v6278_v42 = vld [vmem:[%s8670_s1 + $0xaac] ss:$16 sps:$4 sm:$0xff]  }
 0x11b   :  { %3914 = vmatpush1.bf16.msra.mxu0 %v6177_v43  ;;  %4391 = vmatpush1.bf16.msra.mxu1 %v6180_v44  ;;  %v6273_v43 = vld [vmem:[%s8670_s1 + $0xaa0] ss:$16 sps:$4 sm:$0xff]   ;;  %v6276_v44 = vld [vmem:[%s8670_s1 + $0xaa8] ss:$16 sps:$4 sm:$0xff]  }
 0x11c   :  { %3915 = vmatprep.subr.bf16.mxu0 %v6185_v45  ;;  %4392 = vmatprep.subr.bf16.mxu1 %v6188_v46  ;;  %v6281_v45 = vld [vmem:[%s8670_s1 + $0xac4] ss:$16 sps:$4 sm:$0xff]   ;;  %v6284_v46 = vld [vmem:[%s8670_s1 + $0xacc] ss:$16 sps:$4 sm:$0xff]  }
 0x11f   :  { %3916 = vmatpush1.bf16.msra.mxu0 %v6183_v47  ;;  %4393 = vmatpush1.bf16.msra.mxu1 %v6186_v48  ;;  %v6279_v47 = vld [vmem:[%s8670_s1 + $0xac0] ss:$16 sps:$4 sm:$0xff]   ;;  %v6282_v48 = vld [vmem:[%s8670_s1 + $0xac8] ss:$16 sps:$4 sm:$0xff]  }
 0x120   :  { %3917 = vmatprep.subr.bf16.mxu0 %v6191_v49  ;;  %4394 = vmatprep.subr.bf16.mxu1 %v6194_v50  ;;  %v6287_v49 = vld [vmem:[%s8670_s1 + $0xae4] ss:$16 sps:$4 sm:$0xff]   ;;  %v6290_v50 = vld [vmem:[%s8670_s1 + $0xaec] ss:$16 sps:$4 sm:$0xff]  }
 0x123   :  { %3918 = vmatpush1.bf16.msra.mxu0 %v6189_v51  ;;  %4395 = vmatpush1.bf16.msra.mxu1 %v6192_v52  ;;  %v6285_v51 = vld [vmem:[%s8670_s1 + $0xae0] ss:$16 sps:$4 sm:$0xff]   ;;  %v6288_v52 = vld [vmem:[%s8670_s1 + $0xae8] ss:$16 sps:$4 sm:$0xff]  }
 0x124   :  { %3919 = vmatprep.subr.bf16.mxu0 %v6197_v53  ;;  %4396 = vmatprep.subr.bf16.mxu1 %v6200_v54  ;;  %v6293_v53 = vld [vmem:[%s8670_s1 + $0xb04] ss:$16 sps:$4 sm:$0xff]   ;;  %v6296_v54 = vld [vmem:[%s8670_s1 + $0xb0c] ss:$16 sps:$4 sm:$0xff]  }
 0x127   :  { %3920 = vmatpush1.bf16.msra.mxu0 %v6195_v55  ;;  %4397 = vmatpush1.bf16.msra.mxu1 %v6198_v56  ;;  %v6291_v55 = vld [vmem:[%s8670_s1 + $0xb00] ss:$16 sps:$4 sm:$0xff]   ;;  %v6294_v56 = vld [vmem:[%s8670_s1 + $0xb08] ss:$16 sps:$4 sm:$0xff]  }
 0x128   :  { %3921 = vmatprep.subr.bf16.mxu0 %v6203_v57  ;;  %4398 = vmatprep.subr.bf16.mxu1 %v6206_v58  ;;  %v6299_v57 = vld [vmem:[%s8670_s1 + $0xb24] ss:$16 sps:$4 sm:$0xff]   ;;  %v6302_v58 = vld [vmem:[%s8670_s1 + $0xb2c] ss:$16 sps:$4 sm:$0xff]  }
 0x12b   :  { %3922 = vmatpush1.bf16.msra.mxu0 %v6201_v59  ;;  %4399 = vmatpush1.bf16.msra.mxu1 %v6204_v60  ;;  %v6297_v59 = vld [vmem:[%s8670_s1 + $0xb20] ss:$16 sps:$4 sm:$0xff]   ;;  %v6300_v60 = vld [vmem:[%s8670_s1 + $0xb28] ss:$16 sps:$4 sm:$0xff]  }
 0x12c   :  { %3923 = vmatprep.subr.bf16.mxu0 %v6209_v61  ;;  %4400 = vmatprep.subr.bf16.mxu1 %v6212_v62  ;;  %v6305_v61 = vld [vmem:[%s8670_s1 + $0xb44] ss:$16 sps:$4 sm:$0xff]   ;;  %v6308_v62 = vld [vmem:[%s8670_s1 + $0xb4c] ss:$16 sps:$4 sm:$0xff]  }
 0x12f   :  { %3924 = vmatpush1.bf16.msra.mxu0 %v6207_v63  ;;  %4401 = vmatpush1.bf16.msra.mxu1 %v6210_v0  ;;  %v6303_v63 = vld [vmem:[%s8670_s1 + $0xb40] ss:$16 sps:$4 sm:$0xff]   ;;  %v6306_v0 = vld [vmem:[%s8670_s1 + $0xb48] ss:$16 sps:$4 sm:$0xff]  }
 0x130   :  { %3925 = vmatprep.subr.bf16.mxu0 %v6215_v1  ;;  %4402 = vmatprep.subr.bf16.mxu1 %v6218_v2  ;;  %v6311_v1 = vld [vmem:[%s8670_s1 + $0xb64] ss:$16 sps:$4 sm:$0xff]   ;;  %v6314_v2 = vld [vmem:[%s8670_s1 + $0xb6c] ss:$16 sps:$4 sm:$0xff]  }
 0x133   :  { %3926 = vmatpush1.bf16.msra.mxu0 %v6213_v3  ;;  %4403 = vmatpush1.bf16.msra.mxu1 %v6216_v4  ;;  %v6309_v3 = vld [vmem:[%s8670_s1 + $0xb60] ss:$16 sps:$4 sm:$0xff]   ;;  %v6312_v4 = vld [vmem:[%s8670_s1 + $0xb68] ss:$16 sps:$4 sm:$0xff]  }
 0x134   :  { %3927 = vmatprep.subr.bf16.mxu0 %v6221_v5  ;;  %4404 = vmatprep.subr.bf16.mxu1 %v6224_v6  ;;  %v6317_v5 = vld [vmem:[%s8670_s1 + $0xb84] ss:$16 sps:$4 sm:$0xff]   ;;  %v6320_v6 = vld [vmem:[%s8670_s1 + $0xb8c] ss:$16 sps:$4 sm:$0xff]  }
 0x137   :  { %3928 = vmatpush1.bf16.msra.mxu0 %v6219_v7  ;;  %4405 = vmatpush1.bf16.msra.mxu1 %v6222_v8  ;;  %v6315_v7 = vld [vmem:[%s8670_s1 + $0xb80] ss:$16 sps:$4 sm:$0xff]   ;;  %v6318_v8 = vld [vmem:[%s8670_s1 + $0xb88] ss:$16 sps:$4 sm:$0xff]  }
 0x138   :  { %3929 = vmatprep.subr.bf16.mxu0 %v6229_v9  ;;  %4406 = vmatprep.subr.bf16.mxu1 %v6232_v10  ;;  %v6323_v9 = vld [vmem:[%s8670_s1 + $0xba4] ss:$16 sps:$4 sm:$0xff]   ;;  %v6326_v10 = vld [vmem:[%s8670_s1 + $0xbac] ss:$16 sps:$4 sm:$0xff]  }
 0x13b   :  { %3930 = vmatpush1.bf16.msra.mxu0 %v6227_v11  ;;  %4407 = vmatpush1.bf16.msra.mxu1 %v6230_v12  ;;  %v6321_v11 = vld [vmem:[%s8670_s1 + $0xba0] ss:$16 sps:$4 sm:$0xff]   ;;  %v6324_v12 = vld [vmem:[%s8670_s1 + $0xba8] ss:$16 sps:$4 sm:$0xff]  }
 0x13c   :  { %3931 = vmatprep.subr.bf16.mxu0 %v6236_v13  ;;  %4408 = vmatprep.subr.bf16.mxu1 %v6239_v14  ;;  %v6331_v13 = vld [vmem:[%s8670_s1 + $0xbc4] ss:$16 sps:$4 sm:$0xff]   ;;  %v6334_v14 = vld [vmem:[%s8670_s1 + $0xbcc] ss:$16 sps:$4 sm:$0xff]  }
 0x13f   :  { %3932 = vmatpush1.bf16.msra.mxu0 %v6234_v15  ;;  %4409 = vmatpush1.bf16.msra.mxu1 %v6237_v16  ;;  %v6329_v15 = vld [vmem:[%s8670_s1 + $0xbc0] ss:$16 sps:$4 sm:$0xff]   ;;  %v6332_v16 = vld [vmem:[%s8670_s1 + $0xbc8] ss:$16 sps:$4 sm:$0xff]  }
 0x140   :  { %3954 = vmatprep.subr.bf16.mxu0 %v6245_v18  ;;  %4431 = vmatprep.subr.bf16.mxu1 %v6248_v19  ;;  %v6341_v18 = vld [vmem:[%s8670_s1 + $0xbec] ss:$16 sps:$4 sm:$0xff]   ;;  %v6336_v19 = vld [vmem:[%s8670_s1 + $0xbe0] ss:$16 sps:$4 sm:$0xff]  }
 0x142   :  { %3934 = vmatmul.mubr.bf16.vlgmr.msra.gmra.mrb[0].mxu0 %v6240_v17  ;;  %4411 = vmatmul.mubr.bf16.vlgmr.msra.gmra.mrb[0].mxu1 %v6240_v17  ;;  %v6338_v17 = vld [vmem:[%s8670_s1 + $0xbe4] ss:$16 sps:$4 sm:$0xff]  }
 0x143   :  { %3955 = vmatpush1.bf16.msra.mxu0 %v6243_v20  ;;  %4432 = vmatpush1.bf16.msra.mxu1 %v6246_v21  ;;  %v6339_v20 = vld [vmem:[%s8670_s1 + $0xbe8] ss:$16 sps:$4 sm:$0xff]  }
 0x144   :  { %3956 = vmatprep.subr.bf16.mxu0 %v6251_v22  ;;  %4433 = vmatprep.subr.bf16.mxu1 %v6254_v23  ;;  %v6342_v21 = vld [vmem:[%s8674_s0 + $0x28] ss:$72 sps:$4 sm:$0xff]   ;;  %v6347_v22 = vld [vmem:[%s8670_s1 + $0xc04] ss:$16 sps:$4 sm:$0xff]   ;;  %v6350_v23 = vld [vmem:[%s8670_s1 + $0xc0c] ss:$16 sps:$4 sm:$0xff]  }
 0x145   :  { %3943 = vmatprep.mubr.bf16.mxu0 %v6327_v24  ;;  %4420 = vmatprep.mubr.bf16.mxu1 %v6327_v24  ;;  %v6345_v24 = vld [vmem:[%s8670_s1 + $0xc00] ss:$16 sps:$4 sm:$0xff]  }
 0x147   :  { %3957 = vmatpush1.bf16.msra.mxu0 %v6249_v25  ;;  %4434 = vmatpush1.bf16.msra.mxu1 %v6252_v26  ;;  %v6348_v25 = vld [vmem:[%s8670_s1 + $0xc08] ss:$16 sps:$4 sm:$0xff]   ;;  %v6353_v26 = vld [vmem:[%s8670_s1 + $0xc24] ss:$16 sps:$4 sm:$0xff]  }
 0x148   :  { %3958 = vmatprep.subr.bf16.mxu0 %v6257_v27  ;;  %4435 = vmatprep.subr.bf16.mxu1 %v6260_v28  ;;  %v6356_v27 = vld [vmem:[%s8670_s1 + $0xc2c] ss:$16 sps:$4 sm:$0xff]  }
 0x149   :  { %v6429_v28 = vld [vmem:[%s8674_s0 + $0xbc] ss:$72 sps:$4 sm:$0xff]  }
 0x14a   :  { %3944 = vmatmul.mubr.bf16.gmra.mrb[4].mxu0 %v6335_v29  ;;  %4421 = vmatmul.mubr.bf16.gmra.mrb[4].mxu1 %v6335_v29  ;;  %v6351_v29 = vld [vmem:[%s8670_s1 + $0xc20] ss:$16 sps:$4 sm:$0xff]  }
 0x14b   :  { %3959 = vmatpush1.bf16.msra.mxu0 %v6255_v30  ;;  %4436 = vmatpush1.bf16.msra.mxu1 %v6258_v31  ;;  %v6354_v30 = vld [vmem:[%s8670_s1 + $0xc28] ss:$16 sps:$4 sm:$0xff]   ;;  %v6359_v31 = vld [vmem:[%s8670_s1 + $0xc44] ss:$16 sps:$4 sm:$0xff]  }
 0x14c   :  { %3960 = vmatprep.subr.bf16.mxu0 %v6263_v32  ;;  %4437 = vmatprep.subr.bf16.mxu1 %v6266_v33  ;;  %v6362_v32 = vld [vmem:[%s8670_s1 + $0xc4c] ss:$16 sps:$4 sm:$0xff]   ;;  %v6437_v33 = vld [vmem:[%s8674_s0 + $0xb8] ss:$72 sps:$4 sm:$0xff]  }
 0x14d   :  { %3986 = vmatprep.mubr.bf16.mxu0 %v6344_v34  ;;  %4463 = vmatprep.mubr.bf16.mxu1 %v6344_v34  ;;  %v6357_v34 = vld [vmem:[%s8670_s1 + $0xc40] ss:$16 sps:$4 sm:$0xff]  }
 0x14f   :  { %3961 = vmatpush1.bf16.msra.mxu0 %v6261_v35  ;;  %4438 = vmatpush1.bf16.msra.mxu1 %v6264_v36  ;;  %v6360_v35 = vld [vmem:[%s8670_s1 + $0xc48] ss:$16 sps:$4 sm:$0xff]   ;;  %v6365_v36 = vld [vmem:[%s8670_s1 + $0xc64] ss:$16 sps:$4 sm:$0xff]  }
 0x150   :  { %3962 = vmatprep.subr.bf16.mxu0 %v6269_v37  ;;  %4439 = vmatprep.subr.bf16.mxu1 %v6272_v38  ;;  %v6368_v37 = vld [vmem:[%s8670_s1 + $0xc6c] ss:$16 sps:$4 sm:$0xff]  }
 0x151   :  { %v6446_v38 = vld [vmem:[%s8674_s0 + $0x34] ss:$72 sps:$4 sm:$0xff]  }
 0x153   :  { %3963 = vmatpush1.bf16.msra.mxu0 %v6267_v39  ;;  %4440 = vmatpush1.bf16.msra.mxu1 %v6270_v40  ;;  %v6363_v39 = vld [vmem:[%s8670_s1 + $0xc60] ss:$16 sps:$4 sm:$0xff]   ;;  %v6366_v40 = vld [vmem:[%s8670_s1 + $0xc68] ss:$16 sps:$4 sm:$0xff]  }
 0x154   :  { %3964 = vmatprep.subr.bf16.mxu0 %v6275_v41  ;;  %4441 = vmatprep.subr.bf16.mxu1 %v6278_v42  ;;  %v6371_v41 = vld [vmem:[%s8670_s1 + $0xc84] ss:$16 sps:$4 sm:$0xff]   ;;  %v6374_v42 = vld [vmem:[%s8670_s1 + $0xc8c] ss:$16 sps:$4 sm:$0xff]  }
 0x157   :  { %3965 = vmatpush1.bf16.msra.mxu0 %v6273_v43  ;;  %4442 = vmatpush1.bf16.msra.mxu1 %v6276_v44  ;;  %v6369_v43 = vld [vmem:[%s8670_s1 + $0xc80] ss:$16 sps:$4 sm:$0xff]   ;;  %v6372_v44 = vld [vmem:[%s8670_s1 + $0xc88] ss:$16 sps:$4 sm:$0xff]  }
 0x158   :  { %3966 = vmatprep.subr.bf16.mxu0 %v6281_v45  ;;  %4443 = vmatprep.subr.bf16.mxu1 %v6284_v46  ;;  %v6377_v45 = vld [vmem:[%s8670_s1 + $0xca4] ss:$16 sps:$4 sm:$0xff]   ;;  %v6380_v46 = vld [vmem:[%s8670_s1 + $0xcac] ss:$16 sps:$4 sm:$0xff]  }
 0x15b   :  { %3967 = vmatpush1.bf16.msra.mxu0 %v6279_v47  ;;  %4444 = vmatpush1.bf16.msra.mxu1 %v6282_v48  ;;  %v6375_v47 = vld [vmem:[%s8670_s1 + $0xca0] ss:$16 sps:$4 sm:$0xff]   ;;  %v6378_v48 = vld [vmem:[%s8670_s1 + $0xca8] ss:$16 sps:$4 sm:$0xff]  }
 0x15c   :  { %3968 = vmatprep.subr.bf16.mxu0 %v6287_v49  ;;  %4445 = vmatprep.subr.bf16.mxu1 %v6290_v50  ;;  %v6383_v49 = vld [vmem:[%s8670_s1 + $0xcc4] ss:$16 sps:$4 sm:$0xff]   ;;  %v6386_v50 = vld [vmem:[%s8670_s1 + $0xccc] ss:$16 sps:$4 sm:$0xff]  }
 0x15f   :  { %3969 = vmatpush1.bf16.msra.mxu0 %v6285_v51  ;;  %4446 = vmatpush1.bf16.msra.mxu1 %v6288_v52  ;;  %v6381_v51 = vld [vmem:[%s8670_s1 + $0xcc0] ss:$16 sps:$4 sm:$0xff]   ;;  %v6384_v52 = vld [vmem:[%s8670_s1 + $0xcc8] ss:$16 sps:$4 sm:$0xff]  }
 0x160   :  { %3970 = vmatprep.subr.bf16.mxu0 %v6293_v53  ;;  %4447 = vmatprep.subr.bf16.mxu1 %v6296_v54  ;;  %v6389_v53 = vld [vmem:[%s8670_s1 + $0xce4] ss:$16 sps:$4 sm:$0xff]   ;;  %v6392_v54 = vld [vmem:[%s8670_s1 + $0xcec] ss:$16 sps:$4 sm:$0xff]  }
 0x163   :  { %3971 = vmatpush1.bf16.msra.mxu0 %v6291_v55  ;;  %4448 = vmatpush1.bf16.msra.mxu1 %v6294_v56  ;;  %v6387_v55 = vld [vmem:[%s8670_s1 + $0xce0] ss:$16 sps:$4 sm:$0xff]   ;;  %v6390_v56 = vld [vmem:[%s8670_s1 + $0xce8] ss:$16 sps:$4 sm:$0xff]  }
 0x164   :  { %3972 = vmatprep.subr.bf16.mxu0 %v6299_v57  ;;  %4449 = vmatprep.subr.bf16.mxu1 %v6302_v58  ;;  %v6395_v57 = vld [vmem:[%s8670_s1 + $0xd04] ss:$16 sps:$4 sm:$0xff]   ;;  %v6398_v58 = vld [vmem:[%s8670_s1 + $0xd0c] ss:$16 sps:$4 sm:$0xff]  }
 0x167   :  { %3973 = vmatpush1.bf16.msra.mxu0 %v6297_v59  ;;  %4450 = vmatpush1.bf16.msra.mxu1 %v6300_v60  ;;  %v6393_v59 = vld [vmem:[%s8670_s1 + $0xd00] ss:$16 sps:$4 sm:$0xff]   ;;  %v6396_v60 = vld [vmem:[%s8670_s1 + $0xd08] ss:$16 sps:$4 sm:$0xff]  }
 0x168   :  { %3974 = vmatprep.subr.bf16.mxu0 %v6305_v61  ;;  %4451 = vmatprep.subr.bf16.mxu1 %v6308_v62  ;;  %v6401_v61 = vld [vmem:[%s8670_s1 + $0xd24] ss:$16 sps:$4 sm:$0xff]   ;;  %v6404_v62 = vld [vmem:[%s8670_s1 + $0xd2c] ss:$16 sps:$4 sm:$0xff]  }
 0x16b   :  { %3975 = vmatpush1.bf16.msra.mxu0 %v6303_v63  ;;  %4452 = vmatpush1.bf16.msra.mxu1 %v6306_v0  ;;  %v6399_v63 = vld [vmem:[%s8670_s1 + $0xd20] ss:$16 sps:$4 sm:$0xff]   ;;  %v6402_v0 = vld [vmem:[%s8670_s1 + $0xd28] ss:$16 sps:$4 sm:$0xff]  }
 0x16c   :  { %3976 = vmatprep.subr.bf16.mxu0 %v6311_v1  ;;  %4453 = vmatprep.subr.bf16.mxu1 %v6314_v2  ;;  %v6407_v1 = vld [vmem:[%s8670_s1 + $0xd44] ss:$16 sps:$4 sm:$0xff]   ;;  %v6410_v2 = vld [vmem:[%s8670_s1 + $0xd4c] ss:$16 sps:$4 sm:$0xff]  }
 0x16f   :  { %3977 = vmatpush1.bf16.msra.mxu0 %v6309_v3  ;;  %4454 = vmatpush1.bf16.msra.mxu1 %v6312_v4  ;;  %v6405_v3 = vld [vmem:[%s8670_s1 + $0xd40] ss:$16 sps:$4 sm:$0xff]   ;;  %v6408_v4 = vld [vmem:[%s8670_s1 + $0xd48] ss:$16 sps:$4 sm:$0xff]  }
 0x170   :  { %3978 = vmatprep.subr.bf16.mxu0 %v6317_v5  ;;  %4455 = vmatprep.subr.bf16.mxu1 %v6320_v6  ;;  %v6413_v5 = vld [vmem:[%s8670_s1 + $0xd64] ss:$16 sps:$4 sm:$0xff]   ;;  %v6416_v6 = vld [vmem:[%s8670_s1 + $0xd6c] ss:$16 sps:$4 sm:$0xff]  }
 0x173   :  { %3979 = vmatpush1.bf16.msra.mxu0 %v6315_v7  ;;  %4456 = vmatpush1.bf16.msra.mxu1 %v6318_v8  ;;  %v6411_v7 = vld [vmem:[%s8670_s1 + $0xd60] ss:$16 sps:$4 sm:$0xff]   ;;  %v6414_v8 = vld [vmem:[%s8670_s1 + $0xd68] ss:$16 sps:$4 sm:$0xff]  }
 0x174   :  { %3980 = vmatprep.subr.bf16.mxu0 %v6323_v9  ;;  %4457 = vmatprep.subr.bf16.mxu1 %v6326_v10  ;;  %v6419_v9 = vld [vmem:[%s8670_s1 + $0xd84] ss:$16 sps:$4 sm:$0xff]   ;;  %v6422_v10 = vld [vmem:[%s8670_s1 + $0xd8c] ss:$16 sps:$4 sm:$0xff]  }
 0x177   :  { %3981 = vmatpush1.bf16.msra.mxu0 %v6321_v11  ;;  %4458 = vmatpush1.bf16.msra.mxu1 %v6324_v12  ;;  %v6417_v11 = vld [vmem:[%s8670_s1 + $0xd80] ss:$16 sps:$4 sm:$0xff]   ;;  %v6420_v12 = vld [vmem:[%s8670_s1 + $0xd88] ss:$16 sps:$4 sm:$0xff]  }
 0x178   :  { %3982 = vmatprep.subr.bf16.mxu0 %v6331_v13  ;;  %4459 = vmatprep.subr.bf16.mxu1 %v6334_v14  ;;  %v6425_v13 = vld [vmem:[%s8670_s1 + $0xda4] ss:$16 sps:$4 sm:$0xff]   ;;  %v6428_v14 = vld [vmem:[%s8670_s1 + $0xdac] ss:$16 sps:$4 sm:$0xff]  }
 0x17b   :  { %3983 = vmatpush1.bf16.msra.mxu0 %v6329_v15  ;;  %4460 = vmatpush1.bf16.msra.mxu1 %v6332_v16  ;;  %v6423_v15 = vld [vmem:[%s8670_s1 + $0xda0] ss:$16 sps:$4 sm:$0xff]   ;;  %v6426_v16 = vld [vmem:[%s8670_s1 + $0xda8] ss:$16 sps:$4 sm:$0xff]  }
 0x17c   :  { %3984 = vmatprep.subr.bf16.mxu0 %v6338_v17  ;;  %4461 = vmatprep.subr.bf16.mxu1 %v6341_v18  ;;  %v6433_v17 = vld [vmem:[%s8670_s1 + $0xdc4] ss:$16 sps:$4 sm:$0xff]   ;;  %v6436_v18 = vld [vmem:[%s8670_s1 + $0xdcc] ss:$16 sps:$4 sm:$0xff]  }
 0x17f   :  { %3985 = vmatpush1.bf16.msra.mxu0 %v6336_v19  ;;  %4462 = vmatpush1.bf16.msra.mxu1 %v6339_v20  ;;  %v6431_v19 = vld [vmem:[%s8670_s1 + $0xdc0] ss:$16 sps:$4 sm:$0xff]   ;;  %v6434_v20 = vld [vmem:[%s8670_s1 + $0xdc8] ss:$16 sps:$4 sm:$0xff]  }
 0x180   :  { %4007 = vmatprep.subr.bf16.mxu0 %v6347_v22  ;;  %4484 = vmatprep.subr.bf16.mxu1 %v6350_v23  ;;  %v6443_v22 = vld [vmem:[%s8670_s1 + $0xdec] ss:$16 sps:$4 sm:$0xff]   ;;  %v6438_v23 = vld [vmem:[%s8670_s1 + $0xde0] ss:$16 sps:$4 sm:$0xff]  }
 0x182   :  { %3987 = vmatmul.mubr.bf16.vlgmr.msra.gmra.mrb[0].mxu0 %v6342_v21  ;;  %4464 = vmatmul.mubr.bf16.vlgmr.msra.gmra.mrb[0].mxu1 %v6342_v21  ;;  %v6440_v21 = vld [vmem:[%s8670_s1 + $0xde4] ss:$16 sps:$4 sm:$0xff]  }
 0x183   :  { %4008 = vmatpush1.bf16.msra.mxu0 %v6345_v24  ;;  %4485 = vmatpush1.bf16.msra.mxu1 %v6348_v25  ;;  %v6441_v24 = vld [vmem:[%s8670_s1 + $0xde8] ss:$16 sps:$4 sm:$0xff]   ;;  %v6449_v25 = vld [vmem:[%s8670_s1 + $0xe04] ss:$16 sps:$4 sm:$0xff]  }
 0x184   :  { %4009 = vmatprep.subr.bf16.mxu0 %v6353_v26  ;;  %4486 = vmatprep.subr.bf16.mxu1 %v6356_v27  ;;  %v6452_v26 = vld [vmem:[%s8670_s1 + $0xe0c] ss:$16 sps:$4 sm:$0xff]   ;;  %v6444_v27 = vld [vmem:[%s8674_s0 + $0x30] ss:$72 sps:$4 sm:$0xff]  }
 0x185   :  { %3996 = vmatprep.mubr.bf16.mxu0 %v6429_v28  ;;  %4473 = vmatprep.mubr.bf16.mxu1 %v6429_v28  ;;  %v6447_v28 = vld [vmem:[%s8670_s1 + $0xe00] ss:$16 sps:$4 sm:$0xff]  }
 0x187   :  { %4010 = vmatpush1.bf16.msra.mxu0 %v6351_v29  ;;  %4487 = vmatpush1.bf16.msra.mxu1 %v6354_v30  ;;  %v6450_v29 = vld [vmem:[%s8670_s1 + $0xe08] ss:$16 sps:$4 sm:$0xff]   ;;  %v6455_v30 = vld [vmem:[%s8670_s1 + $0xe24] ss:$16 sps:$4 sm:$0xff]  }
 0x188   :  { %4011 = vmatprep.subr.bf16.mxu0 %v6359_v31  ;;  %4488 = vmatprep.subr.bf16.mxu1 %v6362_v32  ;;  %v6458_v31 = vld [vmem:[%s8670_s1 + $0xe2c] ss:$16 sps:$4 sm:$0xff]  }
 0x189   :  { %v6531_v32 = vld [vmem:[%s8674_s0 + $0xc4] ss:$72 sps:$4 sm:$0xff]  }
 0x18a   :  { %3997 = vmatmul.mubr.bf16.gmra.mrb[4].mxu0 %v6437_v33  ;;  %4474 = vmatmul.mubr.bf16.gmra.mrb[4].mxu1 %v6437_v33  ;;  %v6453_v33 = vld [vmem:[%s8670_s1 + $0xe20] ss:$16 sps:$4 sm:$0xff]  }
 0x18b   :  { %4012 = vmatpush1.bf16.msra.mxu0 %v6357_v34  ;;  %4489 = vmatpush1.bf16.msra.mxu1 %v6360_v35  ;;  %v6456_v34 = vld [vmem:[%s8670_s1 + $0xe28] ss:$16 sps:$4 sm:$0xff]   ;;  %v6461_v35 = vld [vmem:[%s8670_s1 + $0xe44] ss:$16 sps:$4 sm:$0xff]  }
 0x18c   :  { %4013 = vmatprep.subr.bf16.mxu0 %v6365_v36  ;;  %4490 = vmatprep.subr.bf16.mxu1 %v6368_v37  ;;  %v6464_v36 = vld [vmem:[%s8670_s1 + $0xe4c] ss:$16 sps:$4 sm:$0xff]   ;;  %v6539_v37 = vld [vmem:[%s8674_s0 + $0xc0] ss:$72 sps:$4 sm:$0xff]  }
 0x18d   :  { %4039 = vmatprep.mubr.bf16.mxu0 %v6446_v38  ;;  %4516 = vmatprep.mubr.bf16.mxu1 %v6446_v38  ;;  %v6459_v38 = vld [vmem:[%s8670_s1 + $0xe40] ss:$16 sps:$4 sm:$0xff]  }
 0x18f   :  { %4014 = vmatpush1.bf16.msra.mxu0 %v6363_v39  ;;  %4491 = vmatpush1.bf16.msra.mxu1 %v6366_v40  ;;  %v6462_v39 = vld [vmem:[%s8670_s1 + $0xe48] ss:$16 sps:$4 sm:$0xff]   ;;  %v6467_v40 = vld [vmem:[%s8670_s1 + $0xe64] ss:$16 sps:$4 sm:$0xff]  }
 0x190   :  { %4015 = vmatprep.subr.bf16.mxu0 %v6371_v41  ;;  %4492 = vmatprep.subr.bf16.mxu1 %v6374_v42  ;;  %v6470_v41 = vld [vmem:[%s8670_s1 + $0xe6c] ss:$16 sps:$4 sm:$0xff]  }
 0x191   :  { %v6548_v42 = vld [vmem:[%s8674_s0 + $0x3c] ss:$72 sps:$4 sm:$0xff]  }
 0x193   :  { %4016 = vmatpush1.bf16.msra.mxu0 %v6369_v43  ;;  %4493 = vmatpush1.bf16.msra.mxu1 %v6372_v44  ;;  %v6465_v43 = vld [vmem:[%s8670_s1 + $0xe60] ss:$16 sps:$4 sm:$0xff]   ;;  %v6468_v44 = vld [vmem:[%s8670_s1 + $0xe68] ss:$16 sps:$4 sm:$0xff]  }
 0x194   :  { %4017 = vmatprep.subr.bf16.mxu0 %v6377_v45  ;;  %4494 = vmatprep.subr.bf16.mxu1 %v6380_v46  ;;  %v6473_v45 = vld [vmem:[%s8670_s1 + $0xe84] ss:$16 sps:$4 sm:$0xff]   ;;  %v6476_v46 = vld [vmem:[%s8670_s1 + $0xe8c] ss:$16 sps:$4 sm:$0xff]  }
 0x197   :  { %4018 = vmatpush1.bf16.msra.mxu0 %v6375_v47  ;;  %4495 = vmatpush1.bf16.msra.mxu1 %v6378_v48  ;;  %v6471_v47 = vld [vmem:[%s8670_s1 + $0xe80] ss:$16 sps:$4 sm:$0xff]   ;;  %v6474_v48 = vld [vmem:[%s8670_s1 + $0xe88] ss:$16 sps:$4 sm:$0xff]  }
 0x198   :  { %4019 = vmatprep.subr.bf16.mxu0 %v6383_v49  ;;  %4496 = vmatprep.subr.bf16.mxu1 %v6386_v50  ;;  %v6479_v49 = vld [vmem:[%s8670_s1 + $0xea4] ss:$16 sps:$4 sm:$0xff]   ;;  %v6482_v50 = vld [vmem:[%s8670_s1 + $0xeac] ss:$16 sps:$4 sm:$0xff]  }
 0x19b   :  { %4020 = vmatpush1.bf16.msra.mxu0 %v6381_v51  ;;  %4497 = vmatpush1.bf16.msra.mxu1 %v6384_v52  ;;  %v6477_v51 = vld [vmem:[%s8670_s1 + $0xea0] ss:$16 sps:$4 sm:$0xff]   ;;  %v6480_v52 = vld [vmem:[%s8670_s1 + $0xea8] ss:$16 sps:$4 sm:$0xff]  }
 0x19c   :  { %4021 = vmatprep.subr.bf16.mxu0 %v6389_v53  ;;  %4498 = vmatprep.subr.bf16.mxu1 %v6392_v54  ;;  %v6485_v53 = vld [vmem:[%s8670_s1 + $0xec4] ss:$16 sps:$4 sm:$0xff]   ;;  %v6488_v54 = vld [vmem:[%s8670_s1 + $0xecc] ss:$16 sps:$4 sm:$0xff]  }
 0x19f   :  { %4022 = vmatpush1.bf16.msra.mxu0 %v6387_v55  ;;  %4499 = vmatpush1.bf16.msra.mxu1 %v6390_v56  ;;  %v6483_v55 = vld [vmem:[%s8670_s1 + $0xec0] ss:$16 sps:$4 sm:$0xff]   ;;  %v6486_v56 = vld [vmem:[%s8670_s1 + $0xec8] ss:$16 sps:$4 sm:$0xff]  }
 0x1a0   :  { %4023 = vmatprep.subr.bf16.mxu0 %v6395_v57  ;;  %4500 = vmatprep.subr.bf16.mxu1 %v6398_v58  ;;  %v6491_v57 = vld [vmem:[%s8670_s1 + $0xee4] ss:$16 sps:$4 sm:$0xff]   ;;  %v6494_v58 = vld [vmem:[%s8670_s1 + $0xeec] ss:$16 sps:$4 sm:$0xff]  }
 0x1a3   :  { %4024 = vmatpush1.bf16.msra.mxu0 %v6393_v59  ;;  %4501 = vmatpush1.bf16.msra.mxu1 %v6396_v60  ;;  %v6489_v59 = vld [vmem:[%s8670_s1 + $0xee0] ss:$16 sps:$4 sm:$0xff]   ;;  %v6492_v60 = vld [vmem:[%s8670_s1 + $0xee8] ss:$16 sps:$4 sm:$0xff]  }
 0x1a4   :  { %4025 = vmatprep.subr.bf16.mxu0 %v6401_v61  ;;  %4502 = vmatprep.subr.bf16.mxu1 %v6404_v62  ;;  %v6497_v61 = vld [vmem:[%s8670_s1 + $0xf04] ss:$16 sps:$4 sm:$0xff]   ;;  %v6500_v62 = vld [vmem:[%s8670_s1 + $0xf0c] ss:$16 sps:$4 sm:$0xff]  }
 0x1a7   :  { %4026 = vmatpush1.bf16.msra.mxu0 %v6399_v63  ;;  %4503 = vmatpush1.bf16.msra.mxu1 %v6402_v0  ;;  %v6495_v63 = vld [vmem:[%s8670_s1 + $0xf00] ss:$16 sps:$4 sm:$0xff]   ;;  %v6498_v0 = vld [vmem:[%s8670_s1 + $0xf08] ss:$16 sps:$4 sm:$0xff]  }
 0x1a8   :  { %4027 = vmatprep.subr.bf16.mxu0 %v6407_v1  ;;  %4504 = vmatprep.subr.bf16.mxu1 %v6410_v2  ;;  %v6503_v1 = vld [vmem:[%s8670_s1 + $0xf24] ss:$16 sps:$4 sm:$0xff]   ;;  %v6506_v2 = vld [vmem:[%s8670_s1 + $0xf2c] ss:$16 sps:$4 sm:$0xff]  }
 0x1ab   :  { %4028 = vmatpush1.bf16.msra.mxu0 %v6405_v3  ;;  %4505 = vmatpush1.bf16.msra.mxu1 %v6408_v4  ;;  %v6501_v3 = vld [vmem:[%s8670_s1 + $0xf20] ss:$16 sps:$4 sm:$0xff]   ;;  %v6504_v4 = vld [vmem:[%s8670_s1 + $0xf28] ss:$16 sps:$4 sm:$0xff]  }
 0x1ac   :  { %4029 = vmatprep.subr.bf16.mxu0 %v6413_v5  ;;  %4506 = vmatprep.subr.bf16.mxu1 %v6416_v6  ;;  %v6509_v5 = vld [vmem:[%s8670_s1 + $0xf44] ss:$16 sps:$4 sm:$0xff]   ;;  %v6512_v6 = vld [vmem:[%s8670_s1 + $0xf4c] ss:$16 sps:$4 sm:$0xff]  }
 0x1af   :  { %4030 = vmatpush1.bf16.msra.mxu0 %v6411_v7  ;;  %4507 = vmatpush1.bf16.msra.mxu1 %v6414_v8  ;;  %v6507_v7 = vld [vmem:[%s8670_s1 + $0xf40] ss:$16 sps:$4 sm:$0xff]   ;;  %v6510_v8 = vld [vmem:[%s8670_s1 + $0xf48] ss:$16 sps:$4 sm:$0xff]  }
 0x1b0   :  { %4031 = vmatprep.subr.bf16.mxu0 %v6419_v9  ;;  %4508 = vmatprep.subr.bf16.mxu1 %v6422_v10  ;;  %v6515_v9 = vld [vmem:[%s8670_s1 + $0xf64] ss:$16 sps:$4 sm:$0xff]   ;;  %v6518_v10 = vld [vmem:[%s8670_s1 + $0xf6c] ss:$16 sps:$4 sm:$0xff]  }
 0x1b3   :  { %4032 = vmatpush1.bf16.msra.mxu0 %v6417_v11  ;;  %4509 = vmatpush1.bf16.msra.mxu1 %v6420_v12  ;;  %v6513_v11 = vld [vmem:[%s8670_s1 + $0xf60] ss:$16 sps:$4 sm:$0xff]   ;;  %v6516_v12 = vld [vmem:[%s8670_s1 + $0xf68] ss:$16 sps:$4 sm:$0xff]  }
 0x1b4   :  { %4033 = vmatprep.subr.bf16.mxu0 %v6425_v13  ;;  %4510 = vmatprep.subr.bf16.mxu1 %v6428_v14  ;;  %v6521_v13 = vld [vmem:[%s8670_s1 + $0xf84] ss:$16 sps:$4 sm:$0xff]   ;;  %v6524_v14 = vld [vmem:[%s8670_s1 + $0xf8c] ss:$16 sps:$4 sm:$0xff]  }
 0x1b7   :  { %4034 = vmatpush1.bf16.msra.mxu0 %v6423_v15  ;;  %4511 = vmatpush1.bf16.msra.mxu1 %v6426_v16  ;;  %v6519_v15 = vld [vmem:[%s8670_s1 + $0xf80] ss:$16 sps:$4 sm:$0xff]   ;;  %v6522_v16 = vld [vmem:[%s8670_s1 + $0xf88] ss:$16 sps:$4 sm:$0xff]  }
 0x1b8   :  { %4035 = vmatprep.subr.bf16.mxu0 %v6433_v17  ;;  %4512 = vmatprep.subr.bf16.mxu1 %v6436_v18  ;;  %v6527_v17 = vld [vmem:[%s8670_s1 + $0xfa4] ss:$16 sps:$4 sm:$0xff]   ;;  %v6530_v18 = vld [vmem:[%s8670_s1 + $0xfac] ss:$16 sps:$4 sm:$0xff]  }
 0x1bb   :  { %4036 = vmatpush1.bf16.msra.mxu0 %v6431_v19  ;;  %4513 = vmatpush1.bf16.msra.mxu1 %v6434_v20  ;;  %v6525_v19 = vld [vmem:[%s8670_s1 + $0xfa0] ss:$16 sps:$4 sm:$0xff]   ;;  %v6528_v20 = vld [vmem:[%s8670_s1 + $0xfa8] ss:$16 sps:$4 sm:$0xff]  }
 0x1bc   :  { %4037 = vmatprep.subr.bf16.mxu0 %v6440_v21  ;;  %4514 = vmatprep.subr.bf16.mxu1 %v6443_v22  ;;  %v6535_v21 = vld [vmem:[%s8670_s1 + $0xfc4] ss:$16 sps:$4 sm:$0xff]   ;;  %v6538_v22 = vld [vmem:[%s8670_s1 + $0xfcc] ss:$16 sps:$4 sm:$0xff]  }
 0x1bf   :  { %4038 = vmatpush1.bf16.msra.mxu0 %v6438_v23  ;;  %4515 = vmatpush1.bf16.msra.mxu1 %v6441_v24  ;;  %v6533_v23 = vld [vmem:[%s8670_s1 + $0xfc0] ss:$16 sps:$4 sm:$0xff]   ;;  %v6536_v24 = vld [vmem:[%s8670_s1 + $0xfc8] ss:$16 sps:$4 sm:$0xff]  }
 0x1c0   :  { %4060 = vmatprep.subr.bf16.mxu0 %v6449_v25  ;;  %4537 = vmatprep.subr.bf16.mxu1 %v6452_v26  ;;  %v6542_v25 = vld [vmem:[%s8670_s1 + $0xfe4] ss:$16 sps:$4 sm:$0xff]   ;;  %v6545_v26 = vld [vmem:[%s8670_s1 + $0xfec] ss:$16 sps:$4 sm:$0xff]  }
 0x1c2   :  { %4040 = vmatmul.mubr.bf16.vlgmr.msra.gmra.mrb[0].mxu0 %v6444_v27  ;;  %4517 = vmatmul.mubr.bf16.vlgmr.msra.gmra.mrb[0].mxu1 %v6444_v27  ;;  %v6540_v27 = vld [vmem:[%s8670_s1 + $0xfe0] ss:$16 sps:$4 sm:$0xff]  }
 0x1c3   :  { %4061 = vmatpush1.bf16.msra.mxu0 %v6447_v28  ;;  %4538 = vmatpush1.bf16.msra.mxu1 %v6450_v29  ;;  %v6543_v28 = vld [vmem:[%s8670_s1 + $0xfe8] ss:$16 sps:$4 sm:$0xff]   ;;  %v6551_v29 = vld [vmem:[%s8670_s1 + $0x1004] ss:$16 sps:$4 sm:$0xff]  }
 0x1c4   :  { %4062 = vmatprep.subr.bf16.mxu0 %v6455_v30  ;;  %4539 = vmatprep.subr.bf16.mxu1 %v6458_v31  ;;  %v6554_v30 = vld [vmem:[%s8670_s1 + $0x100c] ss:$16 sps:$4 sm:$0xff]   ;;  %v6546_v31 = vld [vmem:[%s8674_s0 + $0x38] ss:$72 sps:$4 sm:$0xff]  }
 0x1c5   :  { %4049 = vmatprep.mubr.bf16.mxu0 %v6531_v32  ;;  %4526 = vmatprep.mubr.bf16.mxu1 %v6531_v32  ;;  %v6549_v32 = vld [vmem:[%s8670_s1 + $0x1000] ss:$16 sps:$4 sm:$0xff]  }
 0x1c7   :  { %4063 = vmatpush1.bf16.msra.mxu0 %v6453_v33  ;;  %4540 = vmatpush1.bf16.msra.mxu1 %v6456_v34  ;;  %v6552_v33 = vld [vmem:[%s8670_s1 + $0x1008] ss:$16 sps:$4 sm:$0xff]   ;;  %v6557_v34 = vld [vmem:[%s8670_s1 + $0x1024] ss:$16 sps:$4 sm:$0xff]  }
 0x1c8   :  { %4064 = vmatprep.subr.bf16.mxu0 %v6461_v35  ;;  %4541 = vmatprep.subr.bf16.mxu1 %v6464_v36  ;;  %v6560_v35 = vld [vmem:[%s8670_s1 + $0x102c] ss:$16 sps:$4 sm:$0xff]  }
 0x1c9   :  { %v6633_v36 = vld [vmem:[%s8674_s0 + $0xcc] ss:$72 sps:$4 sm:$0xff]  }
 0x1ca   :  { %4050 = vmatmul.mubr.bf16.gmra.mrb[4].mxu0 %v6539_v37  ;;  %4527 = vmatmul.mubr.bf16.gmra.mrb[4].mxu1 %v6539_v37  ;;  %v6555_v37 = vld [vmem:[%s8670_s1 + $0x1020] ss:$16 sps:$4 sm:$0xff]  }
 0x1cb   :  { %4065 = vmatpush1.bf16.msra.mxu0 %v6459_v38  ;;  %4542 = vmatpush1.bf16.msra.mxu1 %v6462_v39  ;;  %v6558_v38 = vld [vmem:[%s8670_s1 + $0x1028] ss:$16 sps:$4 sm:$0xff]   ;;  %v6563_v39 = vld [vmem:[%s8670_s1 + $0x1044] ss:$16 sps:$4 sm:$0xff]  }
 0x1cc   :  { %4066 = vmatprep.subr.bf16.mxu0 %v6467_v40  ;;  %4543 = vmatprep.subr.bf16.mxu1 %v6470_v41  ;;  %v6566_v40 = vld [vmem:[%s8670_s1 + $0x104c] ss:$16 sps:$4 sm:$0xff]   ;;  %v6635_v41 = vld [vmem:[%s8674_s0 + $0xc8] ss:$72 sps:$4 sm:$0xff]  }
 0x1cd   :  { %4092 = vmatprep.mubr.bf16.mxu0 %v6548_v42  ;;  %4569 = vmatprep.mubr.bf16.mxu1 %v6548_v42  ;;  %v6561_v42 = vld [vmem:[%s8670_s1 + $0x1040] ss:$16 sps:$4 sm:$0xff]  }
 0x1cf   :  { %4067 = vmatpush1.bf16.msra.mxu0 %v6465_v43  ;;  %4544 = vmatpush1.bf16.msra.mxu1 %v6468_v44  ;;  %v6564_v43 = vld [vmem:[%s8670_s1 + $0x1048] ss:$16 sps:$4 sm:$0xff]   ;;  %v6569_v44 = vld [vmem:[%s8670_s1 + $0x1064] ss:$16 sps:$4 sm:$0xff]  }
 0x1d0   :  { %4068 = vmatprep.subr.bf16.mxu0 %v6473_v45  ;;  %4545 = vmatprep.subr.bf16.mxu1 %v6476_v46  ;;  %v6572_v45 = vld [vmem:[%s8670_s1 + $0x106c] ss:$16 sps:$4 sm:$0xff]  }
 0x1d1   :  { %v6650_v46 = vld [vmem:[%s8674_s0 + $0x44] ss:$72 sps:$4 sm:$0xff]  }
 0x1d3   :  { %4069 = vmatpush1.bf16.msra.mxu0 %v6471_v47  ;;  %4546 = vmatpush1.bf16.msra.mxu1 %v6474_v48  ;;  %v6567_v47 = vld [vmem:[%s8670_s1 + $0x1060] ss:$16 sps:$4 sm:$0xff]   ;;  %v6570_v48 = vld [vmem:[%s8670_s1 + $0x1068] ss:$16 sps:$4 sm:$0xff]  }
 0x1d4   :  { %4070 = vmatprep.subr.bf16.mxu0 %v6479_v49  ;;  %4547 = vmatprep.subr.bf16.mxu1 %v6482_v50  ;;  %v6575_v49 = vld [vmem:[%s8670_s1 + $0x1084] ss:$16 sps:$4 sm:$0xff]   ;;  %v6578_v50 = vld [vmem:[%s8670_s1 + $0x108c] ss:$16 sps:$4 sm:$0xff]  }
 0x1d7   :  { %4071 = vmatpush1.bf16.msra.mxu0 %v6477_v51  ;;  %4548 = vmatpush1.bf16.msra.mxu1 %v6480_v52  ;;  %v6573_v51 = vld [vmem:[%s8670_s1 + $0x1080] ss:$16 sps:$4 sm:$0xff]   ;;  %v6576_v52 = vld [vmem:[%s8670_s1 + $0x1088] ss:$16 sps:$4 sm:$0xff]  }
 0x1d8   :  { %4072 = vmatprep.subr.bf16.mxu0 %v6485_v53  ;;  %4549 = vmatprep.subr.bf16.mxu1 %v6488_v54  ;;  %v6581_v53 = vld [vmem:[%s8670_s1 + $0x10a4] ss:$16 sps:$4 sm:$0xff]   ;;  %v6584_v54 = vld [vmem:[%s8670_s1 + $0x10ac] ss:$16 sps:$4 sm:$0xff]  }
 0x1db   :  { %4073 = vmatpush1.bf16.msra.mxu0 %v6483_v55  ;;  %4550 = vmatpush1.bf16.msra.mxu1 %v6486_v56  ;;  %v6579_v55 = vld [vmem:[%s8670_s1 + $0x10a0] ss:$16 sps:$4 sm:$0xff]   ;;  %v6582_v56 = vld [vmem:[%s8670_s1 + $0x10a8] ss:$16 sps:$4 sm:$0xff]  }
 0x1dc   :  { %4074 = vmatprep.subr.bf16.mxu0 %v6491_v57  ;;  %4551 = vmatprep.subr.bf16.mxu1 %v6494_v58  ;;  %v6587_v57 = vld [vmem:[%s8670_s1 + $0x10c4] ss:$16 sps:$4 sm:$0xff]   ;;  %v6590_v58 = vld [vmem:[%s8670_s1 + $0x10cc] ss:$16 sps:$4 sm:$0xff]  }
 0x1df   :  { %4075 = vmatpush1.bf16.msra.mxu0 %v6489_v59  ;;  %4552 = vmatpush1.bf16.msra.mxu1 %v6492_v60  ;;  %v6585_v59 = vld [vmem:[%s8670_s1 + $0x10c0] ss:$16 sps:$4 sm:$0xff]   ;;  %v6588_v60 = vld [vmem:[%s8670_s1 + $0x10c8] ss:$16 sps:$4 sm:$0xff]  }
 0x1e0   :  { %4076 = vmatprep.subr.bf16.mxu0 %v6497_v61  ;;  %4553 = vmatprep.subr.bf16.mxu1 %v6500_v62  ;;  %v6593_v61 = vld [vmem:[%s8670_s1 + $0x10e4] ss:$16 sps:$4 sm:$0xff]   ;;  %v6596_v62 = vld [vmem:[%s8670_s1 + $0x10ec] ss:$16 sps:$4 sm:$0xff]  }
 0x1e3   :  { %4077 = vmatpush1.bf16.msra.mxu0 %v6495_v63  ;;  %4554 = vmatpush1.bf16.msra.mxu1 %v6498_v0  ;;  %v6591_v63 = vld [vmem:[%s8670_s1 + $0x10e0] ss:$16 sps:$4 sm:$0xff]   ;;  %v6594_v0 = vld [vmem:[%s8670_s1 + $0x10e8] ss:$16 sps:$4 sm:$0xff]  }
 0x1e4   :  { %4078 = vmatprep.subr.bf16.mxu0 %v6503_v1  ;;  %4555 = vmatprep.subr.bf16.mxu1 %v6506_v2  ;;  %v6599_v1 = vld [vmem:[%s8670_s1 + $0x1104] ss:$16 sps:$4 sm:$0xff]   ;;  %v6602_v2 = vld [vmem:[%s8670_s1 + $0x110c] ss:$16 sps:$4 sm:$0xff]  }
 0x1e7   :  { %4079 = vmatpush1.bf16.msra.mxu0 %v6501_v3  ;;  %4556 = vmatpush1.bf16.msra.mxu1 %v6504_v4  ;;  %v6597_v3 = vld [vmem:[%s8670_s1 + $0x1100] ss:$16 sps:$4 sm:$0xff]   ;;  %v6600_v4 = vld [vmem:[%s8670_s1 + $0x1108] ss:$16 sps:$4 sm:$0xff]  }
 0x1e8   :  { %4080 = vmatprep.subr.bf16.mxu0 %v6509_v5  ;;  %4557 = vmatprep.subr.bf16.mxu1 %v6512_v6  ;;  %v6605_v5 = vld [vmem:[%s8670_s1 + $0x1124] ss:$16 sps:$4 sm:$0xff]   ;;  %v6608_v6 = vld [vmem:[%s8670_s1 + $0x112c] ss:$16 sps:$4 sm:$0xff]  }
 0x1eb   :  { %4081 = vmatpush1.bf16.msra.mxu0 %v6507_v7  ;;  %4558 = vmatpush1.bf16.msra.mxu1 %v6510_v8  ;;  %v6603_v7 = vld [vmem:[%s8670_s1 + $0x1120] ss:$16 sps:$4 sm:$0xff]   ;;  %v6606_v8 = vld [vmem:[%s8670_s1 + $0x1128] ss:$16 sps:$4 sm:$0xff]  }
 0x1ec   :  { %4082 = vmatprep.subr.bf16.mxu0 %v6515_v9  ;;  %4559 = vmatprep.subr.bf16.mxu1 %v6518_v10  ;;  %v6611_v9 = vld [vmem:[%s8670_s1 + $0x1144] ss:$16 sps:$4 sm:$0xff]   ;;  %v6614_v10 = vld [vmem:[%s8670_s1 + $0x114c] ss:$16 sps:$4 sm:$0xff]  }
 0x1ef   :  { %4083 = vmatpush1.bf16.msra.mxu0 %v6513_v11  ;;  %4560 = vmatpush1.bf16.msra.mxu1 %v6516_v12  ;;  %v6609_v11 = vld [vmem:[%s8670_s1 + $0x1140] ss:$16 sps:$4 sm:$0xff]   ;;  %v6612_v12 = vld [vmem:[%s8670_s1 + $0x1148] ss:$16 sps:$4 sm:$0xff]  }
 0x1f0   :  { %4084 = vmatprep.subr.bf16.mxu0 %v6521_v13  ;;  %4561 = vmatprep.subr.bf16.mxu1 %v6524_v14  ;;  %v6617_v13 = vld [vmem:[%s8670_s1 + $0x1164] ss:$16 sps:$4 sm:$0xff]   ;;  %v6620_v14 = vld [vmem:[%s8670_s1 + $0x116c] ss:$16 sps:$4 sm:$0xff]  }
 0x1f3   :  { %4085 = vmatpush1.bf16.msra.mxu0 %v6519_v15  ;;  %4562 = vmatpush1.bf16.msra.mxu1 %v6522_v16  ;;  %v6615_v15 = vld [vmem:[%s8670_s1 + $0x1160] ss:$16 sps:$4 sm:$0xff]   ;;  %v6618_v16 = vld [vmem:[%s8670_s1 + $0x1168] ss:$16 sps:$4 sm:$0xff]  }
 0x1f4   :  { %4086 = vmatprep.subr.bf16.mxu0 %v6527_v17  ;;  %4563 = vmatprep.subr.bf16.mxu1 %v6530_v18  ;;  %v6623_v17 = vld [vmem:[%s8670_s1 + $0x1184] ss:$16 sps:$4 sm:$0xff]   ;;  %v6626_v18 = vld [vmem:[%s8670_s1 + $0x118c] ss:$16 sps:$4 sm:$0xff]  }
 0x1f7   :  { %4087 = vmatpush1.bf16.msra.mxu0 %v6525_v19  ;;  %4564 = vmatpush1.bf16.msra.mxu1 %v6528_v20  ;;  %v6621_v19 = vld [vmem:[%s8670_s1 + $0x1180] ss:$16 sps:$4 sm:$0xff]   ;;  %v6624_v20 = vld [vmem:[%s8670_s1 + $0x1188] ss:$16 sps:$4 sm:$0xff]  }
 0x1f8   :  { %4088 = vmatprep.subr.bf16.mxu0 %v6535_v21  ;;  %4565 = vmatprep.subr.bf16.mxu1 %v6538_v22  ;;  %v6629_v21 = vld [vmem:[%s8670_s1 + $0x11a4] ss:$16 sps:$4 sm:$0xff]   ;;  %v6632_v22 = vld [vmem:[%s8670_s1 + $0x11ac] ss:$16 sps:$4 sm:$0xff]  }
 0x1fb   :  { %4089 = vmatpush1.bf16.msra.mxu0 %v6533_v23  ;;  %4566 = vmatpush1.bf16.msra.mxu1 %v6536_v24  ;;  %v6627_v23 = vld [vmem:[%s8670_s1 + $0x11a0] ss:$16 sps:$4 sm:$0xff]   ;;  %v6630_v24 = vld [vmem:[%s8670_s1 + $0x11a8] ss:$16 sps:$4 sm:$0xff]  }
 0x1fc   :  { %4090 = vmatprep.subr.bf16.mxu0 %v6542_v25  ;;  %4567 = vmatprep.subr.bf16.mxu1 %v6545_v26  ;;  %v6638_v25 = vld [vmem:[%s8670_s1 + $0x11c4] ss:$16 sps:$4 sm:$0xff]   ;;  %v6641_v26 = vld [vmem:[%s8670_s1 + $0x11cc] ss:$16 sps:$4 sm:$0xff]  }
 0x1ff   :  { %4091 = vmatpush1.bf16.msra.mxu0 %v6540_v27  ;;  %4568 = vmatpush1.bf16.msra.mxu1 %v6543_v28  ;;  %v6636_v27 = vld [vmem:[%s8670_s1 + $0x11c0] ss:$16 sps:$4 sm:$0xff]   ;;  %v6639_v28 = vld [vmem:[%s8670_s1 + $0x11c8] ss:$16 sps:$4 sm:$0xff]  }
 0x200   :  { %4113 = vmatprep.subr.bf16.mxu0 %v6551_v29  ;;  %4590 = vmatprep.subr.bf16.mxu1 %v6554_v30  ;;  %v6644_v29 = vld [vmem:[%s8670_s1 + $0x11e4] ss:$16 sps:$4 sm:$0xff]   ;;  %v6647_v30 = vld [vmem:[%s8670_s1 + $0x11ec] ss:$16 sps:$4 sm:$0xff]  }
 0x202   :  { %4093 = vmatmul.mubr.bf16.vlgmr.msra.gmra.mrb[0].mxu0 %v6546_v31  ;;  %4570 = vmatmul.mubr.bf16.vlgmr.msra.gmra.mrb[0].mxu1 %v6546_v31  ;;  %v6642_v31 = vld [vmem:[%s8670_s1 + $0x11e0] ss:$16 sps:$4 sm:$0xff]  }
 0x203   :  { %4114 = vmatpush1.bf16.msra.mxu0 %v6549_v32  ;;  %4591 = vmatpush1.bf16.msra.mxu1 %v6552_v33  ;;  %v6645_v32 = vld [vmem:[%s8670_s1 + $0x11e8] ss:$16 sps:$4 sm:$0xff]  }
 0x204   :  { %4115 = vmatprep.subr.bf16.mxu0 %v6557_v34  ;;  %4592 = vmatprep.subr.bf16.mxu1 %v6560_v35  ;;  %v6648_v33 = vld [vmem:[%s8674_s0 + $0x40] ss:$72 sps:$4 sm:$0xff]   ;;  %v6651_v34 = vld [vmem:[%s8674_s0 + $0xd4] ss:$72 sps:$4 sm:$0xff]   ;;  %v6653_v35 = vld [vmem:[%s8674_s0 + $0xd0] ss:$72 sps:$4 sm:$0xff]  }
 0x205   :  { %4102 = vmatprep.mubr.bf16.mxu0 %v6633_v36  ;;  %4579 = vmatprep.mubr.bf16.mxu1 %v6633_v36  ;;  %s8605_s0 = smov 0  }
 0x207   :  { %4116 = vmatpush1.bf16.msra.mxu0 %v6555_v37  ;;  %4593 = vmatpush1.bf16.msra.mxu1 %v6558_v38 }
 0x208   :  { %4117 = vmatprep.subr.bf16.mxu0 %v6563_v39  ;;  %4594 = vmatprep.subr.bf16.mxu1 %v6566_v40 }
 0x20a   :  { %4103 = vmatmul.mubr.bf16.gmra.mrb[4].mxu0 %v6635_v41  ;;  %4580 = vmatmul.mubr.bf16.gmra.mrb[4].mxu1 %v6635_v41 }
 0x20b   :  { %4118 = vmatpush1.bf16.msra.mxu0 %v6561_v42  ;;  %4595 = vmatpush1.bf16.msra.mxu1 %v6564_v43 }
 0x20c   :  { %4119 = vmatprep.subr.bf16.mxu0 %v6569_v44  ;;  %4596 = vmatprep.subr.bf16.mxu1 %v6572_v45 }
 0x20d   :  { %4145 = vmatprep.mubr.bf16.mxu0 %v6650_v46  ;;  %4622 = vmatprep.mubr.bf16.mxu1 %v6650_v46 }
 0x20f   :  { %4120 = vmatpush1.bf16.msra.mxu0 %v6567_v47  ;;  %4597 = vmatpush1.bf16.msra.mxu1 %v6570_v48 }
 0x210   :  { %4121 = vmatprep.subr.bf16.mxu0 %v6575_v49  ;;  %4598 = vmatprep.subr.bf16.mxu1 %v6578_v50 }
 0x213   :  { %4122 = vmatpush1.bf16.msra.mxu0 %v6573_v51  ;;  %4599 = vmatpush1.bf16.msra.mxu1 %v6576_v52  ;;  %v6700_v52 = vmov 0.0  }
 0x214   :  { %4123 = vmatprep.subr.bf16.mxu0 %v6581_v53  ;;  %4600 = vmatprep.subr.bf16.mxu1 %v6584_v54  ;;  %v6704_v53 = vmov 0.0   ;;  %v6708_v54 = vmov 0.0  }
 0x217   :  { %4124 = vmatpush1.bf16.msra.mxu0 %v6579_v55  ;;  %4601 = vmatpush1.bf16.msra.mxu1 %v6582_v56  ;;  %v6712_v55 = vmov 0.0  }
 0x218   :  { %4125 = vmatprep.subr.bf16.mxu0 %v6587_v57  ;;  %4602 = vmatprep.subr.bf16.mxu1 %v6590_v58 }
 0x21b   :  { %4126 = vmatpush1.bf16.msra.mxu0 %v6585_v59  ;;  %4603 = vmatpush1.bf16.msra.mxu1 %v6588_v60 }
 0x21c   :  { %4127 = vmatprep.subr.bf16.mxu0 %v6593_v61  ;;  %4604 = vmatprep.subr.bf16.mxu1 %v6596_v62 }
 0x21f   :  { %4128 = vmatpush1.bf16.msra.mxu0 %v6591_v63  ;;  %4605 = vmatpush1.bf16.msra.mxu1 %v6594_v0 }
 0x220   :  { %4129 = vmatprep.subr.bf16.mxu0 %v6599_v1  ;;  %4606 = vmatprep.subr.bf16.mxu1 %v6602_v2 }
 0x223   :  { %4130 = vmatpush1.bf16.msra.mxu0 %v6597_v3  ;;  %4607 = vmatpush1.bf16.msra.mxu1 %v6600_v4 }
 0x224   :  { %4131 = vmatprep.subr.bf16.mxu0 %v6605_v5  ;;  %4608 = vmatprep.subr.bf16.mxu1 %v6608_v6 }
 0x227   :  { %4132 = vmatpush1.bf16.msra.mxu0 %v6603_v7  ;;  %4609 = vmatpush1.bf16.msra.mxu1 %v6606_v8 }
 0x228   :  { %4133 = vmatprep.subr.bf16.mxu0 %v6611_v9  ;;  %4610 = vmatprep.subr.bf16.mxu1 %v6614_v10 }
 0x22b   :  { %4134 = vmatpush1.bf16.msra.mxu0 %v6609_v11  ;;  %4611 = vmatpush1.bf16.msra.mxu1 %v6612_v12 }
 0x22c   :  { %4135 = vmatprep.subr.bf16.mxu0 %v6617_v13  ;;  %4612 = vmatprep.subr.bf16.mxu1 %v6620_v14 }
 0x22f   :  { %4136 = vmatpush1.bf16.msra.mxu0 %v6615_v15  ;;  %4613 = vmatpush1.bf16.msra.mxu1 %v6618_v16 }
 0x230   :  { %4137 = vmatprep.subr.bf16.mxu0 %v6623_v17  ;;  %4614 = vmatprep.subr.bf16.mxu1 %v6626_v18 }
 0x233   :  { %4138 = vmatpush1.bf16.msra.mxu0 %v6621_v19  ;;  %4615 = vmatpush1.bf16.msra.mxu1 %v6624_v20 }
 0x234   :  { %4139 = vmatprep.subr.bf16.mxu0 %v6629_v21  ;;  %4616 = vmatprep.subr.bf16.mxu1 %v6632_v22 }
 0x237   :  { %4140 = vmatpush1.bf16.msra.mxu0 %v6627_v23  ;;  %4617 = vmatpush1.bf16.msra.mxu1 %v6630_v24 }
 0x238   :  { %4141 = vmatprep.subr.bf16.mxu0 %v6638_v25  ;;  %4618 = vmatprep.subr.bf16.mxu1 %v6641_v26 }
 0x23b   :  { %4142 = vmatpush1.bf16.msra.mxu0 %v6636_v27  ;;  %4619 = vmatpush1.bf16.msra.mxu1 %v6639_v28 }
 0x23c   :  { %4143 = vmatprep.subr.bf16.mxu0 %v6644_v29  ;;  %4620 = vmatprep.subr.bf16.mxu1 %v6647_v30 }
 0x23f   :  { %4144 = vmatpush1.bf16.msra.mxu0 %v6642_v31  ;;  %4621 = vmatpush1.bf16.msra.mxu1 %v6645_v32 }
 0x242   :  { %4146 = vmatmul.mubr.bf16.vlgmr.msra.gmra.mrb[0].mxu0 %v6648_v33  ;;  %4623 = vmatmul.mubr.bf16.vlgmr.msra.gmra.mrb[0].mxu1 %v6648_v33 }
 0x243   :  { %4155 = vmatprep.mubr.bf16.mxu0 %v6651_v34  ;;  %4632 = vmatprep.mubr.bf16.mxu1 %v6651_v34 }
 0x24a   :  { %4156 = vmatmul.mubr.bf16.gmra.mrb[4].mxu0 %v6653_v35  ;;  %4633 = vmatmul.mubr.bf16.gmra.mrb[4].mxu1 %v6653_v35 }
 0x315   :  { %v4147_v36 = vpop.f32.mrb[0].mxu0  ;;  %v4624_v37 = vpop.f32.mrb[0].mxu1 }
 0x316   :  { %4643 = vst [vmem:[#allocation2] sm:$0xff] %v4147_v36  ;;  %4645 = vst [vmem:[#allocation2 + $0x10] sm:$0xff] %v4624_v37  ;;  %v4149_v38 = vpop.f32.mrb[1].mxu0  ;;  %v4626_v39 = vpop.f32.mrb[1].mxu1 }
 0x317   :  { %4644 = vst [vmem:[#allocation2 + $0x8] sm:$0xff] %v4149_v38  ;;  %4646 = vst [vmem:[#allocation2 + $0x18] sm:$0xff] %v4626_v39  ;;  %v4151_v40 = vpop.f32.mrb[2].mxu0  ;;  %v4628_v41 = vpop.f32.mrb[2].mxu1 }
 0x318   :  { %4647 = vst [vmem:[#allocation2 + $0x20] sm:$0xff] %v4151_v40  ;;  %4649 = vst [vmem:[#allocation2 + $0x30] sm:$0xff] %v4628_v41  ;;  %v4153_v42 = vpop.f32.mrb[3].mxu0  ;;  %v4630_v43 = vpop.f32.mrb[3].mxu1 }
 0x319   :  { %4648 = vst [vmem:[#allocation2 + $0x28] sm:$0xff] %v4153_v42  ;;  %4650 = vst [vmem:[#allocation2 + $0x38] sm:$0xff] %v4630_v43 }
 0x31d   :  { %v4157_v44 = vpop.f32.mrb[4].mxu0  ;;  %v4634_v45 = vpop.f32.mrb[4].mxu1 }
 0x31e   :  { %4651 = vst [vmem:[#allocation2 + $0x40] sm:$0xff] %v4157_v44  ;;  %4653 = vst [vmem:[#allocation2 + $0x50] sm:$0xff] %v4634_v45  ;;  %v4159_v46 = vpop.f32.mrb[5].mxu0  ;;  %v4636_v47 = vpop.f32.mrb[5].mxu1 }
 0x31f   :  { %4652 = vst [vmem:[#allocation2 + $0x48] sm:$0xff] %v4159_v46  ;;  %4654 = vst [vmem:[#allocation2 + $0x58] sm:$0xff] %v4636_v47  ;;  %v4161_v48 = vpop.f32.mrb[6].mxu0  ;;  %v4638_v49 = vpop.f32.mrb[6].mxu1 }
 0x320   :  { %4655 = vst [vmem:[#allocation2 + $0x60] sm:$0xff] %v4161_v48  ;;  %4657 = vst [vmem:[#allocation2 + $0x70] sm:$0xff] %v4638_v49  ;;  %v4163_v50 = vpop.f32.mrb[7].mxu0  ;;  %v4640_v51 = vpop.f32.mrb[7].mxu1 }
 0x321   :  { %4656 = vst [vmem:[#allocation2 + $0x68] sm:$0xff] %v4163_v50  ;;  %4658 = vst [vmem:[#allocation2 + $0x78] sm:$0xff] %v4640_v51 }
 0x322 LB: > { %s5502_s1 = sshll.u32 %s6718_s0, 3  ;;  %s4664_s0 = sadd.s32 1, %s6718_s0   ;;  %s6718_s0 = sphi %s8605_s0, %s4664_s0   ;;  %v6714_v55 = vphi %v6712_v55, %v6713_v55   ;;  %v6710_v54 = vphi %v6708_v54, %v6709_v54   ;;  %v6706_v53 = vphi %v6704_v53, %v6705_v53   ;;  %v6702_v52 = vphi %v6700_v52, %v6701_v52  }
 0x323   : > { %s4670_s17 = sshra.s32 %s5502_s1, 3  ;;  %p4661_p0 = scmp.ge.s32.totalorder %s4664_s0, 4  }
 0x324   : > { %s5514_s18 = sshll.u32 %s4670_s17, 5  ;;  %v8616_v28 = vmov (%p4661_p0), 0.0   ;;  %v8618_v29 = vmov (%p4661_p0), 0.0   ;;  %v8620_v30 = vmov (%p4661_p0), 0.0   ;;  %v8622_v31 = vmov (%p4661_p0), 0.0   ;;  %s8624_s20 = smov (%p4661_p0), 0  }
 0x325   : > { %s4674_s19 = scalar_lea.vmem [#allocation2], %s5514_s18 }
 0x328   : > { %v4675_v56 = vld [vmem:[%s4674_s19] sm:$0xff]  ;;  %v4676_v57 = vld [vmem:[%s4674_s19 + $0x8] sm:$0xff]  ;;  %v4677_v58 = vld [vmem:[%s4674_s19 + $0x10] sm:$0xff] }
 0x329   : > { %v4678_v59 = vld [vmem:[%s4674_s19 + $0x18] sm:$0xff]  ;;  %v4679_v60 = vrot.slane %v4675_v56, 4  ;;  %v4685_v61 = vrot.slane %v4676_v57, 4  ;;  %v4691_v62 = vrot.slane %v4677_v58, 4 }
 0x32a   : > { %v4697_v63 = vrot.slane %v4678_v59, 4 }
 0x32b   : > { %v4680_v0 = vadd.f32 %v4679_v60, %v4675_v56  ;;  %v4686_v1 = vadd.f32 %v4685_v61, %v4676_v57  ;;  %v4692_v2 = vadd.f32 %v4691_v62, %v4677_v58 }
 0x32c   : > { %v4698_v3 = vadd.f32 %v4697_v63, %v4678_v59 }
 0x32d   : > { %v4681_v4 = vrot.slane %v4680_v0, 2  ;;  %v4687_v5 = vrot.slane %v4686_v1, 2  ;;  %v4693_v6 = vrot.slane %v4692_v2, 2 }
 0x32e   : > { %v4699_v7 = vrot.slane %v4698_v3, 2 }
 0x32f   : > { %v4682_v8 = vadd.f32 %v4681_v4, %v4680_v0  ;;  %v4688_v9 = vadd.f32 %v4687_v5, %v4686_v1  ;;  %v4694_v10 = vadd.f32 %v4693_v6, %v4692_v2 }
 0x330   : > { %v4700_v11 = vadd.f32 %v4699_v7, %v4698_v3 }
 0x331   : > { %v4683_v12 = vrot.slane %v4682_v8, 1  ;;  %v4689_v13 = vrot.slane %v4688_v9, 1  ;;  %v4695_v14 = vrot.slane %v4694_v10, 1 }
 0x332   : > { %v4701_v15 = vrot.slane %v4700_v11, 1  ;;  %4663 = sbr.rel (!%p4661_p0) target bundleno = 802 (0x322), region = 61 }
 0x333   : > { %v4684_v16 = vadd.f32 %v4683_v12, %v4682_v8  ;;  %v4690_v17 = vadd.f32 %v4689_v13, %v4688_v9  ;;  %v4696_v18 = vadd.f32 %v4695_v14, %v4694_v10 }
 0x334   : > { %v4702_v19 = vadd.f32 %v4701_v15, %v4700_v11 }
 0x335   : > { %v4703_v20 = vadd.f32 %v6714_v55, %v4684_v16   ;;  %v4704_v21 = vadd.f32 %v6710_v54, %v4690_v17   ;;  %v4705_v22 = vadd.f32 %v6706_v53, %v4696_v18  }
 0x336   : > { %v4706_v23 = vadd.f32 %v6702_v52, %v4702_v19  }
 0x337   : > { %v6705_v53 = vmov %v4705_v22   ;;  %v6709_v54 = vmov %v4704_v21   ;;  %v6713_v55 = vmov %v4703_v20   ;;  %v4707_v24 = vadd.f32 (%p4661_p0), %v4704_v21, %v4703_v20 }
 0x338   : > { %v6701_v52 = vmov %v4706_v23  }
 0x339   :  { %v4708_v25 = vadd.f32 %v4707_v24, %v4705_v22 }
 0x33b   :  { %v4709_v26 = vadd.f32 %v4708_v25, %v4706_v23 }
 0x33d   :  { %v8614_v27 = vmul.f32 0.0078125, %v4709_v26 }
 0x33e LB: > { %s5505_s21 = sshll.u32 %s6738_s20, 3  ;;  %v4732_v32 = vlaneseq  ;;  %s4717_s20 = sadd.s32 1, %s6738_s20   ;;  %s6738_s20 = sphi %s8624_s20, %s4717_s20   ;;  %v6734_v31 = vphi %v8622_v31, %v8678_v31   ;;  %v6730_v30 = vphi %v8620_v30, %v8677_v30   ;;  %v6726_v29 = vphi %v8618_v29, %v8676_v29   ;;  %v6722_v28 = vphi %v8616_v28, %v8675_v28  }
 0x33f   : > { %s4723_s22 = sshra.s32 %s5505_s21, 3  ;;  %p4714_p1 = scmp.ge.s32.totalorder %s4717_s20, 4  }
 0x340   : > { %s5515_s23 = sshll.u32 %s4723_s22, 5  ;;  %v4733_v33 = vshrl.u32 %v4732_v32, 7  ;;  %v4778_v17 = vld [vmem:[%s8671_s2] sm:$0x1] (%p4714_p1)  ;;  %s8656_s29 = smov (%p4714_p1), 0  }
 0x341   : > { %s4727_s24 = scalar_lea.vmem [#allocation2], %s5515_s23  ;;  %v4780_v20 = vld [vmem:[%s8672_s3] sm:$0x1] (%p4714_p1) }
 0x342   : > { %v4728_v34 = vld [vmem:[%s4727_s24] sm:$0xff]  ;;  %v8634_v35 = vsub.s32 0, %v4733_v33  ;;  %v4729_v36 = vld [vmem:[%s4727_s24 + $0x8] sm:$0xff]  ;;  %v4730_v37 = vld [vmem:[%s4727_s24 + $0x10] sm:$0xff] }
 0x343   : > { %v4731_v38 = vld [vmem:[%s4727_s24 + $0x18] sm:$0xff] }
 0x344   : > { %v4735_v39 = vrot.slane %v8614_v27, %v8634_v35 }
 0x346   : > { %v4736_v40 = vsub.f32 %v4728_v34, %v4735_v39  ;;  %v4737_v41 = vsub.f32 %v4729_v36, %v4735_v39  ;;  %v4738_v42 = vsub.f32 %v4730_v37, %v4735_v39  ;;  %v4739_v43 = vsub.f32 %v4731_v38, %v4735_v39 }
 0x348   : > { %v4740_v44 = vmul.f32 %v4736_v40, %v4736_v40  ;;  %v4741_v45 = vmul.f32 %v4737_v41, %v4737_v41  ;;  %v4742_v46 = vmul.f32 %v4738_v42, %v4738_v42  ;;  %v4743_v47 = vmul.f32 %v4739_v43, %v4739_v43 }
 0x34a   : > { %v4744_v48 = vrot.slane %v4740_v44, 4  ;;  %v4750_v49 = vrot.slane %v4741_v45, 4  ;;  %v4756_v50 = vrot.slane %v4742_v46, 4  ;;  %v4762_v51 = vrot.slane %v4743_v47, 4 }
 0x34c   : > { %v4745_v52 = vadd.f32 %v4744_v48, %v4740_v44  ;;  %v4751_v53 = vadd.f32 %v4750_v49, %v4741_v45  ;;  %v4757_v54 = vadd.f32 %v4756_v50, %v4742_v46  ;;  %v4763_v55 = vadd.f32 %v4762_v51, %v4743_v47 }
 0x34e   : > { %v4746_v56 = vrot.slane %v4745_v52, 2  ;;  %v4752_v57 = vrot.slane %v4751_v53, 2  ;;  %v4758_v58 = vrot.slane %v4757_v54, 2  ;;  %v4764_v59 = vrot.slane %v4763_v55, 2 }
 0x350   : > { %v4747_v60 = vadd.f32 %v4746_v56, %v4745_v52  ;;  %v4753_v61 = vadd.f32 %v4752_v57, %v4751_v53  ;;  %v4759_v62 = vadd.f32 %v4758_v58, %v4757_v54  ;;  %v4765_v63 = vadd.f32 %v4764_v59, %v4763_v55 }
 0x352   : > { %v4748_v0 = vrot.slane %v4747_v60, 1  ;;  %v4754_v1 = vrot.slane %v4753_v61, 1  ;;  %v4760_v2 = vrot.slane %v4759_v62, 1  ;;  %v4766_v3 = vrot.slane %v4765_v63, 1  ;;  %4716 = sbr.rel (!%p4714_p1) target bundleno = 830 (0x33e), region = 72 }
 0x354   : > { %v4749_v4 = vadd.f32 %v4748_v0, %v4747_v60  ;;  %v4755_v5 = vadd.f32 %v4754_v1, %v4753_v61  ;;  %v4761_v6 = vadd.f32 %v4760_v2, %v4759_v62  ;;  %v4767_v7 = vadd.f32 %v4766_v3, %v4765_v63 }
 0x356   : > { %v4768_v8 = vadd.f32 %v6734_v31, %v4749_v4   ;;  %v4769_v9 = vadd.f32 %v6730_v30, %v4755_v5   ;;  %v4770_v10 = vadd.f32 %v6726_v29, %v4761_v6   ;;  %v4771_v11 = vadd.f32 %v6722_v28, %v4767_v7  }
 0x358   : > { %v8675_v28 = vmov %v4771_v11  ;;  %v8676_v29 = vmov %v4770_v10  ;;  %v8677_v30 = vmov %v4769_v9  ;;  %v8678_v31 = vmov %v4768_v8 }
 0x359   :  { %v4772_v12 = vadd.f32 %v4769_v9, %v4768_v8 }
 0x35b   :  { %v4773_v13 = vadd.f32 %v4772_v12, %v4770_v10 }
 0x35d   :  { %v4774_v14 = vadd.f32 %v4773_v13, %v4771_v11 }
 0x35f   :  { %v4775_v15 = vmul.f32 0.0078125, %v4774_v14 }
 0x361   :  { %v4776_v16 = vadd.f32 1e-05, %v4775_v15 }
 0x363   :  { %6654 = vrsqrt.f32 %v4776_v16 }
 0x36d   :  { %v6655_v18 = vpop.eup %6654 }
 0x36e   :  { %v4779_v19 = vmul.f32 %v6655_v18, %v4778_v17 }
 0x370   :  { %v4781_v21 = vmul.f32 %v4779_v19, %v8614_v27 }
 0x372   :  { %v4782_v22 = vsub.f32 %v4780_v20, %v4781_v21 }
 0x373 LB: > { %s5508_s30 = sshll.u32 %s6742_s29, 3  ;;  %v4802_v23 = vrot.slane %v4779_v19, %v8634_v35  ;;  %s4788_s29 = sadd.s32 1, %s6742_s29   ;;  %s6742_s29 = sphi %s8656_s29, %s4788_s29  }
 0x374   : > { %s4790_s5 = sshra.s32 %s5508_s30, 3  ;;  %v4810_v24 = vrot.slane %v4782_v22, %v8634_v35  ;;  %p4785_p2 = scmp.ge.s32.totalorder %s4788_s29, 4  }
 0x375   : > { %s5516_s2 = sshll.u32 %s4790_s5, 5  ;;  %s5519_s3 = sshll.u32 %s4790_s5, 4 }
 0x376   : > { %s4794_s6 = scalar_lea.vmem [#allocation2], %s5516_s2  ;;  %s4836_s9 = scalar_lea.vmem %s8673_s4, %s5519_s3 }
 0x377   : > { %v4795_v25 = vld [vmem:[%s4794_s6] sm:$0xff]  ;;  %v4796_v26 = vld [vmem:[%s4794_s6 + $0x8] sm:$0xff]  ;;  %v4797_v27 = vld [vmem:[%s4794_s6 + $0x10] sm:$0xff] }
 0x378   : > { %v4803_v28 = vmul.f32 %v4802_v23, %v4795_v25  ;;  %v4804_v29 = vmul.f32 %v4802_v23, %v4796_v26  ;;  %v4798_v30 = vld [vmem:[%s4794_s6 + $0x18] sm:$0xff]  ;;  %v4805_v31 = vmul.f32 %v4802_v23, %v4797_v27 }
 0x379   : > { %v4806_v32 = vmul.f32 %v4802_v23, %v4798_v30 }
 0x37a   : > { %v4811_v33 = vadd.f32 %v4810_v24, %v4803_v28  ;;  %v4812_v34 = vadd.f32 %v4810_v24, %v4804_v29  ;;  %v4813_v36 = vadd.f32 %v4810_v24, %v4805_v31 }
 0x37b   : > { %v4814_v37 = vadd.f32 %v4810_v24, %v4806_v32  ;;  %4787 = sbr.rel (!%p4785_p2) target bundleno = 883 (0x373), region = 83 }
 0x37c   : > { %v4815_v38 = vmax.f32 %v4811_v33, 0.0  ;;  %v4816_v39 = vmax.f32 %v4812_v34, 0.0  ;;  %v4817_v40 = vmax.f32 %v4813_v36, 0.0 }
 0x37d   : > { %v4818_v41 = vmax.f32 %v4814_v37, 0.0 }
 0x37e   : > { %v5517_v42 = vpack.c.bf16 %v4816_v39, %v4815_v38 }
 0x37f   : > { %v5518_v43 = vpack.c.bf16 %v4818_v41, %v4817_v40 }
 0x380   : > { %4837 = vst [vmem:[%s4836_s9] sm:$0xff] %v5517_v42 }
 0x381   : > { %4838 = vst [vmem:[%s4836_s9 + $0x8] sm:$0xff] %v5518_v43 }

// kernel: generator_forward.8
= control target key start
LH: loop header
LB: loop body
LE: loop exit
PB: predicated region body
PF: predicated region fallthrough
CT: control target
= control target key end

     0   :  { %s3844_s1 = inlined_call_operand.vmem [shape: bf16[1152,256], index: 1, kind: input, shape index: {}]   ;;  %s3845_s2 = inlined_call_operand.vmem [shape: f32[1,128], index: 2, kind: input, shape index: {}]   ;;  %s3846_s3 = inlined_call_operand.vmem [shape: f32[1,128], index: 3, kind: input, shape index: {}]   ;;  %s3847_s4 = inlined_call_operand.vmem [shape: bf16[128,256], index: 4, kind: output, shape index: {}]   ;;  %s3848_s0 = inlined_call_operand.vmem [shape: bf16[128,1152], index: 0, kind: input, shape index: {}]  }
   0x1   :  { %v2541_v0 = vld [vmem:[%s3844_s1 + $0x4] ss:$8 sps:$4 sm:$0xff]   ;;  %v2545_v2 = vld [vmem:[%s3844_s1] ss:$8 sps:$4 sm:$0xff]   ;;  %v2547_v4 = vld [vmem:[%s3844_s1 + $0x14] ss:$8 sps:$4 sm:$0xff]  }
   0x2   :  { %v2543_v1 = vld [vmem:[%s3844_s1 + $0x204] ss:$8 sps:$4 sm:$0xff]   ;;  %1330 = vmatprep.subr.bf16.mxu1 %v2541_v0  ;;  %v2546_v3 = vld [vmem:[%s3844_s1 + $0x200] ss:$8 sps:$4 sm:$0xff]   ;;  %v2549_v5 = vld [vmem:[%s3844_s1 + $0x214] ss:$8 sps:$4 sm:$0xff]  }
   0x3   :  { %1556 = vmatprep.subr.bf16.mxu0 %v2543_v1  ;;  %1331 = vmatpush1.bf16.msra.mxu1 %v2545_v2  ;;  %v2551_v6 = vld [vmem:[%s3844_s1 + $0x10] ss:$8 sps:$4 sm:$0xff]   ;;  %v2553_v8 = vld [vmem:[%s3844_s1 + $0x24] ss:$8 sps:$4 sm:$0xff]   ;;  %v2557_v10 = vld [vmem:[%s3844_s1 + $0x20] ss:$8 sps:$4 sm:$0xff]  }
   0x4   :  { %1557 = vmatpush1.bf16.msra.mxu0 %v2546_v3  ;;  %1332 = vmatprep.subr.bf16.mxu1 %v2547_v4  ;;  %v2552_v7 = vld [vmem:[%s3844_s1 + $0x210] ss:$8 sps:$4 sm:$0xff]   ;;  %v2555_v9 = vld [vmem:[%s3844_s1 + $0x224] ss:$8 sps:$4 sm:$0xff]   ;;  %v2558_v11 = vld [vmem:[%s3844_s1 + $0x220] ss:$8 sps:$4 sm:$0xff]  }
   0x5   :  { %1558 = vmatprep.subr.bf16.mxu0 %v2549_v5  ;;  %v2559_v12 = vld [vmem:[%s3844_s1 + $0x34] ss:$8 sps:$4 sm:$0xff]   ;;  %v2563_v14 = vld [vmem:[%s3844_s1 + $0x30] ss:$8 sps:$4 sm:$0xff]   ;;  %v2565_v16 = vld [vmem:[%s3844_s1 + $0x44] ss:$8 sps:$4 sm:$0xff]  }
   0x6   :  { %v2561_v13 = vld [vmem:[%s3844_s1 + $0x234] ss:$8 sps:$4 sm:$0xff]   ;;  %v2564_v15 = vld [vmem:[%s3844_s1 + $0x230] ss:$8 sps:$4 sm:$0xff]   ;;  %v2567_v17 = vld [vmem:[%s3844_s1 + $0x244] ss:$8 sps:$4 sm:$0xff]  }
   0x7   :  { %1333 = vmatpush1.bf16.msra.mxu1 %v2551_v6  ;;  %v2569_v18 = vld [vmem:[%s3844_s1 + $0x40] ss:$8 sps:$4 sm:$0xff]   ;;  %v2571_v20 = vld [vmem:[%s3844_s1 + $0x54] ss:$8 sps:$4 sm:$0xff]   ;;  %v2575_v22 = vld [vmem:[%s3844_s1 + $0x50] ss:$8 sps:$4 sm:$0xff]  }
   0x8   :  { %1559 = vmatpush1.bf16.msra.mxu0 %v2552_v7  ;;  %1334 = vmatprep.subr.bf16.mxu1 %v2553_v8  ;;  %v2570_v19 = vld [vmem:[%s3844_s1 + $0x240] ss:$8 sps:$4 sm:$0xff]   ;;  %v2573_v21 = vld [vmem:[%s3844_s1 + $0x254] ss:$8 sps:$4 sm:$0xff]   ;;  %v2576_v23 = vld [vmem:[%s3844_s1 + $0x250] ss:$8 sps:$4 sm:$0xff]  }
   0x9   :  { %1560 = vmatprep.subr.bf16.mxu0 %v2555_v9  ;;  %v2577_v24 = vld [vmem:[%s3844_s1 + $0x64] ss:$8 sps:$4 sm:$0xff]   ;;  %v2581_v26 = vld [vmem:[%s3844_s1 + $0x60] ss:$8 sps:$4 sm:$0xff]   ;;  %v2583_v28 = vld [vmem:[%s3844_s1 + $0x74] ss:$8 sps:$4 sm:$0xff]  }
   0xa   :  { %v2579_v25 = vld [vmem:[%s3844_s1 + $0x264] ss:$8 sps:$4 sm:$0xff]   ;;  %v2582_v27 = vld [vmem:[%s3844_s1 + $0x260] ss:$8 sps:$4 sm:$0xff]   ;;  %v2585_v29 = vld [vmem:[%s3844_s1 + $0x274] ss:$8 sps:$4 sm:$0xff]  }
   0xb   :  { %1335 = vmatpush1.bf16.msra.mxu1 %v2557_v10  ;;  %v2587_v30 = vld [vmem:[%s3844_s1 + $0x70] ss:$8 sps:$4 sm:$0xff]   ;;  %v2589_v32 = vld [vmem:[%s3844_s1 + $0x84] ss:$8 sps:$4 sm:$0xff]   ;;  %v2593_v34 = vld [vmem:[%s3844_s1 + $0x80] ss:$8 sps:$4 sm:$0xff]  }
   0xc   :  { %1561 = vmatpush1.bf16.msra.mxu0 %v2558_v11  ;;  %1336 = vmatprep.subr.bf16.mxu1 %v2559_v12  ;;  %v2588_v31 = vld [vmem:[%s3844_s1 + $0x270] ss:$8 sps:$4 sm:$0xff]   ;;  %v2591_v33 = vld [vmem:[%s3844_s1 + $0x284] ss:$8 sps:$4 sm:$0xff]   ;;  %v2594_v35 = vld [vmem:[%s3844_s1 + $0x280] ss:$8 sps:$4 sm:$0xff]  }
   0xd   :  { %1562 = vmatprep.subr.bf16.mxu0 %v2561_v13  ;;  %v2595_v36 = vld [vmem:[%s3844_s1 + $0x94] ss:$8 sps:$4 sm:$0xff]   ;;  %v2599_v38 = vld [vmem:[%s3844_s1 + $0x90] ss:$8 sps:$4 sm:$0xff]   ;;  %v2601_v40 = vld [vmem:[%s3844_s1 + $0xa4] ss:$8 sps:$4 sm:$0xff]  }
   0xe   :  { %v2597_v37 = vld [vmem:[%s3844_s1 + $0x294] ss:$8 sps:$4 sm:$0xff]   ;;  %v2600_v39 = vld [vmem:[%s3844_s1 + $0x290] ss:$8 sps:$4 sm:$0xff]   ;;  %v2603_v41 = vld [vmem:[%s3844_s1 + $0x2a4] ss:$8 sps:$4 sm:$0xff]  }
   0xf   :  { %1337 = vmatpush1.bf16.msra.mxu1 %v2563_v14  ;;  %v2605_v42 = vld [vmem:[%s3844_s1 + $0xa0] ss:$8 sps:$4 sm:$0xff]   ;;  %v2607_v44 = vld [vmem:[%s3844_s1 + $0xb4] ss:$8 sps:$4 sm:$0xff]   ;;  %v2611_v46 = vld [vmem:[%s3844_s1 + $0xb0] ss:$8 sps:$4 sm:$0xff]  }
  0x10   :  { %1563 = vmatpush1.bf16.msra.mxu0 %v2564_v15  ;;  %1338 = vmatprep.subr.bf16.mxu1 %v2565_v16  ;;  %v2606_v43 = vld [vmem:[%s3844_s1 + $0x2a0] ss:$8 sps:$4 sm:$0xff]   ;;  %v2609_v45 = vld [vmem:[%s3844_s1 + $0x2b4] ss:$8 sps:$4 sm:$0xff]   ;;  %v2612_v47 = vld [vmem:[%s3844_s1 + $0x2b0] ss:$8 sps:$4 sm:$0xff]  }
  0x11   :  { %1564 = vmatprep.subr.bf16.mxu0 %v2567_v17  ;;  %v2613_v48 = vld [vmem:[%s3844_s1 + $0xc4] ss:$8 sps:$4 sm:$0xff]   ;;  %v2642_v51 = vld [vmem:[%s3848_s0 + $0x14] ss:$36 sps:$4 sm:$0xff]   ;;  %v2617_v52 = vld [vmem:[%s3844_s1 + $0xc0] ss:$8 sps:$4 sm:$0xff]  }
  0x12   :  { %v2639_v49 = vld [vmem:[%s3848_s0 + $0x4] ss:$36 sps:$4 sm:$0xff]   ;;  %1588 = vmatprep.mubr.bf16.mxu0 %v2642_v51  ;;  %v2619_v54 = vld [vmem:[%s3844_s1 + $0xd4] ss:$8 sps:$4 sm:$0xff]   ;;  %v2623_v56 = vld [vmem:[%s3844_s1 + $0xd0] ss:$8 sps:$4 sm:$0xff]  }
  0x13   :  { %1339 = vmatpush1.bf16.msra.mxu1 %v2569_v18  ;;  %v2615_v50 = vld [vmem:[%s3844_s1 + $0x2c4] ss:$8 sps:$4 sm:$0xff]   ;;  %1362 = vmatprep.mubr.bf16.mxu1 %v2639_v49  ;;  %v2618_v53 = vld [vmem:[%s3844_s1 + $0x2c0] ss:$8 sps:$4 sm:$0xff]   ;;  %v2621_v55 = vld [vmem:[%s3844_s1 + $0x2d4] ss:$8 sps:$4 sm:$0xff]  }
  0x14   :  { %1565 = vmatpush1.bf16.msra.mxu0 %v2570_v19  ;;  %1340 = vmatprep.subr.bf16.mxu1 %v2571_v20  ;;  %v2624_v57 = vld [vmem:[%s3844_s1 + $0x2d0] ss:$8 sps:$4 sm:$0xff]   ;;  %v2625_v58 = vld [vmem:[%s3844_s1 + $0xe4] ss:$8 sps:$4 sm:$0xff]   ;;  %v2629_v60 = vld [vmem:[%s3844_s1 + $0xe0] ss:$8 sps:$4 sm:$0xff]  }
  0x15   :  { %1566 = vmatprep.subr.bf16.mxu0 %v2573_v21  ;;  %v2627_v59 = vld [vmem:[%s3844_s1 + $0x2e4] ss:$8 sps:$4 sm:$0xff]   ;;  %v2630_v61 = vld [vmem:[%s3844_s1 + $0x2e0] ss:$8 sps:$4 sm:$0xff]   ;;  %v2631_v62 = vld [vmem:[%s3844_s1 + $0xf4] ss:$8 sps:$4 sm:$0xff]  }
  0x16   :  { %v2633_v63 = vld [vmem:[%s3844_s1 + $0x2f4] ss:$8 sps:$4 sm:$0xff]   ;;  %v2635_v0 = vld [vmem:[%s3844_s1 + $0xf0] ss:$8 sps:$4 sm:$0xff]   ;;  %v2645_v2 = vld [vmem:[%s3844_s1 + $0x104] ss:$8 sps:$4 sm:$0xff]  }
  0x17   :  { %1341 = vmatpush1.bf16.msra.mxu1 %v2575_v22  ;;  %v2636_v1 = vld [vmem:[%s3844_s1 + $0x2f0] ss:$8 sps:$4 sm:$0xff]   ;;  %v3150_v3 = vld [vmem:[%s3844_s1 + $0x304] ss:$8 sps:$4 sm:$0xff]   ;;  %v2643_v6 = vld [vmem:[%s3844_s1 + $0x100] ss:$8 sps:$4 sm:$0xff]  }
  0x18   :  { %1567 = vmatpush1.bf16.msra.mxu0 %v2576_v23  ;;  %1342 = vmatprep.subr.bf16.mxu1 %v2577_v24  ;;  %v2637_v4 = vld [vmem:[%s3848_s0] ss:$36 sps:$4 sm:$0xff]   ;;  %v2640_v5 = vld [vmem:[%s3848_s0 + $0x10] ss:$36 sps:$4 sm:$0xff]   ;;  %v2659_v16 = vld [vmem:[%s3848_s0 + $0x48] ss:$36 sps:$4 sm:$0xff]  }
  0x19   :  { %1568 = vmatprep.subr.bf16.mxu0 %v2579_v25  ;;  %v3164_v7 = vld [vmem:[%s3844_s1 + $0x300] ss:$8 sps:$4 sm:$0xff]   ;;  %v2651_v8 = vld [vmem:[%s3844_s1 + $0x114] ss:$8 sps:$4 sm:$0xff]   ;;  %v2655_v10 = vld [vmem:[%s3848_s0 + $0x4c] ss:$36 sps:$4 sm:$0xff]  }
  0x1a   :  { %v3173_v9 = vld [vmem:[%s3844_s1 + $0x314] ss:$8 sps:$4 sm:$0xff]   ;;  %v2649_v12 = vld [vmem:[%s3844_s1 + $0x110] ss:$8 sps:$4 sm:$0xff]   ;;  %v2662_v14 = vld [vmem:[%s3844_s1 + $0x124] ss:$8 sps:$4 sm:$0xff]  }
  0x1b   :  { %1343 = vmatpush1.bf16.msra.mxu1 %v2581_v26  ;;  %v2657_v11 = vld [vmem:[%s3848_s0 + $0x5c] ss:$36 sps:$4 sm:$0xff]   ;;  %v3188_v13 = vld [vmem:[%s3844_s1 + $0x310] ss:$8 sps:$4 sm:$0xff]   ;;  %v3197_v15 = vld [vmem:[%s3844_s1 + $0x324] ss:$8 sps:$4 sm:$0xff]  }
  0x1c   :  { %1569 = vmatpush1.bf16.msra.mxu0 %v2582_v27  ;;  %1344 = vmatprep.subr.bf16.mxu1 %v2583_v28  ;;  %v2660_v17 = vld [vmem:[%s3844_s1 + $0x120] ss:$8 sps:$4 sm:$0xff]   ;;  %v2663_v18 = vld [vmem:[%s3848_s0 + $0x58] ss:$36 sps:$4 sm:$0xff]   ;;  %v2680_v26 = vld [vmem:[%s3844_s1 + $0x144] ss:$8 sps:$4 sm:$0xff]  }
  0x1d   :  { %1570 = vmatprep.subr.bf16.mxu0 %v2585_v29  ;;  %v3211_v19 = vld [vmem:[%s3844_s1 + $0x320] ss:$8 sps:$4 sm:$0xff]   ;;  %v2669_v20 = vld [vmem:[%s3844_s1 + $0x134] ss:$8 sps:$4 sm:$0xff]   ;;  %v2667_v24 = vld [vmem:[%s3844_s1 + $0x130] ss:$8 sps:$4 sm:$0xff]  }
  0x1e   :  { %v3221_v21 = vld [vmem:[%s3844_s1 + $0x334] ss:$8 sps:$4 sm:$0xff]   ;;  %v2675_v23 = vld [vmem:[%s3848_s0 + $0xa4] ss:$36 sps:$4 sm:$0xff]   ;;  %v3236_v25 = vld [vmem:[%s3844_s1 + $0x330] ss:$8 sps:$4 sm:$0xff]  }
  0x1f   :  { %1345 = vmatpush1.bf16.msra.mxu1 %v2587_v30  ;;  %v2673_v22 = vld [vmem:[%s3848_s0 + $0x94] ss:$36 sps:$4 sm:$0xff]   ;;  %v3245_v27 = vld [vmem:[%s3844_s1 + $0x344] ss:$8 sps:$4 sm:$0xff]   ;;  %v2678_v29 = vld [vmem:[%s3844_s1 + $0x140] ss:$8 sps:$4 sm:$0xff]  }
  0x20   :  { %1571 = vmatpush1.bf16.msra.mxu0 %v2588_v31  ;;  %1346 = vmatprep.subr.bf16.mxu1 %v2589_v32  ;;  %v2677_v28 = vld [vmem:[%s3848_s0 + $0x90] ss:$36 sps:$4 sm:$0xff]   ;;  %v2681_v30 = vld [vmem:[%s3848_s0 + $0xa0] ss:$36 sps:$4 sm:$0xff]  }
  0x21   :  { %1572 = vmatprep.subr.bf16.mxu0 %v2591_v33  ;;  %v3259_v31 = vld [vmem:[%s3844_s1 + $0x340] ss:$8 sps:$4 sm:$0xff]   ;;  %v2687_v32 = vld [vmem:[%s3844_s1 + $0x154] ss:$8 sps:$4 sm:$0xff]   ;;  %v3332_v49 = vld [vmem:[%s3844_s1 + $0x370] ss:$8 sps:$4 sm:$0xff]  }
  0x22   :  { %v3269_v33 = vld [vmem:[%s3844_s1 + $0x354] ss:$8 sps:$4 sm:$0xff]   ;;  %v3341_v51 = vld [vmem:[%s3844_s1 + $0x384] ss:$8 sps:$4 sm:$0xff]  }
  0x23   :  { %1347 = vmatpush1.bf16.msra.mxu1 %v2593_v34  ;;  %v2691_v34 = vld [vmem:[%s3848_s0 + $0xdc] ss:$36 sps:$4 sm:$0xff]  }
  0x24   :  { %1573 = vmatpush1.bf16.msra.mxu0 %v2594_v35  ;;  %1348 = vmatprep.subr.bf16.mxu1 %v2595_v36  ;;  %v2693_v35 = vld [vmem:[%s3848_s0 + $0xec] ss:$36 sps:$4 sm:$0xff]  }
  0x25   :  { %1574 = vmatprep.subr.bf16.mxu0 %v2597_v37  ;;  %v2685_v36 = vld [vmem:[%s3844_s1 + $0x150] ss:$8 sps:$4 sm:$0xff]  }
  0x26   :  { %v3284_v37 = vld [vmem:[%s3844_s1 + $0x350] ss:$8 sps:$4 sm:$0xff]  }
  0x27   :  { %1349 = vmatpush1.bf16.msra.mxu1 %v2599_v38  ;;  %v2698_v38 = vld [vmem:[%s3844_s1 + $0x164] ss:$8 sps:$4 sm:$0xff]  }
  0x28   :  { %1575 = vmatpush1.bf16.msra.mxu0 %v2600_v39  ;;  %1350 = vmatprep.subr.bf16.mxu1 %v2601_v40  ;;  %v3293_v39 = vld [vmem:[%s3844_s1 + $0x364] ss:$8 sps:$4 sm:$0xff]   ;;  %v2695_v40 = vld [vmem:[%s3848_s0 + $0xd8] ss:$36 sps:$4 sm:$0xff]  }
  0x29   :  { %1576 = vmatprep.subr.bf16.mxu0 %v2603_v41  ;;  %v2696_v41 = vld [vmem:[%s3844_s1 + $0x160] ss:$8 sps:$4 sm:$0xff]  }
  0x2b   :  { %1351 = vmatpush1.bf16.msra.mxu1 %v2605_v42  ;;  %v2699_v42 = vld [vmem:[%s3848_s0 + $0xe8] ss:$36 sps:$4 sm:$0xff]  }
  0x2c   :  { %1577 = vmatpush1.bf16.msra.mxu0 %v2606_v43  ;;  %1352 = vmatprep.subr.bf16.mxu1 %v2607_v44  ;;  %v3307_v43 = vld [vmem:[%s3844_s1 + $0x360] ss:$8 sps:$4 sm:$0xff]   ;;  %v2705_v44 = vld [vmem:[%s3844_s1 + $0x174] ss:$8 sps:$4 sm:$0xff]  }
  0x2d   :  { %1578 = vmatprep.subr.bf16.mxu0 %v2609_v45  ;;  %v3317_v45 = vld [vmem:[%s3844_s1 + $0x374] ss:$8 sps:$4 sm:$0xff]  }
  0x2f   :  { %1353 = vmatpush1.bf16.msra.mxu1 %v2611_v46  ;;  %v2709_v46 = vld [vmem:[%s3848_s0 + $0x124] ss:$36 sps:$4 sm:$0xff]  }
  0x30   :  { %1579 = vmatpush1.bf16.msra.mxu0 %v2612_v47  ;;  %1354 = vmatprep.subr.bf16.mxu1 %v2613_v48  ;;  %v2711_v47 = vld [vmem:[%s3848_s0 + $0x134] ss:$36 sps:$4 sm:$0xff]  }
  0x31   :  { %1580 = vmatprep.subr.bf16.mxu0 %v2615_v50  ;;  %v2703_v48 = vld [vmem:[%s3844_s1 + $0x170] ss:$8 sps:$4 sm:$0xff]   ;;  %v2716_v50 = vld [vmem:[%s3844_s1 + $0x184] ss:$8 sps:$4 sm:$0xff]  }
  0x33   :  { %1355 = vmatpush1.bf16.msra.mxu1 %v2617_v52  ;;  %v2713_v52 = vld [vmem:[%s3848_s0 + $0x120] ss:$36 sps:$4 sm:$0xff]  }
  0x34   :  { %1581 = vmatpush1.bf16.msra.mxu0 %v2618_v53  ;;  %1356 = vmatprep.subr.bf16.mxu1 %v2619_v54  ;;  %v2714_v53 = vld [vmem:[%s3844_s1 + $0x180] ss:$8 sps:$4 sm:$0xff]   ;;  %v2717_v54 = vld [vmem:[%s3848_s0 + $0x130] ss:$36 sps:$4 sm:$0xff]  }
  0x35   :  { %1582 = vmatprep.subr.bf16.mxu0 %v2621_v55  ;;  %v3355_v55 = vld [vmem:[%s3844_s1 + $0x380] ss:$8 sps:$4 sm:$0xff]  }
  0x37   :  { %1357 = vmatpush1.bf16.msra.mxu1 %v2623_v56  ;;  %v2723_v56 = vld [vmem:[%s3844_s1 + $0x194] ss:$8 sps:$4 sm:$0xff]  }
  0x38   :  { %1583 = vmatpush1.bf16.msra.mxu0 %v2624_v57  ;;  %1358 = vmatprep.subr.bf16.mxu1 %v2625_v58  ;;  %v3365_v57 = vld [vmem:[%s3844_s1 + $0x394] ss:$8 sps:$4 sm:$0xff]   ;;  %v2727_v58 = vld [vmem:[%s3848_s0 + $0x16c] ss:$36 sps:$4 sm:$0xff]  }
  0x39   :  { %1584 = vmatprep.subr.bf16.mxu0 %v2627_v59  ;;  %v2729_v59 = vld [vmem:[%s3848_s0 + $0x17c] ss:$36 sps:$4 sm:$0xff]  }
  0x3b   :  { %1359 = vmatpush1.bf16.msra.mxu1 %v2629_v60  ;;  %v2721_v60 = vld [vmem:[%s3844_s1 + $0x190] ss:$8 sps:$4 sm:$0xff]  }
  0x3c   :  { %1585 = vmatpush1.bf16.msra.mxu0 %v2630_v61  ;;  %1360 = vmatprep.subr.bf16.mxu1 %v2631_v62  ;;  %v3380_v61 = vld [vmem:[%s3844_s1 + $0x390] ss:$8 sps:$4 sm:$0xff]   ;;  %v2734_v62 = vld [vmem:[%s3844_s1 + $0x1a4] ss:$8 sps:$4 sm:$0xff]  }
  0x3d   :  { %1586 = vmatprep.subr.bf16.mxu0 %v2633_v63  ;;  %v3389_v63 = vld [vmem:[%s3844_s1 + $0x3a4] ss:$8 sps:$4 sm:$0xff]  }
  0x3f   :  { %1361 = vmatpush1.bf16.msra.mxu1 %v2635_v0  ;;  %v2731_v0 = vld [vmem:[%s3848_s0 + $0x168] ss:$36 sps:$4 sm:$0xff]  }
  0x40   :  { %1587 = vmatpush1.bf16.msra.mxu0 %v2636_v1  ;;  %1443 = vmatprep.subr.bf16.mxu1 %v2645_v2  ;;  %v2732_v1 = vld [vmem:[%s3844_s1 + $0x1a0] ss:$8 sps:$4 sm:$0xff]   ;;  %v2735_v2 = vld [vmem:[%s3848_s0 + $0x178] ss:$36 sps:$4 sm:$0xff]  }
  0x41   :  { %1669 = vmatprep.subr.bf16.mxu0 %v3150_v3 }
  0x42   :  { %1363 = vmatmul.mubr.bf16.vlgmr.msra.gmra.mrb[0].mxu1 %v2637_v4  ;;  %v3403_v4 = vld [vmem:[%s3844_s1 + $0x3a0] ss:$8 sps:$4 sm:$0xff]  }
  0x43   :  { %1589 = vmatmul.mubr.bf16.vlgmr.msra.gmra.mrb[0].mxu0 %v2640_v5  ;;  %1444 = vmatpush1.bf16.msra.mxu1 %v2643_v6  ;;  %v2741_v5 = vld [vmem:[%s3844_s1 + $0x1b4] ss:$8 sps:$4 sm:$0xff]  }
  0x44   :  { %1670 = vmatpush1.bf16.msra.mxu0 %v3164_v7  ;;  %1445 = vmatprep.subr.bf16.mxu1 %v2651_v8  ;;  %v3413_v6 = vld [vmem:[%s3844_s1 + $0x3b4] ss:$8 sps:$4 sm:$0xff]  }
  0x45   :  { %1671 = vmatprep.subr.bf16.mxu0 %v3173_v9  ;;  %1372 = vmatprep.mubr.bf16.mxu1 %v2655_v10  ;;  %v2745_v8 = vld [vmem:[%s3848_s0 + $0x1b4] ss:$36 sps:$4 sm:$0xff]   ;;  %v2747_v10 = vld [vmem:[%s3848_s0 + $0x1c4] ss:$36 sps:$4 sm:$0xff]  }
  0x46   :  { %1598 = vmatprep.mubr.bf16.mxu0 %v2657_v11  ;;  %v2739_v11 = vld [vmem:[%s3844_s1 + $0x1b0] ss:$8 sps:$4 sm:$0xff]  }
  0x47   :  { %1446 = vmatpush1.bf16.msra.mxu1 %v2649_v12  ;;  %v3427_v12 = vld [vmem:[%s3844_s1 + $0x3b0] ss:$8 sps:$4 sm:$0xff]  }
  0x48   :  { %1672 = vmatpush1.bf16.msra.mxu0 %v3188_v13  ;;  %1447 = vmatprep.subr.bf16.mxu1 %v2662_v14  ;;  %v2752_v14 = vld [vmem:[%s3844_s1 + $0x1c4] ss:$8 sps:$4 sm:$0xff]  }
  0x49   :  { %1673 = vmatprep.subr.bf16.mxu0 %v3197_v15 }
  0x4a   :  { %1373 = vmatmul.mubr.bf16.gmra.mrb[4].mxu1 %v2659_v16  ;;  %v3437_v16 = vld [vmem:[%s3844_s1 + $0x3c4] ss:$8 sps:$4 sm:$0xff]  }
  0x4b   :  { %1599 = vmatmul.mubr.bf16.gmra.mrb[4].mxu0 %v2663_v18  ;;  %1448 = vmatpush1.bf16.msra.mxu1 %v2660_v17  ;;  %v2749_v17 = vld [vmem:[%s3848_s0 + $0x1b0] ss:$36 sps:$4 sm:$0xff]   ;;  %v2750_v18 = vld [vmem:[%s3844_s1 + $0x1c0] ss:$8 sps:$4 sm:$0xff]  }
  0x4c   :  { %1674 = vmatpush1.bf16.msra.mxu0 %v3211_v19  ;;  %1449 = vmatprep.subr.bf16.mxu1 %v2669_v20  ;;  %v2753_v20 = vld [vmem:[%s3848_s0 + $0x1c0] ss:$36 sps:$4 sm:$0xff]  }
  0x4d   :  { %1675 = vmatprep.subr.bf16.mxu0 %v3221_v21  ;;  %1382 = vmatprep.mubr.bf16.mxu1 %v2673_v22  ;;  %v3451_v22 = vld [vmem:[%s3844_s1 + $0x3c0] ss:$8 sps:$4 sm:$0xff]  }
  0x4e   :  { %1608 = vmatprep.mubr.bf16.mxu0 %v2675_v23  ;;  %v2759_v23 = vld [vmem:[%s3844_s1 + $0x1d4] ss:$8 sps:$4 sm:$0xff]  }
  0x4f   :  { %1450 = vmatpush1.bf16.msra.mxu1 %v2667_v24  ;;  %v3461_v24 = vld [vmem:[%s3844_s1 + $0x3d4] ss:$8 sps:$4 sm:$0xff]  }
  0x50   :  { %1676 = vmatpush1.bf16.msra.mxu0 %v3236_v25  ;;  %1451 = vmatprep.subr.bf16.mxu1 %v2680_v26  ;;  %v2763_v26 = vld [vmem:[%s3848_s0 + $0x1fc] ss:$36 sps:$4 sm:$0xff]  }
  0x51   :  { %1677 = vmatprep.subr.bf16.mxu0 %v3245_v27 }
  0x52   :  { %1383 = vmatmul.mubr.bf16.gmra.mrb[8].mxu1 %v2677_v28  ;;  %v2765_v28 = vld [vmem:[%s3848_s0 + $0x20c] ss:$36 sps:$4 sm:$0xff]  }
  0x53   :  { %1609 = vmatmul.mubr.bf16.gmra.mrb[8].mxu0 %v2681_v30  ;;  %1452 = vmatpush1.bf16.msra.mxu1 %v2678_v29  ;;  %v2757_v29 = vld [vmem:[%s3844_s1 + $0x1d0] ss:$8 sps:$4 sm:$0xff]  }
  0x54   :  { %1678 = vmatpush1.bf16.msra.mxu0 %v3259_v31  ;;  %1453 = vmatprep.subr.bf16.mxu1 %v2687_v32  ;;  %v3475_v30 = vld [vmem:[%s3844_s1 + $0x3d0] ss:$8 sps:$4 sm:$0xff]   ;;  %v2770_v32 = vld [vmem:[%s3844_s1 + $0x1e4] ss:$8 sps:$4 sm:$0xff]  }
  0x55   :  { %1679 = vmatprep.subr.bf16.mxu0 %v3269_v33  ;;  %1392 = vmatprep.mubr.bf16.mxu1 %v2691_v34  ;;  %v3485_v34 = vld [vmem:[%s3844_s1 + $0x3e4] ss:$8 sps:$4 sm:$0xff]  }
  0x56   :  { %1618 = vmatprep.mubr.bf16.mxu0 %v2693_v35  ;;  %v2767_v35 = vld [vmem:[%s3848_s0 + $0x1f8] ss:$36 sps:$4 sm:$0xff]  }
  0x57   :  { %1454 = vmatpush1.bf16.msra.mxu1 %v2685_v36  ;;  %v2768_v36 = vld [vmem:[%s3844_s1 + $0x1e0] ss:$8 sps:$4 sm:$0xff]  }
  0x58   :  { %1680 = vmatpush1.bf16.msra.mxu0 %v3284_v37  ;;  %1455 = vmatprep.subr.bf16.mxu1 %v2698_v38  ;;  %v2771_v38 = vld [vmem:[%s3848_s0 + $0x208] ss:$36 sps:$4 sm:$0xff]  }
  0x59   :  { %1681 = vmatprep.subr.bf16.mxu0 %v3293_v39 }
  0x5a   :  { %1393 = vmatmul.mubr.bf16.gmra.mrb[12].mxu1 %v2695_v40  ;;  %v3499_v40 = vld [vmem:[%s3844_s1 + $0x3e0] ss:$8 sps:$4 sm:$0xff]  }
  0x5b   :  { %1619 = vmatmul.mubr.bf16.gmra.mrb[12].mxu0 %v2699_v42  ;;  %1456 = vmatpush1.bf16.msra.mxu1 %v2696_v41  ;;  %v2777_v41 = vld [vmem:[%s3844_s1 + $0x1f4] ss:$8 sps:$4 sm:$0xff]  }
  0x5c   :  { %1682 = vmatpush1.bf16.msra.mxu0 %v3307_v43  ;;  %1457 = vmatprep.subr.bf16.mxu1 %v2705_v44  ;;  %v3509_v42 = vld [vmem:[%s3844_s1 + $0x3f4] ss:$8 sps:$4 sm:$0xff]   ;;  %v2783_v44 = vld [vmem:[%s3848_s0 + $0xc] ss:$36 sps:$4 sm:$0xff]  }
  0x5d   :  { %1683 = vmatprep.subr.bf16.mxu0 %v3317_v45  ;;  %1402 = vmatprep.mubr.bf16.mxu1 %v2709_v46  ;;  %v2786_v46 = vld [vmem:[%s3848_s0 + $0x1c] ss:$36 sps:$4 sm:$0xff]  }
  0x5e   :  { %1628 = vmatprep.mubr.bf16.mxu0 %v2711_v47  ;;  %v2775_v47 = vld [vmem:[%s3844_s1 + $0x1f0] ss:$8 sps:$4 sm:$0xff]  }
  0x5f   :  { %1458 = vmatpush1.bf16.msra.mxu1 %v2703_v48  ;;  %v3524_v48 = vld [vmem:[%s3844_s1 + $0x3f0] ss:$8 sps:$4 sm:$0xff]  }
  0x60   :  { %1684 = vmatpush1.bf16.msra.mxu0 %v3332_v49  ;;  %1459 = vmatprep.subr.bf16.mxu1 %v2716_v50  ;;  %v2789_v50 = vld [vmem:[%s3844_s1 + $0x404] ss:$8 sps:$4 sm:$0xff]  }
  0x61   :  { %1685 = vmatprep.subr.bf16.mxu0 %v3341_v51 }
  0x62   :  { %1403 = vmatmul.mubr.bf16.gmra.mrb[16].mxu1 %v2713_v52  ;;  %v2781_v52 = vld [vmem:[%s3848_s0 + $0x8] ss:$36 sps:$4 sm:$0xff]  }
  0x63   :  { %1629 = vmatmul.mubr.bf16.gmra.mrb[16].mxu0 %v2717_v54  ;;  %1460 = vmatpush1.bf16.msra.mxu1 %v2714_v53  ;;  %v2784_v53 = vld [vmem:[%s3848_s0 + $0x18] ss:$36 sps:$4 sm:$0xff]   ;;  %v2787_v54 = vld [vmem:[%s3844_s1 + $0x400] ss:$8 sps:$4 sm:$0xff]  }
  0x64   :  { %1686 = vmatpush1.bf16.msra.mxu0 %v3355_v55  ;;  %1461 = vmatprep.subr.bf16.mxu1 %v2723_v56  ;;  %v2792_v56 = vld [vmem:[%s3844_s1 + $0x414] ss:$8 sps:$4 sm:$0xff]  }
  0x65   :  { %1687 = vmatprep.subr.bf16.mxu0 %v3365_v57  ;;  %1412 = vmatprep.mubr.bf16.mxu1 %v2727_v58  ;;  %v2793_v58 = vld [vmem:[%s3848_s0 + $0x54] ss:$36 sps:$4 sm:$0xff]  }
  0x66   :  { %1638 = vmatprep.mubr.bf16.mxu0 %v2729_v59  ;;  %v2795_v59 = vld [vmem:[%s3848_s0 + $0x64] ss:$36 sps:$4 sm:$0xff]  }
  0x67   :  { %1462 = vmatpush1.bf16.msra.mxu1 %v2721_v60  ;;  %v2790_v60 = vld [vmem:[%s3844_s1 + $0x410] ss:$8 sps:$4 sm:$0xff]  }
  0x68   :  { %1688 = vmatpush1.bf16.msra.mxu0 %v3380_v61  ;;  %1463 = vmatprep.subr.bf16.mxu1 %v2734_v62  ;;  %v2797_v62 = vld [vmem:[%s3848_s0 + $0x50] ss:$36 sps:$4 sm:$0xff]  }
  0x69   :  { %1689 = vmatprep.subr.bf16.mxu0 %v3389_v63 }
  0x6a   :  { %1413 = vmatmul.mubr.bf16.gmra.mrb[20].mxu1 %v2731_v0  ;;  %v2804_v0 = vld [vmem:[%s3844_s1 + $0x434] ss:$8 sps:$4 sm:$0xff]  }
  0x6b   :  { %1639 = vmatmul.mubr.bf16.gmra.mrb[20].mxu0 %v2735_v2  ;;  %1464 = vmatpush1.bf16.msra.mxu1 %v2732_v1  ;;  %v2805_v1 = vld [vmem:[%s3848_s0 + $0x9c] ss:$36 sps:$4 sm:$0xff]   ;;  %v2813_v2 = vld [vmem:[%s3844_s1 + $0x444] ss:$8 sps:$4 sm:$0xff]  }
  0x6c   :  { %1690 = vmatpush1.bf16.msra.mxu0 %v3403_v4  ;;  %1465 = vmatprep.subr.bf16.mxu1 %v2741_v5  ;;  %v2809_v5 = vld [vmem:[%s3848_s0 + $0x98] ss:$36 sps:$4 sm:$0xff]  }
  0x6d   :  { %1691 = vmatprep.subr.bf16.mxu0 %v3413_v6  ;;  %1422 = vmatprep.mubr.bf16.mxu1 %v2745_v8  ;;  %v2816_v8 = vld [vmem:[%s3844_s1 + $0x454] ss:$8 sps:$4 sm:$0xff]  }
  0x6e   :  { %1648 = vmatprep.mubr.bf16.mxu0 %v2747_v10  ;;  %v2817_v10 = vld [vmem:[%s3848_s0 + $0xe4] ss:$36 sps:$4 sm:$0xff]  }
  0x6f   :  { %1466 = vmatpush1.bf16.msra.mxu1 %v2739_v11  ;;  %v2825_v11 = vld [vmem:[%s3844_s1 + $0x464] ss:$8 sps:$4 sm:$0xff]  }
  0x70   :  { %1692 = vmatpush1.bf16.msra.mxu0 %v3427_v12  ;;  %1467 = vmatprep.subr.bf16.mxu1 %v2752_v14  ;;  %v2821_v14 = vld [vmem:[%s3848_s0 + $0xe0] ss:$36 sps:$4 sm:$0xff]  }
  0x71   :  { %1693 = vmatprep.subr.bf16.mxu0 %v3437_v16 }
  0x72   :  { %1423 = vmatmul.mubr.bf16.gmra.mrb[24].mxu1 %v2749_v17  ;;  %v2828_v17 = vld [vmem:[%s3844_s1 + $0x474] ss:$8 sps:$4 sm:$0xff]  }
  0x73   :  { %1649 = vmatmul.mubr.bf16.gmra.mrb[24].mxu0 %v2753_v20  ;;  %1468 = vmatpush1.bf16.msra.mxu1 %v2750_v18  ;;  %v2829_v18 = vld [vmem:[%s3848_s0 + $0x12c] ss:$36 sps:$4 sm:$0xff]  }
  0x74   :  { %1694 = vmatpush1.bf16.msra.mxu0 %v3451_v22  ;;  %1469 = vmatprep.subr.bf16.mxu1 %v2759_v23  ;;  %v2831_v20 = vld [vmem:[%s3848_s0 + $0x128] ss:$36 sps:$4 sm:$0xff]  }
  0x75   :  { %1695 = vmatprep.subr.bf16.mxu0 %v3461_v24  ;;  %1432 = vmatprep.mubr.bf16.mxu1 %v2763_v26  ;;  %v2836_v23 = vld [vmem:[%s3848_s0 + $0x68] ss:$36 sps:$4 sm:$0xff]  }
  0x76   :  { %1658 = vmatprep.mubr.bf16.mxu0 %v2765_v28  ;;  %v2852_v26 = vld [vmem:[%s3848_s0 + $0x188] ss:$36 sps:$4 sm:$0xff]  }
  0x77   :  { %1470 = vmatpush1.bf16.msra.mxu1 %v2757_v29  ;;  %v2853_v28 = vld [vmem:[%s3848_s0 + $0x1cc] ss:$36 sps:$4 sm:$0xff]  }
  0x78   :  { %1696 = vmatpush1.bf16.msra.mxu0 %v3475_v30  ;;  %1471 = vmatprep.subr.bf16.mxu1 %v2770_v32  ;;  %v2855_v29 = vld [vmem:[%s3848_s0 + $0x1c8] ss:$36 sps:$4 sm:$0xff]   ;;  %v2857_v32 = vld [vmem:[%s3848_s0 + $0x214] ss:$36 sps:$4 sm:$0xff]  }
  0x79   :  { %1697 = vmatprep.subr.bf16.mxu0 %v3485_v34 }
  0x7a   :  { %1433 = vmatmul.mubr.bf16.gmra.mrb[28].mxu1 %v2767_v35  ;;  %v2860_v35 = vld [vmem:[%s3848_s0 + $0x218] ss:$36 sps:$4 sm:$0xff]  }
  0x7b   :  { %1659 = vmatmul.mubr.bf16.gmra.mrb[28].mxu0 %v2771_v38  ;;  %1472 = vmatpush1.bf16.msra.mxu1 %v2768_v36 }
  0x7c   :  { %1698 = vmatpush1.bf16.msra.mxu0 %v3499_v40  ;;  %1473 = vmatprep.subr.bf16.mxu1 %v2777_v41 }
  0x7d   :  { %1699 = vmatprep.subr.bf16.mxu0 %v3509_v42  ;;  %1475 = vmatprep.mubr.bf16.mxu1 %v2783_v44 }
  0x7e   :  { %1701 = vmatprep.mubr.bf16.mxu0 %v2786_v46 }
  0x7f   :  { %1474 = vmatpush1.bf16.msra.mxu1 %v2775_v47 }
  0x80   :  { %1700 = vmatpush1.bf16.msra.mxu0 %v3524_v48  ;;  %2323 = vmatprep.subr.bf16.mxu1 %v3150_v3  ;;  %v2801_v3 = vld [vmem:[%s3844_s1 + $0x424] ss:$8 sps:$4 sm:$0xff]  }
  0x81   :  { %1782 = vmatprep.subr.bf16.mxu0 %v2789_v50 }
  0x82   :  { %1476 = vmatmul.mubr.bf16.vlgmr.msra.gmra.mrb[0].mxu1 %v2781_v52 }
  0x83   :  { %1702 = vmatmul.mubr.bf16.vlgmr.msra.gmra.mrb[0].mxu0 %v2784_v53  ;;  %2339 = vmatpush1.bf16.msra.mxu1 %v3164_v7  ;;  %v2798_v7 = vld [vmem:[%s3848_s0 + $0x60] ss:$36 sps:$4 sm:$0xff]  }
  0x84   :  { %1783 = vmatpush1.bf16.msra.mxu0 %v2787_v54  ;;  %2324 = vmatprep.subr.bf16.mxu1 %v3173_v9  ;;  %v2799_v9 = vld [vmem:[%s3844_s1 + $0x420] ss:$8 sps:$4 sm:$0xff]  }
  0x85   :  { %1784 = vmatprep.subr.bf16.mxu0 %v2792_v56  ;;  %1485 = vmatprep.mubr.bf16.mxu1 %v2793_v58 }
  0x86   :  { %1711 = vmatprep.mubr.bf16.mxu0 %v2795_v59 }
  0x87   :  { %2340 = vmatpush1.bf16.msra.mxu1 %v3188_v13  ;;  %v2807_v13 = vld [vmem:[%s3848_s0 + $0xac] ss:$36 sps:$4 sm:$0xff]  }
  0x88   :  { %1785 = vmatpush1.bf16.msra.mxu0 %v2790_v60  ;;  %2325 = vmatprep.subr.bf16.mxu1 %v3197_v15  ;;  %v2802_v15 = vld [vmem:[%s3844_s1 + $0x430] ss:$8 sps:$4 sm:$0xff]  }
  0x89   :  { %1786 = vmatprep.subr.bf16.mxu0 %v2801_v3 }
  0x8a   :  { %1486 = vmatmul.mubr.bf16.gmra.mrb[4].mxu1 %v2797_v62 }
  0x8b   :  { %1712 = vmatmul.mubr.bf16.gmra.mrb[4].mxu0 %v2798_v7  ;;  %2341 = vmatpush1.bf16.msra.mxu1 %v3211_v19  ;;  %v2810_v19 = vld [vmem:[%s3848_s0 + $0xa8] ss:$36 sps:$4 sm:$0xff]  }
  0x8c   :  { %1787 = vmatpush1.bf16.msra.mxu0 %v2799_v9  ;;  %2326 = vmatprep.subr.bf16.mxu1 %v3221_v21  ;;  %v2811_v21 = vld [vmem:[%s3844_s1 + $0x440] ss:$8 sps:$4 sm:$0xff]  }
  0x8d   :  { %1788 = vmatprep.subr.bf16.mxu0 %v2804_v0  ;;  %1495 = vmatprep.mubr.bf16.mxu1 %v2805_v1 }
  0x8e   :  { %1721 = vmatprep.mubr.bf16.mxu0 %v2807_v13 }
  0x8f   :  { %2342 = vmatpush1.bf16.msra.mxu1 %v3236_v25  ;;  %v2819_v25 = vld [vmem:[%s3848_s0 + $0xf4] ss:$36 sps:$4 sm:$0xff]  }
  0x90   :  { %1789 = vmatpush1.bf16.msra.mxu0 %v2802_v15  ;;  %2327 = vmatprep.subr.bf16.mxu1 %v3245_v27  ;;  %v2814_v27 = vld [vmem:[%s3844_s1 + $0x450] ss:$8 sps:$4 sm:$0xff]  }
  0x91   :  { %1790 = vmatprep.subr.bf16.mxu0 %v2813_v2 }
  0x92   :  { %1496 = vmatmul.mubr.bf16.gmra.mrb[8].mxu1 %v2809_v5 }
  0x93   :  { %1722 = vmatmul.mubr.bf16.gmra.mrb[8].mxu0 %v2810_v19  ;;  %2343 = vmatpush1.bf16.msra.mxu1 %v3259_v31  ;;  %v2822_v31 = vld [vmem:[%s3848_s0 + $0xf0] ss:$36 sps:$4 sm:$0xff]  }
  0x94   :  { %1791 = vmatpush1.bf16.msra.mxu0 %v2811_v21  ;;  %2328 = vmatprep.subr.bf16.mxu1 %v3269_v33  ;;  %v2823_v33 = vld [vmem:[%s3844_s1 + $0x460] ss:$8 sps:$4 sm:$0xff]  }
  0x95   :  { %1792 = vmatprep.subr.bf16.mxu0 %v2816_v8  ;;  %1505 = vmatprep.mubr.bf16.mxu1 %v2817_v10 }
  0x96   :  { %1731 = vmatprep.mubr.bf16.mxu0 %v2819_v25 }
  0x97   :  { %2344 = vmatpush1.bf16.msra.mxu1 %v3284_v37  ;;  %v2826_v37 = vld [vmem:[%s3844_s1 + $0x470] ss:$8 sps:$4 sm:$0xff]  }
  0x98   :  { %1793 = vmatpush1.bf16.msra.mxu0 %v2814_v27  ;;  %2329 = vmatprep.subr.bf16.mxu1 %v3293_v39  ;;  %v2919_v39 = vmov 0  }
  0x99   :  { %1794 = vmatprep.subr.bf16.mxu0 %v2825_v11 }
  0x9a   :  { %1506 = vmatmul.mubr.bf16.gmra.mrb[12].mxu1 %v2821_v14 }
  0x9b   :  { %1732 = vmatmul.mubr.bf16.gmra.mrb[12].mxu0 %v2822_v31  ;;  %2345 = vmatpush1.bf16.msra.mxu1 %v3307_v43  ;;  %v2832_v43 = vld [vmem:[%s3848_s0 + $0x20] ss:$36 sps:$4 sm:$0xff]  }
  0x9c   :  { %1795 = vmatpush1.bf16.msra.mxu0 %v2823_v33  ;;  %2330 = vmatprep.subr.bf16.mxu1 %v3317_v45  ;;  %v2833_v45 = vld [vmem:[%s3848_s0 + $0x174] ss:$36 sps:$4 sm:$0xff]  }
  0x9d   :  { %1796 = vmatprep.subr.bf16.mxu0 %v2828_v17  ;;  %1515 = vmatprep.mubr.bf16.mxu1 %v2829_v18 }
  0x9e   :  { %1814 = vmatprep.mubr.bf16.mxu0 %v2919_v39 }
  0x9f   :  { %2346 = vmatpush1.bf16.msra.mxu1 %v3332_v49  ;;  %v2835_v49 = vld [vmem:[%s3848_s0 + $0x170] ss:$36 sps:$4 sm:$0xff]  }
  0xa0   :  { %1797 = vmatpush1.bf16.msra.mxu0 %v2826_v37  ;;  %2331 = vmatprep.subr.bf16.mxu1 %v3341_v51  ;;  %v2837_v51 = vld [vmem:[%s3848_s0 + $0x1bc] ss:$36 sps:$4 sm:$0xff]  }
  0xa2   :  { %1516 = vmatmul.mubr.bf16.gmra.mrb[16].mxu1 %v2831_v20 }
  0xa3   :  { %1815 = vmatmul.mubr.bf16.vlgmr.msra.gmra.mrb[0].mxu0 %v2832_v43  ;;  %2347 = vmatpush1.bf16.msra.mxu1 %v3355_v55  ;;  %v2839_v55 = vld [vmem:[%s3848_s0 + $0x1b8] ss:$36 sps:$4 sm:$0xff]  }
  0xa4   :  { %1525 = vmatprep.mubr.bf16.mxu1 %v2833_v45  ;;  %2332 = vmatprep.subr.bf16.mxu1 %v3365_v57  ;;  %v2840_v57 = vld [vmem:[%s3848_s0 + $0xb0] ss:$36 sps:$4 sm:$0xff]  }
  0xa5   :  { %1824 = vmatprep.mubr.bf16.mxu0 %v2919_v39 }
  0xa7   :  { %2348 = vmatpush1.bf16.msra.mxu1 %v3380_v61  ;;  %v2841_v61 = vld [vmem:[%s3848_s0 + $0x204] ss:$36 sps:$4 sm:$0xff]  }
  0xa8   :  { %2333 = vmatprep.subr.bf16.mxu1 %v3389_v63  ;;  %v2843_v63 = vld [vmem:[%s3848_s0 + $0x200] ss:$36 sps:$4 sm:$0xff]  }
  0xaa   :  { %1526 = vmatmul.mubr.bf16.gmra.mrb[20].mxu1 %v2835_v49 }
  0xab   :  { %1825 = vmatmul.mubr.bf16.gmra.mrb[4].mxu0 %v2836_v23  ;;  %2349 = vmatpush1.bf16.msra.mxu1 %v3403_v4  ;;  %v2844_v4 = vld [vmem:[%s3848_s0 + $0xf8] ss:$36 sps:$4 sm:$0xff]  }
  0xac   :  { %1535 = vmatprep.mubr.bf16.mxu1 %v2837_v51  ;;  %2334 = vmatprep.subr.bf16.mxu1 %v3413_v6  ;;  %v2847_v6 = vld [vmem:[%s3848_s0 + $0x13c] ss:$36 sps:$4 sm:$0xff]  }
  0xad   :  { %1834 = vmatprep.mubr.bf16.mxu0 %v2919_v39 }
  0xaf   :  { %2350 = vmatpush1.bf16.msra.mxu1 %v3427_v12  ;;  %v2845_v12 = vld [vmem:[%s3848_s0 + $0x138] ss:$36 sps:$4 sm:$0xff]  }
  0xb0   :  { %2335 = vmatprep.subr.bf16.mxu1 %v3437_v16  ;;  %v2848_v16 = vld [vmem:[%s3848_s0 + $0x140] ss:$36 sps:$4 sm:$0xff]  }
  0xb2   :  { %1536 = vmatmul.mubr.bf16.gmra.mrb[24].mxu1 %v2839_v55 }
  0xb3   :  { %1835 = vmatmul.mubr.bf16.gmra.mrb[8].mxu0 %v2840_v57  ;;  %2351 = vmatpush1.bf16.msra.mxu1 %v3451_v22  ;;  %v2849_v22 = vld [vmem:[%s3848_s0 + $0x184] ss:$36 sps:$4 sm:$0xff]  }
  0xb4   :  { %1545 = vmatprep.mubr.bf16.mxu1 %v2841_v61  ;;  %2336 = vmatprep.subr.bf16.mxu1 %v3461_v24  ;;  %v2851_v24 = vld [vmem:[%s3848_s0 + $0x180] ss:$36 sps:$4 sm:$0xff]  }
  0xb5   :  { %1844 = vmatprep.mubr.bf16.mxu0 %v2919_v39 }
  0xb7   :  { %2352 = vmatpush1.bf16.msra.mxu1 %v3475_v30  ;;  %v2856_v30 = vld [vmem:[%s3848_s0 + $0x1d0] ss:$36 sps:$4 sm:$0xff]  }
  0xb8   :  { %2337 = vmatprep.subr.bf16.mxu1 %v3485_v34  ;;  %v2859_v34 = vld [vmem:[%s3848_s0 + $0x210] ss:$36 sps:$4 sm:$0xff]   ;;  %s3814_s0 = smov 0  }
  0xba   :  { %1546 = vmatmul.mubr.bf16.gmra.mrb[28].mxu1 %v2843_v63 }
  0xbb   :  { %1845 = vmatmul.mubr.bf16.gmra.mrb[12].mxu0 %v2844_v4  ;;  %2353 = vmatpush1.bf16.msra.mxu1 %v3499_v40 }
  0xbc   :  { %1741 = vmatprep.mubr.bf16.mxu1 %v2847_v6  ;;  %2338 = vmatprep.subr.bf16.mxu1 %v3509_v42 }
  0xbd   :  { %1854 = vmatprep.mubr.bf16.mxu0 %v2919_v39 }
  0xbf   :  { %2354 = vmatpush1.bf16.msra.mxu1 %v3524_v48 }
  0xc2   :  { %1742 = vmatmul.mubr.bf16.vlgmr.msra.gmra.mrb[32].mxu1 %v2845_v12 }
  0xc3   :  { %1855 = vmatmul.mubr.bf16.gmra.mrb[32].mxu0 %v2848_v16  ;;  %1751 = vmatprep.mubr.bf16.mxu1 %v2849_v22 }
  0xc4   :  { %1864 = vmatprep.mubr.bf16.mxu0 %v2919_v39 }
  0xca   :  { %1752 = vmatmul.mubr.bf16.gmra.mrb[36].mxu1 %v2851_v24 }
  0xcb   :  { %1865 = vmatmul.mubr.bf16.gmra.mrb[36].mxu0 %v2852_v26  ;;  %1761 = vmatprep.mubr.bf16.mxu1 %v2853_v28 }
  0xcc   :  { %1874 = vmatprep.mubr.bf16.mxu0 %v2919_v39 }
  0xd2   :  { %1762 = vmatmul.mubr.bf16.gmra.mrb[40].mxu1 %v2855_v29 }
  0xd3   :  { %1875 = vmatmul.mubr.bf16.gmra.mrb[40].mxu0 %v2856_v30  ;;  %1771 = vmatprep.mubr.bf16.mxu1 %v2857_v32 }
  0xd4   :  { %1884 = vmatprep.mubr.bf16.mxu0 %v2919_v39 }
  0xda   :  { %1772 = vmatmul.mubr.bf16.gmra.mrb[44].mxu1 %v2859_v34 }
  0xdb   :  { %1885 = vmatmul.mubr.bf16.gmra.mrb[44].mxu0 %v2860_v35 }
 0x136   :  { %v1630_v36 = vpop.f32.mrb[16].mxu0 }
 0x137   :  { %v1632_v38 = vpop.f32.mrb[17].mxu0 }
 0x138   :  { %v1634_v40 = vpop.f32.mrb[18].mxu0 }
 0x139   :  { %v1636_v41 = vpop.f32.mrb[19].mxu0 }
 0x13e   :  { %v1640_v42 = vpop.f32.mrb[20].mxu0 }
 0x13f   :  { %v1642_v44 = vpop.f32.mrb[21].mxu0 }
 0x140   :  { %v1644_v46 = vpop.f32.mrb[22].mxu0 }
 0x141   :  { %v1646_v47 = vpop.f32.mrb[23].mxu0 }
 0x146   :  { %v3730_v48 = vpop.f32.mrb[24].mxu0 }
 0x147   :  { %v3732_v50 = vpop.f32.mrb[25].mxu0 }
 0x148   :  { %v3734_v52 = vpop.f32.mrb[26].mxu0 }
 0x149   :  { %v3736_v53 = vpop.f32.mrb[27].mxu0 }
 0x14e   :  { %v3738_v54 = vpop.f32.mrb[28].mxu0 }
 0x14f   :  { %v3740_v56 = vpop.f32.mrb[29].mxu0 }
 0x150   :  { %v3742_v58 = vpop.f32.mrb[30].mxu0 }
 0x151   :  { %v3744_v59 = vpop.f32.mrb[31].mxu0 }
 0x155   :  { %v1477_v60 = vpop.f32.mrb[0].mxu1 }
 0x156   :  { %v1479_v3 = vpop.f32.mrb[1].mxu1 }
 0x157   :  { %v1481_v62 = vpop.f32.mrb[2].mxu1 }
 0x158   :  { %v1483_v7 = vpop.f32.mrb[3].mxu1 }
 0x15d   :  { %v1487_v9 = vpop.f32.mrb[4].mxu1 }
 0x15e   :  { %v1489_v0 = vpop.f32.mrb[5].mxu1 }
 0x15f   :  { %v1491_v1 = vpop.f32.mrb[6].mxu1 }
 0x160   :  { %v1493_v13 = vpop.f32.mrb[7].mxu1 }
 0x165   :  { %v1497_v15 = vpop.f32.mrb[8].mxu1 }
 0x166   :  { %v1499_v2 = vpop.f32.mrb[9].mxu1 }
 0x167   :  { %v1501_v5 = vpop.f32.mrb[10].mxu1 }
 0x168   :  { %v1503_v19 = vpop.f32.mrb[11].mxu1 }
 0x16d   :  { %v3746_v21 = vpop.f32.mrb[12].mxu1 }
 0x16e   :  { %v3748_v8 = vpop.f32.mrb[13].mxu1 }
 0x16f   :  { %v3750_v10 = vpop.f32.mrb[14].mxu1 }
 0x170   :  { %v3752_v25 = vpop.f32.mrb[15].mxu1 }
 0x175   :  { %v1517_v27 = vpop.f32.mrb[16].mxu1 }
 0x176   :  { %v1816_v11 = vpop.f32.mrb[0].mxu0  ;;  %v3754_v14 = vadd.f32 %v1630_v36, %v1517_v27  ;;  %v1519_v33 = vpop.f32.mrb[17].mxu1 }
 0x177   :  { %v2355_v31 = vadd.f32 %v1816_v11, %v1477_v60  ;;  %v1818_v17 = vpop.f32.mrb[1].mxu0  ;;  %v3756_v18 = vadd.f32 %v1632_v38, %v1519_v33  ;;  %v1521_v39 = vpop.f32.mrb[18].mxu1 }
 0x178   :  { %v2356_v37 = vadd.f32 %v1818_v17, %v1479_v3  ;;  %v1820_v20 = vpop.f32.mrb[2].mxu0  ;;  %v3758_v43 = vadd.f32 %v1634_v40, %v1521_v39  ;;  %v1523_v49 = vpop.f32.mrb[19].mxu1 }
 0x179   :  { %1895 = vst [vmem:[#allocation2] sm:$0xff] %v2355_v31  ;;  %v2357_v45 = vadd.f32 %v1820_v20, %v1481_v62  ;;  %v1822_v23 = vpop.f32.mrb[3].mxu0  ;;  %v3760_v51 = vadd.f32 %v1636_v41, %v1523_v49 }
 0x17a   :  { %1896 = vst [vmem:[#allocation2 + $0x8] sm:$0xff] %v2356_v37  ;;  %v2358_v55 = vadd.f32 %v1822_v23, %v1483_v7 }
 0x17b   :  { %1897 = vst [vmem:[#allocation2 + $0x10] sm:$0xff] %v2357_v45 }
 0x17c   :  { %1898 = vst [vmem:[#allocation2 + $0x18] sm:$0xff] %v2358_v55 }
 0x17d   :  { %v1527_v57 = vpop.f32.mrb[20].mxu1 }
 0x17e   :  { %v1826_v61 = vpop.f32.mrb[4].mxu0  ;;  %v3762_v63 = vadd.f32 %v1640_v42, %v1527_v57  ;;  %v1529_v6 = vpop.f32.mrb[21].mxu1 }
 0x17f   :  { %v2359_v4 = vadd.f32 %v1826_v61, %v1487_v9  ;;  %v1828_v12 = vpop.f32.mrb[5].mxu0  ;;  %v3764_v16 = vadd.f32 %v1642_v44, %v1529_v6  ;;  %v1531_v24 = vpop.f32.mrb[22].mxu1 }
 0x180   :  { %v2360_v22 = vadd.f32 %v1828_v12, %v1489_v0  ;;  %v1830_v26 = vpop.f32.mrb[6].mxu0  ;;  %v3766_v28 = vadd.f32 %v1644_v46, %v1531_v24  ;;  %v1533_v30 = vpop.f32.mrb[23].mxu1 }
 0x181   :  { %1899 = vst [vmem:[#allocation2 + $0x20] sm:$0xff] %v2359_v4  ;;  %v2361_v29 = vadd.f32 %v1830_v26, %v1491_v1  ;;  %v1832_v32 = vpop.f32.mrb[7].mxu0  ;;  %v3768_v34 = vadd.f32 %v1646_v47, %v1533_v30 }
 0x182   :  { %1900 = vst [vmem:[#allocation2 + $0x28] sm:$0xff] %v2360_v22  ;;  %v2362_v35 = vadd.f32 %v1832_v32, %v1493_v13 }
 0x183   :  { %1901 = vst [vmem:[#allocation2 + $0x30] sm:$0xff] %v2361_v29 }
 0x184   :  { %1902 = vst [vmem:[#allocation2 + $0x38] sm:$0xff] %v2362_v35 }
 0x185   :  { %v1537_v36 = vpop.f32.mrb[24].mxu1 }
 0x186   :  { %v1836_v38 = vpop.f32.mrb[8].mxu0  ;;  %v3771_v40 = vadd.f32 %v3730_v48, %v1537_v36  ;;  %v1539_v42 = vpop.f32.mrb[25].mxu1 }
 0x187   :  { %v2363_v41 = vadd.f32 %v1836_v38, %v1497_v15  ;;  %v1838_v44 = vpop.f32.mrb[9].mxu0  ;;  %v3774_v46 = vadd.f32 %v3732_v50, %v1539_v42  ;;  %v1541_v3 = vpop.f32.mrb[26].mxu1 }
 0x188   :  { %v2364_v60 = vadd.f32 %v1838_v44, %v1499_v2  ;;  %v1840_v62 = vpop.f32.mrb[10].mxu0  ;;  %v3777_v47 = vadd.f32 %v3734_v52, %v1541_v3  ;;  %v1543_v9 = vpop.f32.mrb[27].mxu1 }
 0x189   :  { %1903 = vst [vmem:[#allocation2 + $0x40] sm:$0xff] %v2363_v41  ;;  %v2365_v7 = vadd.f32 %v1840_v62, %v1501_v5  ;;  %v1842_v0 = vpop.f32.mrb[11].mxu0  ;;  %v3780_v48 = vadd.f32 %v3736_v53, %v1543_v9 }
 0x18a   :  { %1904 = vst [vmem:[#allocation2 + $0x48] sm:$0xff] %v2364_v60  ;;  %v2366_v1 = vadd.f32 %v1842_v0, %v1503_v19 }
 0x18b   :  { %1905 = vst [vmem:[#allocation2 + $0x50] sm:$0xff] %v2365_v7 }
 0x18c   :  { %1906 = vst [vmem:[#allocation2 + $0x58] sm:$0xff] %v2366_v1 }
 0x18d   :  { %v1547_v13 = vpop.f32.mrb[28].mxu1 }
 0x18e   :  { %v1846_v50 = vpop.f32.mrb[12].mxu0  ;;  %v3783_v15 = vadd.f32 %v3738_v54, %v1547_v13  ;;  %v1549_v27 = vpop.f32.mrb[29].mxu1 }
 0x18f   :  { %v2367_v2 = vadd.f32 %v1846_v50, %v3746_v21  ;;  %v1848_v52 = vpop.f32.mrb[13].mxu0  ;;  %v3787_v5 = vadd.f32 %v3740_v56, %v1549_v27  ;;  %v1551_v31 = vpop.f32.mrb[30].mxu1 }
 0x190   :  { %v2368_v11 = vadd.f32 %v1848_v52, %v3748_v8  ;;  %v1850_v53 = vpop.f32.mrb[14].mxu0  ;;  %v3791_v19 = vadd.f32 %v3742_v58, %v1551_v31  ;;  %v1553_v17 = vpop.f32.mrb[31].mxu1 }
 0x191   :  { %1907 = vst [vmem:[#allocation2 + $0x60] sm:$0xff] %v2367_v2  ;;  %v2369_v33 = vadd.f32 %v1850_v53, %v3750_v10  ;;  %v1852_v54 = vpop.f32.mrb[15].mxu0  ;;  %v3795_v21 = vadd.f32 %v3744_v59, %v1553_v17 }
 0x192   :  { %1908 = vst [vmem:[#allocation2 + $0x68] sm:$0xff] %v2368_v11  ;;  %v2370_v37 = vadd.f32 %v1852_v54, %v3752_v25 }
 0x193   :  { %1909 = vst [vmem:[#allocation2 + $0x70] sm:$0xff] %v2369_v33 }
 0x194   :  { %1910 = vst [vmem:[#allocation2 + $0x78] sm:$0xff] %v2370_v37 }
 0x195   :  { %v1743_v56 = vpop.f32.mrb[32].mxu1 }
 0x196   :  { %v1856_v8 = vpop.f32.mrb[32].mxu0  ;;  %v2372_v39 = vadd.f32 %v3754_v14, %v1743_v56  ;;  %v1745_v20 = vpop.f32.mrb[33].mxu1 }
 0x197   :  { %v1858_v45 = vpop.f32.mrb[33].mxu0  ;;  %v2375_v58 = vadd.f32 %v3756_v18, %v1745_v20  ;;  %v1747_v49 = vpop.f32.mrb[34].mxu1 }
 0x198   :  { %v1860_v10 = vpop.f32.mrb[34].mxu0  ;;  %v2373_v23 = vadd.f32 %v2372_v39, %v1856_v8  ;;  %v2378_v55 = vadd.f32 %v3758_v43, %v1747_v49  ;;  %v1749_v57 = vpop.f32.mrb[35].mxu1 }
 0x199   :  { %v1862_v59 = vpop.f32.mrb[35].mxu0  ;;  %v2376_v61 = vadd.f32 %v2375_v58, %v1858_v45  ;;  %v2381_v25 = vadd.f32 %v3760_v51, %v1749_v57  ;;  %v2895_v45 = vmov 0.0  }
 0x19a   :  { %1911 = vst [vmem:[#allocation2 + $0x80] sm:$0xff] %v2373_v23  ;;  %v2379_v4 = vadd.f32 %v2378_v55, %v1860_v10 }
 0x19b   :  { %1912 = vst [vmem:[#allocation2 + $0x88] sm:$0xff] %v2376_v61  ;;  %v2382_v6 = vadd.f32 %v2381_v25, %v1862_v59 }
 0x19c   :  { %1913 = vst [vmem:[#allocation2 + $0x90] sm:$0xff] %v2379_v4 }
 0x19d   :  { %1914 = vst [vmem:[#allocation2 + $0x98] sm:$0xff] %v2382_v6  ;;  %v1753_v14 = vpop.f32.mrb[36].mxu1 }
 0x19e   :  { %v1866_v12 = vpop.f32.mrb[36].mxu0  ;;  %v2384_v18 = vadd.f32 %v3762_v63, %v1753_v14  ;;  %v1755_v22 = vpop.f32.mrb[37].mxu1 }
 0x19f   :  { %v1868_v24 = vpop.f32.mrb[37].mxu0  ;;  %v2387_v26 = vadd.f32 %v3764_v16, %v1755_v22  ;;  %v1757_v43 = vpop.f32.mrb[38].mxu1 }
 0x1a0   :  { %v1870_v29 = vpop.f32.mrb[38].mxu0  ;;  %v2385_v30 = vadd.f32 %v2384_v18, %v1866_v12  ;;  %v2390_v32 = vadd.f32 %v3766_v28, %v1757_v43  ;;  %v1759_v51 = vpop.f32.mrb[39].mxu1 }
 0x1a1   :  { %v1872_v35 = vpop.f32.mrb[39].mxu0  ;;  %v2388_v36 = vadd.f32 %v2387_v26, %v1868_v24  ;;  %v2393_v38 = vadd.f32 %v3768_v34, %v1759_v51 }
 0x1a2   :  { %1915 = vst [vmem:[#allocation2 + $0xa0] sm:$0xff] %v2385_v30  ;;  %v2391_v41 = vadd.f32 %v2390_v32, %v1870_v29 }
 0x1a3   :  { %1916 = vst [vmem:[#allocation2 + $0xa8] sm:$0xff] %v2388_v36  ;;  %v2394_v42 = vadd.f32 %v2393_v38, %v1872_v35 }
 0x1a4   :  { %1917 = vst [vmem:[#allocation2 + $0xb0] sm:$0xff] %v2391_v41 }
 0x1a5   :  { %1918 = vst [vmem:[#allocation2 + $0xb8] sm:$0xff] %v2394_v42  ;;  %v1763_v63 = vpop.f32.mrb[40].mxu1 }
 0x1a6   :  { %v1876_v44 = vpop.f32.mrb[40].mxu0  ;;  %v2396_v16 = vadd.f32 %v3771_v40, %v1763_v63  ;;  %v1765_v60 = vpop.f32.mrb[41].mxu1 }
 0x1a7   :  { %v1878_v3 = vpop.f32.mrb[41].mxu0  ;;  %v2399_v62 = vadd.f32 %v3774_v46, %v1765_v60  ;;  %v1767_v28 = vpop.f32.mrb[42].mxu1 }
 0x1a8   :  { %v1880_v7 = vpop.f32.mrb[42].mxu0  ;;  %v2397_v9 = vadd.f32 %v2396_v16, %v1876_v44  ;;  %v2402_v0 = vadd.f32 %v3777_v47, %v1767_v28  ;;  %v1769_v34 = vpop.f32.mrb[43].mxu1 }
 0x1a9   :  { %v1882_v1 = vpop.f32.mrb[43].mxu0  ;;  %v2400_v13 = vadd.f32 %v2399_v62, %v1878_v3  ;;  %v2405_v50 = vadd.f32 %v3780_v48, %v1769_v34 }
 0x1aa   :  { %1919 = vst [vmem:[#allocation2 + $0xc0] sm:$0xff] %v2397_v9  ;;  %v2403_v2 = vadd.f32 %v2402_v0, %v1880_v7 }
 0x1ab   :  { %1920 = vst [vmem:[#allocation2 + $0xc8] sm:$0xff] %v2400_v13  ;;  %v2406_v27 = vadd.f32 %v2405_v50, %v1882_v1 }
 0x1ac   :  { %1921 = vst [vmem:[#allocation2 + $0xd0] sm:$0xff] %v2403_v2 }
 0x1ad   :  { %1922 = vst [vmem:[#allocation2 + $0xd8] sm:$0xff] %v2406_v27  ;;  %v1773_v40 = vpop.f32.mrb[44].mxu1 }
 0x1ae   :  { %v1886_v52 = vpop.f32.mrb[44].mxu0  ;;  %v2408_v46 = vadd.f32 %v3783_v15, %v1773_v40  ;;  %v1775_v11 = vpop.f32.mrb[45].mxu1  ;;  %v2891_v15 = vmov 0.0  }
 0x1af   :  { %v1888_v31 = vpop.f32.mrb[45].mxu0  ;;  %v2411_v53 = vadd.f32 %v3787_v5, %v1775_v11  ;;  %v1777_v47 = vpop.f32.mrb[46].mxu1 }
 0x1b0   :  { %v1890_v33 = vpop.f32.mrb[46].mxu0  ;;  %v2409_v17 = vadd.f32 %v2408_v46, %v1886_v52  ;;  %v2414_v54 = vadd.f32 %v3791_v19, %v1777_v47  ;;  %v1779_v48 = vpop.f32.mrb[47].mxu1 }
 0x1b1   :  { %v1892_v37 = vpop.f32.mrb[47].mxu0  ;;  %v2412_v56 = vadd.f32 %v2411_v53, %v1888_v31  ;;  %v2417_v8 = vadd.f32 %v3795_v21, %v1779_v48 }
 0x1b2   :  { %1923 = vst [vmem:[#allocation2 + $0xe0] sm:$0xff] %v2409_v17  ;;  %v2415_v39 = vadd.f32 %v2414_v54, %v1890_v33 }
 0x1b3   :  { %1924 = vst [vmem:[#allocation2 + $0xe8] sm:$0xff] %v2412_v56  ;;  %v2418_v20 = vadd.f32 %v2417_v8, %v1892_v37 }
 0x1b4   :  { %1925 = vst [vmem:[#allocation2 + $0xf0] sm:$0xff] %v2415_v39 }
 0x1b5   :  { %1926 = vst [vmem:[#allocation2 + $0xf8] sm:$0xff] %v2418_v20 }
 0x1b6 LB: > { %s2307_s29 = sshll.u32 %s2901_s0, 3  ;;  %s1932_s0 = sadd.s32 1, %s2901_s0   ;;  %s2901_s0 = sphi %s3814_s0, %s1932_s0   ;;  %v2897_v45 = vphi %v2895_v45, %v2896_v45   ;;  %v2893_v15 = vphi %v2891_v15, %v2892_v15  }
 0x1b7   : > { %s1936_s30 = sshra.s32 %s2307_s29, 3  ;;  %p1929_p0 = scmp.ge.s32.totalorder %s1932_s0, 16  }
 0x1b8   : > { %s2318_s5 = sshll.u32 %s1936_s30, 4  ;;  %s2920_s7 = smov (%p1929_p0), 64   ;;  %v2903_v43 = vmov (%p1929_p0), 0.0   ;;  %v2907_v29 = vmov (%p1929_p0), 0.0  }
 0x1b9   : > { %s1940_s6 = scalar_lea.vmem [#allocation2], %s2318_s5  ;;  %s3820_s8 = smov (%p1929_p0), 0  }
 0x1bc   : > { %v1941_v5 = vld [vmem:[%s1940_s6] sm:$0xff]  ;;  %v1942_v19 = vld [vmem:[%s1940_s6 + $0x8] sm:$0xff] }
 0x1bd   : > { %v1943_v21 = vrot.slane %v1941_v5, 4  ;;  %v1949_v58 = vrot.slane %v1942_v19, 4 }
 0x1bf   : > { %v1944_v49 = vadd.f32 %v1943_v21, %v1941_v5  ;;  %v1950_v10 = vadd.f32 %v1949_v58, %v1942_v19 }
 0x1c1   : > { %v1945_v23 = vrot.slane %v1944_v49, 2  ;;  %v1951_v55 = vrot.slane %v1950_v10, 2 }
 0x1c3   : > { %v1946_v57 = vadd.f32 %v1945_v23, %v1944_v49  ;;  %v1952_v59 = vadd.f32 %v1951_v55, %v1950_v10 }
 0x1c5   : > { %v1947_v61 = vrot.slane %v1946_v57, 1  ;;  %v1953_v25 = vrot.slane %v1952_v59, 1  ;;  %1931 = sbr.rel (!%p1929_p0) target bundleno = 438 (0x1b6), region = 61 }
 0x1c7   : > { %v1948_v4 = vadd.f32 %v1947_v61, %v1946_v57  ;;  %v1954_v6 = vadd.f32 %v1953_v25, %v1952_v59 }
 0x1c9   : > { %v1955_v14 = vadd.f32 %v2897_v45, %v1948_v4   ;;  %v1956_v12 = vadd.f32 %v2893_v15, %v1954_v6  }
 0x1cb   : > { %v2892_v15 = vmov %v1956_v12   ;;  %v2896_v45 = vmov %v1955_v14   ;;  %v1957_v18 = vadd.f32 (%p1929_p0), %v1956_v12, %v1955_v14 }
 0x1cd   :  { %1958 = vrot.lane.b32.xlu0 %v1957_v18, %s2920_s7 }
 0x23f   :  { %v1959_v22 = vpop.permute.xlu0 %1958 }
 0x240   :  { %v1960_v24 = vadd.f32 %v1959_v22, %v1957_v18 }
 0x242   :  { %v1962_v26 = vmul.f32 0.001953125, %v1960_v24 }
 0x243 LB: > { %v1979_v30 = vlaneseq  ;;  %s2310_s9 = sshll.u32 %s2913_s8, 3  ;;  %s1968_s8 = sadd.s32 1, %s2913_s8   ;;  %s2913_s8 = sphi %s3820_s8, %s1968_s8   ;;  %v2909_v29 = vphi %v2907_v29, %v2908_v29   ;;  %v2905_v43 = vphi %v2903_v43, %v2904_v43  }
 0x244   : > { %s1972_s10 = sshra.s32 %s2310_s9, 3  ;;  %p1965_p1 = scmp.ge.s32.totalorder %s1968_s8, 16  }
 0x245   : > { %v1980_v32 = vshrl.u32 %v1979_v30, 7  ;;  %s2319_s11 = sshll.u32 %s1972_s10, 4  ;;  %v2008_v53 = vld [vmem:[%s3845_s2] sm:$0x1] (%p1965_p1)  ;;  %s2915_s16 = smov (%p1965_p1), 0  }
 0x246   : > { %s1976_s12 = scalar_lea.vmem [#allocation2], %s2319_s11  ;;  %v2010_v17 = vld [vmem:[%s3846_s3] sm:$0x1] (%p1965_p1) }
 0x247   : > { %v3826_v51 = vsub.s32 0, %v1980_v32  ;;  %v1977_v35 = vld [vmem:[%s1976_s12] sm:$0xff]  ;;  %v1978_v36 = vld [vmem:[%s1976_s12 + $0x8] sm:$0xff] }
 0x249   : > { %v1982_v38 = vrot.slane %v1962_v26, %v3826_v51 }
 0x24b   : > { %v1983_v41 = vsub.f32 %v1977_v35, %v1982_v38  ;;  %v1984_v42 = vsub.f32 %v1978_v36, %v1982_v38 }
 0x24d   : > { %v1985_v63 = vmul.f32 %v1983_v41, %v1983_v41  ;;  %v1986_v44 = vmul.f32 %v1984_v42, %v1984_v42 }
 0x24f   : > { %v1987_v16 = vrot.slane %v1985_v63, 4  ;;  %v1993_v60 = vrot.slane %v1986_v44, 4 }
 0x251   : > { %v1988_v3 = vadd.f32 %v1987_v16, %v1985_v63  ;;  %v1994_v62 = vadd.f32 %v1993_v60, %v1986_v44 }
 0x253   : > { %v1989_v28 = vrot.slane %v1988_v3, 2  ;;  %v1995_v7 = vrot.slane %v1994_v62, 2 }
 0x255   : > { %v1990_v9 = vadd.f32 %v1989_v28, %v1988_v3  ;;  %v1996_v0 = vadd.f32 %v1995_v7, %v1994_v62 }
 0x257   : > { %v1991_v34 = vrot.slane %v1990_v9, 1  ;;  %v1997_v1 = vrot.slane %v1996_v0, 1  ;;  %1967 = sbr.rel (!%p1965_p1) target bundleno = 579 (0x243), region = 72 }
 0x259   : > { %v1992_v13 = vadd.f32 %v1991_v34, %v1990_v9  ;;  %v1998_v50 = vadd.f32 %v1997_v1, %v1996_v0 }
 0x25b   : > { %v1999_v2 = vadd.f32 %v2909_v29, %v1992_v13   ;;  %v2000_v27 = vadd.f32 %v2905_v43, %v1998_v50  }
 0x25d   : > { %v2904_v43 = vmov %v2000_v27   ;;  %v2908_v29 = vmov %v1999_v2   ;;  %v2001_v40 = vadd.f32 (%p1965_p1), %v2000_v27, %v1999_v2 }
 0x25f   :  { %2002 = vrot.lane.b32.xlu0 %v2001_v40, %s2920_s7 }
 0x2d1   :  { %v2003_v52 = vpop.permute.xlu0 %2002 }
 0x2d2   :  { %v2004_v46 = vadd.f32 %v2003_v52, %v2001_v40 }
 0x2d4   :  { %v2005_v11 = vmul.f32 0.001953125, %v2004_v46 }
 0x2d6   :  { %v2006_v31 = vadd.f32 1e-05, %v2005_v11 }
 0x2d8   :  { %2861 = vrsqrt.f32 %v2006_v31 }
 0x2e2   :  { %v2862_v47 = vpop.eup %2861 }
 0x2e3   :  { %v2009_v33 = vmul.f32 %v2862_v47, %v2008_v53 }
 0x2e5   :  { %v2011_v54 = vmul.f32 %v2009_v33, %v1962_v26 }
 0x2e7   :  { %v2012_v48 = vsub.f32 %v2010_v17, %v2011_v54 }
 0x2e8 LB: > { %s2313_s17 = sshll.u32 %s2917_s16, 3  ;;  %v2030_v37 = vrot.slane %v2009_v33, %v3826_v51  ;;  %s2018_s16 = sadd.s32 1, %s2917_s16   ;;  %s2917_s16 = sphi %s2915_s16, %s2018_s16  }
 0x2e9   : > { %s2020_s18 = sshra.s32 %s2313_s17, 3  ;;  %v2036_v56 = vrot.slane %v2012_v48, %v3826_v51  ;;  %s2050_s21 = scalar_lea.vmem %s3847_s4, %s2313_s17 }
 0x2ea   : > { %s2320_s19 = sshll.u32 %s2020_s18, 4  ;;  %p2015_p2 = scmp.ge.s32.totalorder %s2018_s16, 16  }
 0x2eb   : > { %s2024_s2 = scalar_lea.vmem [#allocation2], %s2320_s19 }
 0x2ec   : > { %v2025_v8 = vld [vmem:[%s2024_s2] sm:$0xff]  ;;  %v2026_v39 = vld [vmem:[%s2024_s2 + $0x8] sm:$0xff] }
 0x2ed   : > { %v2031_v20 = vmul.f32 %v2030_v37, %v2025_v8  ;;  %v2032_v15 = vmul.f32 %v2030_v37, %v2026_v39 }
 0x2ef   : > { %v2037_v45 = vadd.f32 %v2036_v56, %v2031_v20  ;;  %v2038_v5 = vadd.f32 %v2036_v56, %v2032_v15  ;;  %2017 = sbr.rel (!%p2015_p2) target bundleno = 744 (0x2e8), region = 83 }
 0x2f1   : > { %v2039_v19 = vmax.f32 %v2037_v45, 0.0  ;;  %v2040_v21 = vmax.f32 %v2038_v5, 0.0 }
 0x2f3   : > { %v2321_v58 = vpack.c.bf16 %v2040_v21, %v2039_v19 }
 0x2f5   : > { %2051 = vst [vmem:[%s2050_s21] sm:$0xff] %v2321_v58 }

// kernel: generator_forward.9
= control target key start
LH: loop header
LB: loop body
LE: loop exit
PB: predicated region body
PF: predicated region fallthrough
CT: control target
= control target key end

     0   :  { %s1677_s9 = smov 0   ;;  %s1910_s0 = inlined_call_operand.vmem [shape: bf16[512,640], index: 0, kind: input, shape index: {}]   ;;  %s1911_s1 = inlined_call_operand.vmem [shape: bf16[640,128], index: 1, kind: input, shape index: {}]   ;;  %s1912_s2 = inlined_call_operand.vmem [shape: f32[512,128], index: 2, kind: output, shape index: {}]  }
   0x1 LB: > { %s1186_s10 = sadd.s32 4294967295, %s1660_s9   ;;  %p1190_p0 = scmp.ge.s32.totalorder %s1660_s9, 1  ;;  %s1660_s9 = sphi %s1677_s9, %s12_s9  }
   0x2   : > { %p114_p1 = scmp.lt.s32.totalorder %s1660_s9, 5 }
   0x4   : > { %p115_p2 = pnand %p1190_p0, %p114_p1 }
   0x5   : > { %v1494_v0 = vld [vmem:[%s1911_s1 + $0x40] sm:$0xff] (!%p115_p2)   ;;  %v1498_v4 = vld [vmem:[%s1911_s1 + $0x48] sm:$0xff] (!%p115_p2)   ;;  %v1502_v8 = vld [vmem:[%s1911_s1 + $0x50] sm:$0xff] (!%p115_p2)   ;;  %s1191_s15 = sshll.u32 (!%p115_p2), %s1186_s10, 4 }
   0x6   : > { %118 = sbr.rel (%p115_p2) target bundleno = 372 (0x174), region = 28  ;;  %v1495_v1 = vld [vmem:[%s1911_s1 + $0xc0] sm:$0xff] (!%p115_p2)   ;;  %1293 = vmatprep.subr.bf16.mxu0 (!%p115_p2), %v1494_v0  ;;  %v1499_v5 = vld [vmem:[%s1911_s1 + $0xc8] sm:$0xff] (!%p115_p2)   ;;  %v1503_v9 = vld [vmem:[%s1911_s1 + $0xd0] sm:$0xff] (!%p115_p2)   ;;  %p138_p3 = scmp.lt.s32.totalorder (!%p115_p2), %s1191_s15, 63 }
   0x7   : > { %v1496_v2 = vld [vmem:[%s1911_s1] sm:$0xff] (!%p115_p2)   ;;  %1357 = vmatprep.subr.bf16.mxu1 (!%p115_p2), %v1495_v1  ;;  %v1500_v6 = vld [vmem:[%s1911_s1 + $0x8] sm:$0xff] (!%p115_p2)   ;;  %v1504_v10 = vld [vmem:[%s1911_s1 + $0x10] sm:$0xff] (!%p115_p2)  }
   0x8   : > { %v1497_v3 = vld [vmem:[%s1911_s1 + $0x80] sm:$0xff] (!%p115_p2)   ;;  %1294 = vmatpush3.bf16.msra.mxu0 (!%p115_p2), %v1496_v2  ;;  %v1501_v7 = vld [vmem:[%s1911_s1 + $0x88] sm:$0xff] (!%p115_p2)   ;;  %v1505_v11 = vld [vmem:[%s1911_s1 + $0x90] sm:$0xff] (!%p115_p2)  }
   0x9   : > { %1358 = vmatpush3.bf16.msra.mxu1 (!%p115_p2), %v1497_v3  ;;  %1295 = vmatprep.subr.bf16.mxu0 (!%p115_p2), %v1498_v4  ;;  %v1506_v12 = vld [vmem:[%s1911_s1 + $0x58] sm:$0xff] (!%p115_p2)   ;;  %v1510_v16 = vld [vmem:[%s1911_s1 + $0x60] sm:$0xff] (!%p115_p2)   ;;  %v1514_v20 = vld [vmem:[%s1911_s1 + $0x68] sm:$0xff] (!%p115_p2)  }
   0xa   : > { %1359 = vmatprep.subr.bf16.mxu1 (!%p115_p2), %v1499_v5  ;;  %v1507_v13 = vld [vmem:[%s1911_s1 + $0xd8] sm:$0xff] (!%p115_p2)   ;;  %v1511_v17 = vld [vmem:[%s1911_s1 + $0xe0] sm:$0xff] (!%p115_p2)   ;;  %v1515_v21 = vld [vmem:[%s1911_s1 + $0xe8] sm:$0xff] (!%p115_p2)  }
   0xb   : > { %v1508_v14 = vld [vmem:[%s1911_s1 + $0x18] sm:$0xff] (!%p115_p2)   ;;  %v1512_v18 = vld [vmem:[%s1911_s1 + $0x20] sm:$0xff] (!%p115_p2)   ;;  %v1516_v22 = vld [vmem:[%s1911_s1 + $0x28] sm:$0xff] (!%p115_p2)  }
   0xc   : > { %1296 = vmatpush3.bf16.msra.mxu0 (!%p115_p2), %v1500_v6  ;;  %v1509_v15 = vld [vmem:[%s1911_s1 + $0x98] sm:$0xff] (!%p115_p2)   ;;  %v1513_v19 = vld [vmem:[%s1911_s1 + $0xa0] sm:$0xff] (!%p115_p2)   ;;  %v1517_v23 = vld [vmem:[%s1911_s1 + $0xa8] sm:$0xff] (!%p115_p2)  }
   0xd   : > { %1360 = vmatpush3.bf16.msra.mxu1 %v1501_v7  ;;  %1297 = vmatprep.subr.bf16.mxu0 %v1502_v8  ;;  %s1914_s15 = smov (!%p138_p3, %s1191_s15), 63  ;;  %v1518_v24 = vld [vmem:[%s1911_s1 + $0x70] sm:$0xff]   ;;  %v1522_v28 = vld [vmem:[%s1911_s1 + $0x78] sm:$0xff]   ;;  %v1532_v36 = vld [vmem:[%s1911_s1 + $0x100] sm:$0xff]  }
   0xe   : > { %1361 = vmatprep.subr.bf16.mxu1 %v1503_v9  ;;  %v1519_v25 = vld [vmem:[%s1911_s1 + $0xf0] sm:$0xff]   ;;  %s1485_s11 = smul.u32 20, %s1914_s15  ;;  %v1523_v29 = vld [vmem:[%s1911_s1 + $0xf8] sm:$0xff]   ;;  %v1539_v39 = vld [vmem:[%s1911_s1 + $0x108] sm:$0xff]   ;;  %s1194_s18 = sshll.u32 %s1914_s15, 3 }
   0xf   : > { %v1520_v26 = vld [vmem:[%s1911_s1 + $0x30] sm:$0xff]   ;;  %v1524_v30 = vld [vmem:[%s1911_s1 + $0x38] sm:$0xff]   ;;  %v1560_v50 = vld [vmem:[%s1911_s1 + $0x120] sm:$0xff]   ;;  %s1889_s21 = scalar_lea.vmem %s1912_s2, %s1194_s18 }
  0x10   : > { %1298 = vmatpush3.bf16.msra.mxu0 %v1504_v10  ;;  %v1521_v27 = vld [vmem:[%s1911_s1 + $0xb0] sm:$0xff]   ;;  %s1783_s23 = scalar_lea.vmem %s1910_s0, %s1485_s11  ;;  %v1525_v31 = vld [vmem:[%s1911_s1 + $0xb8] sm:$0xff]   ;;  %v1567_v51 = vld [vmem:[%s1911_s1 + $0x128] sm:$0xff]  }
  0x11   : > { %1362 = vmatpush3.bf16.msra.mxu1 %v1505_v11  ;;  %1299 = vmatprep.subr.bf16.mxu0 %v1506_v12  ;;  %v1526_v32 = vld [vmem:[%s1783_s23] ss:$20 sps:$4 sm:$0xff]   ;;  %v1528_v33 = vld [vmem:[%s1783_s23 + $0x4] ss:$20 sps:$4 sm:$0xff]   ;;  %v1529_v34 = vld [vmem:[%s1783_s23 + $0x8] ss:$20 sps:$4 sm:$0xff]  }
  0x12   : > { %1363 = vmatprep.subr.bf16.mxu1 %v1507_v13  ;;  %v1531_v35 = vld [vmem:[%s1783_s23 + $0xc] ss:$20 sps:$4 sm:$0xff]   ;;  %759 = vmatprep.mubr.bf16.mxu0 %v1528_v33  ;;  %v1535_v38 = vld [vmem:[%s1783_s23 + $0x34] ss:$20 sps:$4 sm:$0xff]   ;;  %v1538_v41 = vld [vmem:[%s1783_s23 + $0x30] ss:$20 sps:$4 sm:$0xff]  }
  0x13   : > { %856 = vmatprep.mubr.bf16.mxu1 %v1531_v35  ;;  %v1533_v37 = vld [vmem:[%s1783_s23 + $0x2c] ss:$20 sps:$4 sm:$0xff]   ;;  %v1537_v40 = vld [vmem:[%s1783_s23 + $0x28] ss:$20 sps:$4 sm:$0xff]   ;;  %v1546_v44 = vld [vmem:[%s1911_s1 + $0x110] sm:$0xff]  }
  0x14   : > { %1300 = vmatpush3.bf16.msra.mxu0 %v1508_v14  ;;  %v1540_v42 = vld [vmem:[%s1783_s23 + $0x54] ss:$20 sps:$4 sm:$0xff]   ;;  %v1542_v43 = vld [vmem:[%s1783_s23 + $0x5c] ss:$20 sps:$4 sm:$0xff]   ;;  %v1545_v47 = vld [vmem:[%s1783_s23 + $0x58] ss:$20 sps:$4 sm:$0xff]  }
  0x15   : > { %1364 = vmatpush3.bf16.msra.mxu1 %v1509_v15  ;;  %1301 = vmatprep.subr.bf16.mxu0 %v1510_v16  ;;  %v1553_v45 = vld [vmem:[%s1911_s1 + $0x118] sm:$0xff]   ;;  %v1544_v46 = vld [vmem:[%s1783_s23 + $0x50] ss:$20 sps:$4 sm:$0xff]   ;;  %v1552_v53 = vld [vmem:[%s1783_s23 + $0x80] ss:$20 sps:$4 sm:$0xff]  }
  0x16   : > { %1365 = vmatprep.subr.bf16.mxu1 %v1511_v17  ;;  %v1547_v48 = vld [vmem:[%s1783_s23 + $0x7c] ss:$20 sps:$4 sm:$0xff]   ;;  %v1549_v49 = vld [vmem:[%s1783_s23 + $0x84] ss:$20 sps:$4 sm:$0xff]   ;;  %v1556_v56 = vld [vmem:[%s1783_s23 + $0xac] ss:$20 sps:$4 sm:$0xff]  }
  0x17   : > { %v1551_v52 = vld [vmem:[%s1783_s23 + $0x78] ss:$20 sps:$4 sm:$0xff]   ;;  %v1574_v55 = vld [vmem:[%s1911_s1 + $0x130] sm:$0xff]   ;;  %v1559_v59 = vld [vmem:[%s1783_s23 + $0xa8] ss:$20 sps:$4 sm:$0xff]  }
  0x18   : > { %1302 = vmatpush3.bf16.msra.mxu0 %v1512_v18  ;;  %v1554_v54 = vld [vmem:[%s1783_s23 + $0xa4] ss:$20 sps:$4 sm:$0xff]   ;;  %v1558_v58 = vld [vmem:[%s1783_s23 + $0xa0] ss:$20 sps:$4 sm:$0xff]   ;;  %v1565_v62 = vld [vmem:[%s1783_s23 + $0xc8] ss:$20 sps:$4 sm:$0xff]  }
  0x19   : > { %1366 = vmatpush3.bf16.msra.mxu1 %v1513_v19  ;;  %1303 = vmatprep.subr.bf16.mxu0 %v1514_v20  ;;  %v1581_v57 = vld [vmem:[%s1911_s1 + $0x138] sm:$0xff]   ;;  %v1561_v60 = vld [vmem:[%s1783_s23 + $0xcc] ss:$20 sps:$4 sm:$0xff]   ;;  %v1563_v61 = vld [vmem:[%s1783_s23 + $0xd4] ss:$20 sps:$4 sm:$0xff]  }
  0x1a   : > { %1367 = vmatprep.subr.bf16.mxu1 %v1515_v21  ;;  %v1566_v63 = vld [vmem:[%s1783_s23 + $0xd0] ss:$20 sps:$4 sm:$0xff]   ;;  %v1568_v0 = vld [vmem:[%s1783_s23 + $0xf4] ss:$20 sps:$4 sm:$0xff]   ;;  %v1573_v3 = vld [vmem:[%s1783_s23 + $0xf8] ss:$20 sps:$4 sm:$0xff]  }
  0x1b   : > { %v1570_v1 = vld [vmem:[%s1783_s23 + $0xfc] ss:$20 sps:$4 sm:$0xff]   ;;  %v1577_v5 = vld [vmem:[%s1783_s23 + $0x124] ss:$20 sps:$4 sm:$0xff]   ;;  %v1580_v7 = vld [vmem:[%s1783_s23 + $0x120] ss:$20 sps:$4 sm:$0xff]  }
  0x1c   : > { %1304 = vmatpush3.bf16.msra.mxu0 %v1516_v22  ;;  %v1572_v2 = vld [vmem:[%s1783_s23 + $0xf0] ss:$20 sps:$4 sm:$0xff]   ;;  %v1579_v6 = vld [vmem:[%s1783_s23 + $0x118] ss:$20 sps:$4 sm:$0xff]   ;;  %v1586_v12 = vld [vmem:[%s1783_s23 + $0x60] ss:$20 sps:$4 sm:$0xff]  }
  0x1d   : > { %1368 = vmatpush3.bf16.msra.mxu1 %v1517_v23  ;;  %1305 = vmatprep.subr.bf16.mxu0 %v1518_v24  ;;  %v1575_v4 = vld [vmem:[%s1783_s23 + $0x11c] ss:$20 sps:$4 sm:$0xff]   ;;  %v1584_v10 = vld [vmem:[%s1783_s23 + $0x38] ss:$20 sps:$4 sm:$0xff]   ;;  %v1587_v13 = vld [vmem:[%s1783_s23 + $0x100] ss:$20 sps:$4 sm:$0xff]  }
  0x1e   : > { %1369 = vmatprep.subr.bf16.mxu1 %v1519_v25  ;;  %v1582_v8 = vld [vmem:[%s1783_s23 + $0x10] ss:$20 sps:$4 sm:$0xff]   ;;  %v1585_v11 = vld [vmem:[%s1783_s23 + $0xd8] ss:$20 sps:$4 sm:$0xff]   ;;  %v1588_v14 = vld [vmem:[%s1783_s23 + $0x88] ss:$20 sps:$4 sm:$0xff]  }
  0x1f   : > { %v1583_v9 = vld [vmem:[%s1783_s23 + $0xb0] ss:$20 sps:$4 sm:$0xff]   ;;  %v1589_v15 = vld [vmem:[%s1783_s23 + $0x128] ss:$20 sps:$4 sm:$0xff]  }
  0x20   : > { %1306 = vmatpush3.bf16.msra.mxu0 %v1520_v26 }
  0x21   : > { %1370 = vmatpush3.bf16.msra.mxu1 %v1521_v27  ;;  %1307 = vmatprep.subr.bf16.mxu0 %v1522_v28 }
  0x22   : > { %1371 = vmatprep.subr.bf16.mxu1 %v1523_v29 }
  0x24   : > { %1308 = vmatpush3.bf16.msra.mxu0 %v1524_v30 }
  0x25   : > { %1372 = vmatpush3.bf16.msra.mxu1 %v1525_v31  ;;  %1437 = vmatprep.subr.bf16.mxu0 %v1532_v36 }
  0x26   : > { %1469 = vmatprep.subr.bf16.mxu1 %v1532_v36 }
  0x27   : > { %760 = vmatmul.mubr.bf16.vlgmr.msra.gmra.mrb[0].mxu0 %v1526_v32 }
  0x28   : > { %857 = vmatmul.mubr.bf16.vlgmr.msra.gmra.mrb[0].mxu1 %v1529_v34  ;;  %1438 = vmatpush3.bf16.msra.mxu0 %v1532_v36 }
  0x29   : > { %1477 = vmatpush3.bf16.msra.mxu1 %v1532_v36  ;;  %767 = vmatprep.mubr.bf16.mxu0 %v1533_v37 }
  0x2a   : > { %864 = vmatprep.mubr.bf16.mxu1 %v1535_v38  ;;  %1439 = vmatprep.subr.bf16.mxu0 %v1539_v39 }
  0x2b   : > { %1470 = vmatprep.subr.bf16.mxu1 %v1539_v39 }
  0x2c   : > { %1440 = vmatpush3.bf16.msra.mxu0 %v1539_v39 }
  0x2d   : > { %1478 = vmatpush3.bf16.msra.mxu1 %v1539_v39  ;;  %1441 = vmatprep.subr.bf16.mxu0 %v1546_v44 }
  0x2e   : > { %1471 = vmatprep.subr.bf16.mxu1 %v1546_v44 }
  0x2f   : > { %768 = vmatmul.mubr.bf16.gmra.mrb[4].mxu0 %v1537_v40 }
  0x30   : > { %865 = vmatmul.mubr.bf16.gmra.mrb[4].mxu1 %v1538_v41  ;;  %775 = vmatprep.mubr.bf16.mxu0 %v1540_v42 }
  0x31   : > { %872 = vmatprep.mubr.bf16.mxu1 %v1542_v43  ;;  %1442 = vmatpush3.bf16.msra.mxu0 %v1546_v44 }
  0x32   : > { %1479 = vmatpush3.bf16.msra.mxu1 %v1546_v44  ;;  %1443 = vmatprep.subr.bf16.mxu0 %v1553_v45 }
  0x33   : > { %1472 = vmatprep.subr.bf16.mxu1 %v1553_v45 }
  0x35   : > { %1444 = vmatpush3.bf16.msra.mxu0 %v1553_v45 }
  0x36   : > { %1480 = vmatpush3.bf16.msra.mxu1 %v1553_v45  ;;  %1445 = vmatprep.subr.bf16.mxu0 %v1560_v50 }
  0x37   : > { %776 = vmatmul.mubr.bf16.gmra.mrb[8].mxu0 %v1544_v46  ;;  %1473 = vmatprep.subr.bf16.mxu1 %v1560_v50 }
  0x38   : > { %873 = vmatmul.mubr.bf16.gmra.mrb[8].mxu1 %v1545_v47  ;;  %783 = vmatprep.mubr.bf16.mxu0 %v1547_v48 }
  0x39   : > { %880 = vmatprep.mubr.bf16.mxu1 %v1549_v49  ;;  %1446 = vmatpush3.bf16.msra.mxu0 %v1560_v50 }
  0x3a   : > { %1481 = vmatpush3.bf16.msra.mxu1 %v1560_v50  ;;  %1447 = vmatprep.subr.bf16.mxu0 %v1567_v51 }
  0x3b   : > { %1474 = vmatprep.subr.bf16.mxu1 %v1567_v51 }
  0x3d   : > { %1448 = vmatpush3.bf16.msra.mxu0 %v1567_v51 }
  0x3e   : > { %1482 = vmatpush3.bf16.msra.mxu1 %v1567_v51  ;;  %1449 = vmatprep.subr.bf16.mxu0 %v1574_v55 }
  0x3f   : > { %784 = vmatmul.mubr.bf16.gmra.mrb[12].mxu0 %v1551_v52  ;;  %1475 = vmatprep.subr.bf16.mxu1 %v1574_v55 }
  0x40   : > { %881 = vmatmul.mubr.bf16.gmra.mrb[12].mxu1 %v1552_v53  ;;  %791 = vmatprep.mubr.bf16.mxu0 %v1554_v54 }
  0x41   : > { %888 = vmatprep.mubr.bf16.mxu1 %v1556_v56  ;;  %1450 = vmatpush3.bf16.msra.mxu0 %v1574_v55 }
  0x42   : > { %1483 = vmatpush3.bf16.msra.mxu1 %v1574_v55  ;;  %1451 = vmatprep.subr.bf16.mxu0 %v1581_v57 }
  0x43   : > { %1476 = vmatprep.subr.bf16.mxu1 %v1581_v57 }
  0x45   : > { %1452 = vmatpush3.bf16.msra.mxu0 %v1581_v57 }
  0x46   : > { %1484 = vmatpush3.bf16.msra.mxu1 %v1581_v57 }
  0x47   : > { %792 = vmatmul.mubr.bf16.gmra.mrb[16].mxu0 %v1558_v58 }
  0x48   : > { %889 = vmatmul.mubr.bf16.gmra.mrb[16].mxu1 %v1559_v59  ;;  %799 = vmatprep.mubr.bf16.mxu0 %v1561_v60 }
  0x49   : > { %896 = vmatprep.mubr.bf16.mxu1 %v1563_v61 }
  0x4f   : > { %800 = vmatmul.mubr.bf16.gmra.mrb[20].mxu0 %v1565_v62 }
  0x50   : > { %897 = vmatmul.mubr.bf16.gmra.mrb[20].mxu1 %v1566_v63  ;;  %807 = vmatprep.mubr.bf16.mxu0 %v1568_v0 }
  0x51   : > { %904 = vmatprep.mubr.bf16.mxu1 %v1570_v1 }
  0x57   : > { %808 = vmatmul.mubr.bf16.gmra.mrb[24].mxu0 %v1572_v2 }
  0x58   : > { %905 = vmatmul.mubr.bf16.gmra.mrb[24].mxu1 %v1573_v3  ;;  %815 = vmatprep.mubr.bf16.mxu0 %v1575_v4 }
  0x59   : > { %912 = vmatprep.mubr.bf16.mxu1 %v1577_v5 }
  0x5f   : > { %816 = vmatmul.mubr.bf16.gmra.mrb[28].mxu0 %v1579_v6 }
  0x60   : > { %913 = vmatmul.mubr.bf16.gmra.mrb[28].mxu1 %v1580_v7  ;;  %1453 = vmatprep.mubr.bf16.mxu0 %v1582_v8 }
  0x61   : > { %1461 = vmatprep.mubr.bf16.mxu1 %v1583_v9 }
  0x67   : > { %1454 = vmatmul.mubr.bf16.vlgmr.msra.gmra.mrb[32].mxu0 %v1584_v10 }
  0x68   : > { %1462 = vmatmul.mubr.bf16.vlgmr.msra.gmra.mrb[32].mxu1 %v1585_v11  ;;  %1457 = vmatprep.mubr.bf16.mxu0 %v1586_v12 }
  0x69   : > { %1465 = vmatprep.mubr.bf16.mxu1 %v1587_v13 }
  0x6f   : > { %1458 = vmatmul.mubr.bf16.gmra.mrb[36].mxu0 %v1588_v14 }
  0x70   : > { %1466 = vmatmul.mubr.bf16.gmra.mrb[36].mxu1 %v1589_v15 }
  0xfa   : > { %v1309_v16 = vpop.f32.mrb[0].mxu0 }
  0xfb   : > { %v1373_v17 = vpop.f32.mrb[0].mxu1  ;;  %v1310_v18 = vpop.f32.mrb[1].mxu0 }
  0xfc   : > { %v1311_v19 = vadd.f32 %v1310_v18, %v1309_v16  ;;  %v1374_v20 = vpop.f32.mrb[1].mxu1  ;;  %v1312_v21 = vpop.f32.mrb[2].mxu0 }
  0xfd   : > { %v1375_v22 = vadd.f32 %v1374_v20, %v1373_v17  ;;  %v1376_v23 = vpop.f32.mrb[2].mxu1  ;;  %v1313_v24 = vpop.f32.mrb[3].mxu0 }
  0xfe   : > { %v1314_v25 = vadd.f32 %v1313_v24, %v1312_v21  ;;  %v1377_v26 = vpop.f32.mrb[3].mxu1 }
  0xff   : > { %v1378_v27 = vadd.f32 %v1377_v26, %v1376_v23  ;;  %v1855_v28 = vadd.f32 %v1375_v22, %v1311_v19 }
 0x101   : > { %v1857_v29 = vadd.f32 %v1378_v27, %v1314_v25 }
 0x102   : > { %v1315_v30 = vpop.f32.mrb[4].mxu0 }
 0x103   : > { %v1379_v31 = vpop.f32.mrb[4].mxu1  ;;  %v1316_v32 = vpop.f32.mrb[5].mxu0 }
 0x104   : > { %v1317_v33 = vadd.f32 %v1316_v32, %v1315_v30  ;;  %v1380_v34 = vpop.f32.mrb[5].mxu1  ;;  %v1318_v35 = vpop.f32.mrb[6].mxu0 }
 0x105   : > { %v1381_v36 = vadd.f32 %v1380_v34, %v1379_v31  ;;  %v1382_v37 = vpop.f32.mrb[6].mxu1  ;;  %v1319_v38 = vpop.f32.mrb[7].mxu0 }
 0x106   : > { %v1320_v39 = vadd.f32 %v1319_v38, %v1318_v35  ;;  %v1383_v40 = vpop.f32.mrb[7].mxu1 }
 0x107   : > { %v1384_v41 = vadd.f32 %v1383_v40, %v1382_v37  ;;  %v1859_v42 = vadd.f32 %v1381_v36, %v1317_v33 }
 0x109   : > { %v1861_v43 = vadd.f32 %v1384_v41, %v1320_v39 }
 0x10a   : > { %v1321_v44 = vpop.f32.mrb[8].mxu0 }
 0x10b   : > { %v1385_v45 = vpop.f32.mrb[8].mxu1  ;;  %v1322_v46 = vpop.f32.mrb[9].mxu0 }
 0x10c   : > { %v1323_v47 = vadd.f32 %v1322_v46, %v1321_v44  ;;  %v1386_v48 = vpop.f32.mrb[9].mxu1  ;;  %v1324_v49 = vpop.f32.mrb[10].mxu0 }
 0x10d   : > { %v1387_v50 = vadd.f32 %v1386_v48, %v1385_v45  ;;  %v1388_v51 = vpop.f32.mrb[10].mxu1  ;;  %v1325_v52 = vpop.f32.mrb[11].mxu0 }
 0x10e   : > { %v1326_v53 = vadd.f32 %v1325_v52, %v1324_v49  ;;  %v1389_v54 = vpop.f32.mrb[11].mxu1 }
 0x10f   : > { %v1390_v55 = vadd.f32 %v1389_v54, %v1388_v51  ;;  %v1863_v56 = vadd.f32 %v1387_v50, %v1323_v47 }
 0x111   : > { %v1865_v57 = vadd.f32 %v1390_v55, %v1326_v53 }
 0x112   : > { %v1327_v58 = vpop.f32.mrb[12].mxu0 }
 0x113   : > { %v1391_v59 = vpop.f32.mrb[12].mxu1  ;;  %v1328_v60 = vpop.f32.mrb[13].mxu0 }
 0x114   : > { %v1329_v61 = vadd.f32 %v1328_v60, %v1327_v58  ;;  %v1392_v62 = vpop.f32.mrb[13].mxu1  ;;  %v1330_v63 = vpop.f32.mrb[14].mxu0 }
 0x115   : > { %v1393_v0 = vadd.f32 %v1392_v62, %v1391_v59  ;;  %v1394_v1 = vpop.f32.mrb[14].mxu1  ;;  %v1331_v2 = vpop.f32.mrb[15].mxu0 }
 0x116   : > { %v1332_v3 = vadd.f32 %v1331_v2, %v1330_v63  ;;  %v1395_v4 = vpop.f32.mrb[15].mxu1 }
 0x117   : > { %v1396_v5 = vadd.f32 %v1395_v4, %v1394_v1  ;;  %v1867_v6 = vadd.f32 %v1393_v0, %v1329_v61 }
 0x119   : > { %v1869_v7 = vadd.f32 %v1396_v5, %v1332_v3 }
 0x11a   : > { %v1333_v8 = vpop.f32.mrb[16].mxu0 }
 0x11b   : > { %v1397_v9 = vpop.f32.mrb[16].mxu1  ;;  %v1334_v10 = vpop.f32.mrb[17].mxu0 }
 0x11c   : > { %v1335_v11 = vadd.f32 %v1334_v10, %v1333_v8  ;;  %v1398_v12 = vpop.f32.mrb[17].mxu1  ;;  %v1336_v13 = vpop.f32.mrb[18].mxu0 }
 0x11d   : > { %v1399_v14 = vadd.f32 %v1398_v12, %v1397_v9  ;;  %v1400_v15 = vpop.f32.mrb[18].mxu1  ;;  %v1337_v16 = vpop.f32.mrb[19].mxu0 }
 0x11e   : > { %v1338_v17 = vadd.f32 %v1337_v16, %v1336_v13  ;;  %v1401_v18 = vpop.f32.mrb[19].mxu1 }
 0x11f   : > { %v1402_v19 = vadd.f32 %v1401_v18, %v1400_v15  ;;  %v891_v20 = vadd.f32 %v1399_v14, %v1335_v11 }
 0x121   : > { %v1871_v21 = vadd.f32 %v1402_v19, %v1338_v17 }
 0x122   : > { %v1339_v22 = vpop.f32.mrb[20].mxu0 }
 0x123   : > { %v1403_v23 = vpop.f32.mrb[20].mxu1  ;;  %v1340_v24 = vpop.f32.mrb[21].mxu0 }
 0x124   : > { %v1341_v25 = vadd.f32 %v1340_v24, %v1339_v22  ;;  %v1404_v26 = vpop.f32.mrb[21].mxu1  ;;  %v1342_v27 = vpop.f32.mrb[22].mxu0 }
 0x125   : > { %v1405_v30 = vadd.f32 %v1404_v26, %v1403_v23  ;;  %v1406_v31 = vpop.f32.mrb[22].mxu1  ;;  %v1343_v32 = vpop.f32.mrb[23].mxu0 }
 0x126   : > { %v1344_v33 = vadd.f32 %v1343_v32, %v1342_v27  ;;  %v1407_v34 = vpop.f32.mrb[23].mxu1 }
 0x127   : > { %v1408_v35 = vadd.f32 %v1407_v34, %v1406_v31  ;;  %v899_v36 = vadd.f32 %v1405_v30, %v1341_v25 }
 0x129   : > { %v902_v37 = vadd.f32 %v1408_v35, %v1344_v33 }
 0x12a   : > { %v1345_v38 = vpop.f32.mrb[24].mxu0 }
 0x12b   : > { %v1409_v39 = vpop.f32.mrb[24].mxu1  ;;  %v1346_v40 = vpop.f32.mrb[25].mxu0 }
 0x12c   : > { %v1347_v41 = vadd.f32 %v1346_v40, %v1345_v38  ;;  %v1410_v44 = vpop.f32.mrb[25].mxu1  ;;  %v1348_v45 = vpop.f32.mrb[26].mxu0 }
 0x12d   : > { %v1411_v46 = vadd.f32 %v1410_v44, %v1409_v39  ;;  %v1412_v47 = vpop.f32.mrb[26].mxu1  ;;  %v1349_v48 = vpop.f32.mrb[27].mxu0 }
 0x12e   : > { %v1350_v49 = vadd.f32 %v1349_v48, %v1348_v45  ;;  %v1413_v50 = vpop.f32.mrb[27].mxu1 }
 0x12f   : > { %v1414_v51 = vadd.f32 %v1413_v50, %v1412_v47  ;;  %v907_v52 = vadd.f32 %v1411_v46, %v1347_v41 }
 0x131   : > { %v1873_v53 = vadd.f32 %v1414_v51, %v1350_v49 }
 0x132   : > { %v1351_v54 = vpop.f32.mrb[28].mxu0 }
 0x133   : > { %v1415_v55 = vpop.f32.mrb[28].mxu1  ;;  %v1352_v58 = vpop.f32.mrb[29].mxu0 }
 0x134   : > { %v1353_v59 = vadd.f32 %v1352_v58, %v1351_v54  ;;  %v1416_v60 = vpop.f32.mrb[29].mxu1  ;;  %v1354_v61 = vpop.f32.mrb[30].mxu0 }
 0x135   : > { %v1417_v62 = vadd.f32 %v1416_v60, %v1415_v55  ;;  %v1418_v63 = vpop.f32.mrb[30].mxu1  ;;  %v1355_v0 = vpop.f32.mrb[31].mxu0 }
 0x136   : > { %v1356_v1 = vadd.f32 %v1355_v0, %v1354_v61  ;;  %v1419_v2 = vpop.f32.mrb[31].mxu1 }
 0x137   : > { %v1420_v3 = vadd.f32 %v1419_v2, %v1418_v63  ;;  %v915_v4 = vadd.f32 %v1417_v62, %v1353_v59 }
 0x139   : > { %v918_v5 = vadd.f32 %v1420_v3, %v1356_v1 }
 0x13a   : > { %v1455_v8 = vpop.f32.mrb[32].mxu0 }
 0x13b   : > { %v964_v9 = vadd.f32 %v1455_v8, %v1859_v42  ;;  %v1463_v10 = vpop.f32.mrb[32].mxu1  ;;  %v955_v11 = vpop.f32.mrb[33].mxu0 }
 0x13c   : > { %v996_v12 = vadd.f32 %v1463_v10, %v899_v36  ;;  %v956_v13 = vadd.f32 %v955_v11, %v1855_v28  ;;  %v987_v14 = vpop.f32.mrb[33].mxu1  ;;  %v1456_v15 = vpop.f32.mrb[34].mxu0 }
 0x13d   : > { %v1277_v16 = vmul.f32 -1.442695, %v964_v9  ;;  %v988_v17 = vadd.f32 %v987_v14, %v891_v20  ;;  %v967_v18 = vadd.f32 %v1456_v15, %v1861_v43  ;;  %v1464_v19 = vpop.f32.mrb[34].mxu1  ;;  %v958_v22 = vpop.f32.mrb[35].mxu0 }
 0x13e   : > { %v1285_v23 = vmul.f32 -1.442695, %v996_v12  ;;  %v1275_v24 = vmul.f32 -1.442695, %v956_v13  ;;  %v999_v25 = vadd.f32 %v1464_v19, %v902_v37  ;;  %v959_v26 = vadd.f32 %v958_v22, %v1857_v29  ;;  %v990_v27 = vpop.f32.mrb[35].mxu1 }
 0x13f   : > { %1590 = vpow2.f32 %v1277_v16  ;;  %v1283_v42 = vmul.f32 -1.442695, %v988_v17  ;;  %v1278_v30 = vmul.f32 -1.442695, %v967_v18  ;;  %v991_v31 = vadd.f32 %v990_v27, %v1871_v21 }
 0x140   : > { %1592 = vpow2.f32 %v1285_v23  ;;  %v1286_v28 = vmul.f32 -1.442695, %v999_v25  ;;  %v1276_v32 = vmul.f32 -1.442695, %v959_v26 }
 0x141   : > { %1594 = vpow2.f32 %v1275_v24  ;;  %v1284_v20 = vmul.f32 -1.442695, %v991_v31 }
 0x142   : > { %1596 = vpow2.f32 %v1283_v42  ;;  %v1459_v43 = vpop.f32.mrb[36].mxu0 }
 0x143   : > { %1598 = vpow2.f32 %v1278_v30  ;;  %v980_v33 = vadd.f32 %v1459_v43, %v1867_v6  ;;  %v1467_v34 = vpop.f32.mrb[36].mxu1  ;;  %v971_v35 = vpop.f32.mrb[37].mxu0 }
 0x144   : > { %1600 = vpow2.f32 %v1286_v28  ;;  %v1012_v29 = vadd.f32 %v1467_v34, %v915_v4  ;;  %v972_v36 = vadd.f32 %v971_v35, %v1863_v56  ;;  %v1003_v37 = vpop.f32.mrb[37].mxu1  ;;  %v1460_v38 = vpop.f32.mrb[38].mxu0 }
 0x145   : > { %1602 = vpow2.f32 %v1276_v32  ;;  %v1281_v21 = vmul.f32 -1.442695, %v980_v33  ;;  %v1004_v39 = vadd.f32 %v1003_v37, %v907_v52  ;;  %v983_v40 = vadd.f32 %v1460_v38, %v1869_v7  ;;  %v1468_v41 = vpop.f32.mrb[38].mxu1  ;;  %v974_v44 = vpop.f32.mrb[39].mxu0 }
 0x146   : > { %1604 = vpow2.f32 %v1284_v20  ;;  %v1289_v45 = vmul.f32 -1.442695, %v1012_v29  ;;  %v1279_v46 = vmul.f32 -1.442695, %v972_v36  ;;  %v1015_v47 = vadd.f32 %v1468_v41, %v918_v5  ;;  %v1006_v6 = vpop.f32.mrb[39].mxu1 }
 0x147   : > { %1606 = vpow2.f32 %v1281_v21  ;;  %v1287_v48 = vmul.f32 -1.442695, %v1004_v39  ;;  %v1282_v49 = vmul.f32 -1.442695, %v983_v40  ;;  %v975_v50 = vadd.f32 %v974_v44, %v1865_v57 }
 0x148   : > { %1608 = vpow2.f32 %v1289_v45  ;;  %v1007_v56 = vadd.f32 %v1006_v6, %v1873_v53  ;;  %v1290_v14 = vmul.f32 -1.442695, %v1015_v47 }
 0x149   : > { %v1591_v51 = vpop.eup %1590  ;;  %1610 = vpow2.f32 %v1279_v46  ;;  %v1280_v17 = vmul.f32 -1.442695, %v975_v50 }
 0x14a   : > { %v1593_v52 = vpop.eup %1592  ;;  %v1068_v54 = vadd.f32 1.0, %v1591_v51  ;;  %1612 = vpow2.f32 %v1287_v48  ;;  %v1288_v19 = vmul.f32 -1.442695, %v1007_v56 }
 0x14b   : > { %v1595_v7 = vpop.eup %1594  ;;  %v1076_v55 = vadd.f32 1.0, %v1593_v52  ;;  %1614 = vpow2.f32 %v1282_v49 }
 0x14c   : > { %v1597_v58 = vpop.eup %1596  ;;  %1616 = vrcp.f32 %v1068_v54  ;;  %v1066_v59 = vadd.f32 1.0, %v1595_v7 }
 0x14d   : > { %v1599_v60 = vpop.eup %1598  ;;  %1618 = vrcp.f32 %v1076_v55  ;;  %v1074_v61 = vadd.f32 1.0, %v1597_v58 }
 0x14e   : > { %v1601_v62 = vpop.eup %1600  ;;  %1620 = vrcp.f32 %v1066_v59  ;;  %v1069_v57 = vadd.f32 1.0, %v1599_v60 }
 0x14f   : > { %v1603_v63 = vpop.eup %1602  ;;  %1622 = vrcp.f32 %v1074_v61  ;;  %v1077_v53 = vadd.f32 1.0, %v1601_v62 }
 0x150   : > { %v1605_v0 = vpop.eup %1604  ;;  %1624 = vrcp.f32 %v1069_v57  ;;  %v1067_v1 = vadd.f32 1.0, %v1603_v63 }
 0x151   : > { %v1607_v2 = vpop.eup %1606  ;;  %1626 = vrcp.f32 %v1077_v53  ;;  %v1075_v3 = vadd.f32 1.0, %v1605_v0 }
 0x152   : > { %v1609_v4 = vpop.eup %1608  ;;  %1628 = vrcp.f32 %v1067_v1  ;;  %v1072_v5 = vadd.f32 1.0, %v1607_v2 }
 0x153   : > { %v1611_v8 = vpop.eup %1610  ;;  %1630 = vrcp.f32 %v1075_v3  ;;  %v1080_v9 = vadd.f32 1.0, %v1609_v4 }
 0x154   : > { %v1613_v10 = vpop.eup %1612  ;;  %1632 = vrcp.f32 %v1072_v5  ;;  %v1070_v11 = vadd.f32 1.0, %v1611_v8 }
 0x155   : > { %v1615_v12 = vpop.eup %1614  ;;  %1634 = vrcp.f32 %v1080_v9  ;;  %v1078_v13 = vadd.f32 1.0, %v1613_v10 }
 0x156   : > { %v1617_v15 = vpop.eup %1616  ;;  %1636 = vrcp.f32 %v1070_v11  ;;  %v1073_v16 = vadd.f32 1.0, %v1615_v12 }
 0x157   : > { %v1619_v18 = vpop.eup %1618  ;;  %1116 = vst [vmem:[%s1889_s21 + $0x10] sm:$0xff] %v1617_v15  ;;  %1638 = vrcp.f32 %v1078_v13 }
 0x158   : > { %v1621_v22 = vpop.eup %1620  ;;  %1124 = vst [vmem:[%s1889_s21 + $0x50] sm:$0xff] %v1619_v18  ;;  %1640 = vrcp.f32 %v1073_v16 }
 0x159   : > { %v1623_v23 = vpop.eup %1622  ;;  %1114 = vst [vmem:[%s1889_s21] sm:$0xff] %v1621_v22  ;;  %1642 = vpow2.f32 %v1290_v14 }
 0x15a   : > { %v1625_v24 = vpop.eup %1624  ;;  %1122 = vst [vmem:[%s1889_s21 + $0x40] sm:$0xff] %v1623_v23  ;;  %1644 = vpow2.f32 %v1280_v17 }
 0x15b   : > { %v1627_v25 = vpop.eup %1626  ;;  %1117 = vst [vmem:[%s1889_s21 + $0x18] sm:$0xff] %v1625_v24  ;;  %1646 = vpow2.f32 %v1288_v19 }
 0x15c   : > { %v1629_v26 = vpop.eup %1628  ;;  %1125 = vst [vmem:[%s1889_s21 + $0x58] sm:$0xff] %v1627_v25 }
 0x15d   : > { %v1631_v27 = vpop.eup %1630  ;;  %1115 = vst [vmem:[%s1889_s21 + $0x8] sm:$0xff] %v1629_v26 }
 0x15e   : > { %v1633_v42 = vpop.eup %1632  ;;  %1123 = vst [vmem:[%s1889_s21 + $0x48] sm:$0xff] %v1631_v27 }
 0x15f   : > { %v1635_v30 = vpop.eup %1634  ;;  %1120 = vst [vmem:[%s1889_s21 + $0x30] sm:$0xff] %v1633_v42 }
 0x160   : > { %v1637_v31 = vpop.eup %1636  ;;  %1128 = vst [vmem:[%s1889_s21 + $0x70] sm:$0xff] %v1635_v30 }
 0x161   : > { %v1639_v28 = vpop.eup %1638  ;;  %1118 = vst [vmem:[%s1889_s21 + $0x20] sm:$0xff] %v1637_v31 }
 0x162   : > { %v1641_v32 = vpop.eup %1640  ;;  %1126 = vst [vmem:[%s1889_s21 + $0x60] sm:$0xff] %v1639_v28 }
 0x163   : > { %v1643_v20 = vpop.eup %1642  ;;  %1121 = vst [vmem:[%s1889_s21 + $0x38] sm:$0xff] %v1641_v32 }
 0x164   : > { %v1645_v43 = vpop.eup %1644  ;;  %v1081_v33 = vadd.f32 1.0, %v1643_v20 }
 0x165   : > { %v1647_v34 = vpop.eup %1646  ;;  %v1071_v35 = vadd.f32 1.0, %v1645_v43 }
 0x166   : > { %1648 = vrcp.f32 %v1081_v33  ;;  %v1079_v29 = vadd.f32 1.0, %v1647_v34 }
 0x167   : > { %1650 = vrcp.f32 %v1071_v35 }
 0x168   : > { %1652 = vrcp.f32 %v1079_v29 }
 0x170   : > { %v1649_v36 = vpop.eup %1648 }
 0x171   : > { %v1651_v37 = vpop.eup %1650  ;;  %1129 = vst [vmem:[%s1889_s21 + $0x78] sm:$0xff] %v1649_v36 }
 0x172   : > { %v1653_v38 = vpop.eup %1652  ;;  %1119 = vst [vmem:[%s1889_s21 + $0x28] sm:$0xff] %v1651_v37 }
 0x173   : > { %1127 = vst [vmem:[%s1889_s21 + $0x68] sm:$0xff] %v1653_v38 }
 0x174 PF: > { %s12_s9 = sadd.s32 1, %s1660_s9  }
 0x175   : > { %p9_p4 = scmp.ge.s32.totalorder %s12_s9, 6  }
 0x177   :  { %11 = sbr.rel (!%p9_p4) target bundleno = 1 (0x1), region = 58 }

</bundles_post_ra>
